<compile_context>
chip_gen: v5e
topology: v5e:2x2
jax: 0.10.0
libtpu: 0.0.40
codegen_flags: <defaults>
</compile_context>

<pallas_src>
import jax
import jax.numpy as jnp
from jax.experimental import pallas as pl
from jax.experimental.pallas import tpu as pltpu


def _leaky_relu(x, slope=0.2):
    # For 0 < slope < 1, max(x, slope*x) == leaky_relu(x, slope).
    return jnp.maximum(x, slope * x)


def discriminator_kernel(x_ref,
                         w1_ref, b1_ref,
                         w2_ref, b2_ref,
                         w3_ref, b3_ref,
                         w4_ref, b4_ref,
                         o_ref):
    # Layer 1: 784 -> 1024 (bf16 MXU inputs, f32 accumulation).
    h = jnp.dot(x_ref[...].astype(jnp.bfloat16), w1_ref[...],
                preferred_element_type=jnp.float32) + b1_ref[...]
    h = _leaky_relu(h)
    # Layer 2: 1024 -> 512.
    h = jnp.dot(h.astype(jnp.bfloat16), w2_ref[...],
                preferred_element_type=jnp.float32) + b2_ref[...]
    h = _leaky_relu(h)
    # Layer 3: 512 -> 256.
    h = jnp.dot(h.astype(jnp.bfloat16), w3_ref[...],
                preferred_element_type=jnp.float32) + b3_ref[...]
    h = _leaky_relu(h)
    # Head: 256 -> 1 + sigmoid.  VPU broadcast-multiply + lane (XLU) reduction;
    # w4 is a [1, 256] f32 row, so no degenerate N=1 MXU pass.
    logits = jnp.sum(h * w4_ref[...], axis=-1, keepdims=True) + b4_ref[...]
    o_ref[...] = jax.nn.sigmoid(logits).astype(o_ref.dtype)


def _round_up(n, m):
    return ((n + m - 1) // m) * m


def _select_batch_tile(batch):
    """Pick (b_tile, b_pad): >=2 tiles where possible (v7x megacore), tile sized
    to the actual batch (no wasted padded MXU rows), 512-row tiles at large B."""
    max_tile = 512 if batch >= 2048 else 256
    n_tiles = max(2, pl.cdiv(batch, max_tile))
    b_tile = max(8, _round_up(pl.cdiv(batch, n_tiles), 8))
    b_pad = _round_up(batch, b_tile)
    return b_tile, b_pad


def _build_call(b_pad, b_tile, single_buffer_weights):
    grid = (pl.cdiv(b_pad, b_tile),)

    def const_spec(shape):
        # Weights/biases never change across grid steps; single-buffer them
        # (saves ~3 MB VMEM) when the build supports pipeline_mode.
        if single_buffer_weights:
            return pl.BlockSpec(shape, lambda i: (0, 0),
                                pipeline_mode=pl.Buffered(1))
        return pl.BlockSpec(shape, lambda i: (0, 0))

    in_specs = [
        pl.BlockSpec((b_tile, 784), lambda i: (i, 0)),   # x tile (double-buffered)
        const_spec((784, 1024)), const_spec((1, 1024)),  # fc1
        const_spec((1024, 512)), const_spec((1, 512)),   # fc2
        const_spec((512, 256)), const_spec((1, 256)),    # fc3
        const_spec((1, 256)), const_spec((1, 1)),        # head
    ]
    out_spec = pl.BlockSpec((b_tile, 1), lambda i: (i, 0))

    return pl.pallas_call(
        discriminator_kernel,
        out_shape=jax.ShapeDtypeStruct((b_pad, 1), jnp.float32),
        grid=grid,
        in_specs=in_specs,
        out_specs=out_spec,
        compiler_params=pltpu.CompilerParams(
            dimension_semantics=("parallel",),   # batch tiles shard across v7x TCs
            vmem_limit_bytes=32 << 20,           # ~10-15 MB working set + headroom
        ),
    )


def discriminator_forward(x, params):
    """x: [B, 784] (f32 or bf16 accepted); params: f32 W[in,out], b[1,out]."""
    B = x.shape[0]
    b_tile, b_pad = _select_batch_tile(B)
    if b_pad != B:
        x = jnp.pad(x, ((0, b_pad - B), (0, 0)))   # zero rows, sliced off below

    # bf16 weight storage for the big matmuls; head weight as an f32 [1,256] row.
    args = (x,
            params["w1"].astype(jnp.bfloat16), params["b1"],
            params["w2"].astype(jnp.bfloat16), params["b2"],
            params["w3"].astype(jnp.bfloat16), params["b3"],
            params["w4"].reshape(1, 256).astype(jnp.float32), params["b4"])

    try:
        out = _build_call(b_pad, b_tile, single_buffer_weights=True)(*args)
    except Exception:
        # pipeline_mode=pl.Buffered(1) unsupported on this build: fall back to
        # default double buffering (extra ~3 MB VMEM, still within the limit).
        out = _build_call(b_pad, b_tile, single_buffer_weights=False)(*args)
    return out[:B]


def init_params(key):
    """PyTorch nn.Linear default init: W, b ~ U(-1/sqrt(fan_in), 1/sqrt(fan_in)).
    Weights stored as [in, out] (transposed vs torch's [out, in])."""
    dims = [(784, 1024), (1024, 512), (512, 256), (256, 1)]
    params = {}
    keys = jax.random.split(key, 2 * len(dims))
    for i, (fin, fout) in enumerate(dims):
        bound = 1.0 / jnp.sqrt(fin)
        params[f"w{i + 1}"] = jax.random.uniform(
            keys[2 * i], (fin, fout), jnp.float32, minval=-bound, maxval=bound)
        params[f"b{i + 1}"] = jax.random.uniform(
            keys[2 * i + 1], (1, fout), jnp.float32, minval=-bound, maxval=bound)
    return params


def reference_forward(x, p):
    """Pure-JAX reference matching the kernel's bf16-weight / f32-accumulate math."""
    def lin(h, w, b):
        hq = h.astype(jnp.bfloat16).astype(jnp.float32)
        wq = w.astype(jnp.bfloat16).astype(jnp.float32)
        return jnp.dot(hq, wq, precision=jax.lax.Precision.HIGHEST) + b

    h = _leaky_relu(lin(x, p["w1"], p["b1"]))
    h = _leaky_relu(lin(h, p["w2"], p["b2"]))
    h = _leaky_relu(lin(h, p["w3"], p["b3"]))
    logits = jnp.sum(h * p["w4"].reshape(1, 256), axis=-1, keepdims=True) + p["b4"]
    return jax.nn.sigmoid(logits)


if __name__ == "__main__":
    key = jax.random.PRNGKey(0)
    k_x, k_x2, k_p = jax.random.split(key, 3)
    params = init_params(k_p)

    # Small batch: single 8-row tile.
    B = 4
    x = jax.random.normal(k_x, (B, 784), dtype=jnp.float32)
    out = jax.block_until_ready(discriminator_forward(x, params))
    ref = reference_forward(x, params)
    assert out.shape == (B, 1)
    assert jnp.allclose(out, ref, atol=1e-4, rtol=1e-4), "mismatch (B=4) vs reference"

    # Ragged batch: exercises 2-tile grid (2 x 104 rows) + padding path.
    B2 = 200
    x2 = jax.random.normal(k_x2, (B2, 784), dtype=jnp.float32)
    out2 = jax.block_until_ready(discriminator_forward(x2, params))
    ref2 = reference_forward(x2, params)
    assert out2.shape == (B2, 1)
    assert jnp.allclose(out2, ref2, atol=1e-4, rtol=1e-4), "mismatch (B=200) vs reference"

    print("KERNEL_OK")
</pallas_src>

<mosaic_0001>
module attributes {stable_mosaic.version = 11 : i64} {
  func.func @discriminator_kernel(%arg0: i32, %arg1: memref<8x784xf32, #tpu.memory_space<vmem>>, %arg2: memref<784x1024xbf16, #tpu.memory_space<vmem>>, %arg3: memref<1x1024xf32, #tpu.memory_space<vmem>>, %arg4: memref<1024x512xbf16, #tpu.memory_space<vmem>>, %arg5: memref<1x512xf32, #tpu.memory_space<vmem>>, %arg6: memref<512x256xbf16, #tpu.memory_space<vmem>>, %arg7: memref<1x256xf32, #tpu.memory_space<vmem>>, %arg8: memref<1x256xf32, #tpu.memory_space<vmem>>, %arg9: memref<1x1xf32, #tpu.memory_space<vmem>>, %arg10: memref<8x1xf32, #tpu.memory_space<vmem>>) attributes {dimension_semantics = [#tpu.dimension_semantics<parallel>], iteration_bounds = array<i64: 1>, scalar_prefetch = 0 : i64, scratch_operands = 0 : i64, tpu.core_type = #tpu.core_type<tc>, window_params = [{transform_indices = @transform_0, window_bounds = array<i64: 8, 784>}, {pipeline_mode = #tpu.pipeline_mode<synchronous>, transform_indices = @transform_1, window_bounds = array<i64: 784, 1024>}, {pipeline_mode = #tpu.pipeline_mode<synchronous>, transform_indices = @transform_2, window_bounds = array<i64: 1, 1024>}, {pipeline_mode = #tpu.pipeline_mode<synchronous>, transform_indices = @transform_3, window_bounds = array<i64: 1024, 512>}, {pipeline_mode = #tpu.pipeline_mode<synchronous>, transform_indices = @transform_4, window_bounds = array<i64: 1, 512>}, {pipeline_mode = #tpu.pipeline_mode<synchronous>, transform_indices = @transform_5, window_bounds = array<i64: 512, 256>}, {pipeline_mode = #tpu.pipeline_mode<synchronous>, transform_indices = @transform_6, window_bounds = array<i64: 1, 256>}, {pipeline_mode = #tpu.pipeline_mode<synchronous>, transform_indices = @transform_7, window_bounds = array<i64: 1, 256>}, {pipeline_mode = #tpu.pipeline_mode<synchronous>, transform_indices = @transform_8, window_bounds = array<i64: 1, 1>}, {transform_indices = @transform_9, window_bounds = array<i64: 8, 1>}]} {
    %c0 = arith.constant 0 : index
    %c0_0 = arith.constant 0 : index
    %0 = vector.load %arg1[%c0, %c0_0] : memref<8x784xf32, #tpu.memory_space<vmem>>, vector<8x784xf32>
    %1 = arith.truncf %0 : vector<8x784xf32> to vector<8x784xbf16>
    %c0_1 = arith.constant 0 : index
    %c0_2 = arith.constant 0 : index
    %2 = vector.load %arg2[%c0_1, %c0_2] : memref<784x1024xbf16, #tpu.memory_space<vmem>>, vector<784x1024xbf16>
    %cst = arith.constant dense<0.000000e+00> : vector<8x1024xf32>
    %3 = tpu.matmul %1, %2, %cst {dimension_numbers = #tpu.dot_dimension_numbers<[1], [0], [0], [1], [0, 0, 1, 1], [], []>} : vector<8x784xbf16>, vector<784x1024xbf16>, vector<8x1024xf32> -> vector<8x1024xf32>
    %c0_3 = arith.constant 0 : index
    %c0_4 = arith.constant 0 : index
    %4 = vector.load %arg3[%c0_3, %c0_4] : memref<1x1024xf32, #tpu.memory_space<vmem>>, vector<1x1024xf32>
    %5 = vector.broadcast %4 : vector<1x1024xf32> to vector<8x1024xf32>
    %6 = arith.addf %3, %5 : vector<8x1024xf32>
    %cst_5 = arith.constant 2.000000e-01 : f32
    %7 = vector.broadcast %cst_5 : f32 to vector<8x1024xf32>
    %8 = arith.mulf %7, %6 : vector<8x1024xf32>
    %9 = arith.maximumf %6, %8 : vector<8x1024xf32>
    %10 = arith.truncf %9 : vector<8x1024xf32> to vector<8x1024xbf16>
    %c0_6 = arith.constant 0 : index
    %c0_7 = arith.constant 0 : index
    %11 = vector.load %arg4[%c0_6, %c0_7] : memref<1024x512xbf16, #tpu.memory_space<vmem>>, vector<1024x512xbf16>
    %cst_8 = arith.constant dense<0.000000e+00> : vector<8x512xf32>
    %12 = tpu.matmul %10, %11, %cst_8 {dimension_numbers = #tpu.dot_dimension_numbers<[1], [0], [0], [1], [0, 0, 1, 1], [], []>} : vector<8x1024xbf16>, vector<1024x512xbf16>, vector<8x512xf32> -> vector<8x512xf32>
    %c0_9 = arith.constant 0 : index
    %c0_10 = arith.constant 0 : index
    %13 = vector.load %arg5[%c0_9, %c0_10] : memref<1x512xf32, #tpu.memory_space<vmem>>, vector<1x512xf32>
    %14 = vector.broadcast %13 : vector<1x512xf32> to vector<8x512xf32>
    %15 = arith.addf %12, %14 : vector<8x512xf32>
    %cst_11 = arith.constant 2.000000e-01 : f32
    %16 = vector.broadcast %cst_11 : f32 to vector<8x512xf32>
    %17 = arith.mulf %16, %15 : vector<8x512xf32>
    %18 = arith.maximumf %15, %17 : vector<8x512xf32>
    %19 = arith.truncf %18 : vector<8x512xf32> to vector<8x512xbf16>
    %c0_12 = arith.constant 0 : index
    %c0_13 = arith.constant 0 : index
    %20 = vector.load %arg6[%c0_12, %c0_13] : memref<512x256xbf16, #tpu.memory_space<vmem>>, vector<512x256xbf16>
    %cst_14 = arith.constant dense<0.000000e+00> : vector<8x256xf32>
    %21 = tpu.matmul %19, %20, %cst_14 {dimension_numbers = #tpu.dot_dimension_numbers<[1], [0], [0], [1], [0, 0, 1, 1], [], []>} : vector<8x512xbf16>, vector<512x256xbf16>, vector<8x256xf32> -> vector<8x256xf32>
    %c0_15 = arith.constant 0 : index
    %c0_16 = arith.constant 0 : index
    %22 = vector.load %arg7[%c0_15, %c0_16] : memref<1x256xf32, #tpu.memory_space<vmem>>, vector<1x256xf32>
    %23 = vector.broadcast %22 : vector<1x256xf32> to vector<8x256xf32>
    %24 = arith.addf %21, %23 : vector<8x256xf32>
    %cst_17 = arith.constant 2.000000e-01 : f32
    %25 = vector.broadcast %cst_17 : f32 to vector<8x256xf32>
    %26 = arith.mulf %25, %24 : vector<8x256xf32>
    %27 = arith.maximumf %24, %26 : vector<8x256xf32>
    %c0_18 = arith.constant 0 : index
    %c0_19 = arith.constant 0 : index
    %28 = vector.load %arg8[%c0_18, %c0_19] : memref<1x256xf32, #tpu.memory_space<vmem>>, vector<1x256xf32>
    %29 = vector.broadcast %28 : vector<1x256xf32> to vector<8x256xf32>
    %30 = arith.mulf %27, %29 : vector<8x256xf32>
    %cst_20 = arith.constant dense<0.000000e+00> : vector<8xf32>
    %31 = vector.multi_reduction <add>, %30, %cst_20 [1] : vector<8x256xf32> to vector<8xf32>
    %32 = vector.shape_cast %31 : vector<8xf32> to vector<8x1xf32>
    %c0_21 = arith.constant 0 : index
    %c0_22 = arith.constant 0 : index
    %33 = vector.load %arg9[%c0_21, %c0_22] : memref<1x1xf32, #tpu.memory_space<vmem>>, vector<1x1xf32>
    %34 = vector.broadcast %33 : vector<1x1xf32> to vector<8x1xf32>
    %35 = arith.addf %32, %34 : vector<8x1xf32>
    %36 = arith.negf %35 : vector<8x1xf32>
    %37 = math.exp %36 : vector<8x1xf32>
    %cst_23 = arith.constant 1.000000e+00 : f32
    %38 = vector.broadcast %cst_23 : f32 to vector<8x1xf32>
    %39 = arith.addf %38, %37 : vector<8x1xf32>
    %40 = arith.divf %38, %39 : vector<8x1xf32>
    %c0_24 = arith.constant 0 : index
    %c0_25 = arith.constant 0 : index
    %41 = vector.load %arg10[%c0_24, %c0_25] : memref<8x1xf32, #tpu.memory_space<vmem>>, vector<8x1xf32>
    tpu.vector_store %arg10[%c0_24, %c0_25], %40 {strides = array<i32>} : memref<8x1xf32, #tpu.memory_space<vmem>>, vector<8x1xf32>,
    return
  }
  func.func @transform_0(%arg0: i32) -> (i32, i32) {
    %c0_i32 = arith.constant 0 : i32
    %c0_i32_0 = arith.constant 0 : i32
    return %arg0, %c0_i32 : i32, i32
  }
  func.func @transform_1(%arg0: i32) -> (i32, i32) {
    %c0_i32 = arith.constant 0 : i32
    %c0_i32_0 = arith.constant 0 : i32
    %c0_i32_1 = arith.constant 0 : i32
    return %c0_i32, %c0_i32_0 : i32, i32
  }
  func.func @transform_2(%arg0: i32) -> (i32, i32) {
    %c0_i32 = arith.constant 0 : i32
    %c0_i32_0 = arith.constant 0 : i32
    %c0_i32_1 = arith.constant 0 : i32
    return %c0_i32, %c0_i32_0 : i32, i32
  }
  func.func @transform_3(%arg0: i32) -> (i32, i32) {
    %c0_i32 = arith.constant 0 : i32
    %c0_i32_0 = arith.constant 0 : i32
    %c0_i32_1 = arith.constant 0 : i32
    return %c0_i32, %c0_i32_0 : i32, i32
  }
  func.func @transform_4(%arg0: i32) -> (i32, i32) {
    %c0_i32 = arith.constant 0 : i32
    %c0_i32_0 = arith.constant 0 : i32
    %c0_i32_1 = arith.constant 0 : i32
    return %c0_i32, %c0_i32_0 : i32, i32
  }
  func.func @transform_5(%arg0: i32) -> (i32, i32) {
    %c0_i32 = arith.constant 0 : i32
    %c0_i32_0 = arith.constant 0 : i32
    %c0_i32_1 = arith.constant 0 : i32
    return %c0_i32, %c0_i32_0 : i32, i32
  }
  func.func @transform_6(%arg0: i32) -> (i32, i32) {
    %c0_i32 = arith.constant 0 : i32
    %c0_i32_0 = arith.constant 0 : i32
    %c0_i32_1 = arith.constant 0 : i32
    return %c0_i32, %c0_i32_0 : i32, i32
  }
  func.func @transform_7(%arg0: i32) -> (i32, i32) {
    %c0_i32 = arith.constant 0 : i32
    %c0_i32_0 = arith.constant 0 : i32
    %c0_i32_1 = arith.constant 0 : i32
    return %c0_i32, %c0_i32_0 : i32, i32
  }
  func.func @transform_8(%arg0: i32) -> (i32, i32) {
    %c0_i32 = arith.constant 0 : i32
    %c0_i32_0 = arith.constant 0 : i32
    %c0_i32_1 = arith.constant 0 : i32
    return %c0_i32, %c0_i32_0 : i32, i32
  }
  func.func @transform_9(%arg0: i32) -> (i32, i32) {
    %c0_i32 = arith.constant 0 : i32
    %c0_i32_0 = arith.constant 0 : i32
    return %arg0, %c0_i32 : i32, i32
  }
}

module attributes {stable_mosaic.version = 11 : i64} {
  func.func @discriminator_kernel(%arg0: i32, %arg1: memref<8x784xf32, #tpu.memory_space<vmem>>, %arg2: memref<784x1024xbf16, #tpu.memory_space<vmem>>, %arg3: memref<1x1024xf32, #tpu.memory_space<vmem>>, %arg4: memref<1024x512xbf16, #tpu.memory_space<vmem>>, %arg5: memref<1x512xf32, #tpu.memory_space<vmem>>, %arg6: memref<512x256xbf16, #tpu.memory_space<vmem>>, %arg7: memref<1x256xf32, #tpu.memory_space<vmem>>, %arg8: memref<1x256xf32, #tpu.memory_space<vmem>>, %arg9: memref<1x1xf32, #tpu.memory_space<vmem>>, %arg10: memref<8x1xf32, #tpu.memory_space<vmem>>) attributes {dimension_semantics = [#tpu.dimension_semantics<parallel>], iteration_bounds = array<i64: 1>, scalar_prefetch = 0 : i64, scratch_operands = 0 : i64, tpu.core_type = #tpu.core_type<tc>, window_params = [{transform_indices = @transform_0, window_bounds = array<i64: 8, 784>}, {pipeline_mode = #tpu.pipeline_mode<synchronous>, transform_indices = @transform_1, window_bounds = array<i64: 784, 1024>}, {pipeline_mode = #tpu.pipeline_mode<synchronous>, transform_indices = @transform_2, window_bounds = array<i64: 1, 1024>}, {pipeline_mode = #tpu.pipeline_mode<synchronous>, transform_indices = @transform_3, window_bounds = array<i64: 1024, 512>}, {pipeline_mode = #tpu.pipeline_mode<synchronous>, transform_indices = @transform_4, window_bounds = array<i64: 1, 512>}, {pipeline_mode = #tpu.pipeline_mode<synchronous>, transform_indices = @transform_5, window_bounds = array<i64: 512, 256>}, {pipeline_mode = #tpu.pipeline_mode<synchronous>, transform_indices = @transform_6, window_bounds = array<i64: 1, 256>}, {pipeline_mode = #tpu.pipeline_mode<synchronous>, transform_indices = @transform_7, window_bounds = array<i64: 1, 256>}, {pipeline_mode = #tpu.pipeline_mode<synchronous>, transform_indices = @transform_8, window_bounds = array<i64: 1, 1>}, {transform_indices = @transform_9, window_bounds = array<i64: 8, 1>}]} {
    %c0 = arith.constant 0 : index
    %c0_0 = arith.constant 0 : index
    %0 = vector.load %arg1[%c0, %c0_0] : memref<8x784xf32, #tpu.memory_space<vmem>>, vector<8x784xf32>
    %1 = arith.truncf %0 : vector<8x784xf32> to vector<8x784xbf16>
    %c0_1 = arith.constant 0 : index
    %c0_2 = arith.constant 0 : index
    %2 = vector.load %arg2[%c0_1, %c0_2] : memref<784x1024xbf16, #tpu.memory_space<vmem>>, vector<784x1024xbf16>
    %cst = arith.constant dense<0.000000e+00> : vector<8x1024xf32>
    %3 = tpu.matmul %1, %2, %cst {dimension_numbers = #tpu.dot_dimension_numbers<[1], [0], [0], [1], [0, 0, 1, 1], [], []>} : vector<8x784xbf16>, vector<784x1024xbf16>, vector<8x1024xf32> -> vector<8x1024xf32>
    %c0_3 = arith.constant 0 : index
    %c0_4 = arith.constant 0 : index
    %4 = vector.load %arg3[%c0_3, %c0_4] : memref<1x1024xf32, #tpu.memory_space<vmem>>, vector<1x1024xf32>
    %5 = vector.broadcast %4 : vector<1x1024xf32> to vector<8x1024xf32>
    %6 = arith.addf %3, %5 : vector<8x1024xf32>
    %cst_5 = arith.constant 2.000000e-01 : f32
    %7 = vector.broadcast %cst_5 : f32 to vector<8x1024xf32>
    %8 = arith.mulf %7, %6 : vector<8x1024xf32>
    %9 = arith.maximumf %6, %8 : vector<8x1024xf32>
    %10 = arith.truncf %9 : vector<8x1024xf32> to vector<8x1024xbf16>
    %c0_6 = arith.constant 0 : index
    %c0_7 = arith.constant 0 : index
    %11 = vector.load %arg4[%c0_6, %c0_7] : memref<1024x512xbf16, #tpu.memory_space<vmem>>, vector<1024x512xbf16>
    %cst_8 = arith.constant dense<0.000000e+00> : vector<8x512xf32>
    %12 = tpu.matmul %10, %11, %cst_8 {dimension_numbers = #tpu.dot_dimension_numbers<[1], [0], [0], [1], [0, 0, 1, 1], [], []>} : vector<8x1024xbf16>, vector<1024x512xbf16>, vector<8x512xf32> -> vector<8x512xf32>
    %c0_9 = arith.constant 0 : index
    %c0_10 = arith.constant 0 : index
    %13 = vector.load %arg5[%c0_9, %c0_10] : memref<1x512xf32, #tpu.memory_space<vmem>>, vector<1x512xf32>
    %14 = vector.broadcast %13 : vector<1x512xf32> to vector<8x512xf32>
    %15 = arith.addf %12, %14 : vector<8x512xf32>
    %cst_11 = arith.constant 2.000000e-01 : f32
    %16 = vector.broadcast %cst_11 : f32 to vector<8x512xf32>
    %17 = arith.mulf %16, %15 : vector<8x512xf32>
    %18 = arith.maximumf %15, %17 : vector<8x512xf32>
    %19 = arith.truncf %18 : vector<8x512xf32> to vector<8x512xbf16>
    %c0_12 = arith.constant 0 : index
    %c0_13 = arith.constant 0 : index
    %20 = vector.load %arg6[%c0_12, %c0_13] : memref<512x256xbf16, #tpu.memory_space<vmem>>, vector<512x256xbf16>
    %cst_14 = arith.constant dense<0.000000e+00> : vector<8x256xf32>
    %21 = tpu.matmul %19, %20, %cst_14 {dimension_numbers = #tpu.dot_dimension_numbers<[1], [0], [0], [1], [0, 0, 1, 1], [], []>} : vector<8x512xbf16>, vector<512x256xbf16>, vector<8x256xf32> -> vector<8x256xf32>
    %c0_15 = arith.constant 0 : index
    %c0_16 = arith.constant 0 : index
    %22 = vector.load %arg7[%c0_15, %c0_16] : memref<1x256xf32, #tpu.memory_space<vmem>>, vector<1x256xf32>
    %23 = vector.broadcast %22 : vector<1x256xf32> to vector<8x256xf32>
    %24 = arith.addf %21, %23 : vector<8x256xf32>
    %cst_17 = arith.constant 2.000000e-01 : f32
    %25 = vector.broadcast %cst_17 : f32 to vector<8x256xf32>
    %26 = arith.mulf %25, %24 : vector<8x256xf32>
    %27 = arith.maximumf %24, %26 : vector<8x256xf32>
    %c0_18 = arith.constant 0 : index
    %c0_19 = arith.constant 0 : index
    %28 = vector.load %arg8[%c0_18, %c0_19] : memref<1x256xf32, #tpu.memory_space<vmem>>, vector<1x256xf32>
    %29 = vector.broadcast %28 : vector<1x256xf32> to vector<8x256xf32>
    %30 = arith.mulf %27, %29 : vector<8x256xf32>
    %cst_20 = arith.constant dense<0.000000e+00> : vector<8xf32>
    %31 = vector.multi_reduction <add>, %30, %cst_20 [1] : vector<8x256xf32> to vector<8xf32>
    %32 = vector.shape_cast %31 : vector<8xf32> to vector<8x1xf32>
    %c0_21 = arith.constant 0 : index
    %c0_22 = arith.constant 0 : index
    %33 = vector.load %arg9[%c0_21, %c0_22] : memref<1x1xf32, #tpu.memory_space<vmem>>, vector<1x1xf32>
    %34 = vector.broadcast %33 : vector<1x1xf32> to vector<8x1xf32>
    %35 = arith.addf %32, %34 : vector<8x1xf32>
    %36 = arith.negf %35 : vector<8x1xf32>
    %37 = math.exp %36 : vector<8x1xf32>
    %cst_23 = arith.constant 1.000000e+00 : f32
    %38 = vector.broadcast %cst_23 : f32 to vector<8x1xf32>
    %39 = arith.addf %38, %37 : vector<8x1xf32>
    %40 = arith.divf %38, %39 : vector<8x1xf32>
    %c0_24 = arith.constant 0 : index
    %c0_25 = arith.constant 0 : index
    %41 = vector.load %arg10[%c0_24, %c0_25] : memref<8x1xf32, #tpu.memory_space<vmem>>, vector<8x1xf32>
    tpu.vector_store %arg10[%c0_24, %c0_25], %40 {strides = array<i32>} : memref<8x1xf32, #tpu.memory_space<vmem>>, vector<8x1xf32>,
    return
  }
  func.func @transform_0(%arg0: i32) -> (i32, i32) {
    %c0_i32 = arith.constant 0 : i32
    %c0_i32_0 = arith.constant 0 : i32
    return %arg0, %c0_i32 : i32, i32
  }
  func.func @transform_1(%arg0: i32) -> (i32, i32) {
    %c0_i32 = arith.constant 0 : i32
    %c0_i32_0 = arith.constant 0 : i32
    %c0_i32_1 = arith.constant 0 : i32
    return %c0_i32, %c0_i32_0 : i32, i32
  }
  func.func @transform_2(%arg0: i32) -> (i32, i32) {
    %c0_i32 = arith.constant 0 : i32
    %c0_i32_0 = arith.constant 0 : i32
    %c0_i32_1 = arith.constant 0 : i32
    return %c0_i32, %c0_i32_0 : i32, i32
  }
  func.func @transform_3(%arg0: i32) -> (i32, i32) {
    %c0_i32 = arith.constant 0 : i32
    %c0_i32_0 = arith.constant 0 : i32
    %c0_i32_1 = arith.constant 0 : i32
    return %c0_i32, %c0_i32_0 : i32, i32
  }
  func.func @transform_4(%arg0: i32) -> (i32, i32) {
    %c0_i32 = arith.constant 0 : i32
    %c0_i32_0 = arith.constant 0 : i32
    %c0_i32_1 = arith.constant 0 : i32
    return %c0_i32, %c0_i32_0 : i32, i32
  }
  func.func @transform_5(%arg0: i32) -> (i32, i32) {
    %c0_i32 = arith.constant 0 : i32
    %c0_i32_0 = arith.constant 0 : i32
    %c0_i32_1 = arith.constant 0 : i32
    return %c0_i32, %c0_i32_0 : i32, i32
  }
  func.func @transform_6(%arg0: i32) -> (i32, i32) {
    %c0_i32 = arith.constant 0 : i32
    %c0_i32_0 = arith.constant 0 : i32
    %c0_i32_1 = arith.constant 0 : i32
    return %c0_i32, %c0_i32_0 : i32, i32
  }
  func.func @transform_7(%arg0: i32) -> (i32, i32) {
    %c0_i32 = arith.constant 0 : i32
    %c0_i32_0 = arith.constant 0 : i32
    %c0_i32_1 = arith.constant 0 : i32
    return %c0_i32, %c0_i32_0 : i32, i32
  }
  func.func @transform_8(%arg0: i32) -> (i32, i32) {
    %c0_i32 = arith.constant 0 : i32
    %c0_i32_0 = arith.constant 0 : i32
    %c0_i32_1 = arith.constant 0 : i32
    return %c0_i32, %c0_i32_0 : i32, i32
  }
  func.func @transform_9(%arg0: i32) -> (i32, i32) {
    %c0_i32 = arith.constant 0 : i32
    %c0_i32_0 = arith.constant 0 : i32
    return %arg0, %c0_i32 : i32, i32
  }
}

</mosaic_0001>

<bundles_post_ra>
// kernel: tpu_custom_call.1
= control target key start
LH: loop header
LB: loop body
LE: loop exit
PB: predicated region body
PF: predicated region fallthrough
CT: control target
= control target key end

     0   :  { %s9967_s0 = inlined_call_operand.hbm [shape: f32[8,784], index: 0, kind: input, shape index: {}]   ;;  %s9968_s1 = inlined_call_operand.hbm [shape: bf16[784,1024], index: 1, kind: input, shape index: {}]   ;;  %s9969_s2 = inlined_call_operand.hbm [shape: f32[1,1024], index: 2, kind: input, shape index: {}]   ;;  %s9970_s3 = inlined_call_operand.hbm [shape: bf16[1024,512], index: 3, kind: input, shape index: {}]   ;;  %s9971_s4 = inlined_call_operand.hbm [shape: f32[1,512], index: 4, kind: input, shape index: {}]   ;;  %s9972_s5 = inlined_call_operand.hbm [shape: bf16[512,256], index: 5, kind: input, shape index: {}]   ;;  %s9973_s6 = inlined_call_operand.hbm [shape: f32[1,256], index: 6, kind: input, shape index: {}]   ;;  %s9974_s7 = inlined_call_operand.hbm [shape: f32[1,256], index: 7, kind: input, shape index: {}]   ;;  %s9975_s8 = inlined_call_operand.<no memory space> [shape: f32[1,1], index: 8, kind: input, shape index: {}]   ;;  %s9976_s9 = inlined_call_operand.vmem [shape: f32[8,1], index: 9, kind: output, shape index: {}]  }
   0x1   :  { %v14_v0 = vstv %s9975_s8 }
   0x2   :  { %15 = vst [vmem:[#allocation2] sm:$0x1] %v14_v0 }
   0x3   :  { %16 = vsyncpa [#allocation4], 0 }
   0x4   :  { %17 = vsyncpa [#allocation6], 0 }
   0x5   :  { %18 = vsyncpa [#allocation9], 0 }
   0x6   :  { %19 = vsyncpa [#allocation12], 0  ;;  %s36_s13 = sshll.u32 %s9968_s1, 4  ;;  %s37_s13 = int_to_ptr.hbm [resolvable:$true] %s36_s13 }
   0x7   :  { %20 = vsyncpa [#allocation15], 0  ;;  %s9601_s14 = smov [#allocation5]   ;;  %s60_s18 = sshll.u32 %s9970_s3, 4  ;;  %s61_s18 = int_to_ptr.hbm [resolvable:$true] %s60_s18 }
   0x8   :  { %s38_s15 = sshll.u32 %s9601_s14, 4  ;;  %s9602_s19 = smov 512   ;;  %s39_s15 = int_to_ptr.vmem [resolvable:$true] %s38_s15 }
   0x9   :  { %s9603_s8 = smov 32   ;;  %s9604_s20 = smov [#allocation8]  }
   0xa   :  { %44 = dma.hbm_to_vmem [thread:$0]  %s37_s13, 50176, %s39_s15, [#allocation6], %s9602_s19, %s9602_s19, %s9603_s8  }
   0xb   :  { %s62_s21 = sshll.u32 %s9604_s20, 4  ;;  %s9605_s22 = smov 256   ;;  %s63_s21 = int_to_ptr.vmem [resolvable:$true] %s62_s21 }
   0xc   :  { %s9606_s23 = smov 16   ;;  %s84_s25 = sshll.u32 %s9972_s5, 4  ;;  %s85_s25 = int_to_ptr.hbm [resolvable:$true] %s84_s25 }
   0xd   :  { %68 = dma.hbm_to_vmem [thread:$0]  %s61_s18, 32768, %s63_s21, [#allocation9], %s9605_s22, %s9605_s22, %s9606_s23  }
   0xe   :  { %s9607_s26 = smov [#allocation11]   ;;  %s26_s29 = sshll.u32 %s9967_s0, 4  ;;  %s27_s29 = int_to_ptr.hbm [resolvable:$true] %s26_s29 }
   0xf   :  { %s86_s27 = sshll.u32 %s9607_s26, 4  ;;  %s9608_s30 = smov 128   ;;  %s87_s27 = int_to_ptr.vmem [resolvable:$true] %s86_s27 }
  0x10   :  { %s9609_s10 = smov 8   ;;  %s9610_s11 = smov [#allocation3]  }
  0x11   :  { %92 = dma.hbm_to_vmem [thread:$0]  %s85_s25, 8192, %s87_s27, [#allocation12], %s9608_s30, %s9608_s30, %s9609_s10  }
  0x12   :  { %s28_s12 = sshll.u32 %s9610_s11, 4  ;;  %s50_s15 = sshll.u32 %s9969_s2, 4  ;;  %s29_s12 = int_to_ptr.vmem [resolvable:$true] %s28_s12  ;;  %s51_s15 = int_to_ptr.hbm [resolvable:$true] %s50_s15 }
  0x13   :  { %31 = dma.hbm_to_vmem [thread:$0]  %s27_s29, 896, %s29_s12, [#allocation4]  }
  0x14   :  { %s74_s17 = sshll.u32 %s9971_s4, 4  ;;  %s9611_s18 = smov [#allocation7]   ;;  %s75_s17 = int_to_ptr.hbm [resolvable:$true] %s74_s17 }
  0x15   :  { %s52_s19 = sshll.u32 %s9611_s18, 4  ;;  %s9612_s0 = smov [#allocation10]   ;;  %s53_s19 = int_to_ptr.vmem [resolvable:$true] %s52_s19 }
  0x16   :  { %55 = dma.hbm_to_vmem [thread:$0]  %s51_s15, 128, %s53_s19, [#allocation6]  }
  0x17   :  { %s76_s8 = sshll.u32 %s9612_s0, 4  ;;  %s98_s22 = sshll.u32 %s9973_s6, 4  ;;  %s77_s8 = int_to_ptr.vmem [resolvable:$true] %s76_s8  ;;  %s99_s22 = int_to_ptr.hbm [resolvable:$true] %s98_s22 }
  0x18   :  { %79 = dma.hbm_to_vmem [thread:$0]  %s75_s17, 64, %s77_s8, [#allocation9]  }
  0x19   :  { %s109_s1 = sshll.u32 %s9974_s7, 4  ;;  %s9613_s24 = smov [#allocation13]   ;;  %s110_s1 = int_to_ptr.hbm [resolvable:$true] %s109_s1 }
  0x1a   :  { %s100_s4 = sshll.u32 %s9613_s24, 4  ;;  %s9614_s25 = smov [#allocation14]   ;;  %s101_s4 = int_to_ptr.vmem [resolvable:$true] %s100_s4 }
  0x1b   :  { %103 = dma.hbm_to_vmem [thread:$0]  %s99_s22, 32, %s101_s4, [#allocation12]  }
  0x1c   :  { %s111_s26 = sshll.u32 %s9614_s25, 4  ;;  %s112_s26 = int_to_ptr.vmem [resolvable:$true] %s111_s26 }
  0x1d   :  { %114 = dma.hbm_to_vmem [thread:$0]  %s110_s1, 32, %s112_s26, [#allocation15]  }
  0x1e   :  { %9591 = dma.done.wait [#allocation4], 896  }
  0x1f   :  { %9592 = vsyncadd [#allocation4], 4294966400 }
  0x20   :  { %9593 = dma.done.wait [#allocation6], 50304  }
  0x21   :  { %9594 = vsyncadd [#allocation6], 4294916992 }
  0x22   :  { %9595 = dma.done.wait [#allocation9], 32832  }
  0x23   :  { %9596 = vsyncadd [#allocation9], 4294934464 }
  0x24   :  { %9597 = dma.done.wait [#allocation12], 8224  }
  0x25   :  { %9598 = vsyncadd [#allocation12], 4294959072 }
  0x26   :  { %9599 = dma.done.wait [#allocation15], 32  }
  0x27   :  { %9600 = vsyncadd [#allocation15], 4294967264  ;;  %v6034_v1 = vld [vmem:[#allocation5 + $0x1c0] sm:$0xf]  ;;  %vm2534_vm0 = vcmask 130048   ;;  %vm5797_vm4 = vcmask 7168  }
  0x28   :  { %v8725_v2 = vld [vmem:[#allocation5 + $0x1dc] sm:$0xf0] }
  0x29   :  { %v6290_v3 = vld [vmem:[#allocation5 + $0x3c0] sm:$0xf]  ;;  %v6035_v4 = vor.u32 %v8725_v2, %v6034_v1 }
  0x2a   :  { %v8789_v5 = vld [vmem:[#allocation5 + $0x3dc] sm:$0xf0] }
  0x2b   :  { %v6546_v6 = vld [vmem:[#allocation5 + $0x5c0] sm:$0xf]  ;;  %v6291_v8 = vor.u32 %v8789_v5, %v6290_v3  ;;  %2538 = vmatpush.bf16.msra.mxu0 %v6035_v4 }
  0x2c   :  { %v8853_v7 = vld [vmem:[#allocation5 + $0x5dc] sm:$0xf0] }
  0x2d   :  { %v6547_v9 = vor.u32 %v8853_v7, %v6546_v6  ;;  %v6802_v10 = vld [vmem:[#allocation5 + $0x7c0] sm:$0xf]  ;;  %2551 = vmatpush.bf16.msra.mxu1 %v6291_v8 }
  0x2e   :  { %v8917_v11 = vld [vmem:[#allocation5 + $0x7dc] sm:$0xf0] }
  0x2f   :  { %v6002_v12 = vld [vmem:[#allocation5 + $0x180] sm:$0xf]  ;;  %v6803_v13 = vor.u32 %v8917_v11, %v6802_v10  ;;  %2564 = vmatpush.bf16.msra.mxu2 %v6547_v9 }
  0x30   :  { %v8717_v14 = vld [vmem:[#allocation5 + $0x19c] sm:$0xf0] }
  0x31   :  { %v6258_v15 = vld [vmem:[#allocation5 + $0x380] sm:$0xf]  ;;  %v6003_v17 = vor.u32 %v8717_v14, %v6002_v12  ;;  %2577 = vmatpush.bf16.msra.mxu3 %v6803_v13 }
  0x32   :  { %v8781_v16 = vld [vmem:[#allocation5 + $0x39c] sm:$0xf0] }
  0x33   :  { %v6259_v18 = vor.u32 %v8781_v16, %v6258_v15  ;;  %v6514_v19 = vld [vmem:[#allocation5 + $0x580] sm:$0xf]  ;;  %2539 = vmatpush.bf16.msra.mxu0 %v6003_v17 }
  0x34   :  { %v8845_v20 = vld [vmem:[#allocation5 + $0x59c] sm:$0xf0] }
  0x35   :  { %v6770_v21 = vld [vmem:[#allocation5 + $0x780] sm:$0xf]  ;;  %v6515_v22 = vor.u32 %v8845_v20, %v6514_v19  ;;  %2552 = vmatpush.bf16.msra.mxu1 %v6259_v18 }
  0x36   :  { %v8909_v23 = vld [vmem:[#allocation5 + $0x79c] sm:$0xf0] }
  0x37   :  { %v5970_v24 = vld [vmem:[#allocation5 + $0x140] sm:$0xf]  ;;  %v6771_v26 = vor.u32 %v8909_v23, %v6770_v21  ;;  %2565 = vmatpush.bf16.msra.mxu2 %v6515_v22 }
  0x38   :  { %v8709_v25 = vld [vmem:[#allocation5 + $0x15c] sm:$0xf0] }
  0x39   :  { %v6226_v27 = vld [vmem:[#allocation5 + $0x340] sm:$0xf]  ;;  %v5971_v30 = vor.u32 %v8709_v25, %v5970_v24  ;;  %2578 = vmatpush.bf16.msra.mxu3 %v6771_v26 }
  0x3a   :  { %v8773_v28 = vld [vmem:[#allocation5 + $0x35c] sm:$0xf0] }
  0x3b   :  { %v6482_v29 = vld [vmem:[#allocation5 + $0x540] sm:$0xf]  ;;  %v6227_v34 = vor.u32 %v8773_v28, %v6226_v27  ;;  %2540 = vmatpush.bf16.msra.mxu0 %v5971_v30 }
  0x3c   :  { %v8837_v31 = vld [vmem:[#allocation5 + $0x55c] sm:$0xf0] }
  0x3d   :  { %v6738_v32 = vld [vmem:[#allocation5 + $0x740] sm:$0xf]  ;;  %v6483_v35 = vor.u32 %v8837_v31, %v6482_v29  ;;  %2553 = vmatpush.bf16.msra.mxu1 %v6227_v34  ;;  %v8721_v34 = vld [vmem:[#allocation5 + $0x1c4] sm:$0xf] }
  0x3e   :  { %v8901_v33 = vld [vmem:[#allocation5 + $0x75c] sm:$0xf0] }
  0x3f   :  { %v5938_v36 = vld [vmem:[#allocation5 + $0x100] sm:$0xf]  ;;  %v6739_v39 = vor.u32 %v8901_v33, %v6738_v32  ;;  %2566 = vmatpush.bf16.msra.mxu2 %v6483_v35  ;;  %v6036_v35 = vld [vmem:[#allocation5 + $0x1e0] sm:$0xf0] }
  0x40   :  { %v8701_v37 = vld [vmem:[#allocation5 + $0x11c] sm:$0xf0] }
  0x41   :  { %v6194_v38 = vld [vmem:[#allocation5 + $0x300] sm:$0xf]  ;;  %v5939_v45 = vor.u32 %v8701_v37, %v5938_v36  ;;  %2579 = vmatpush.bf16.msra.mxu3 %v6739_v39  ;;  %v152_v36 = vld [vmem:[#allocation3 + $0x10] sm:$0xff] }
  0x42   :  { %v8765_v40 = vld [vmem:[#allocation5 + $0x31c] sm:$0xf0] }
  0x43   :  { %v6450_v41 = vld [vmem:[#allocation5 + $0x500] sm:$0xf]  ;;  %v6195_v46 = vor.u32 %v8765_v40, %v6194_v38  ;;  %2541 = vmatpush.bf16.msra.mxu0 %v5939_v45  ;;  %v6292_v45 = vld [vmem:[#allocation5 + $0x3e0] sm:$0xf0] }
  0x44   :  { %v8829_v42 = vld [vmem:[#allocation5 + $0x51c] sm:$0xf0] }
  0x45   :  { %v6706_v43 = vld [vmem:[#allocation5 + $0x700] sm:$0xf]  ;;  %v6451_v47 = vor.u32 %v8829_v42, %v6450_v41  ;;  %2554 = vmatpush.bf16.msra.mxu1 %v6195_v46  ;;  %v150_v41 = vld [vmem:[#allocation3] sm:$0xff] }
  0x46   :  { %v8893_v44 = vld [vmem:[#allocation5 + $0x71c] sm:$0xf0] }
  0x47   :  { %v5906_v48 = vld [vmem:[#allocation5 + $0xc0] sm:$0xf]  ;;  %v6707_v51 = vor.u32 %v8893_v44, %v6706_v43  ;;  %2567 = vmatpush.bf16.msra.mxu2 %v6451_v47  ;;  %v8785_v44 = vld [vmem:[#allocation5 + $0x3c4] sm:$0xf] }
  0x48   :  { %v8693_v49 = vld [vmem:[#allocation5 + $0xdc] sm:$0xf0] }
  0x49   :  { %v6162_v50 = vld [vmem:[#allocation5 + $0x2c0] sm:$0xf]  ;;  %v5907_v57 = vor.u32 %v8693_v49, %v5906_v48  ;;  %2580 = vmatpush.bf16.msra.mxu3 %v6707_v51  ;;  %v6039_v48 = vor.u32 %v8721_v34, %v6036_v35 }
  0x4a   :  { %v8757_v52 = vld [vmem:[#allocation5 + $0x2dc] sm:$0xf0] }
  0x4b   :  { %v6418_v53 = vld [vmem:[#allocation5 + $0x4c0] sm:$0xf]  ;;  %v6163_v58 = vor.u32 %v8757_v52, %v6162_v50  ;;  %2542 = vmatpush.bf16.msra.mxu0 %v5907_v57  ;;  %v9692_v52 = vpack.c.bf16 %v152_v36, %v152_v36  ;;  %v8753_v36 = vld [vmem:[#allocation5 + $0x2c4] sm:$0xf] }
  0x4c   :  { %v8821_v54 = vld [vmem:[#allocation5 + $0x4dc] sm:$0xf0] }
  0x4d   :  { %v6674_v55 = vld [vmem:[#allocation5 + $0x6c0] sm:$0xf]  ;;  %v6419_v59 = vor.u32 %v8821_v54, %v6418_v53  ;;  %2555 = vmatpush.bf16.msra.mxu1 %v6163_v58  ;;  %v8713_v54 = vld [vmem:[#allocation5 + $0x184] sm:$0xf] }
  0x4e   :  { %v8885_v56 = vld [vmem:[#allocation5 + $0x6dc] sm:$0xf0] }
  0x4f   :  { %v5874_v60 = vld [vmem:[#allocation5 + $0x80] sm:$0xf]  ;;  %v6675_v63 = vor.u32 %v8885_v56, %v6674_v55  ;;  %2568 = vmatpush.bf16.msra.mxu2 %v6419_v59  ;;  %v6004_v55 = vld [vmem:[#allocation5 + $0x1a0] sm:$0xf0]  ;;  %v9694_v56 = vpack.c.bf16 %v150_v41, %v150_v41  ;;  %v151_v59 = vld [vmem:[#allocation3 + $0x8] sm:$0xff] }
  0x50   :  { %v8685_v61 = vld [vmem:[#allocation5 + $0x9c] sm:$0xf0] }
  0x51   :  { %v6130_v62 = vld [vmem:[#allocation5 + $0x280] sm:$0xf]  ;;  %v5875_v5 = vor.u32 %v8685_v61, %v5874_v60  ;;  %2581 = vmatpush.bf16.msra.mxu3 %v6675_v63  ;;  %v6295_v60 = vor.u32 %v8785_v44, %v6292_v45  ;;  %v6260_v63 = vld [vmem:[#allocation5 + $0x3a0] sm:$0xf0] }
  0x52   :  { %v8749_v0 = vld [vmem:[#allocation5 + $0x29c] sm:$0xf0]  ;;  %v8681_v44 = vld [vmem:[#allocation5 + $0x84] sm:$0xf] }
  0x53   :  { %v6386_v1 = vld [vmem:[#allocation5 + $0x480] sm:$0xf]  ;;  %v6131_v6 = vor.u32 %v8749_v0, %v6130_v62  ;;  %2543 = vmatpush.bf16.msra.mxu0 %v5875_v5  ;;  %v8777_v62 = vld [vmem:[#allocation5 + $0x384] sm:$0xf] }
  0x54   :  { %v8813_v2 = vld [vmem:[#allocation5 + $0x49c] sm:$0xf0]  ;;  %v5876_v45 = vld [vmem:[#allocation5 + $0xa0] sm:$0xf0] }
  0x55   :  { %v6642_v3 = vld [vmem:[#allocation5 + $0x680] sm:$0xf]  ;;  %v6387_v7 = vor.u32 %v8813_v2, %v6386_v1  ;;  %2556 = vmatpush.bf16.msra.mxu1 %v6131_v6  ;;  %v6007_v1 = vor.u32 %v8713_v54, %v6004_v55  ;;  %v8705_v6 = vld [vmem:[#allocation5 + $0x144] sm:$0xf] }
  0x56   :  { %v8877_v4 = vld [vmem:[#allocation5 + $0x69c] sm:$0xf0] }
  0x57   :  { %v5842_v8 = vld [vmem:[#allocation5 + $0x40] sm:$0xf]  ;;  %v6643_v11 = vor.u32 %v8877_v4, %v6642_v3  ;;  %2569 = vmatpush.bf16.msra.mxu2 %v6387_v7  ;;  %v5972_v7 = vld [vmem:[#allocation5 + $0x160] sm:$0xf0] }
  0x58   :  { %v8677_v9 = vld [vmem:[#allocation5 + $0x5c] sm:$0xf0] }
  0x59   :  { %v6098_v10 = vld [vmem:[#allocation5 + $0x240] sm:$0xf]  ;;  %v5843_v17 = vor.u32 %v8677_v9, %v5842_v8  ;;  %2582 = vmatpush.bf16.msra.mxu3 %v6643_v11  ;;  %v9700_v8 = vpack.c.bf16 %v151_v59, %v151_v59  ;;  %v6263_v9 = vor.u32 %v8777_v62, %v6260_v63  ;;  %v8769_v11 = vld [vmem:[#allocation5 + $0x344] sm:$0xf] }
  0x5a   :  { %v8741_v12 = vld [vmem:[#allocation5 + $0x25c] sm:$0xf0] }
  0x5b   :  { %v6354_v13 = vld [vmem:[#allocation5 + $0x440] sm:$0xf]  ;;  %v6099_v21 = vor.u32 %v8741_v12, %v6098_v10  ;;  %2544 = vmatpush.bf16.msra.mxu0 %v5843_v17  ;;  %v6228_v12 = vld [vmem:[#allocation5 + $0x360] sm:$0xf0] }
  0x5c   :  { %v8805_v14 = vld [vmem:[#allocation5 + $0x45c] sm:$0xf0] }
  0x5d   :  { %v6610_v15 = vld [vmem:[#allocation5 + $0x640] sm:$0xf]  ;;  %v6355_v22 = vor.u32 %v8805_v14, %v6354_v13  ;;  %2557 = vmatpush.bf16.msra.mxu1 %v6099_v21  ;;  %v5975_v14 = vor.u32 %v8705_v6, %v5972_v7  ;;  %v6231_v21 = vor.u32 %v8769_v11, %v6228_v12  ;;  %v8849_v11 = vld [vmem:[#allocation5 + $0x5c4] sm:$0xf] }
  0x5e   :  { %v8869_v16 = vld [vmem:[#allocation5 + $0x65c] sm:$0xf0]  ;;  %v6548_v12 = vld [vmem:[#allocation5 + $0x5e0] sm:$0xf0] }
  0x5f   :  { %v5810_v18 = vld [vmem:[#allocation5] sm:$0xf]  ;;  %v6611_v26 = vor.u32 %v8869_v16, %v6610_v15  ;;  %2570 = vmatpush.bf16.msra.mxu2 %v6355_v22 }
  0x60   :  { %v8669_v19 = vld [vmem:[#allocation5 + $0x1c] sm:$0xf0] }
  0x61   :  { %v6066_v20 = vld [vmem:[#allocation5 + $0x200] sm:$0xf]  ;;  %v5811_v33 = vor.u32 %v8669_v19, %v5810_v18  ;;  %2583 = vmatpush.bf16.msra.mxu3 %v6611_v26  ;;  %v8697_v19 = vld [vmem:[#allocation5 + $0x104] sm:$0xf] }
  0x62   :  { %v8733_v23 = vld [vmem:[#allocation5 + $0x21c] sm:$0xf0] }
  0x63   :  { %v6322_v24 = vld [vmem:[#allocation5 + $0x400] sm:$0xf]  ;;  %v6067_v37 = vor.u32 %v8733_v23, %v6066_v20  ;;  %2545 = vmatpush.bf16.msra.mxu0 %v5811_v33  ;;  %v5940_v20 = vld [vmem:[#allocation5 + $0x120] sm:$0xf0]  ;;  %v156_v33 = vld [vmem:[#allocation3 + $0x30] sm:$0xff] }
  0x64   :  { %v8797_v25 = vld [vmem:[#allocation5 + $0x41c] sm:$0xf0]  ;;  %v8761_v23 = vld [vmem:[#allocation5 + $0x304] sm:$0xf]  ;;  %v5943_v26 = vor.u32 %v8697_v19, %v5940_v20  ;;  %v154_v19 = vld [vmem:[#allocation3 + $0x20] sm:$0xff] }
  0x65   :  { %v6578_v27 = vld [vmem:[#allocation5 + $0x600] sm:$0xf]  ;;  %v6323_v38 = vor.u32 %v8797_v25, %v6322_v24  ;;  %2558 = vmatpush.bf16.msra.mxu1 %v6067_v37  ;;  %v6196_v24 = vld [vmem:[#allocation5 + $0x320] sm:$0xf0] }
  0x66   :  { %v8861_v28 = vld [vmem:[#allocation5 + $0x61c] sm:$0xf0]  ;;  %2546 = vmatmul.bf16.vlgmr.msra.gmra.mxu0 %v9694_v56  ;;  %v6199_v34 = vor.u32 %v8761_v23, %v6196_v24  ;;  %v6164_v37 = vld [vmem:[#allocation5 + $0x2e0] sm:$0xf0]  ;;  %v155_v24 = vld [vmem:[#allocation3 + $0x28] sm:$0xff] }
  0x67   :  { %v7058_v29 = vld [vmem:[#allocation5 + $0x9c0] sm:$0xf]  ;;  %v6579_v42 = vor.u32 %v8861_v28, %v6578_v27  ;;  %2571 = vmatpush.bf16.msra.mxu2 %v6323_v38  ;;  %v6068_v23 = vld [vmem:[#allocation5 + $0x220] sm:$0xf0] }
  0x68   :  { %v8981_v30 = vld [vmem:[#allocation5 + $0x9dc] sm:$0xf0]  ;;  %2559 = vmatmul.bf16.vlgmr.msra.gmra.mxu1 %v9700_v8 }
  0x69   :  { %v7314_v31 = vld [vmem:[#allocation5 + $0xbc0] sm:$0xf]  ;;  %v7059_v43 = vor.u32 %v8981_v30, %v7058_v29  ;;  %2584 = vmatpush.bf16.msra.mxu3 %v6579_v42 }
  0x6a   :  { %v9045_v32 = vld [vmem:[#allocation5 + $0xbdc] sm:$0xf0]  ;;  %2572 = vmatmul.bf16.vlgmr.msra.gmra.mxu2 %v9692_v52 }
  0x6b   :  { %v7346_v39 = vld [vmem:[#allocation5 + $0xc00] sm:$0xf]  ;;  %v7315_v47 = vor.u32 %v9045_v32, %v7314_v31  ;;  %2590 = vmatpush.bf16.msrb.mxu0 %v7059_v43  ;;  %v8689_v31 = vld [vmem:[#allocation5 + $0xc4] sm:$0xf] }
  0x6c   :  { %v9053_v40 = vld [vmem:[#allocation5 + $0xc1c] sm:$0xf0]  ;;  %v5908_v32 = vld [vmem:[#allocation5 + $0xe0] sm:$0xf0] }
  0x6d   :  { %v153_v46 = vld [vmem:[#allocation3 + $0x18] sm:$0xff]  ;;  %v7347_v57 = vor.u32 %v9053_v40, %v7346_v39  ;;  %2603 = vmatpush.bf16.msrb.mxu1 %v7315_v47  ;;  %2629 = vmatpush.bf16.msrb.mxu3 %v6039_v48  ;;  %v5911_v39 = vor.u32 %v8689_v31, %v5908_v32  ;;  %v6167_v47 = vor.u32 %v8753_v36, %v6164_v37 }
  0x6e   :  { %v7026_v49 = vld [vmem:[#allocation5 + $0x980] sm:$0xf]  ;;  %v9696_v58 = vpack.c.bf16 %v153_v46, %v153_v46  ;;  %v9704_v46 = vpack.c.bf16 %v156_v33, %v156_v33  ;;  %v9708_v31 = vpack.c.bf16 %v154_v19, %v154_v19  ;;  %v6516_v32 = vld [vmem:[#allocation5 + $0x5a0] sm:$0xf0]  ;;  %v9710_v36 = vpack.c.bf16 %v155_v24, %v155_v24 }
  0x6f   :  { %v8973_v50 = vld [vmem:[#allocation5 + $0x99c] sm:$0xf0]  ;;  %2623 = vmatpush.bf16.msrb.mxu2 %v7347_v57  ;;  %v8905_v33 = vld [vmem:[#allocation5 + $0x784] sm:$0xf] }
  0x70   :  { %v7282_v51 = vld [vmem:[#allocation5 + $0xb80] sm:$0xf]  ;;  %v7027_v61 = vor.u32 %v8973_v50, %v7026_v49  ;;  %2585 = vmatmul.bf16.vlgmr.msra.gmra.mxu3 %v9696_v58  ;;  %v8745_v49 = vld [vmem:[#allocation5 + $0x284] sm:$0xf] }
  0x71   :  { %v9037_v53 = vld [vmem:[#allocation5 + $0xb9c] sm:$0xf0]  ;;  %2630 = vmatpush.bf16.msrb.mxu3 %v6007_v1  ;;  %v6132_v50 = vld [vmem:[#allocation5 + $0x2a0] sm:$0xf0] }
  0x72   :  { %v7283_v0 = vor.u32 %v9037_v53, %v7282_v51  ;;  %v6994_v2 = vld [vmem:[#allocation5 + $0x940] sm:$0xf]  ;;  %2591 = vmatpush.bf16.msrb.mxu0 %v7027_v61  ;;  %v5879_v53 = vor.u32 %v8681_v44, %v5876_v45  ;;  %v5844_v61 = vld [vmem:[#allocation5 + $0x60] sm:$0xf0]  ;;  %v6135_v62 = vor.u32 %v8745_v49, %v6132_v50 }
  0x73   :  { %v8965_v3 = vld [vmem:[#allocation5 + $0x95c] sm:$0xf0]  ;;  %2642 = vmatpush.bf16.msra.mxu2 %v6295_v60  ;;  %v8673_v60 = vld [vmem:[#allocation5 + $0x44] sm:$0xf] }
  0x74   :  { %v7250_v4 = vld [vmem:[#allocation5 + $0xb40] sm:$0xf]  ;;  %v6995_v10 = vor.u32 %v8965_v3, %v6994_v2  ;;  %2604 = vmatpush.bf16.msrb.mxu1 %v7283_v0  ;;  %v8737_v0 = vld [vmem:[#allocation5 + $0x244] sm:$0xf] }
  0x75   :  { %v9029_v5 = vld [vmem:[#allocation5 + $0xb5c] sm:$0xf0]  ;;  %2631 = vmatpush.bf16.msrb.mxu3 %v5975_v14  ;;  %v6100_v1 = vld [vmem:[#allocation5 + $0x260] sm:$0xf0] }
  0x76   :  { %v7251_v13 = vor.u32 %v9029_v5, %v7250_v4  ;;  %v6962_v15 = vld [vmem:[#allocation5 + $0x900] sm:$0xf]  ;;  %2592 = vmatpush.bf16.msrb.mxu0 %v6995_v10  ;;  %v5847_v4 = vor.u32 %v8673_v60, %v5844_v61  ;;  %v5812_v10 = vld [vmem:[#allocation5 + $0x20] sm:$0xf0] }
  0x77   :  { %v8957_v16 = vld [vmem:[#allocation5 + $0x91c] sm:$0xf0]  ;;  %2643 = vmatpush.bf16.msra.mxu2 %v6263_v9  ;;  %v8665_v9 = vld [vmem:[#allocation5 + $0x4] sm:$0xf] }
  0x78   :  { %v7218_v17 = vld [vmem:[#allocation5 + $0xb00] sm:$0xf]  ;;  %v6963_v22 = vor.u32 %v8957_v16, %v6962_v15  ;;  %2605 = vmatpush.bf16.msrb.mxu1 %v7251_v13  ;;  %v8913_v13 = vld [vmem:[#allocation5 + $0x7c4] sm:$0xf]  ;;  %v6103_v15 = vor.u32 %v8737_v0, %v6100_v1 }
  0x79   :  { %v9021_v18 = vld [vmem:[#allocation5 + $0xb1c] sm:$0xf0]  ;;  %2632 = vmatpush.bf16.msrb.mxu3 %v5943_v26  ;;  %v6804_v14 = vld [vmem:[#allocation5 + $0x7e0] sm:$0xf0] }
  0x7a   :  { %v7219_v25 = vor.u32 %v9021_v18, %v7218_v17  ;;  %v6930_v27 = vld [vmem:[#allocation5 + $0x8c0] sm:$0xf]  ;;  %2593 = vmatpush.bf16.msrb.mxu0 %v6963_v22  ;;  %7376 = vmatmul.msk.bf16.vlgmr.msrb.gmra.mxu2 %vm2534_vm0, %v9704_v46  ;;  %v8977_v17 = vld [vmem:[#allocation5 + $0x9c4] sm:$0xf]  ;;  %v6807_v26 = vor.u32 %v8913_v13, %v6804_v14 }
  0x7b   :  { %v8949_v28 = vld [vmem:[#allocation5 + $0x8dc] sm:$0xf0]  ;;  %2644 = vmatpush.bf16.msra.mxu2 %v6231_v21  ;;  %v7060_v18 = vld [vmem:[#allocation5 + $0x9e0] sm:$0xf0]  ;;  %v5815_v21 = vor.u32 %v8665_v9, %v5812_v10 }
  0x7c   :  { %v7186_v29 = vld [vmem:[#allocation5 + $0xac0] sm:$0xf]  ;;  %v6931_v35 = vor.u32 %v8949_v28, %v6930_v27  ;;  %2606 = vmatpush.bf16.msrb.mxu1 %v7219_v25  ;;  %v8729_v22 = vld [vmem:[#allocation5 + $0x204] sm:$0xf]  ;;  %v6551_v25 = vor.u32 %v8849_v11, %v6548_v12 }
  0x7d   :  { %v9013_v30 = vld [vmem:[#allocation5 + $0xadc] sm:$0xf0]  ;;  %2633 = vmatpush.bf16.msrb.mxu3 %v5911_v39  ;;  %v9041_v27 = vld [vmem:[#allocation5 + $0xbc4] sm:$0xf] }
  0x7e   :  { %v7187_v38 = vor.u32 %v9013_v30, %v7186_v29  ;;  %v6898_v40 = vld [vmem:[#allocation5 + $0x880] sm:$0xf]  ;;  %2594 = vmatpush.bf16.msrb.mxu0 %v6931_v35  ;;  %v7316_v28 = vld [vmem:[#allocation5 + $0xbe0] sm:$0xf0]  ;;  %v7063_v30 = vor.u32 %v8977_v17, %v7060_v18  ;;  %v6071_v35 = vor.u32 %v8729_v22, %v6068_v23 }
  0x7f   :  { %v8941_v41 = vld [vmem:[#allocation5 + $0x89c] sm:$0xf0]  ;;  %2645 = vmatpush.bf16.msra.mxu2 %v6199_v34  ;;  %v8841_v29 = vld [vmem:[#allocation5 + $0x584] sm:$0xf]  ;;  %v7319_v39 = vor.u32 %v9041_v27, %v7316_v28 }
  0x80   :  { %v7154_v42 = vld [vmem:[#allocation5 + $0xa80] sm:$0xf]  ;;  %v6899_v48 = vor.u32 %v8941_v41, %v6898_v40  ;;  %2607 = vmatpush.bf16.msrb.mxu1 %v7187_v38  ;;  %v6772_v34 = vld [vmem:[#allocation5 + $0x7a0] sm:$0xf0]  ;;  %v6519_v40 = vor.u32 %v8841_v29, %v6516_v32 }
  0x81   :  { %v9005_v43 = vld [vmem:[#allocation5 + $0xa9c] sm:$0xf0]  ;;  %2634 = vmatpush.bf16.msrb.mxu3 %v5879_v53  ;;  %v8969_v37 = vld [vmem:[#allocation5 + $0x984] sm:$0xf]  ;;  %v6775_v41 = vor.u32 %v8905_v33, %v6772_v34 }
  0x82   :  { %v7155_v51 = vor.u32 %v9005_v43, %v7154_v42  ;;  %v6866_v54 = vld [vmem:[#allocation5 + $0x840] sm:$0xf]  ;;  %2595 = vmatpush.bf16.msrb.mxu0 %v6899_v48  ;;  %v7028_v38 = vld [vmem:[#allocation5 + $0x9a0] sm:$0xf0] }
  0x83   :  { %v8933_v55 = vld [vmem:[#allocation5 + $0x85c] sm:$0xf0]  ;;  %2646 = vmatpush.bf16.msra.mxu2 %v6167_v47  ;;  %v9033_v42 = vld [vmem:[#allocation5 + $0xb84] sm:$0xf]  ;;  %v7031_v45 = vor.u32 %v8969_v37, %v7028_v38 }
  0x84   :  { %v7122_v57 = vld [vmem:[#allocation5 + $0xa40] sm:$0xf]  ;;  %v6867_v63 = vor.u32 %v8933_v55, %v6866_v54  ;;  %2608 = vmatpush.bf16.msrb.mxu1 %v7155_v51  ;;  %v7284_v43 = vld [vmem:[#allocation5 + $0xba0] sm:$0xf0] }
  0x85   :  { %v8997_v59 = vld [vmem:[#allocation5 + $0xa5c] sm:$0xf0]  ;;  %2635 = vmatpush.bf16.msrb.mxu3 %v5847_v4  ;;  %v8833_v44 = vld [vmem:[#allocation5 + $0x544] sm:$0xf]  ;;  %v7287_v53 = vor.u32 %v9033_v42, %v7284_v43 }
  0x86   :  { %v6834_v2 = vld [vmem:[#allocation5 + $0x800] sm:$0xf]  ;;  %v7123_v3 = vor.u32 %v8997_v59, %v7122_v57  ;;  %2596 = vmatpush.bf16.msrb.mxu0 %v6867_v63  ;;  %v6484_v47 = vld [vmem:[#allocation5 + $0x560] sm:$0xf0] }
  0x87   :  { %v8925_v5 = vld [vmem:[#allocation5 + $0x81c] sm:$0xf0]  ;;  %2647 = vmatpush.bf16.msra.mxu2 %v6135_v62  ;;  %v8897_v48 = vld [vmem:[#allocation5 + $0x744] sm:$0xf]  ;;  %v6487_v54 = vor.u32 %v8833_v44, %v6484_v47 }
  0x88   :  { %v7090_v6 = vld [vmem:[#allocation5 + $0xa00] sm:$0xf]  ;;  %v6835_v16 = vor.u32 %v8925_v5, %v6834_v2  ;;  %2609 = vmatpush.bf16.msrb.mxu1 %v7123_v3  ;;  %v6740_v49 = vld [vmem:[#allocation5 + $0x760] sm:$0xf0] }
  0x89   :  { %v8989_v7 = vld [vmem:[#allocation5 + $0xa1c] sm:$0xf0]  ;;  %2636 = vmatpush.bf16.msrb.mxu3 %v5815_v21  ;;  %v8961_v50 = vld [vmem:[#allocation5 + $0x944] sm:$0xf]  ;;  %v6743_v55 = vor.u32 %v8897_v48, %v6740_v49 }
  0x8a   :  { %v7091_v20 = vor.u32 %v8989_v7, %v7090_v6  ;;  %2597 = vmatpush.bf16.msrb.mxu0 %v6835_v16  ;;  %v6996_v51 = vld [vmem:[#allocation5 + $0x960] sm:$0xf0] }
  0x8b   :  { %2648 = vmatpush.bf16.msra.mxu2 %v6103_v15  ;;  %v9025_v57 = vld [vmem:[#allocation5 + $0xb44] sm:$0xf]  ;;  %v6999_v61 = vor.u32 %v8961_v50, %v6996_v51 }
  0x8c   :  { %2610 = vmatpush.bf16.msrb.mxu1 %v7091_v20  ;;  %2637 = vmatmul.bf16.vlgmr.msrb.gmra.mxu3 %v9694_v56  ;;  %v7252_v59 = vld [vmem:[#allocation5 + $0xb60] sm:$0xf0] }
  0x8d   :  { %2681 = vmatpush.bf16.msra.mxu3 %v7063_v30  ;;  %2598 = vmatmul.bf16.vlgmr.msrb.gmra.mxu0 %v9708_v31  ;;  %v8825_v60 = vld [vmem:[#allocation5 + $0x504] sm:$0xf]  ;;  %v7255_v3 = vor.u32 %v9025_v57, %v7252_v59  ;;  %v6042_v57 = vld [vmem:[#allocation5 + $0x1c8] sm:$0xf] }
  0x8e   :  { %2655 = vmatpush.bf16.msra.mxu0 %v6551_v25  ;;  %v6452_v62 = vld [vmem:[#allocation5 + $0x520] sm:$0xf0]  ;;  %v8726_v59 = vld [vmem:[#allocation5 + $0x1e4] sm:$0xf0] }
  0x8f   :  { %2649 = vmatpush.bf16.msra.mxu2 %v6071_v35  ;;  %2611 = vmatmul.bf16.vlgmr.msrb.gmra.mxu1 %v9710_v36  ;;  %v8889_v63 = vld [vmem:[#allocation5 + $0x704] sm:$0xf]  ;;  %v6455_v4 = vor.u32 %v8825_v60, %v6452_v62  ;;  %v6554_v60 = vld [vmem:[#allocation5 + $0x5c8] sm:$0xf] }
  0x90   :  { %2668 = vmatpush.bf16.msra.mxu1 %v6807_v26  ;;  %v6708_v0 = vld [vmem:[#allocation5 + $0x720] sm:$0xf0]  ;;  %v8854_v62 = vld [vmem:[#allocation5 + $0x5e4] sm:$0xf0] }
  0x91   :  { %2682 = vmatpush.bf16.msra.mxu3 %v7031_v45  ;;  %v8953_v1 = vld [vmem:[#allocation5 + $0x904] sm:$0xf]  ;;  %v6711_v5 = vor.u32 %v8889_v63, %v6708_v0 }
  0x92   :  { %2656 = vmatpush.bf16.msra.mxu0 %v6519_v40  ;;  %2650 = vmatmul.bf16.vlgmr.msra.gmra.mxu2 %v9700_v8  ;;  %v6964_v2 = vld [vmem:[#allocation5 + $0x920] sm:$0xf0] }
  0x93   :  { %2694 = vmatpush.bf16.msrb.mxu2 %v7319_v39  ;;  %v9017_v6 = vld [vmem:[#allocation5 + $0xb04] sm:$0xf]  ;;  %v6967_v10 = vor.u32 %v8953_v1, %v6964_v2 }
  0x94   :  { %2669 = vmatpush.bf16.msra.mxu1 %v6775_v41  ;;  %v7220_v7 = vld [vmem:[#allocation5 + $0xb20] sm:$0xf0] }
  0x95   :  { %v8817_v9 = vld [vmem:[#allocation5 + $0x4c4] sm:$0xf]  ;;  %2683 = vmatpush.bf16.msra.mxu3 %v6999_v61  ;;  %v7223_v16 = vor.u32 %v9017_v6, %v7220_v7  ;;  %v6043_v6 = vor.u32 %v8726_v59, %v6042_v57  ;;  %v6810_v7 = vld [vmem:[#allocation5 + $0x7c8] sm:$0xf] }
  0x96   :  { %2657 = vmatpush.bf16.msra.mxu0 %v6487_v54  ;;  %v6420_v11 = vld [vmem:[#allocation5 + $0x4e0] sm:$0xf0]  ;;  %v8694_v57 = vld [vmem:[#allocation5 + $0xe4] sm:$0xf0] }
  0x97   :  { %2695 = vmatpush.bf16.msrb.mxu2 %v7287_v53  ;;  %v8881_v12 = vld [vmem:[#allocation5 + $0x6c4] sm:$0xf]  ;;  %v6423_v17 = vor.u32 %v8817_v9, %v6420_v11  ;;  %v8918_v9 = vld [vmem:[#allocation5 + $0x7e4] sm:$0xf0] }
  0x98   :  { %2670 = vmatpush.bf16.msra.mxu1 %v6743_v55  ;;  %v6676_v13 = vld [vmem:[#allocation5 + $0x6e0] sm:$0xf0]  ;;  %v6426_v59 = vld [vmem:[#allocation5 + $0x4c8] sm:$0xf] }
  0x99   :  { %v8945_v14 = vld [vmem:[#allocation5 + $0x8c4] sm:$0xf]  ;;  %v6679_v18 = vor.u32 %v8881_v12, %v6676_v13  ;;  %2684 = vmatpush.bf16.msra.mxu3 %v6967_v10  ;;  %v6555_v10 = vor.u32 %v8854_v62, %v6554_v60  ;;  %v6298_v12 = vld [vmem:[#allocation5 + $0x3c8] sm:$0xf] }
  0x9a   :  { %v6932_v15 = vld [vmem:[#allocation5 + $0x8e0] sm:$0xf0]  ;;  %2658 = vmatpush.bf16.msra.mxu0 %v6455_v4  ;;  %v8790_v13 = vld [vmem:[#allocation5 + $0x3e4] sm:$0xf0] }
  0x9b   :  { %2696 = vmatpush.bf16.msrb.mxu2 %v7255_v3  ;;  %v9009_v19 = vld [vmem:[#allocation5 + $0xac4] sm:$0xf]  ;;  %v6935_v22 = vor.u32 %v8945_v14, %v6932_v15  ;;  %v6010_v14 = vld [vmem:[#allocation5 + $0x188] sm:$0xf] }
  0x9c   :  { %2671 = vmatpush.bf16.msra.mxu1 %v6711_v5  ;;  %v7188_v20 = vld [vmem:[#allocation5 + $0xae0] sm:$0xf0]  ;;  %v8822_v60 = vld [vmem:[#allocation5 + $0x4e4] sm:$0xf0] }
  0x9d   :  { %v8809_v21 = vld [vmem:[#allocation5 + $0x484] sm:$0xf]  ;;  %v7191_v28 = vor.u32 %v9009_v19, %v7188_v20  ;;  %2685 = vmatpush.bf16.msra.mxu3 %v6935_v22  ;;  %v6811_v19 = vor.u32 %v8918_v9, %v6810_v7  ;;  %v6299_v20 = vor.u32 %v8790_v13, %v6298_v12  ;;  %v8910_v22 = vld [vmem:[#allocation5 + $0x7a4] sm:$0xf0] }
  0x9e   :  { %v6388_v23 = vld [vmem:[#allocation5 + $0x4a0] sm:$0xf0]  ;;  %2659 = vmatpush.bf16.msra.mxu0 %v6423_v17  ;;  %v6522_v17 = vld [vmem:[#allocation5 + $0x588] sm:$0xf] }
  0x9f   :  { %v8873_v24 = vld [vmem:[#allocation5 + $0x684] sm:$0xf]  ;;  %2697 = vmatpush.bf16.msrb.mxu2 %v7223_v16  ;;  %v6391_v29 = vor.u32 %v8809_v21, %v6388_v23  ;;  %v8718_v16 = vld [vmem:[#allocation5 + $0x1a4] sm:$0xf0] }
  0xa0   :  { %v6644_v25 = vld [vmem:[#allocation5 + $0x6a0] sm:$0xf0]  ;;  %2672 = vmatpush.bf16.msra.mxu1 %v6679_v18  ;;  %v8846_v18 = vld [vmem:[#allocation5 + $0x5a4] sm:$0xf0]  ;;  %v6011_v23 = vor.u32 %v8718_v16, %v6010_v14 }
  0xa1   :  { %v8937_v26 = vld [vmem:[#allocation5 + $0x884] sm:$0xf]  ;;  %v6647_v30 = vor.u32 %v8873_v24, %v6644_v25  ;;  %v6778_v21 = vld [vmem:[#allocation5 + $0x788] sm:$0xf]  ;;  %v6523_v24 = vor.u32 %v8846_v18, %v6522_v17 }
  0xa2   :  { %v6900_v27 = vld [vmem:[#allocation5 + $0x8a0] sm:$0xf0]  ;;  %2660 = vmatpush.bf16.msra.mxu0 %v6391_v29  ;;  %v6266_v25 = vld [vmem:[#allocation5 + $0x388] sm:$0xf] }
  0xa3   :  { %v9001_v32 = vld [vmem:[#allocation5 + $0xa84] sm:$0xf]  ;;  %v6903_v35 = vor.u32 %v8937_v26, %v6900_v27  ;;  %2698 = vmatpush.bf16.msrb.mxu2 %v7191_v28  ;;  %v8782_v26 = vld [vmem:[#allocation5 + $0x3a4] sm:$0xf0] }
  0xa4   :  { %v7156_v33 = vld [vmem:[#allocation5 + $0xaa0] sm:$0xf0]  ;;  %2673 = vmatpush.bf16.msra.mxu1 %v6647_v30  ;;  %v5978_v27 = vld [vmem:[#allocation5 + $0x148] sm:$0xf] }
  0xa5   :  { %v8801_v34 = vld [vmem:[#allocation5 + $0x444] sm:$0xf]  ;;  %v7159_v42 = vor.u32 %v9001_v32, %v7156_v33  ;;  %2686 = vmatpush.bf16.msra.mxu3 %v6903_v35  ;;  %v8710_v28 = vld [vmem:[#allocation5 + $0x164] sm:$0xf0]  ;;  %v6779_v32 = vor.u32 %v8910_v22, %v6778_v21  ;;  %v6267_v33 = vor.u32 %v8782_v26, %v6266_v25 }
  0xa6   :  { %v6356_v37 = vld [vmem:[#allocation5 + $0x460] sm:$0xf0]  ;;  %v6490_v29 = vld [vmem:[#allocation5 + $0x548] sm:$0xf] }
  0xa7   :  { %v8865_v38 = vld [vmem:[#allocation5 + $0x644] sm:$0xf]  ;;  %v6359_v45 = vor.u32 %v8801_v34, %v6356_v37  ;;  %2699 = vmatpush.bf16.msrb.mxu2 %v7159_v42  ;;  %v8838_v30 = vld [vmem:[#allocation5 + $0x564] sm:$0xf0]  ;;  %v5979_v37 = vor.u32 %v8710_v28, %v5978_v27 }
  0xa8   :  { %v6612_v39 = vld [vmem:[#allocation5 + $0x660] sm:$0xf0]  ;;  %v6746_v34 = vld [vmem:[#allocation5 + $0x748] sm:$0xf] }
  0xa9   :  { %v8929_v40 = vld [vmem:[#allocation5 + $0x844] sm:$0xf]  ;;  %v6615_v47 = vor.u32 %v8865_v38, %v6612_v39  ;;  %2661 = vmatpush.bf16.msra.mxu0 %v6359_v45  ;;  %v8902_v35 = vld [vmem:[#allocation5 + $0x764] sm:$0xf0]  ;;  %v6491_v38 = vor.u32 %v8838_v30, %v6490_v29 }
  0xaa   :  { %v6868_v41 = vld [vmem:[#allocation5 + $0x860] sm:$0xf0]  ;;  %v6234_v39 = vld [vmem:[#allocation5 + $0x348] sm:$0xf]  ;;  %v6747_v45 = vor.u32 %v8902_v35, %v6746_v34 }
  0xab   :  { %v8993_v43 = vld [vmem:[#allocation5 + $0xa44] sm:$0xf]  ;;  %v6871_v51 = vor.u32 %v8929_v40, %v6868_v41  ;;  %2674 = vmatpush.bf16.msra.mxu1 %v6615_v47  ;;  %v8774_v40 = vld [vmem:[#allocation5 + $0x364] sm:$0xf0] }
  0xac   :  { %v7124_v44 = vld [vmem:[#allocation5 + $0xa60] sm:$0xf0]  ;;  %v5946_v41 = vld [vmem:[#allocation5 + $0x108] sm:$0xf]  ;;  %v6235_v47 = vor.u32 %v8774_v40, %v6234_v39 }
  0xad   :  { %v8793_v48 = vld [vmem:[#allocation5 + $0x404] sm:$0xf]  ;;  %v7127_v61 = vor.u32 %v8993_v43, %v7124_v44  ;;  %2687 = vmatpush.bf16.msra.mxu3 %v6871_v51  ;;  %v8702_v42 = vld [vmem:[#allocation5 + $0x124] sm:$0xf0] }
  0xae   :  { %v6324_v49 = vld [vmem:[#allocation5 + $0x420] sm:$0xf0]  ;;  %v6458_v43 = vld [vmem:[#allocation5 + $0x508] sm:$0xf] }
  0xaf   :  { %v8857_v50 = vld [vmem:[#allocation5 + $0x604] sm:$0xf]  ;;  %v6327_v1 = vor.u32 %v8793_v48, %v6324_v49  ;;  %2700 = vmatpush.bf16.msrb.mxu2 %v7127_v61  ;;  %v8830_v44 = vld [vmem:[#allocation5 + $0x524] sm:$0xf0] }
  0xb0   :  { %v6580_v53 = vld [vmem:[#allocation5 + $0x620] sm:$0xf0]  ;;  %v6714_v48 = vld [vmem:[#allocation5 + $0x708] sm:$0xf]  ;;  %v6459_v51 = vor.u32 %v8830_v44, %v6458_v43 }
  0xb1   :  { %v8921_v54 = vld [vmem:[#allocation5 + $0x804] sm:$0xf]  ;;  %v6583_v2 = vor.u32 %v8857_v50, %v6580_v53  ;;  %2662 = vmatpush.bf16.msra.mxu0 %v6327_v1  ;;  %v8894_v49 = vld [vmem:[#allocation5 + $0x724] sm:$0xf0]  ;;  %v5947_v50 = vor.u32 %v8702_v42, %v5946_v41 }
  0xb2   :  { %v6836_v55 = vld [vmem:[#allocation5 + $0x820] sm:$0xf0]  ;;  %v6202_v53 = vld [vmem:[#allocation5 + $0x308] sm:$0xf]  ;;  %v6715_v61 = vor.u32 %v8894_v49, %v6714_v48 }
  0xb3   :  { %v9049_v63 = vld [vmem:[#allocation5 + $0xc04] sm:$0xf]  ;;  %v6839_v5 = vor.u32 %v8921_v54, %v6836_v55  ;;  %2675 = vmatpush.bf16.msra.mxu1 %v6583_v2  ;;  %v8766_v54 = vld [vmem:[#allocation5 + $0x324] sm:$0xf0]  ;;  %v6427_v2 = vor.u32 %v8822_v60, %v6426_v59  ;;  %v6300_v60 = vld [vmem:[#allocation5 + $0x3e8] sm:$0xf0] }
  0xb4   :  { %v7348_v0 = vld [vmem:[#allocation5 + $0xc20] sm:$0xf0]  ;;  %2663 = vmatmul.bf16.vlgmr.msra.gmra.mxu0 %v9692_v52  ;;  %v5914_v55 = vld [vmem:[#allocation5 + $0xc8] sm:$0xf]  ;;  %v6203_v62 = vor.u32 %v8766_v54, %v6202_v53  ;;  %v8722_v54 = vld [vmem:[#allocation5 + $0x1cc] sm:$0xf] }
  0xb5   :  { %v8985_v3 = vld [vmem:[#allocation5 + $0xa04] sm:$0xf]  ;;  %v7351_v11 = vor.u32 %v9049_v63, %v7348_v0  ;;  %2688 = vmatpush.bf16.msra.mxu3 %v6839_v5  ;;  %2746 = vmatpush.bf16.msrb.mxu0 %v6555_v10  ;;  %v6682_v63 = vld [vmem:[#allocation5 + $0x6c8] sm:$0xf]  ;;  %v5915_v1 = vor.u32 %v8694_v57, %v5914_v55  ;;  %v6044_v55 = vld [vmem:[#allocation5 + $0x1e8] sm:$0xf0] }
  0xb6   :  { %v7092_v4 = vld [vmem:[#allocation5 + $0xa20] sm:$0xf0]  ;;  %2676 = vmatmul.bf16.vlgmr.msra.gmra.mxu1 %v9696_v58  ;;  %v8886_v0 = vld [vmem:[#allocation5 + $0x6e4] sm:$0xf0]  ;;  %v8786_v57 = vld [vmem:[#allocation5 + $0x3cc] sm:$0xf] }
  0xb7   :  { %v7095_v15 = vor.u32 %v8985_v3, %v7092_v4  ;;  %2720 = vmatpush.bf16.msrb.mxu1 %v6043_v6  ;;  %v6170_v3 = vld [vmem:[#allocation5 + $0x2c8] sm:$0xf]  ;;  %v6683_v10 = vor.u32 %v8886_v0, %v6682_v63 }
  0xb8   :  { %2689 = vmatmul.bf16.vlgmr.msra.gmra.mxu3 %v9708_v31  ;;  %v8758_v4 = vld [vmem:[#allocation5 + $0x2e4] sm:$0xf0] }
  0xb9   :  { %2714 = vmatpush.bf16.msrb.mxu3 %v7351_v11  ;;  %2701 = vmatpush.bf16.msrb.mxu2 %v7095_v15  ;;  %v5882_v5 = vld [vmem:[#allocation5 + $0x88] sm:$0xf]  ;;  %v6171_v11 = vor.u32 %v8758_v4, %v6170_v3  ;;  %v6303_v4 = vor.u32 %v8786_v57, %v6300_v60 }
  0xba   :  { %2747 = vmatpush.bf16.msrb.mxu0 %v6523_v24  ;;  %v8686_v6 = vld [vmem:[#allocation5 + $0xa4] sm:$0xf0] }
  0xbb   :  { %2721 = vmatpush.bf16.msrb.mxu1 %v6011_v23  ;;  %v6394_v7 = vld [vmem:[#allocation5 + $0x488] sm:$0xf]  ;;  %v5883_v14 = vor.u32 %v8686_v6, %v5882_v5  ;;  %v8714_v6 = vld [vmem:[#allocation5 + $0x18c] sm:$0xf] }
  0xbc   :  { %2702 = vmatmul.bf16.vlgmr.msrb.gmra.mxu2 %v9710_v36  ;;  %v8814_v9 = vld [vmem:[#allocation5 + $0x4a4] sm:$0xf0] }
  0xbd   :  { %2759 = vmatpush.bf16.msra.mxu2 %v6811_v19  ;;  %2733 = vmatpush.bf16.msra.mxu3 %v6299_v20  ;;  %v6650_v12 = vld [vmem:[#allocation5 + $0x688] sm:$0xf]  ;;  %v6395_v15 = vor.u32 %v8814_v9, %v6394_v7  ;;  %v6012_v7 = vld [vmem:[#allocation5 + $0x1a8] sm:$0xf0] }
  0xbe   :  { %2748 = vmatpush.bf16.msrb.mxu0 %v6491_v38  ;;  %v8878_v13 = vld [vmem:[#allocation5 + $0x6a4] sm:$0xf0]  ;;  %v8778_v9 = vld [vmem:[#allocation5 + $0x38c] sm:$0xf] }
  0xbf   :  { %2722 = vmatpush.bf16.msrb.mxu1 %v5979_v37  ;;  %v6138_v16 = vld [vmem:[#allocation5 + $0x288] sm:$0xf]  ;;  %v6651_v22 = vor.u32 %v8878_v13, %v6650_v12 }
  0xc0   :  { %v8750_v17 = vld [vmem:[#allocation5 + $0x2a4] sm:$0xf0] }
  0xc1   :  { %2760 = vmatpush.bf16.msra.mxu2 %v6779_v32  ;;  %2734 = vmatpush.bf16.msra.mxu3 %v6267_v33  ;;  %v5850_v18 = vld [vmem:[#allocation5 + $0x48] sm:$0xf]  ;;  %v6139_v23 = vor.u32 %v8750_v17, %v6138_v16 }
  0xc2   :  { %2749 = vmatpush.bf16.msrb.mxu0 %v6459_v51  ;;  %v8678_v19 = vld [vmem:[#allocation5 + $0x64] sm:$0xf0] }
  0xc3   :  { %2723 = vmatpush.bf16.msrb.mxu1 %v5947_v50  ;;  %v6362_v20 = vld [vmem:[#allocation5 + $0x448] sm:$0xf]  ;;  %v5851_v27 = vor.u32 %v8678_v19, %v5850_v18  ;;  %v8706_v19 = vld [vmem:[#allocation5 + $0x14c] sm:$0xf] }
  0xc4   :  { %v8806_v21 = vld [vmem:[#allocation5 + $0x464] sm:$0xf0] }
  0xc5   :  { %2761 = vmatpush.bf16.msra.mxu2 %v6747_v45  ;;  %2735 = vmatpush.bf16.msra.mxu3 %v6235_v47  ;;  %v6106_v24 = vld [vmem:[#allocation5 + $0x248] sm:$0xf]  ;;  %v6363_v28 = vor.u32 %v8806_v21, %v6362_v20  ;;  %v5980_v20 = vld [vmem:[#allocation5 + $0x168] sm:$0xf0] }
  0xc6   :  { %2750 = vmatpush.bf16.msrb.mxu0 %v6427_v2  ;;  %v6618_v25 = vld [vmem:[#allocation5 + $0x648] sm:$0xf]  ;;  %v8770_v21 = vld [vmem:[#allocation5 + $0x34c] sm:$0xf] }
  0xc7   :  { %2724 = vmatpush.bf16.msrb.mxu1 %v5915_v1  ;;  %v8870_v26 = vld [vmem:[#allocation5 + $0x664] sm:$0xf0]  ;;  %v6047_v1 = vor.u32 %v8722_v54, %v6044_v55 }
  0xc8   :  { %7377 = vmatmul.msk.bf16.vlgmr.msrb.gmra.mxu3 %vm2534_vm0, %v9704_v46  ;;  %v8742_v29 = vld [vmem:[#allocation5 + $0x264] sm:$0xf0]  ;;  %v6619_v37 = vor.u32 %v8870_v26, %v6618_v25  ;;  %v5983_v26 = vor.u32 %v8706_v19, %v5980_v20 }
  0xc9   :  { %2762 = vmatpush.bf16.msra.mxu2 %v6715_v61  ;;  %2736 = vmatpush.bf16.msra.mxu3 %v6203_v62  ;;  %v5818_v30 = vld [vmem:[#allocation5 + $0x8] sm:$0xf]  ;;  %v6107_v41 = vor.u32 %v8742_v29, %v6106_v24 }
  0xca   :  { %2751 = vmatpush.bf16.msrb.mxu0 %v6395_v15  ;;  %v8670_v32 = vld [vmem:[#allocation5 + $0x24] sm:$0xf0] }
  0xcb   :  { %2725 = vmatpush.bf16.msrb.mxu1 %v5883_v14  ;;  %v6330_v33 = vld [vmem:[#allocation5 + $0x408] sm:$0xf]  ;;  %v5819_v45 = vor.u32 %v8670_v32, %v5818_v30  ;;  %v6015_v14 = vor.u32 %v8714_v6, %v6012_v7  ;;  %v8698_v32 = vld [vmem:[#allocation5 + $0x10c] sm:$0xf] }
  0xcc   :  { %v8798_v34 = vld [vmem:[#allocation5 + $0x424] sm:$0xf0] }
  0xcd   :  { %2763 = vmatpush.bf16.msra.mxu2 %v6683_v10  ;;  %2737 = vmatpush.bf16.msra.mxu3 %v6171_v11  ;;  %v7066_v35 = vld [vmem:[#allocation5 + $0x9c8] sm:$0xf]  ;;  %v6331_v47 = vor.u32 %v8798_v34, %v6330_v33  ;;  %v6268_v10 = vld [vmem:[#allocation5 + $0x3a8] sm:$0xf0] }
  0xce   :  { %v8982_v38 = vld [vmem:[#allocation5 + $0x9e4] sm:$0xf0]  ;;  %2752 = vmatpush.bf16.msrb.mxu0 %v6363_v28  ;;  %v6271_v17 = vor.u32 %v8778_v9, %v6268_v10  ;;  %v5948_v33 = vld [vmem:[#allocation5 + $0x128] sm:$0xf0] }
  0xcf   :  { %v7354_v39 = vld [vmem:[#allocation5 + $0xc08] sm:$0xf]  ;;  %2726 = vmatpush.bf16.msrb.mxu1 %v5851_v27  ;;  %v7067_v51 = vor.u32 %v8982_v38, %v7066_v35  ;;  %v8762_v34 = vld [vmem:[#allocation5 + $0x30c] sm:$0xf] }
  0xd0   :  { %v9054_v40 = vld [vmem:[#allocation5 + $0xc24] sm:$0xf0]  ;;  %v6204_v35 = vld [vmem:[#allocation5 + $0x328] sm:$0xf0] }
  0xd1   :  { %2764 = vmatpush.bf16.msra.mxu2 %v6651_v22  ;;  %2738 = vmatpush.bf16.msra.mxu3 %v6139_v23  ;;  %v6074_v42 = vld [vmem:[#allocation5 + $0x208] sm:$0xf]  ;;  %v7355_v53 = vor.u32 %v9054_v40, %v7354_v39  ;;  %v6236_v22 = vld [vmem:[#allocation5 + $0x368] sm:$0xf0]  ;;  %v5951_v40 = vor.u32 %v8698_v32, %v5948_v33 }
  0xd2   :  { %v6586_v43 = vld [vmem:[#allocation5 + $0x608] sm:$0xf]  ;;  %2753 = vmatpush.bf16.msrb.mxu0 %v6331_v47  ;;  %v6239_v29 = vor.u32 %v8770_v21, %v6236_v22  ;;  %v5916_v47 = vld [vmem:[#allocation5 + $0xe8] sm:$0xf0] }
  0xd3   :  { %v8862_v44 = vld [vmem:[#allocation5 + $0x624] sm:$0xf0]  ;;  %2727 = vmatpush.bf16.msrb.mxu1 %v5819_v45  ;;  %v8690_v45 = vld [vmem:[#allocation5 + $0xcc] sm:$0xf] }
  0xd4   :  { %v8734_v48 = vld [vmem:[#allocation5 + $0x224] sm:$0xf0]  ;;  %v6587_v59 = vor.u32 %v8862_v44, %v6586_v43  ;;  %v6207_v43 = vor.u32 %v8762_v34, %v6204_v35  ;;  %v5919_v54 = vor.u32 %v8690_v45, %v5916_v47  ;;  %v8674_v10 = vld [vmem:[#allocation5 + $0x4c] sm:$0xf] }
  0xd5   :  { %v7322_v49 = vld [vmem:[#allocation5 + $0xbc8] sm:$0xf]  ;;  %2765 = vmatpush.bf16.msra.mxu2 %v6619_v37  ;;  %2739 = vmatpush.bf16.msra.mxu3 %v6107_v41  ;;  %v6075_v63 = vor.u32 %v8734_v48, %v6074_v42  ;;  %v8754_v48 = vld [vmem:[#allocation5 + $0x2cc] sm:$0xf] }
  0xd6   :  { %v9046_v50 = vld [vmem:[#allocation5 + $0xbe4] sm:$0xf0]  ;;  %2805 = vmatpush.bf16.msra.mxu0 %v7355_v53  ;;  %2728 = vmatmul.bf16.vlgmr.msrb.gmra.mxu1 %v9694_v56  ;;  %v8978_v32 = vld [vmem:[#allocation5 + $0x9cc] sm:$0xf] }
  0xd7   :  { %v7034_v61 = vld [vmem:[#allocation5 + $0x988] sm:$0xf]  ;;  %v7323_v0 = vor.u32 %v9046_v50, %v7322_v49  ;;  %2772 = vmatpush.bf16.msra.mxu1 %v7067_v51  ;;  %2754 = vmatmul.bf16.vlgmr.msrb.gmra.mxu0 %v9692_v52  ;;  %v6172_v49 = vld [vmem:[#allocation5 + $0x2e8] sm:$0xf0] }
  0xd8   :  { %v8974_v62 = vld [vmem:[#allocation5 + $0x9a4] sm:$0xf0]  ;;  %v7068_v33 = vld [vmem:[#allocation5 + $0x9e8] sm:$0xf0] }
  0xd9   :  { %v7290_v2 = vld [vmem:[#allocation5 + $0xb88] sm:$0xf]  ;;  %v7035_v5 = vor.u32 %v8974_v62, %v7034_v61  ;;  %2766 = vmatpush.bf16.msra.mxu2 %v6587_v59  ;;  %2740 = vmatpush.bf16.msra.mxu3 %v6075_v63  ;;  %v6175_v59 = vor.u32 %v8754_v48, %v6172_v49  ;;  %v8682_v61 = vld [vmem:[#allocation5 + $0x8c] sm:$0xf] }
  0xda   :  { %v9038_v3 = vld [vmem:[#allocation5 + $0xba4] sm:$0xf0]  ;;  %2824 = vmatpush.bf16.msrb.mxu0 %v6303_v4  ;;  %v5884_v62 = vld [vmem:[#allocation5 + $0xa8] sm:$0xf0] }
  0xdb   :  { %v7002_v11 = vld [vmem:[#allocation5 + $0x948] sm:$0xf]  ;;  %v7291_v13 = vor.u32 %v9038_v3, %v7290_v2  ;;  %2773 = vmatpush.bf16.msra.mxu1 %v7035_v5  ;;  %v8746_v63 = vld [vmem:[#allocation5 + $0x28c] sm:$0xf]  ;;  %v5887_v4 = vor.u32 %v8682_v61, %v5884_v62 }
  0xdc   :  { %v8966_v12 = vld [vmem:[#allocation5 + $0x964] sm:$0xf0]  ;;  %2741 = vmatmul.bf16.vlgmr.msra.gmra.mxu3 %v9700_v8  ;;  %2767 = vmatmul.bf16.vlgmr.msra.gmra.mxu2 %v9696_v58  ;;  %v9042_v34 = vld [vmem:[#allocation5 + $0xbcc] sm:$0xf] }
  0xdd   :  { %2785 = vmatpush.bf16.msrb.mxu3 %v7323_v0  ;;  %2811 = vmatpush.bf16.msrb.mxu2 %v6047_v1  ;;  %v7258_v15 = vld [vmem:[#allocation5 + $0xb48] sm:$0xf]  ;;  %v7003_v18 = vor.u32 %v8966_v12, %v7002_v11  ;;  %v6140_v0 = vld [vmem:[#allocation5 + $0x2a8] sm:$0xf0] }
  0xde   :  { %v9030_v16 = vld [vmem:[#allocation5 + $0xb64] sm:$0xf0]  ;;  %2825 = vmatpush.bf16.msrb.mxu0 %v6271_v17  ;;  %v6143_v7 = vor.u32 %v8746_v63, %v6140_v0  ;;  %v5852_v11 = vld [vmem:[#allocation5 + $0x68] sm:$0xf0] }
  0xdf   :  { %v6970_v23 = vld [vmem:[#allocation5 + $0x908] sm:$0xf]  ;;  %v7259_v25 = vor.u32 %v9030_v16, %v7258_v15  ;;  %2774 = vmatpush.bf16.msra.mxu1 %v7003_v18  ;;  %v8738_v12 = vld [vmem:[#allocation5 + $0x24c] sm:$0xf]  ;;  %v5855_v19 = vor.u32 %v8674_v10, %v5852_v11 }
  0xe0   :  { %v8958_v24 = vld [vmem:[#allocation5 + $0x924] sm:$0xf0]  ;;  %v8850_v16 = vld [vmem:[#allocation5 + $0x5cc] sm:$0xf] }
  0xe1   :  { %2786 = vmatpush.bf16.msrb.mxu3 %v7291_v13  ;;  %2812 = vmatpush.bf16.msrb.mxu2 %v6015_v14  ;;  %v7226_v27 = vld [vmem:[#allocation5 + $0xb08] sm:$0xf]  ;;  %v6971_v30 = vor.u32 %v8958_v24, %v6970_v23  ;;  %v6108_v13 = vld [vmem:[#allocation5 + $0x268] sm:$0xf0] }
  0xe2   :  { %v9022_v28 = vld [vmem:[#allocation5 + $0xb24] sm:$0xf0]  ;;  %2826 = vmatpush.bf16.msrb.mxu0 %v6239_v29  ;;  %v6556_v17 = vld [vmem:[#allocation5 + $0x5e8] sm:$0xf0]  ;;  %v6111_v22 = vor.u32 %v8738_v12, %v6108_v13 }
  0xe3   :  { %v6938_v37 = vld [vmem:[#allocation5 + $0x8c8] sm:$0xf]  ;;  %v7227_v39 = vor.u32 %v9022_v28, %v7226_v27  ;;  %2775 = vmatpush.bf16.msra.mxu1 %v6971_v30  ;;  %v8666_v24 = vld [vmem:[#allocation5 + $0xc] sm:$0xf]  ;;  %v6559_v27 = vor.u32 %v8850_v16, %v6556_v17 }
  0xe4   :  { %v8950_v38 = vld [vmem:[#allocation5 + $0x8e4] sm:$0xf0]  ;;  %v6076_v28 = vld [vmem:[#allocation5 + $0x228] sm:$0xf0] }
  0xe5   :  { %2787 = vmatpush.bf16.msrb.mxu3 %v7259_v25  ;;  %2813 = vmatpush.bf16.msrb.mxu2 %v5983_v26  ;;  %v7194_v41 = vld [vmem:[#allocation5 + $0xac8] sm:$0xf]  ;;  %v6939_v44 = vor.u32 %v8950_v38, %v6938_v37  ;;  %v5820_v25 = vld [vmem:[#allocation5 + $0x28] sm:$0xf0] }
  0xe6   :  { %v9014_v42 = vld [vmem:[#allocation5 + $0xae4] sm:$0xf0]  ;;  %2827 = vmatpush.bf16.msrb.mxu0 %v6207_v43  ;;  %v8730_v26 = vld [vmem:[#allocation5 + $0x20c] sm:$0xf]  ;;  %v7071_v43 = vor.u32 %v8978_v32, %v7068_v33 }
  0xe7   :  { %v6906_v50 = vld [vmem:[#allocation5 + $0x888] sm:$0xf]  ;;  %v7195_v53 = vor.u32 %v9014_v42, %v7194_v41  ;;  %2776 = vmatpush.bf16.msra.mxu1 %v6939_v44  ;;  %7378 = vmatmul.msk.bf16.vlgmr.msra.gmra.mxu0 %vm2534_vm0, %v9704_v46  ;;  %v8914_v29 = vld [vmem:[#allocation5 + $0x7cc] sm:$0xf]  ;;  %v6079_v41 = vor.u32 %v8730_v26, %v6076_v28 }
  0xe8   :  { %v8942_v51 = vld [vmem:[#allocation5 + $0x8a4] sm:$0xf0]  ;;  %v6812_v30 = vld [vmem:[#allocation5 + $0x7e8] sm:$0xf0] }
  0xe9   :  { %2788 = vmatpush.bf16.msrb.mxu3 %v7227_v39  ;;  %2814 = vmatpush.bf16.msrb.mxu2 %v5951_v40  ;;  %v7162_v55 = vld [vmem:[#allocation5 + $0xa88] sm:$0xf]  ;;  %v6907_v60 = vor.u32 %v8942_v51, %v6906_v50  ;;  %v7324_v37 = vld [vmem:[#allocation5 + $0xbe8] sm:$0xf0]  ;;  %v5823_v40 = vor.u32 %v8666_v24, %v5820_v25  ;;  %v6815_v42 = vor.u32 %v8914_v29, %v6812_v30  ;;  %v2560_v29 = vpop.f32.mrf.mxu1 }
  0xea   :  { %v9006_v57 = vld [vmem:[#allocation5 + $0xaa4] sm:$0xf0]  ;;  %2828 = vmatpush.bf16.msrb.mxu0 %v6175_v59  ;;  %v8842_v38 = vld [vmem:[#allocation5 + $0x58c] sm:$0xf]  ;;  %v7327_v47 = vor.u32 %v9042_v34, %v7324_v37 }
  0xeb   :  { %v6874_v1 = vld [vmem:[#allocation5 + $0x848] sm:$0xf]  ;;  %v7163_v3 = vor.u32 %v9006_v57, %v7162_v55  ;;  %2777 = vmatpush.bf16.msra.mxu1 %v6907_v60  ;;  %v6524_v39 = vld [vmem:[#allocation5 + $0x5a8] sm:$0xf0]  ;;  %v9729_v57 = vld [vmem:[#allocation7] sm:$0xff] }
  0xec   :  { %v8934_v2 = vld [vmem:[#allocation5 + $0x864] sm:$0xf0]  ;;  %v8906_v44 = vld [vmem:[#allocation5 + $0x78c] sm:$0xf]  ;;  %v6527_v48 = vor.u32 %v8842_v38, %v6524_v39 }
  0xed   :  { %2789 = vmatpush.bf16.msrb.mxu3 %v7195_v53  ;;  %2815 = vmatpush.bf16.msrb.mxu2 %v5919_v54  ;;  %v7130_v5 = vld [vmem:[#allocation5 + $0xa48] sm:$0xf]  ;;  %v6875_v9 = vor.u32 %v8934_v2, %v6874_v1  ;;  %v6780_v45 = vld [vmem:[#allocation5 + $0x7a8] sm:$0xf0]  ;;  %v2573_v39 = vpop.f32.mrf.mxu2 }
  0xee   :  { %v8998_v6 = vld [vmem:[#allocation5 + $0xa64] sm:$0xf0]  ;;  %2829 = vmatpush.bf16.msrb.mxu0 %v6143_v7  ;;  %v8970_v49 = vld [vmem:[#allocation5 + $0x98c] sm:$0xf]  ;;  %v6783_v59 = vor.u32 %v8906_v44, %v6780_v45  ;;  %v558_v7 = vperm.slane %v9729_v57, 0 }
  0xef   :  { %v6842_v14 = vld [vmem:[#allocation5 + $0x808] sm:$0xf]  ;;  %v7131_v18 = vor.u32 %v8998_v6, %v7130_v5  ;;  %2778 = vmatpush.bf16.msra.mxu1 %v6875_v9  ;;  %v7036_v50 = vld [vmem:[#allocation5 + $0x9a8] sm:$0xf0] }
  0xf0   :  { %v8926_v15 = vld [vmem:[#allocation5 + $0x824] sm:$0xf0]  ;;  %v9034_v51 = vld [vmem:[#allocation5 + $0xb8c] sm:$0xf]  ;;  %v7039_v60 = vor.u32 %v8970_v49, %v7036_v50 }
  0xf1   :  { %2790 = vmatpush.bf16.msrb.mxu3 %v7163_v3  ;;  %2816 = vmatpush.bf16.msrb.mxu2 %v5887_v4  ;;  %v7098_v20 = vld [vmem:[#allocation5 + $0xa08] sm:$0xf]  ;;  %v6843_v23 = vor.u32 %v8926_v15, %v6842_v14  ;;  %v7292_v53 = vld [vmem:[#allocation5 + $0xba8] sm:$0xf0] }
  0xf2   :  { %v8990_v21 = vld [vmem:[#allocation5 + $0xa24] sm:$0xf0]  ;;  %2830 = vmatpush.bf16.msrb.mxu0 %v6111_v22  ;;  %v8834_v54 = vld [vmem:[#allocation5 + $0x54c] sm:$0xf]  ;;  %v7295_v0 = vor.u32 %v9034_v51, %v7292_v53 }
  0xf3   :  { %v7099_v35 = vor.u32 %v8990_v21, %v7098_v20  ;;  %2779 = vmatpush.bf16.msra.mxu1 %v6843_v23  ;;  %v6492_v55 = vld [vmem:[#allocation5 + $0x568] sm:$0xf0] }
  0xf4   :  { %v8898_v61 = vld [vmem:[#allocation5 + $0x74c] sm:$0xf]  ;;  %v6495_v1 = vor.u32 %v8834_v54, %v6492_v55 }
  0xf5   :  { %2791 = vmatpush.bf16.msrb.mxu3 %v7131_v18  ;;  %2817 = vmatpush.bf16.msrb.mxu2 %v5855_v19  ;;  %v6748_v62 = vld [vmem:[#allocation5 + $0x768] sm:$0xf0]  ;;  %v2547_v18 = vpop.f32.mrf.mxu0 }
  0xf6   :  { %2780 = vmatmul.bf16.vlgmr.msra.gmra.mxu1 %v9708_v31  ;;  %2831 = vmatpush.bf16.msrb.mxu0 %v6079_v41  ;;  %v8962_v63 = vld [vmem:[#allocation5 + $0x94c] sm:$0xf]  ;;  %v6751_v9 = vor.u32 %v8898_v61, %v6748_v62  ;;  %v2548_v22 = vadd.f32 %v2547_v18, %v558_v7 }
  0xf7   :  { %2837 = vmatpush.bf16.msrb.mxu1 %v6559_v27  ;;  %v7004_v2 = vld [vmem:[#allocation5 + $0x968] sm:$0xf0] }
  0xf8   :  { %v9026_v3 = vld [vmem:[#allocation5 + $0xb4c] sm:$0xf]  ;;  %v7007_v10 = vor.u32 %v8962_v63, %v7004_v2  ;;  %v2561_v34 = vadd.f32 %v2560_v29, %v2548_v22  ;;  %v8791_v29 = vld [vmem:[#allocation5 + $0x3ec] sm:$0xf0] }
  0xf9   :  { %2792 = vmatpush.bf16.msrb.mxu3 %v7099_v35  ;;  %2818 = vmatpush.bf16.msrb.mxu2 %v5823_v40  ;;  %v7260_v4 = vld [vmem:[#allocation5 + $0xb68] sm:$0xf0] }
  0xfa   :  { %2876 = vmatpush.bf16.msra.mxu0 %v7327_v47  ;;  %v8826_v5 = vld [vmem:[#allocation5 + $0x50c] sm:$0xf]  ;;  %v7263_v13 = vor.u32 %v9026_v3, %v7260_v4 }
  0xfb   :  { %2838 = vmatpush.bf16.msrb.mxu1 %v6527_v48  ;;  %v6460_v6 = vld [vmem:[#allocation5 + $0x528] sm:$0xf0]  ;;  %2832 = vmatmul.bf16.vlgmr.msrb.gmra.mxu0 %v9700_v8 }
  0xfc   :  { %2793 = vmatmul.bf16.vlgmr.msrb.gmra.mxu3 %v9710_v36  ;;  %2819 = vmatmul.bf16.vlgmr.msrb.gmra.mxu2 %v9694_v56  ;;  %v8890_v11 = vld [vmem:[#allocation5 + $0x70c] sm:$0xf]  ;;  %v6463_v14 = vor.u32 %v8826_v5, %v6460_v6  ;;  %v2562_v6 = vpop.f32.mrf.mxu1 }
  0xfd   :  { %2850 = vmatpush.bf16.msra.mxu3 %v6815_v42  ;;  %2863 = vmatpush.bf16.msra.mxu2 %v7071_v43  ;;  %v6716_v12 = vld [vmem:[#allocation5 + $0x728] sm:$0xf0]  ;;  %v2574_v42 = vadd.f32 %v2573_v39, %v2561_v34  ;;  %v2586_v43 = vpop.f32.mrf.mxu3  ;;  %v2549_v53 = vpop.f32.mrf.mxu0  ;;  %v6818_v34 = vld [vmem:[#allocation5 + $0x7d0] sm:$0xf] }
  0xfe   :  { %2877 = vmatpush.bf16.msra.mxu0 %v7295_v0  ;;  %v8954_v15 = vld [vmem:[#allocation5 + $0x90c] sm:$0xf]  ;;  %v6719_v23 = vor.u32 %v8890_v11, %v6716_v12  ;;  %v2575_v11 = vpop.f32.mrf.mxu2  ;;  %v8911_v53 = vld [vmem:[#allocation5 + $0x7ac] sm:$0xf0] }
  0xff   :  { %2839 = vmatpush.bf16.msrb.mxu1 %v6495_v1  ;;  %v6972_v16 = vld [vmem:[#allocation5 + $0x928] sm:$0xf0]  ;;  %v9735_v54 = vadd.f32 %v2586_v43, %v2574_v42  ;;  %v8719_v42 = vld [vmem:[#allocation5 + $0x1ac] sm:$0xf0] }
 0x100   :  { %v9018_v17 = vld [vmem:[#allocation5 + $0xb0c] sm:$0xf]  ;;  %v6975_v24 = vor.u32 %v8954_v15, %v6972_v16  ;;  %v8703_v11 = vld [vmem:[#allocation5 + $0x12c] sm:$0xf0] }
 0x101   :  { %2851 = vmatpush.bf16.msra.mxu3 %v6783_v59  ;;  %2864 = vmatpush.bf16.msra.mxu2 %v7039_v60  ;;  %v7228_v19 = vld [vmem:[#allocation5 + $0xb28] sm:$0xf0] }
 0x102   :  { %v8818_v20 = vld [vmem:[#allocation5 + $0x4cc] sm:$0xf]  ;;  %2878 = vmatpush.bf16.msra.mxu0 %v7263_v13  ;;  %v7231_v27 = vor.u32 %v9018_v17, %v7228_v19 }
 0x103   :  { %v6428_v21 = vld [vmem:[#allocation5 + $0x4e8] sm:$0xf0]  ;;  %2840 = vmatpush.bf16.msrb.mxu1 %v6463_v14 }
 0x104   :  { %v8882_v25 = vld [vmem:[#allocation5 + $0x6cc] sm:$0xf]  ;;  %v6431_v28 = vor.u32 %v8818_v20, %v6428_v21 }
 0x105   :  { %2852 = vmatpush.bf16.msra.mxu3 %v6751_v9  ;;  %2865 = vmatpush.bf16.msra.mxu2 %v7007_v10  ;;  %v6684_v26 = vld [vmem:[#allocation5 + $0x6e8] sm:$0xf0]  ;;  %v2588_v18 = vpop.f32.mrf.mxu3 }
 0x106   :  { %v8946_v30 = vld [vmem:[#allocation5 + $0x8cc] sm:$0xf]  ;;  %v6687_v40 = vor.u32 %v8882_v25, %v6684_v26  ;;  %2879 = vmatpush.bf16.msra.mxu0 %v7231_v27  ;;  %v6050_v26 = vld [vmem:[#allocation5 + $0x1d0] sm:$0xf] }
 0x107   :  { %v6940_v32 = vld [vmem:[#allocation5 + $0x8e8] sm:$0xf0]  ;;  %2841 = vmatpush.bf16.msrb.mxu1 %v6431_v28  ;;  %v8727_v27 = vld [vmem:[#allocation5 + $0x1ec] sm:$0xf0] }
 0x108   :  { %v9010_v33 = vld [vmem:[#allocation5 + $0xacc] sm:$0xf]  ;;  %v6943_v41 = vor.u32 %v8946_v30, %v6940_v32  ;;  %v6306_v28 = vld [vmem:[#allocation5 + $0x3d0] sm:$0xf]  ;;  %v6051_v39 = vor.u32 %v8727_v27, %v6050_v26 }
 0x109   :  { %v7196_v35 = vld [vmem:[#allocation5 + $0xae8] sm:$0xf0]  ;;  %2853 = vmatpush.bf16.msra.mxu3 %v6719_v23  ;;  %2866 = vmatpush.bf16.msra.mxu2 %v6975_v24  ;;  %v6562_v30 = vld [vmem:[#allocation5 + $0x5d0] sm:$0xf] }
 0x10a   :  { %v8810_v37 = vld [vmem:[#allocation5 + $0x48c] sm:$0xf]  ;;  %v7199_v47 = vor.u32 %v9010_v33, %v7196_v35  ;;  %v8855_v33 = vld [vmem:[#allocation5 + $0x5ec] sm:$0xf0]  ;;  %v2599_v6 = vpop.f32.mrf.mxu0 }
 0x10b   :  { %v6396_v38 = vld [vmem:[#allocation5 + $0x4a8] sm:$0xf0]  ;;  %v8919_v35 = vld [vmem:[#allocation5 + $0x7ec] sm:$0xf0]  ;;  %v6563_v43 = vor.u32 %v8855_v33, %v6562_v30 }
 0x10c   :  { %v8874_v44 = vld [vmem:[#allocation5 + $0x68c] sm:$0xf]  ;;  %v6399_v48 = vor.u32 %v8810_v37, %v6396_v38  ;;  %2880 = vmatpush.bf16.msra.mxu0 %v7199_v47  ;;  %v8783_v47 = vld [vmem:[#allocation5 + $0x3ac] sm:$0xf0] }
 0x10d   :  { %v6652_v45 = vld [vmem:[#allocation5 + $0x6a8] sm:$0xf0]  ;;  %2854 = vmatpush.bf16.msra.mxu3 %v6687_v40  ;;  %2867 = vmatpush.bf16.msra.mxu2 %v6943_v41  ;;  %v6307_v40 = vor.u32 %v8791_v29, %v6306_v28  ;;  %v6018_v41 = vld [vmem:[#allocation5 + $0x190] sm:$0xf] }
 0x10e   :  { %v8938_v49 = vld [vmem:[#allocation5 + $0x88c] sm:$0xf]  ;;  %v6655_v61 = vor.u32 %v8874_v44, %v6652_v45  ;;  %2842 = vmatpush.bf16.msrb.mxu1 %v6399_v48  ;;  %v6819_v44 = vor.u32 %v8919_v35, %v6818_v34  ;;  %v6274_v45 = vld [vmem:[#allocation5 + $0x390] sm:$0xf]  ;;  %v559_v34 = vperm.slane %v9729_v57, 1 }
 0x10f   :  { %v6908_v50 = vld [vmem:[#allocation5 + $0x8a8] sm:$0xf0]  ;;  %v6530_v48 = vld [vmem:[#allocation5 + $0x590] sm:$0xf] }
 0x110   :  { %v9002_v51 = vld [vmem:[#allocation5 + $0xa8c] sm:$0xf]  ;;  %v6911_v62 = vor.u32 %v8938_v49, %v6908_v50  ;;  %v2625_v49 = vpop.f32.mrf.mxu2  ;;  %v8847_v50 = vld [vmem:[#allocation5 + $0x5ac] sm:$0xf0] }
 0x111   :  { %v7164_v55 = vld [vmem:[#allocation5 + $0xaa8] sm:$0xf0]  ;;  %2855 = vmatpush.bf16.msra.mxu3 %v6655_v61  ;;  %v8711_v61 = vld [vmem:[#allocation5 + $0x16c] sm:$0xf0] }
 0x112   :  { %v8802_v59 = vld [vmem:[#allocation5 + $0x44c] sm:$0xf]  ;;  %v7167_v1 = vor.u32 %v9002_v51, %v7164_v55  ;;  %2868 = vmatpush.bf16.msra.mxu2 %v6911_v62  ;;  %v6786_v51 = vld [vmem:[#allocation5 + $0x790] sm:$0xf]  ;;  %v6019_v55 = vor.u32 %v8719_v42, %v6018_v41  ;;  %v6531_v62 = vor.u32 %v8847_v50, %v6530_v48 }
 0x113   :  { %v6364_v60 = vld [vmem:[#allocation5 + $0x468] sm:$0xf0]  ;;  %v6466_v18 = vld [vmem:[#allocation5 + $0x510] sm:$0xf] }
 0x114   :  { %v8866_v63 = vld [vmem:[#allocation5 + $0x64c] sm:$0xf]  ;;  %v6367_v2 = vor.u32 %v8802_v59, %v6364_v60  ;;  %2881 = vmatpush.bf16.msra.mxu0 %v7167_v1  ;;  %v6275_v59 = vor.u32 %v8783_v47, %v6274_v45  ;;  %v5986_v60 = vld [vmem:[#allocation5 + $0x150] sm:$0xf] }
 0x115   :  { %v6620_v0 = vld [vmem:[#allocation5 + $0x668] sm:$0xf0]  ;;  %v8775_v1 = vld [vmem:[#allocation5 + $0x36c] sm:$0xf0] }
 0x116   :  { %v8930_v3 = vld [vmem:[#allocation5 + $0x84c] sm:$0xf]  ;;  %v6623_v14 = vor.u32 %v8866_v63, %v6620_v0  ;;  %2843 = vmatpush.bf16.msrb.mxu1 %v6367_v2  ;;  %v6787_v63 = vor.u32 %v8911_v53, %v6786_v51  ;;  %v6242_v0 = vld [vmem:[#allocation5 + $0x350] sm:$0xf] }
 0x117   :  { %v6876_v4 = vld [vmem:[#allocation5 + $0x868] sm:$0xf0]  ;;  %v6498_v2 = vld [vmem:[#allocation5 + $0x550] sm:$0xf] }
 0x118   :  { %v8994_v5 = vld [vmem:[#allocation5 + $0xa4c] sm:$0xf]  ;;  %v6879_v15 = vor.u32 %v8930_v3, %v6876_v4  ;;  %2856 = vmatpush.bf16.msra.mxu3 %v6623_v14  ;;  %v8839_v3 = vld [vmem:[#allocation5 + $0x56c] sm:$0xf0] }
 0x119   :  { %v7132_v7 = vld [vmem:[#allocation5 + $0xa68] sm:$0xf0]  ;;  %v6754_v4 = vld [vmem:[#allocation5 + $0x750] sm:$0xf] }
 0x11a   :  { %v8794_v9 = vld [vmem:[#allocation5 + $0x40c] sm:$0xf]  ;;  %v7135_v19 = vor.u32 %v8994_v5, %v7132_v7  ;;  %2869 = vmatpush.bf16.msra.mxu2 %v6879_v15  ;;  %v8903_v5 = vld [vmem:[#allocation5 + $0x76c] sm:$0xf0]  ;;  %v5987_v7 = vor.u32 %v8711_v61, %v5986_v60  ;;  %v2612_v15 = vpop.f32.mrf.mxu1 }
 0x11b   :  { %v6332_v10 = vld [vmem:[#allocation5 + $0x428] sm:$0xf0]  ;;  %v6755_v14 = vor.u32 %v8903_v5, %v6754_v4  ;;  %v5922_v26 = vld [vmem:[#allocation5 + $0xd0] sm:$0xf] }
 0x11c   :  { %v9050_v12 = vld [vmem:[#allocation5 + $0xc0c] sm:$0xf]  ;;  %v6335_v20 = vor.u32 %v8794_v9, %v6332_v10  ;;  %2882 = vmatpush.bf16.msra.mxu0 %v7135_v19  ;;  %v6243_v9 = vor.u32 %v8775_v1, %v6242_v0  ;;  %v5954_v10 = vld [vmem:[#allocation5 + $0x110] sm:$0xf]  ;;  %v2627_v19 = vpop.f32.mrf.mxu2 }
 0x11d   :  { %v7356_v13 = vld [vmem:[#allocation5 + $0xc28] sm:$0xf0]  ;;  %v8695_v27 = vld [vmem:[#allocation5 + $0xec] sm:$0xf0] }
 0x11e   :  { %v8858_v16 = vld [vmem:[#allocation5 + $0x60c] sm:$0xf]  ;;  %v7359_v25 = vor.u32 %v9050_v12, %v7356_v13  ;;  %2844 = vmatpush.bf16.msrb.mxu1 %v6335_v20  ;;  %v2600_v12 = vadd.f32 %v2599_v6, %v9735_v54  ;;  %v6499_v13 = vor.u32 %v8839_v3, %v6498_v2  ;;  %v8831_v20 = vld [vmem:[#allocation5 + $0x52c] sm:$0xf0] }
 0x11f   :  { %v6588_v17 = vld [vmem:[#allocation5 + $0x628] sm:$0xf0]  ;;  %v6178_v28 = vld [vmem:[#allocation5 + $0x2d0] sm:$0xf]  ;;  %v6467_v29 = vor.u32 %v8831_v20, %v6466_v18 }
 0x120   :  { %v8922_v21 = vld [vmem:[#allocation5 + $0x80c] sm:$0xf]  ;;  %v6591_v32 = vor.u32 %v8858_v16, %v6588_v17  ;;  %v6210_v16 = vld [vmem:[#allocation5 + $0x310] sm:$0xf] }
 0x121   :  { %v6844_v22 = vld [vmem:[#allocation5 + $0x828] sm:$0xf0]  ;;  %2845 = vmatmul.bf16.vlgmr.msrb.gmra.mxu1 %v9692_v52  ;;  %v8767_v17 = vld [vmem:[#allocation5 + $0x32c] sm:$0xf0] }
 0x122   :  { %v8986_v23 = vld [vmem:[#allocation5 + $0xa0c] sm:$0xf]  ;;  %v6847_v37 = vor.u32 %v8922_v21, %v6844_v22  ;;  %2896 = vmatpush.bf16.msra.mxu1 %v7359_v25  ;;  %2857 = vmatpush.bf16.msra.mxu3 %v6591_v32  ;;  %v6722_v21 = vld [vmem:[#allocation5 + $0x710] sm:$0xf]  ;;  %v6211_v25 = vor.u32 %v8767_v17, %v6210_v16  ;;  %v2614_v53 = vpop.f32.mrf.mxu1 }
 0x123   :  { %v7100_v24 = vld [vmem:[#allocation5 + $0xa28] sm:$0xf0]  ;;  %v8895_v22 = vld [vmem:[#allocation5 + $0x72c] sm:$0xf0] }
 0x124   :  { %v7103_v38 = vor.u32 %v8986_v23, %v7100_v24  ;;  %2870 = vmatpush.bf16.msra.mxu2 %v6847_v37  ;;  %v2613_v23 = vadd.f32 %v2612_v15, %v2600_v12  ;;  %v5955_v24 = vor.u32 %v8703_v11, %v5954_v10  ;;  %v6723_v30 = vor.u32 %v8895_v22, %v6722_v21  ;;  %v8759_v32 = vld [vmem:[#allocation5 + $0x2ec] sm:$0xf0]  ;;  %v2651_v61 = vpop.f32.mrf.mxu2 }
 0x125   :  { %2858 = vmatmul.bf16.vlgmr.msra.gmra.mxu3 %v9696_v58  ;;  %v6434_v33 = vld [vmem:[#allocation5 + $0x4d0] sm:$0xf] }
 0x126   :  { %2883 = vmatpush.bf16.msra.mxu0 %v7103_v38  ;;  %2902 = vmatpush.bf16.msrb.mxu3 %v6051_v39  ;;  %v9742_v54 = vadd.f32 %v2625_v49, %v2613_v23  ;;  %v8823_v35 = vld [vmem:[#allocation5 + $0x4ec] sm:$0xf0]  ;;  %v5923_v39 = vor.u32 %v8695_v27, %v5922_v26 }
 0x127   :  { %2915 = vmatpush.bf16.msrb.mxu1 %v6307_v40  ;;  %2871 = vmatmul.bf16.vlgmr.msra.gmra.mxu2 %v9708_v31  ;;  %v6690_v37 = vld [vmem:[#allocation5 + $0x6d0] sm:$0xf]  ;;  %v6179_v40 = vor.u32 %v8759_v32, %v6178_v28  ;;  %v6435_v45 = vor.u32 %v8823_v35, %v6434_v33  ;;  %v8723_v33 = vld [vmem:[#allocation5 + $0x1d4] sm:$0xf] }
 0x128   :  { %2928 = vmatpush.bf16.msrb.mxu2 %v6563_v43  ;;  %v8887_v38 = vld [vmem:[#allocation5 + $0x6ec] sm:$0xf0]  ;;  %v2638_v43 = vpop.f32.mrf.mxu3 }
 0x129   :  { %2884 = vmatmul.bf16.vlgmr.msra.gmra.mxu0 %v9710_v36  ;;  %v5890_v41 = vld [vmem:[#allocation5 + $0x90] sm:$0xf]  ;;  %v6691_v47 = vor.u32 %v8887_v38, %v6690_v37  ;;  %v2639_v51 = vadd.f32 %v2638_v43, %v559_v34  ;;  %v6052_v34 = vld [vmem:[#allocation5 + $0x1f0] sm:$0xf0] }
 0x12a   :  { %2941 = vmatpush.bf16.msrb.mxu0 %v6819_v44  ;;  %2903 = vmatpush.bf16.msrb.mxu3 %v6019_v55  ;;  %v8687_v42 = vld [vmem:[#allocation5 + $0xac] sm:$0xf0]  ;;  %v2601_v44 = vpop.f32.mrf.mxu0  ;;  %v6308_v43 = vld [vmem:[#allocation5 + $0x3f0] sm:$0xf0] }
 0x12b   :  { %2916 = vmatpush.bf16.msrb.mxu1 %v6275_v59  ;;  %v6146_v48 = vld [vmem:[#allocation5 + $0x290] sm:$0xf]  ;;  %v6055_v44 = vor.u32 %v8723_v33, %v6052_v34  ;;  %v8691_v34 = vld [vmem:[#allocation5 + $0xd4] sm:$0xf] }
 0x12c   :  { %2929 = vmatpush.bf16.msrb.mxu2 %v6531_v62  ;;  %v8751_v49 = vld [vmem:[#allocation5 + $0x2ac] sm:$0xf0]  ;;  %v9747_v62 = vadd.f32 %v2651_v61, %v2639_v51  ;;  %v2653_v26 = vpop.f32.mrf.mxu2  ;;  %v6020_v51 = vld [vmem:[#allocation5 + $0x1b0] sm:$0xf0] }
 0x12d   :  { %v6402_v50 = vld [vmem:[#allocation5 + $0x490] sm:$0xf]  ;;  %v6147_v0 = vor.u32 %v8751_v49, %v6146_v48  ;;  %v6276_v61 = vld [vmem:[#allocation5 + $0x3b0] sm:$0xf0] }
 0x12e   :  { %2942 = vmatpush.bf16.msrb.mxu0 %v6787_v63  ;;  %2904 = vmatpush.bf16.msrb.mxu3 %v5987_v7  ;;  %v8815_v55 = vld [vmem:[#allocation5 + $0x4ac] sm:$0xf0]  ;;  %v5891_v63 = vor.u32 %v8687_v42, %v5890_v41  ;;  %v8787_v42 = vld [vmem:[#allocation5 + $0x3d4] sm:$0xf] }
 0x12f   :  { %2917 = vmatpush.bf16.msrb.mxu1 %v6243_v9  ;;  %v6658_v59 = vld [vmem:[#allocation5 + $0x690] sm:$0xf]  ;;  %v6403_v3 = vor.u32 %v8815_v55, %v6402_v50  ;;  %v8715_v50 = vld [vmem:[#allocation5 + $0x194] sm:$0xf]  ;;  %v6311_v55 = vor.u32 %v8787_v42, %v6308_v43 }
 0x130   :  { %2930 = vmatpush.bf16.msrb.mxu2 %v6499_v13  ;;  %v8879_v60 = vld [vmem:[#allocation5 + $0x6ac] sm:$0xf0]  ;;  %v2640_v17 = vpop.f32.mrf.mxu3  ;;  %v8763_v26 = vld [vmem:[#allocation5 + $0x314] sm:$0xf] }
 0x131   :  { %7379 = vmatmul.msk.bf16.vlgmr.msra.gmra.mxu1 %vm2534_vm0, %v9704_v46  ;;  %v5858_v1 = vld [vmem:[#allocation5 + $0x50] sm:$0xf]  ;;  %v6659_v4 = vor.u32 %v8879_v60, %v6658_v59  ;;  %v8779_v60 = vld [vmem:[#allocation5 + $0x394] sm:$0xf] }
 0x132   :  { %2943 = vmatpush.bf16.msrb.mxu0 %v6755_v14  ;;  %2905 = vmatpush.bf16.msrb.mxu3 %v5955_v24  ;;  %v8679_v2 = vld [vmem:[#allocation5 + $0x6c] sm:$0xf0]  ;;  %v6180_v42 = vld [vmem:[#allocation5 + $0x2f0] sm:$0xf0] }
 0x133   :  { %2918 = vmatpush.bf16.msrb.mxu1 %v6211_v25  ;;  %v6114_v5 = vld [vmem:[#allocation5 + $0x250] sm:$0xf]  ;;  %v5859_v12 = vor.u32 %v8679_v2, %v5858_v1 }
 0x134   :  { %2931 = vmatpush.bf16.msrb.mxu2 %v6467_v29  ;;  %v8743_v6 = vld [vmem:[#allocation5 + $0x26c] sm:$0xf0] }
 0x135   :  { %v6370_v7 = vld [vmem:[#allocation5 + $0x450] sm:$0xf]  ;;  %v6115_v13 = vor.u32 %v8743_v6, %v6114_v5  ;;  %v8707_v5 = vld [vmem:[#allocation5 + $0x154] sm:$0xf] }
 0x136   :  { %2944 = vmatpush.bf16.msrb.mxu0 %v6723_v30  ;;  %2906 = vmatpush.bf16.msrb.mxu3 %v5923_v39  ;;  %v8807_v9 = vld [vmem:[#allocation5 + $0x46c] sm:$0xf0]  ;;  %v5988_v6 = vld [vmem:[#allocation5 + $0x170] sm:$0xf0] }
 0x137   :  { %2919 = vmatpush.bf16.msrb.mxu1 %v6179_v40  ;;  %v6626_v10 = vld [vmem:[#allocation5 + $0x650] sm:$0xf]  ;;  %v6371_v18 = vor.u32 %v8807_v9, %v6370_v7  ;;  %v6279_v7 = vor.u32 %v8779_v60, %v6276_v61  ;;  %v2664_v9 = vpop.f32.mrf.mxu0 }
 0x138   :  { %2932 = vmatpush.bf16.msrb.mxu2 %v6435_v45  ;;  %v8871_v11 = vld [vmem:[#allocation5 + $0x66c] sm:$0xf0] }
 0x139   :  { %v5826_v14 = vld [vmem:[#allocation5 + $0x10] sm:$0xf]  ;;  %v6627_v19 = vor.u32 %v8871_v11, %v6626_v10  ;;  %v8771_v11 = vld [vmem:[#allocation5 + $0x354] sm:$0xf] }
 0x13a   :  { %2945 = vmatpush.bf16.msrb.mxu0 %v6691_v47  ;;  %2907 = vmatpush.bf16.msrb.mxu3 %v5891_v63  ;;  %v8671_v15 = vld [vmem:[#allocation5 + $0x2c] sm:$0xf0] }
 0x13b   :  { %2920 = vmatpush.bf16.msrb.mxu1 %v6147_v0  ;;  %v6082_v16 = vld [vmem:[#allocation5 + $0x210] sm:$0xf]  ;;  %v5827_v30 = vor.u32 %v8671_v15, %v5826_v14  ;;  %v6023_v0 = vor.u32 %v8715_v50, %v6020_v51  ;;  %v5991_v15 = vor.u32 %v8707_v5, %v5988_v6 }
 0x13c   :  { %2933 = vmatpush.bf16.msrb.mxu2 %v6403_v3  ;;  %v8735_v20 = vld [vmem:[#allocation5 + $0x22c] sm:$0xf0] }
 0x13d   :  { %v6338_v21 = vld [vmem:[#allocation5 + $0x410] sm:$0xf]  ;;  %v6083_v32 = vor.u32 %v8735_v20, %v6082_v16 }
 0x13e   :  { %2946 = vmatpush.bf16.msrb.mxu0 %v6659_v4  ;;  %v8799_v22 = vld [vmem:[#allocation5 + $0x42c] sm:$0xf0]  ;;  %2908 = vmatpush.bf16.msrb.mxu3 %v5859_v12  ;;  %v6244_v12 = vld [vmem:[#allocation5 + $0x370] sm:$0xf0] }
 0x13f   :  { %v6594_v23 = vld [vmem:[#allocation5 + $0x610] sm:$0xf]  ;;  %2921 = vmatpush.bf16.msrb.mxu1 %v6115_v13  ;;  %v6339_v35 = vor.u32 %v8799_v22, %v6338_v21  ;;  %v2665_v13 = vadd.f32 %v2664_v9, %v9747_v62  ;;  %v8699_v21 = vld [vmem:[#allocation5 + $0x114] sm:$0xf]  ;;  %v2666_v43 = vpop.f32.mrf.mxu0  ;;  %v2703_v50 = vpop.f32.mrf.mxu2 }
 0x140   :  { %v8863_v24 = vld [vmem:[#allocation5 + $0x62c] sm:$0xf0]  ;;  %2934 = vmatpush.bf16.msrb.mxu2 %v6371_v18  ;;  %v5956_v22 = vld [vmem:[#allocation5 + $0x130] sm:$0xf0] }
 0x141   :  { %v7074_v25 = vld [vmem:[#allocation5 + $0x9d0] sm:$0xf]  ;;  %v6595_v37 = vor.u32 %v8863_v24, %v6594_v23  ;;  %v6247_v24 = vor.u32 %v8771_v11, %v6244_v12  ;;  %v5959_v62 = vor.u32 %v8699_v21, %v5956_v22  ;;  %v8675_v9 = vld [vmem:[#allocation5 + $0x54] sm:$0xf] }
 0x142   :  { %v8983_v27 = vld [vmem:[#allocation5 + $0x9ec] sm:$0xf0]  ;;  %2947 = vmatpush.bf16.msrb.mxu0 %v6627_v19  ;;  %2909 = vmatpush.bf16.msrb.mxu3 %v5827_v30  ;;  %v2677_v19 = vpop.f32.mrf.mxu1  ;;  %v8667_v22 = vld [vmem:[#allocation5 + $0x14] sm:$0xf] }
 0x143   :  { %v7330_v28 = vld [vmem:[#allocation5 + $0xbd0] sm:$0xf]  ;;  %v7075_v39 = vor.u32 %v8983_v27, %v7074_v25  ;;  %2922 = vmatpush.bf16.msrb.mxu1 %v6083_v32  ;;  %v2678_v23 = vadd.f32 %v2677_v19, %v2665_v13  ;;  %v6212_v27 = vld [vmem:[#allocation5 + $0x330] sm:$0xf0] }
 0x144   :  { %v9047_v29 = vld [vmem:[#allocation5 + $0xbec] sm:$0xf0]  ;;  %2935 = vmatpush.bf16.msrb.mxu2 %v6339_v35  ;;  %v5924_v35 = vld [vmem:[#allocation5 + $0xf0] sm:$0xf0] }
 0x145   :  { %v7362_v38 = vld [vmem:[#allocation5 + $0xc10] sm:$0xf]  ;;  %v7331_v40 = vor.u32 %v9047_v29, %v7330_v28  ;;  %2910 = vmatmul.bf16.vlgmr.msrb.gmra.mxu3 %v9694_v56 }
 0x146   :  { %v9055_v41 = vld [vmem:[#allocation5 + $0xc2c] sm:$0xf0]  ;;  %2948 = vmatpush.bf16.msrb.mxu0 %v6595_v37  ;;  %2954 = vmatpush.bf16.msra.mxu3 %v7075_v39  ;;  %v2690_v37 = vpop.f32.mrf.mxu3  ;;  %v6215_v39 = vor.u32 %v8763_v26, %v6212_v27  ;;  %v6564_v26 = vld [vmem:[#allocation5 + $0x5f0] sm:$0xf0] }
 0x147   :  { %v7042_v45 = vld [vmem:[#allocation5 + $0x990] sm:$0xf]  ;;  %v7363_v53 = vor.u32 %v9055_v41, %v7362_v38  ;;  %2967 = vmatpush.bf16.msra.mxu1 %v7331_v40  ;;  %2936 = vmatmul.bf16.vlgmr.msrb.gmra.mxu2 %v9692_v52  ;;  %v2691_v38 = vadd.f32 %v2690_v37, %v2678_v23  ;;  %v8755_v41 = vld [vmem:[#allocation5 + $0x2d4] sm:$0xf] }
 0x148   :  { %v8975_v47 = vld [vmem:[#allocation5 + $0x9ac] sm:$0xf0]  ;;  %2923 = vmatmul.bf16.vlgmr.msrb.gmra.mxu1 %v9700_v8  ;;  %v6183_v61 = vor.u32 %v8755_v41, %v6180_v42  ;;  %v5828_v23 = vld [vmem:[#allocation5 + $0x30] sm:$0xf0] }
 0x149   :  { %v7298_v48 = vld [vmem:[#allocation5 + $0xb90] sm:$0xf]  ;;  %v7043_v59 = vor.u32 %v8975_v47, %v7042_v45  ;;  %2987 = vmatpush.bf16.msra.mxu2 %v7363_v53  ;;  %2949 = vmatmul.bf16.vlgmr.msrb.gmra.mxu0 %v9696_v58  ;;  %v5927_v45 = vor.u32 %v8691_v34, %v5924_v35  ;;  %v8683_v53 = vld [vmem:[#allocation5 + $0x94] sm:$0xf]  ;;  %v9754_v60 = vadd.f32 %v2703_v50, %v2691_v38 }
 0x14a   :  { %v9039_v49 = vld [vmem:[#allocation5 + $0xbac] sm:$0xf0]  ;;  %2993 = vmatpush.bf16.msra.mxu0 %v6055_v44  ;;  %v8915_v27 = vld [vmem:[#allocation5 + $0x7d4] sm:$0xf]  ;;  %v5831_v34 = vor.u32 %v8667_v22, %v5828_v23  ;;  %v560_v22 = vperm.slane %v9729_v57, 2 }
 0x14b   :  { %v7299_v63 = vor.u32 %v9039_v49, %v7298_v48  ;;  %v7010_v1 = vld [vmem:[#allocation5 + $0x950] sm:$0xf]  ;;  %2955 = vmatpush.bf16.msra.mxu3 %v7043_v59  ;;  %v2679_v59 = vpop.f32.mrf.mxu1  ;;  %v8731_v35 = vld [vmem:[#allocation5 + $0x214] sm:$0xf] }
 0x14c   :  { %v8967_v2 = vld [vmem:[#allocation5 + $0x96c] sm:$0xf0]  ;;  %v6084_v37 = vld [vmem:[#allocation5 + $0x230] sm:$0xf0] }
 0x14d   :  { %v7266_v3 = vld [vmem:[#allocation5 + $0xb50] sm:$0xf]  ;;  %3006 = vmatpush.bf16.msrb.mxu2 %v6311_v55  ;;  %v7011_v10 = vor.u32 %v8967_v2, %v7010_v1  ;;  %2968 = vmatpush.bf16.msra.mxu1 %v7299_v63  ;;  %v5892_v55 = vld [vmem:[#allocation5 + $0xb0] sm:$0xf0]  ;;  %v6087_v50 = vor.u32 %v8731_v35, %v6084_v37 }
 0x14e   :  { %v9031_v4 = vld [vmem:[#allocation5 + $0xb6c] sm:$0xf0]  ;;  %2994 = vmatpush.bf16.msra.mxu0 %v6023_v0  ;;  %v8747_v0 = vld [vmem:[#allocation5 + $0x294] sm:$0xf]  ;;  %v2692_v11 = vpop.f32.mrf.mxu3 }
 0x14f   :  { %v7267_v14 = vor.u32 %v9031_v4, %v7266_v3  ;;  %v6978_v16 = vld [vmem:[#allocation5 + $0x910] sm:$0xf]  ;;  %2956 = vmatpush.bf16.msra.mxu3 %v7011_v10  ;;  %v6148_v1 = vld [vmem:[#allocation5 + $0x2b0] sm:$0xf0]  ;;  %v5895_v3 = vor.u32 %v8683_v53, %v5892_v55 }
 0x150   :  { %v8959_v17 = vld [vmem:[#allocation5 + $0x92c] sm:$0xf0]  ;;  %v5860_v10 = vld [vmem:[#allocation5 + $0x70] sm:$0xf0]  ;;  %v6151_v12 = vor.u32 %v8747_v0, %v6148_v1 }
 0x151   :  { %v7234_v18 = vld [vmem:[#allocation5 + $0xb10] sm:$0xf]  ;;  %3007 = vmatpush.bf16.msrb.mxu2 %v6279_v7  ;;  %v6979_v25 = vor.u32 %v8959_v17, %v6978_v16  ;;  %2969 = vmatpush.bf16.msra.mxu1 %v7267_v14  ;;  %v8739_v14 = vld [vmem:[#allocation5 + $0x254] sm:$0xf] }
 0x152   :  { %v9023_v20 = vld [vmem:[#allocation5 + $0xb2c] sm:$0xf0]  ;;  %2995 = vmatpush.bf16.msra.mxu0 %v5991_v15  ;;  %v6116_v15 = vld [vmem:[#allocation5 + $0x270] sm:$0xf0] }
 0x153   :  { %v7235_v28 = vor.u32 %v9023_v20, %v7234_v18  ;;  %v6946_v29 = vld [vmem:[#allocation5 + $0x8d0] sm:$0xf]  ;;  %2957 = vmatpush.bf16.msra.mxu3 %v6979_v25  ;;  %v5863_v18 = vor.u32 %v8675_v9, %v5860_v10  ;;  %v2705_v25 = vpop.f32.mrf.mxu2  ;;  %v7332_v41 = vld [vmem:[#allocation5 + $0xbf0] sm:$0xf0] }
 0x154   :  { %v8951_v30 = vld [vmem:[#allocation5 + $0x8ec] sm:$0xf0]  ;;  %v8843_v42 = vld [vmem:[#allocation5 + $0x594] sm:$0xf] }
 0x155   :  { %v7202_v32 = vld [vmem:[#allocation5 + $0xad0] sm:$0xf]  ;;  %3008 = vmatpush.bf16.msrb.mxu2 %v6247_v24  ;;  %v6947_v40 = vor.u32 %v8951_v30, %v6946_v29  ;;  %2970 = vmatpush.bf16.msra.mxu1 %v7235_v28  ;;  %v8851_v24 = vld [vmem:[#allocation5 + $0x5d4] sm:$0xf] }
 0x156   :  { %v9015_v33 = vld [vmem:[#allocation5 + $0xaec] sm:$0xf0]  ;;  %2996 = vmatpush.bf16.msra.mxu0 %v5959_v62  ;;  %v6820_v28 = vld [vmem:[#allocation5 + $0x7f0] sm:$0xf0]  ;;  %v6119_v62 = vor.u32 %v8739_v14, %v6116_v15  ;;  %v6567_v38 = vor.u32 %v8851_v24, %v6564_v26  ;;  %v2729_v24 = vpop.f32.mrf.mxu1 }
 0x157   :  { %v7203_v44 = vor.u32 %v9015_v33, %v7202_v32  ;;  %v6914_v47 = vld [vmem:[#allocation5 + $0x890] sm:$0xf]  ;;  %2958 = vmatpush.bf16.msra.mxu3 %v6947_v40  ;;  %7380 = vmatmul.msk.bf16.vlgmr.msra.gmra.mxu2 %vm2534_vm0, %v9704_v46  ;;  %v8979_v30 = vld [vmem:[#allocation5 + $0x9d4] sm:$0xf] }
 0x158   :  { %v8943_v48 = vld [vmem:[#allocation5 + $0x8ac] sm:$0xf0]  ;;  %v7076_v32 = vld [vmem:[#allocation5 + $0x9f0] sm:$0xf0] }
 0x159   :  { %v7170_v49 = vld [vmem:[#allocation5 + $0xa90] sm:$0xf]  ;;  %3009 = vmatpush.bf16.msrb.mxu2 %v6215_v39  ;;  %v6915_v63 = vor.u32 %v8943_v48, %v6914_v47  ;;  %2971 = vmatpush.bf16.msra.mxu1 %v7203_v44  ;;  %v6823_v39 = vor.u32 %v8915_v27, %v6820_v28  ;;  %v9043_v40 = vld [vmem:[#allocation5 + $0xbd4] sm:$0xf]  ;;  %v7079_v43 = vor.u32 %v8979_v30, %v7076_v32  ;;  %v2716_v44 = vpop.f32.mrf.mxu3 }
 0x15a   :  { %v9007_v51 = vld [vmem:[#allocation5 + $0xaac] sm:$0xf0]  ;;  %2997 = vmatpush.bf16.msra.mxu0 %v5927_v45  ;;  %v6532_v45 = vld [vmem:[#allocation5 + $0x5b0] sm:$0xf0]  ;;  %v7335_v55 = vor.u32 %v9043_v40, %v7332_v41 }
 0x15b   :  { %v7171_v2 = vor.u32 %v9007_v51, %v7170_v49  ;;  %v6882_v4 = vld [vmem:[#allocation5 + $0x850] sm:$0xf]  ;;  %2959 = vmatpush.bf16.msra.mxu3 %v6915_v63  ;;  %v8907_v47 = vld [vmem:[#allocation5 + $0x794] sm:$0xf]  ;;  %v9759_v49 = vadd.f32 %v2716_v44, %v9754_v60  ;;  %v6535_v59 = vor.u32 %v8843_v42, %v6532_v45 }
 0x15c   :  { %v8935_v5 = vld [vmem:[#allocation5 + $0x86c] sm:$0xf0]  ;;  %v6788_v48 = vld [vmem:[#allocation5 + $0x7b0] sm:$0xf0] }
 0x15d   :  { %v7138_v6 = vld [vmem:[#allocation5 + $0xa50] sm:$0xf]  ;;  %3010 = vmatpush.bf16.msrb.mxu2 %v6183_v61  ;;  %v6883_v13 = vor.u32 %v8935_v5, %v6882_v4  ;;  %2972 = vmatpush.bf16.msra.mxu1 %v7171_v2  ;;  %v8971_v51 = vld [vmem:[#allocation5 + $0x994] sm:$0xf]  ;;  %v6791_v61 = vor.u32 %v8907_v47, %v6788_v48 }
 0x15e   :  { %v8999_v7 = vld [vmem:[#allocation5 + $0xa6c] sm:$0xf0]  ;;  %2998 = vmatpush.bf16.msra.mxu0 %v5895_v3  ;;  %v7044_v53 = vld [vmem:[#allocation5 + $0x9b0] sm:$0xf0] }
 0x15f   :  { %v6850_v16 = vld [vmem:[#allocation5 + $0x810] sm:$0xf]  ;;  %v7139_v17 = vor.u32 %v8999_v7, %v7138_v6  ;;  %2960 = vmatpush.bf16.msra.mxu3 %v6883_v13  ;;  %v9035_v63 = vld [vmem:[#allocation5 + $0xb94] sm:$0xf]  ;;  %v7047_v2 = vor.u32 %v8971_v51, %v7044_v53  ;;  %v2755_v13 = vpop.f32.mrf.mxu0 }
 0x160   :  { %v8927_v19 = vld [vmem:[#allocation5 + $0x82c] sm:$0xf0]  ;;  %v7300_v0 = vld [vmem:[#allocation5 + $0xbb0] sm:$0xf0] }
 0x161   :  { %v7106_v20 = vld [vmem:[#allocation5 + $0xa10] sm:$0xf]  ;;  %3011 = vmatpush.bf16.msrb.mxu2 %v6151_v12  ;;  %v6851_v29 = vor.u32 %v8927_v19, %v6850_v16  ;;  %2973 = vmatpush.bf16.msra.mxu1 %v7139_v17  ;;  %v8835_v1 = vld [vmem:[#allocation5 + $0x554] sm:$0xf]  ;;  %v7303_v7 = vor.u32 %v9035_v63, %v7300_v0  ;;  %v2718_v16 = vpop.f32.mrf.mxu3  ;;  %v2731_v63 = vpop.f32.mrf.mxu1 }
 0x162   :  { %v8991_v21 = vld [vmem:[#allocation5 + $0xa2c] sm:$0xf0]  ;;  %2999 = vmatpush.bf16.msra.mxu0 %v5863_v18  ;;  %v6500_v3 = vld [vmem:[#allocation5 + $0x570] sm:$0xf0]  ;;  %v6282_v63 = vld [vmem:[#allocation5 + $0x398] sm:$0xf] }
 0x163   :  { %v7107_v33 = vor.u32 %v8991_v21, %v7106_v20  ;;  %2961 = vmatpush.bf16.msra.mxu3 %v6851_v29  ;;  %v8899_v60 = vld [vmem:[#allocation5 + $0x754] sm:$0xf]  ;;  %v6503_v9 = vor.u32 %v8835_v1, %v6500_v3 }
 0x164   :  { %v6756_v4 = vld [vmem:[#allocation5 + $0x770] sm:$0xf0] }
 0x165   :  { %3012 = vmatpush.bf16.msrb.mxu2 %v6119_v62  ;;  %2974 = vmatpush.bf16.msra.mxu1 %v7107_v33  ;;  %v8963_v5 = vld [vmem:[#allocation5 + $0x954] sm:$0xf]  ;;  %v6759_v10 = vor.u32 %v8899_v60, %v6756_v4 }
 0x166   :  { %3000 = vmatpush.bf16.msra.mxu0 %v5831_v34  ;;  %2962 = vmatmul.bf16.vlgmr.msra.gmra.mxu3 %v9708_v31  ;;  %v7012_v6 = vld [vmem:[#allocation5 + $0x970] sm:$0xf0]  ;;  %v2730_v34 = vadd.f32 %v2729_v24, %v560_v22 }
 0x167   :  { %3019 = vmatpush.bf16.msrb.mxu3 %v6567_v38  ;;  %v9027_v11 = vld [vmem:[#allocation5 + $0xb54] sm:$0xf]  ;;  %v7015_v15 = vor.u32 %v8963_v5, %v7012_v6  ;;  %v2757_v42 = vpop.f32.mrf.mxu0 }
 0x168   :  { %2975 = vmatmul.bf16.vlgmr.msra.gmra.mxu1 %v9710_v36  ;;  %v7268_v12 = vld [vmem:[#allocation5 + $0xb70] sm:$0xf0]  ;;  %v8792_v42 = vld [vmem:[#allocation5 + $0x3f4] sm:$0xf0] }
 0x169   :  { %3032 = vmatpush.bf16.msrb.mxu1 %v6823_v39  ;;  %3013 = vmatpush.bf16.msrb.mxu2 %v6087_v50  ;;  %v8827_v14 = vld [vmem:[#allocation5 + $0x514] sm:$0xf]  ;;  %v7271_v23 = vor.u32 %v9027_v11, %v7268_v12  ;;  %v2742_v45 = vpop.f32.mrf.mxu3 }
 0x16a   :  { %3045 = vmatpush.bf16.msrb.mxu0 %v7079_v43  ;;  %v6468_v17 = vld [vmem:[#allocation5 + $0x530] sm:$0xf0]  ;;  %v2743_v51 = vadd.f32 %v2742_v45, %v2730_v34 }
 0x16b   :  { %3001 = vmatmul.bf16.vlgmr.msra.gmra.mxu0 %v9694_v56  ;;  %3020 = vmatpush.bf16.msrb.mxu3 %v6535_v59  ;;  %v8891_v18 = vld [vmem:[#allocation5 + $0x714] sm:$0xf]  ;;  %v6471_v25 = vor.u32 %v8827_v14, %v6468_v17  ;;  %v2768_v59 = vpop.f32.mrf.mxu2 }
 0x16c   :  { %v6724_v19 = vld [vmem:[#allocation5 + $0x730] sm:$0xf0]  ;;  %3014 = vmatmul.bf16.vlgmr.msrb.gmra.mxu2 %v9700_v8 }
 0x16d   :  { %3058 = vmatpush.bf16.msra.mxu2 %v7335_v55  ;;  %3033 = vmatpush.bf16.msrb.mxu1 %v6791_v61  ;;  %v8955_v20 = vld [vmem:[#allocation5 + $0x914] sm:$0xf]  ;;  %v6727_v26 = vor.u32 %v8891_v18, %v6724_v19 }
 0x16e   :  { %3046 = vmatpush.bf16.msrb.mxu0 %v7047_v2  ;;  %v6980_v21 = vld [vmem:[#allocation5 + $0x930] sm:$0xf0]  ;;  %v2756_v2 = vadd.f32 %v2755_v13, %v2743_v51 }
 0x16f   :  { %3021 = vmatpush.bf16.msrb.mxu3 %v6503_v9  ;;  %v9019_v27 = vld [vmem:[#allocation5 + $0xb14] sm:$0xf]  ;;  %v6983_v29 = vor.u32 %v8955_v20, %v6980_v21  ;;  %v9768_v21 = vpop.f32.mrf.mxu0 }
 0x170   :  { %v7236_v28 = vld [vmem:[#allocation5 + $0xb30] sm:$0xf0] }
 0x171   :  { %3059 = vmatpush.bf16.msra.mxu2 %v7303_v7  ;;  %3034 = vmatpush.bf16.msrb.mxu1 %v6759_v10  ;;  %v8819_v62 = vld [vmem:[#allocation5 + $0x4d4] sm:$0xf]  ;;  %v7239_v57 = vor.u32 %v9019_v27, %v7236_v28  ;;  %v9766_v10 = vadd.f32 %v2768_v59, %v2756_v2  ;;  %v6058_v27 = vld [vmem:[#allocation5 + $0x1d8] sm:$0xf] }
 0x172   :  { %3047 = vmatpush.bf16.msrb.mxu0 %v7015_v15  ;;  %v6436_v30 = vld [vmem:[#allocation5 + $0x4f0] sm:$0xf0]  ;;  %v8728_v28 = vld [vmem:[#allocation5 + $0x1f4] sm:$0xf0] }
 0x173   :  { %v8883_v32 = vld [vmem:[#allocation5 + $0x6d4] sm:$0xf]  ;;  %3022 = vmatpush.bf16.msrb.mxu3 %v6471_v25  ;;  %v6439_v38 = vor.u32 %v8819_v62, %v6436_v30  ;;  %v6570_v62 = vld [vmem:[#allocation5 + $0x5d8] sm:$0xf] }
 0x174   :  { %v6692_v33 = vld [vmem:[#allocation5 + $0x6f0] sm:$0xf0]  ;;  %v8784_v2 = vld [vmem:[#allocation5 + $0x3b4] sm:$0xf0] }
 0x175   :  { %v8947_v35 = vld [vmem:[#allocation5 + $0x8d4] sm:$0xf]  ;;  %3060 = vmatpush.bf16.msra.mxu2 %v7271_v23  ;;  %3035 = vmatpush.bf16.msrb.mxu1 %v6727_v26  ;;  %v6695_v39 = vor.u32 %v8883_v32, %v6692_v33  ;;  %v2744_v26 = vpop.f32.mrf.mxu3  ;;  %v8856_v32 = vld [vmem:[#allocation5 + $0x5f4] sm:$0xf0] }
 0x176   :  { %v6948_v37 = vld [vmem:[#allocation5 + $0x8f0] sm:$0xf0]  ;;  %3048 = vmatpush.bf16.msrb.mxu0 %v6983_v29  ;;  %v2770_v29 = vpop.f32.mrf.mxu2  ;;  %v6571_v45 = vor.u32 %v8856_v32, %v6570_v62  ;;  %v8896_v32 = vld [vmem:[#allocation5 + $0x734] sm:$0xf0] }
 0x177   :  { %v9011_v40 = vld [vmem:[#allocation5 + $0xad4] sm:$0xf]  ;;  %v6951_v44 = vor.u32 %v8947_v35, %v6948_v37  ;;  %3023 = vmatpush.bf16.msrb.mxu3 %v6439_v38  ;;  %v8768_v29 = vld [vmem:[#allocation5 + $0x334] sm:$0xf0] }
 0x178   :  { %v7204_v41 = vld [vmem:[#allocation5 + $0xaf0] sm:$0xf0] }
 0x179   :  { %v8811_v43 = vld [vmem:[#allocation5 + $0x494] sm:$0xf]  ;;  %3061 = vmatpush.bf16.msra.mxu2 %v7239_v57  ;;  %v7207_v61 = vor.u32 %v9011_v40, %v7204_v41  ;;  %3036 = vmatpush.bf16.msrb.mxu1 %v6695_v39  ;;  %v6314_v39 = vld [vmem:[#allocation5 + $0x3d8] sm:$0xf]  ;;  %v6059_v41 = vor.u32 %v8728_v28, %v6058_v27 }
 0x17a   :  { %v6404_v47 = vld [vmem:[#allocation5 + $0x4b0] sm:$0xf0]  ;;  %3049 = vmatpush.bf16.msrb.mxu0 %v6951_v44  ;;  %v8920_v44 = vld [vmem:[#allocation5 + $0x7f4] sm:$0xf0]  ;;  %v6315_v59 = vor.u32 %v8792_v42, %v6314_v39  ;;  %v9775_v42 = vld [vmem:[#allocation7] sm:$0xff] }
 0x17b   :  { %v8875_v48 = vld [vmem:[#allocation5 + $0x694] sm:$0xf]  ;;  %v6407_v0 = vor.u32 %v8811_v43, %v6404_v47  ;;  %v6826_v43 = vld [vmem:[#allocation5 + $0x7d8] sm:$0xf] }
 0x17c   :  { %v6660_v50 = vld [vmem:[#allocation5 + $0x6b0] sm:$0xf0]  ;;  %v6218_v28 = vld [vmem:[#allocation5 + $0x318] sm:$0xf] }
 0x17d   :  { %v8939_v53 = vld [vmem:[#allocation5 + $0x894] sm:$0xf]  ;;  %v6663_v1 = vor.u32 %v8875_v48, %v6660_v50  ;;  %3062 = vmatpush.bf16.msra.mxu2 %v7207_v61  ;;  %3024 = vmatpush.bf16.msrb.mxu3 %v6407_v0  ;;  %v6026_v48 = vld [vmem:[#allocation5 + $0x198] sm:$0xf]  ;;  %v6827_v61 = vor.u32 %v8920_v44, %v6826_v43  ;;  %v2809_v0 = vpop.f32.mrf.mxu0  ;;  %v561_v43 = vperm.slane %v9775_v42, 3 }
 0x17e   :  { %v6916_v55 = vld [vmem:[#allocation5 + $0x8b0] sm:$0xf0]  ;;  %v8720_v50 = vld [vmem:[#allocation5 + $0x1b4] sm:$0xf0] }
 0x17f   :  { %v9003_v3 = vld [vmem:[#allocation5 + $0xa94] sm:$0xf]  ;;  %v6919_v5 = vor.u32 %v8939_v53, %v6916_v55  ;;  %3037 = vmatpush.bf16.msrb.mxu1 %v6663_v1  ;;  %v6538_v53 = vld [vmem:[#allocation5 + $0x598] sm:$0xf]  ;;  %v6027_v1 = vor.u32 %v8720_v50, %v6026_v48  ;;  %v2820_v0 = vpop.f32.mrf.mxu2 }
 0x180   :  { %v7172_v60 = vld [vmem:[#allocation5 + $0xab0] sm:$0xf0]  ;;  %v8848_v55 = vld [vmem:[#allocation5 + $0x5b4] sm:$0xf0] }
 0x181   :  { %v8803_v4 = vld [vmem:[#allocation5 + $0x454] sm:$0xf]  ;;  %v7175_v14 = vor.u32 %v9003_v3, %v7172_v60  ;;  %3050 = vmatpush.bf16.msrb.mxu0 %v6919_v5  ;;  %v6794_v3 = vld [vmem:[#allocation5 + $0x798] sm:$0xf] }
 0x182   :  { %v6372_v6 = vld [vmem:[#allocation5 + $0x470] sm:$0xf0]  ;;  %v8912_v60 = vld [vmem:[#allocation5 + $0x7b4] sm:$0xf0] }
 0x183   :  { %v8867_v7 = vld [vmem:[#allocation5 + $0x654] sm:$0xf]  ;;  %v6375_v17 = vor.u32 %v8803_v4, %v6372_v6  ;;  %3063 = vmatpush.bf16.msra.mxu2 %v7175_v14  ;;  %v6539_v4 = vor.u32 %v8848_v55, %v6538_v53  ;;  %v5994_v5 = vld [vmem:[#allocation5 + $0x158] sm:$0xf]  ;;  %v2794_v55 = vpop.f32.mrf.mxu3 }
 0x184   :  { %v6628_v9 = vld [vmem:[#allocation5 + $0x670] sm:$0xf0]  ;;  %v8712_v6 = vld [vmem:[#allocation5 + $0x174] sm:$0xf0] }
 0x185   :  { %v8931_v11 = vld [vmem:[#allocation5 + $0x854] sm:$0xf]  ;;  %v6631_v13 = vor.u32 %v8867_v7, %v6628_v9  ;;  %3025 = vmatpush.bf16.msrb.mxu3 %v6375_v17  ;;  %v6506_v7 = vld [vmem:[#allocation5 + $0x558] sm:$0xf] }
 0x186   :  { %v6884_v12 = vld [vmem:[#allocation5 + $0x870] sm:$0xf0]  ;;  %v8840_v9 = vld [vmem:[#allocation5 + $0x574] sm:$0xf0] }
 0x187   :  { %v8995_v15 = vld [vmem:[#allocation5 + $0xa54] sm:$0xf]  ;;  %v6887_v22 = vor.u32 %v8931_v11, %v6884_v12  ;;  %3038 = vmatpush.bf16.msrb.mxu1 %v6631_v13  ;;  %v6283_v11 = vor.u32 %v8784_v2, %v6282_v63  ;;  %v6795_v12 = vor.u32 %v8912_v60, %v6794_v3  ;;  %v6250_v14 = vld [vmem:[#allocation5 + $0x358] sm:$0xf]  ;;  %v2821_v60 = vadd.f32 %v2820_v0, %v561_v43 }
 0x188   :  { %v7140_v16 = vld [vmem:[#allocation5 + $0xa70] sm:$0xf0]  ;;  %v8776_v17 = vld [vmem:[#allocation5 + $0x374] sm:$0xf0] }
 0x189   :  { %v8795_v18 = vld [vmem:[#allocation5 + $0x414] sm:$0xf]  ;;  %v7143_v30 = vor.u32 %v8995_v15, %v7140_v16  ;;  %3051 = vmatpush.bf16.msrb.mxu0 %v6887_v22  ;;  %v2781_v15 = vpop.f32.mrf.mxu1  ;;  %v5995_v16 = vor.u32 %v8712_v6, %v5994_v5  ;;  %v6762_v13 = vld [vmem:[#allocation5 + $0x758] sm:$0xf]  ;;  %v6251_v26 = vor.u32 %v8776_v17, %v6250_v14 }
 0x18a   :  { %v6340_v19 = vld [vmem:[#allocation5 + $0x430] sm:$0xf0]  ;;  %v5962_v22 = vld [vmem:[#allocation5 + $0x118] sm:$0xf] }
 0x18b   :  { %v8859_v20 = vld [vmem:[#allocation5 + $0x614] sm:$0xf]  ;;  %v6343_v35 = vor.u32 %v8795_v18, %v6340_v19  ;;  %3064 = vmatpush.bf16.msra.mxu2 %v7143_v30  ;;  %v8904_v18 = vld [vmem:[#allocation5 + $0x774] sm:$0xf0]  ;;  %v2782_v19 = vadd.f32 %v2781_v15, %v9766_v10 }
 0x18c   :  { %v6596_v23 = vld [vmem:[#allocation5 + $0x630] sm:$0xf0]  ;;  %v6763_v27 = vor.u32 %v8904_v18, %v6762_v13  ;;  %v6730_v30 = vld [vmem:[#allocation5 + $0x718] sm:$0xf] }
 0x18d   :  { %v8923_v24 = vld [vmem:[#allocation5 + $0x814] sm:$0xf]  ;;  %v6599_v37 = vor.u32 %v8859_v20, %v6596_v23  ;;  %3026 = vmatpush.bf16.msrb.mxu3 %v6343_v35  ;;  %v6507_v20 = vor.u32 %v8840_v9, %v6506_v7  ;;  %v8704_v23 = vld [vmem:[#allocation5 + $0x134] sm:$0xf0]  ;;  %v2833_v35 = vpop.f32.mrf.mxu0  ;;  %v6731_v39 = vor.u32 %v8896_v32, %v6730_v30  ;;  %v2796_v32 = vpop.f32.mrf.mxu3 }
 0x18e   :  { %v6852_v25 = vld [vmem:[#allocation5 + $0x830] sm:$0xf0]  ;;  %v5963_v62 = vor.u32 %v8704_v23, %v5962_v22  ;;  %v8688_v53 = vld [vmem:[#allocation5 + $0xb4] sm:$0xf0]  ;;  %v9781_v15 = vadd.f32 %v2833_v35, %v2821_v60 }
 0x18f   :  { %v9051_v33 = vld [vmem:[#allocation5 + $0xc14] sm:$0xf]  ;;  %v6855_v40 = vor.u32 %v8923_v24, %v6852_v25  ;;  %3039 = vmatpush.bf16.msrb.mxu1 %v6599_v37  ;;  %v6474_v24 = vld [vmem:[#allocation5 + $0x518] sm:$0xf] }
 0x190   :  { %v7364_v34 = vld [vmem:[#allocation5 + $0xc30] sm:$0xf0]  ;;  %3027 = vmatmul.bf16.vlgmr.msrb.gmra.mxu3 %v9692_v52  ;;  %v8832_v25 = vld [vmem:[#allocation5 + $0x534] sm:$0xf0] }
 0x191   :  { %v8987_v57 = vld [vmem:[#allocation5 + $0xa14] sm:$0xf]  ;;  %v7367_v47 = vor.u32 %v9051_v33, %v7364_v34  ;;  %3052 = vmatpush.bf16.msrb.mxu0 %v6855_v40  ;;  %v6475_v10 = vor.u32 %v8832_v25, %v6474_v24  ;;  %v5930_v33 = vld [vmem:[#allocation5 + $0xd8] sm:$0xf]  ;;  %v2783_v48 = vpop.f32.mrf.mxu1 }
 0x192   :  { %v7108_v38 = vld [vmem:[#allocation5 + $0xa30] sm:$0xf0]  ;;  %3040 = vmatmul.bf16.vlgmr.msrb.gmra.mxu1 %v9696_v58  ;;  %v8696_v34 = vld [vmem:[#allocation5 + $0xf4] sm:$0xf0]  ;;  %v8724_v48 = vld [vmem:[#allocation5 + $0x1dc] sm:$0xf] }
 0x193   :  { %v7111_v51 = vor.u32 %v8987_v57, %v7108_v38  ;;  %3084 = vmatpush.bf16.msra.mxu1 %v6059_v41  ;;  %3078 = vmatpush.bf16.msra.mxu3 %v7367_v47  ;;  %v6442_v37 = vld [vmem:[#allocation5 + $0x4d8] sm:$0xf]  ;;  %v6219_v38 = vor.u32 %v8768_v29, %v6218_v28  ;;  %v5931_v44 = vor.u32 %v8696_v34, %v5930_v33 }
 0x194   :  { %3053 = vmatmul.bf16.vlgmr.msrb.gmra.mxu0 %v9708_v31  ;;  %v8824_v57 = vld [vmem:[#allocation5 + $0x4f4] sm:$0xf0] }
 0x195   :  { %3110 = vmatpush.bf16.msra.mxu0 %v6571_v45  ;;  %3065 = vmatpush.bf16.msra.mxu2 %v7111_v51  ;;  %v6186_v40 = vld [vmem:[#allocation5 + $0x2d8] sm:$0xf]  ;;  %v6443_v50 = vor.u32 %v8824_v57, %v6442_v37 }
 0x196   :  { %v8760_v41 = vld [vmem:[#allocation5 + $0x2f4] sm:$0xf0] }
 0x197   :  { %3097 = vmatpush.bf16.msrb.mxu3 %v6315_v59  ;;  %3085 = vmatpush.bf16.msra.mxu1 %v6027_v1  ;;  %v6698_v45 = vld [vmem:[#allocation5 + $0x6d8] sm:$0xf]  ;;  %v6187_v59 = vor.u32 %v8760_v41, %v6186_v40  ;;  %v2795_v1 = vadd.f32 %v2794_v55, %v2782_v19  ;;  %v6316_v55 = vld [vmem:[#allocation5 + $0x3f8] sm:$0xf0] }
 0x198   :  { %3066 = vmatmul.bf16.vlgmr.msra.gmra.mxu2 %v9710_v36  ;;  %v8888_v47 = vld [vmem:[#allocation5 + $0x6f4] sm:$0xf0] }
 0x199   :  { %3123 = vmatpush.bf16.msrb.mxu2 %v6827_v61  ;;  %3111 = vmatpush.bf16.msra.mxu0 %v6539_v4  ;;  %v5898_v51 = vld [vmem:[#allocation5 + $0x98] sm:$0xf]  ;;  %v6699_v2 = vor.u32 %v8888_v47, %v6698_v45  ;;  %v9779_v9 = vadd.f32 %v9768_v21, %v2795_v1 }
 0x19a   :  { %v6410_v61 = vld [vmem:[#allocation5 + $0x498] sm:$0xf]  ;;  %v5899_v4 = vor.u32 %v8688_v53, %v5898_v51  ;;  %v6060_v51 = vld [vmem:[#allocation5 + $0x1f8] sm:$0xf0] }
 0x19b   :  { %3098 = vmatpush.bf16.msrb.mxu3 %v6283_v11  ;;  %3086 = vmatpush.bf16.msra.mxu1 %v5995_v16  ;;  %v8816_v63 = vld [vmem:[#allocation5 + $0x4b4] sm:$0xf0]  ;;  %v2835_v16 = vpop.f32.mrf.mxu0  ;;  %v8788_v53 = vld [vmem:[#allocation5 + $0x3dc] sm:$0xf] }
 0x19c   :  { %v6154_v3 = vld [vmem:[#allocation5 + $0x298] sm:$0xf]  ;;  %v6411_v11 = vor.u32 %v8816_v63, %v6410_v61 }
 0x19d   :  { %3124 = vmatpush.bf16.msrb.mxu2 %v6795_v12  ;;  %3112 = vmatpush.bf16.msra.mxu0 %v6507_v20  ;;  %v8752_v5 = vld [vmem:[#allocation5 + $0x2b4] sm:$0xf0] }
 0x19e   :  { %v6666_v6 = vld [vmem:[#allocation5 + $0x698] sm:$0xf]  ;;  %v6155_v18 = vor.u32 %v8752_v5, %v6154_v3  ;;  %v6319_v3 = vor.u32 %v8788_v53, %v6316_v55  ;;  %v8716_v5 = vld [vmem:[#allocation5 + $0x19c] sm:$0xf] }
 0x19f   :  { %3099 = vmatpush.bf16.msrb.mxu3 %v6251_v26  ;;  %3087 = vmatpush.bf16.msra.mxu1 %v5963_v62  ;;  %v8880_v7 = vld [vmem:[#allocation5 + $0x6b4] sm:$0xf0]  ;;  %v5932_v53 = vld [vmem:[#allocation5 + $0xf8] sm:$0xf0] }
 0x1a0   :  { %v5866_v12 = vld [vmem:[#allocation5 + $0x58] sm:$0xf]  ;;  %7381 = vmatmul.msk.bf16.vlgmr.msra.gmra.mxu3 %vm2534_vm0, %v9704_v46  ;;  %v6667_v19 = vor.u32 %v8880_v7, %v6666_v6  ;;  %v6028_v7 = vld [vmem:[#allocation5 + $0x1b8] sm:$0xf0] }
 0x1a1   :  { %3125 = vmatpush.bf16.msrb.mxu2 %v6763_v27  ;;  %3113 = vmatpush.bf16.msra.mxu0 %v6475_v10  ;;  %v8680_v14 = vld [vmem:[#allocation5 + $0x74] sm:$0xf0]  ;;  %v2822_v10 = vpop.f32.mrf.mxu2  ;;  %v8756_v55 = vld [vmem:[#allocation5 + $0x2dc] sm:$0xf] }
 0x1a2   :  { %v6378_v17 = vld [vmem:[#allocation5 + $0x458] sm:$0xf]  ;;  %v5867_v22 = vor.u32 %v8680_v14, %v5866_v12  ;;  %v6284_v12 = vld [vmem:[#allocation5 + $0x3b8] sm:$0xf0] }
 0x1a3   :  { %3100 = vmatpush.bf16.msrb.mxu3 %v6219_v38  ;;  %3088 = vmatpush.bf16.msra.mxu1 %v5931_v44  ;;  %v8808_v13 = vld [vmem:[#allocation5 + $0x474] sm:$0xf0] }
 0x1a4   :  { %v6122_v20 = vld [vmem:[#allocation5 + $0x258] sm:$0xf]  ;;  %v6379_v25 = vor.u32 %v8808_v13, %v6378_v17  ;;  %v6031_v13 = vor.u32 %v8716_v5, %v6028_v7  ;;  %v8684_v7 = vld [vmem:[#allocation5 + $0x9c] sm:$0xf] }
 0x1a5   :  { %3126 = vmatpush.bf16.msrb.mxu2 %v6731_v39  ;;  %3114 = vmatpush.bf16.msra.mxu0 %v6443_v50  ;;  %v8744_v21 = vld [vmem:[#allocation5 + $0x274] sm:$0xf0] }
 0x1a6   :  { %v6634_v23 = vld [vmem:[#allocation5 + $0x658] sm:$0xf]  ;;  %v6123_v33 = vor.u32 %v8744_v21, %v6122_v20  ;;  %v2846_v21 = vpop.f32.mrf.mxu1 }
 0x1a7   :  { %3101 = vmatpush.bf16.msrb.mxu3 %v6187_v59  ;;  %3089 = vmatpush.bf16.msra.mxu1 %v5899_v4  ;;  %v8872_v24 = vld [vmem:[#allocation5 + $0x674] sm:$0xf0] }
 0x1a8   :  { %v5834_v26 = vld [vmem:[#allocation5 + $0x18] sm:$0xf]  ;;  %v6635_v34 = vor.u32 %v8872_v24, %v6634_v23  ;;  %v5996_v24 = vld [vmem:[#allocation5 + $0x178] sm:$0xf0] }
 0x1a9   :  { %3127 = vmatpush.bf16.msrb.mxu2 %v6699_v2  ;;  %3115 = vmatpush.bf16.msra.mxu0 %v6411_v11  ;;  %v8672_v27 = vld [vmem:[#allocation5 + $0x34] sm:$0xf0]  ;;  %v6063_v2 = vor.u32 %v8724_v48, %v6060_v51  ;;  %v8780_v11 = vld [vmem:[#allocation5 + $0x39c] sm:$0xf] }
 0x1aa   :  { %v6346_v28 = vld [vmem:[#allocation5 + $0x418] sm:$0xf]  ;;  %v5835_v38 = vor.u32 %v8672_v27, %v5834_v26  ;;  %v6252_v26 = vld [vmem:[#allocation5 + $0x378] sm:$0xf0]  ;;  %v2847_v27 = vadd.f32 %v2846_v21, %v9781_v15 }
 0x1ab   :  { %v8800_v62 = vld [vmem:[#allocation5 + $0x434] sm:$0xf0]  ;;  %3102 = vmatpush.bf16.msrb.mxu3 %v6155_v18  ;;  %3090 = vmatpush.bf16.msra.mxu1 %v5867_v22  ;;  %v6287_v18 = vor.u32 %v8780_v11, %v6284_v12  ;;  %v8708_v22 = vld [vmem:[#allocation5 + $0x15c] sm:$0xf] }
 0x1ac   :  { %v7082_v29 = vld [vmem:[#allocation5 + $0x9d8] sm:$0xf]  ;;  %v6347_v43 = vor.u32 %v8800_v62, %v6346_v28  ;;  %v6220_v15 = vld [vmem:[#allocation5 + $0x338] sm:$0xf0] }
 0x1ad   :  { %v8984_v30 = vld [vmem:[#allocation5 + $0x9f4] sm:$0xf0]  ;;  %3128 = vmatpush.bf16.msrb.mxu2 %v6667_v19  ;;  %3116 = vmatpush.bf16.msra.mxu0 %v6379_v25  ;;  %v8772_v25 = vld [vmem:[#allocation5 + $0x35c] sm:$0xf] }
 0x1ae   :  { %v6090_v35 = vld [vmem:[#allocation5 + $0x218] sm:$0xf]  ;;  %v7083_v44 = vor.u32 %v8984_v30, %v7082_v29  ;;  %v5999_v30 = vor.u32 %v8708_v22, %v5996_v24  ;;  %v6255_v32 = vor.u32 %v8772_v25, %v6252_v26  ;;  %v8692_v48 = vld [vmem:[#allocation5 + $0xdc] sm:$0xf] }
 0x1af   :  { %v7370_v37 = vld [vmem:[#allocation5 + $0xc18] sm:$0xf]  ;;  %3103 = vmatpush.bf16.msrb.mxu3 %v6123_v33  ;;  %3091 = vmatpush.bf16.msra.mxu1 %v5835_v38  ;;  %v5900_v12 = vld [vmem:[#allocation5 + $0xb8] sm:$0xf0] }
 0x1b0   :  { %v9056_v57 = vld [vmem:[#allocation5 + $0xc34] sm:$0xf0]  ;;  %v5903_v21 = vor.u32 %v8684_v7, %v5900_v12  ;;  %v8676_v26 = vld [vmem:[#allocation5 + $0x5c] sm:$0xf] }
 0x1b1   :  { %v8736_v39 = vld [vmem:[#allocation5 + $0x234] sm:$0xf0]  ;;  %v7371_v50 = vor.u32 %v9056_v57, %v7370_v37  ;;  %3129 = vmatpush.bf16.msrb.mxu2 %v6635_v34  ;;  %3117 = vmatpush.bf16.msra.mxu0 %v6347_v43  ;;  %v8700_v34 = vld [vmem:[#allocation5 + $0x11c] sm:$0xf] }
 0x1b2   :  { %v6602_v40 = vld [vmem:[#allocation5 + $0x618] sm:$0xf]  ;;  %v6091_v59 = vor.u32 %v8736_v39, %v6090_v35  ;;  %3092 = vmatmul.bf16.vlgmr.msra.gmra.mxu1 %v9694_v56  ;;  %v5964_v37 = vld [vmem:[#allocation5 + $0x138] sm:$0xf0] }
 0x1b3   :  { %v8864_v41 = vld [vmem:[#allocation5 + $0x634] sm:$0xf0]  ;;  %3136 = vmatpush.bf16.msrb.mxu1 %v7083_v44  ;;  %v8764_v57 = vld [vmem:[#allocation5 + $0x31c] sm:$0xf]  ;;  %v5967_v43 = vor.u32 %v8700_v34, %v5964_v37 }
 0x1b4   :  { %v7338_v45 = vld [vmem:[#allocation5 + $0xbd8] sm:$0xf]  ;;  %v6603_v61 = vor.u32 %v8864_v41, %v6602_v40  ;;  %3104 = vmatpush.bf16.msrb.mxu3 %v6091_v59  ;;  %3118 = vmatmul.bf16.vlgmr.msra.gmra.mxu0 %v9692_v52  ;;  %v2885_v40 = vpop.f32.mrf.mxu0  ;;  %v6223_v44 = vor.u32 %v8764_v57, %v6220_v15  ;;  %v6188_v59 = vld [vmem:[#allocation5 + $0x2f8] sm:$0xf0] }
 0x1b5   :  { %v9048_v47 = vld [vmem:[#allocation5 + $0xbf4] sm:$0xf0]  ;;  %3169 = vmatpush.bf16.msrb.mxu0 %v7371_v50  ;;  %v2848_v50 = vpop.f32.mrf.mxu1  ;;  %v6572_v37 = vld [vmem:[#allocation5 + $0x5f8] sm:$0xf0] }
 0x1b6   :  { %v7050_v63 = vld [vmem:[#allocation5 + $0x998] sm:$0xf]  ;;  %v7339_v1 = vor.u32 %v9048_v47, %v7338_v45  ;;  %3130 = vmatpush.bf16.msrb.mxu2 %v6603_v61  ;;  %v6796_v12 = vld [vmem:[#allocation5 + $0x7b8] sm:$0xf0] }
 0x1b7   :  { %v8976_v0 = vld [vmem:[#allocation5 + $0x9b4] sm:$0xf0]  ;;  %3105 = vmatmul.bf16.vlgmr.msrb.gmra.mxu3 %v9700_v8 }
 0x1b8   :  { %v7306_v60 = vld [vmem:[#allocation5 + $0xb98] sm:$0xf]  ;;  %v7051_v6 = vor.u32 %v8976_v0, %v7050_v63  ;;  %3149 = vmatpush.bf16.msra.mxu3 %v7339_v1  ;;  %v2859_v0 = vpop.f32.mrf.mxu3  ;;  %v2872_v1 = vpop.f32.mrf.mxu2 }
 0x1b9   :  { %v9040_v4 = vld [vmem:[#allocation5 + $0xbb4] sm:$0xf0]  ;;  %3188 = vmatpush.bf16.msra.mxu0 %v6319_v3  ;;  %3131 = vmatmul.bf16.vlgmr.msrb.gmra.mxu2 %v9696_v58  ;;  %v2860_v3 = vadd.f32 %v2859_v0, %v2847_v27  ;;  %v7340_v0 = vld [vmem:[#allocation5 + $0xbf8] sm:$0xf0] }
 0x1ba   :  { %v7018_v14 = vld [vmem:[#allocation5 + $0x958] sm:$0xf]  ;;  %v7307_v17 = vor.u32 %v9040_v4, %v7306_v60  ;;  %3175 = vmatpush.bf16.msra.mxu2 %v6063_v2  ;;  %3137 = vmatpush.bf16.msrb.mxu1 %v7051_v6  ;;  %v5935_v60 = vor.u32 %v8692_v48, %v5932_v53  ;;  %v6191_v4 = vor.u32 %v8756_v55, %v6188_v59  ;;  %v6092_v48 = vld [vmem:[#allocation5 + $0x238] sm:$0xf0] }
 0x1bb   :  { %v8968_v16 = vld [vmem:[#allocation5 + $0x974] sm:$0xf0]  ;;  %v6828_v53 = vld [vmem:[#allocation5 + $0x7f8] sm:$0xf0] }
 0x1bc   :  { %v7274_v19 = vld [vmem:[#allocation5 + $0xb58] sm:$0xf]  ;;  %v7019_v23 = vor.u32 %v8968_v16, %v7018_v14  ;;  %3150 = vmatpush.bf16.msra.mxu3 %v7307_v17  ;;  %v8748_v14 = vld [vmem:[#allocation5 + $0x29c] sm:$0xf]  ;;  %v2873_v17 = vadd.f32 %v2872_v1, %v2860_v3 }
 0x1bd   :  { %v9032_v20 = vld [vmem:[#allocation5 + $0xb74] sm:$0xf0]  ;;  %3189 = vmatpush.bf16.msra.mxu0 %v6287_v18  ;;  %v6156_v16 = vld [vmem:[#allocation5 + $0x2b8] sm:$0xf0]  ;;  %v2898_v27 = vpop.f32.mrf.mxu1 }
 0x1be   :  { %v6986_v28 = vld [vmem:[#allocation5 + $0x918] sm:$0xf]  ;;  %v7275_v29 = vor.u32 %v9032_v20, %v7274_v19  ;;  %3176 = vmatpush.bf16.msra.mxu2 %v6031_v13  ;;  %3138 = vmatpush.bf16.msrb.mxu1 %v7019_v23  ;;  %v2887_v19 = vpop.f32.mrf.mxu0  ;;  %v2886_v22 = vadd.f32 %v2885_v40, %v2873_v17  ;;  %v6159_v23 = vor.u32 %v8748_v14, %v6156_v16  ;;  %v8980_v55 = vld [vmem:[#allocation5 + $0x9dc] sm:$0xf] }
 0x1bf   :  { %v8960_v62 = vld [vmem:[#allocation5 + $0x934] sm:$0xf0]  ;;  %v6540_v3 = vld [vmem:[#allocation5 + $0x5b8] sm:$0xf0] }
 0x1c0   :  { %v7242_v10 = vld [vmem:[#allocation5 + $0xb18] sm:$0xf]  ;;  %v6987_v35 = vor.u32 %v8960_v62, %v6986_v28  ;;  %3151 = vmatpush.bf16.msra.mxu3 %v7275_v29  ;;  %v5868_v62 = vld [vmem:[#allocation5 + $0x78] sm:$0xf0]  ;;  %v2874_v57 = vpop.f32.mrf.mxu2  ;;  %v2861_v15 = vpop.f32.mrf.mxu3 }
 0x1c1   :  { %v9024_v33 = vld [vmem:[#allocation5 + $0xb34] sm:$0xf0]  ;;  %3190 = vmatpush.bf16.msra.mxu0 %v6255_v32  ;;  %v8740_v29 = vld [vmem:[#allocation5 + $0x25c] sm:$0xf]  ;;  %v9792_v32 = vadd.f32 %v2898_v27, %v2886_v22 }
 0x1c2   :  { %v6954_v38 = vld [vmem:[#allocation5 + $0x8d8] sm:$0xf]  ;;  %v7243_v41 = vor.u32 %v9024_v33, %v7242_v10  ;;  %3177 = vmatpush.bf16.msra.mxu2 %v5999_v30  ;;  %3139 = vmatpush.bf16.msrb.mxu1 %v6987_v35  ;;  %v6124_v30 = vld [vmem:[#allocation5 + $0x278] sm:$0xf0] }
 0x1c3   :  { %v8952_v39 = vld [vmem:[#allocation5 + $0x8f4] sm:$0xf0]  ;;  %v8852_v35 = vld [vmem:[#allocation5 + $0x5dc] sm:$0xf] }
 0x1c4   :  { %v7210_v45 = vld [vmem:[#allocation5 + $0xad8] sm:$0xf]  ;;  %v6955_v51 = vor.u32 %v8952_v39, %v6954_v38  ;;  %3152 = vmatpush.bf16.msra.mxu3 %v7243_v41  ;;  %7382 = vmatmul.msk.bf16.vlgmr.msrb.gmra.mxu0 %vm2534_vm0, %v9704_v46  ;;  %v5871_v38 = vor.u32 %v8676_v26, %v5868_v62  ;;  %v6127_v39 = vor.u32 %v8740_v29, %v6124_v30  ;;  %v8972_v14 = vld [vmem:[#allocation5 + $0x99c] sm:$0xf] }
 0x1c5   :  { %v9016_v47 = vld [vmem:[#allocation5 + $0xaf4] sm:$0xf0]  ;;  %3191 = vmatpush.bf16.msra.mxu0 %v6223_v44  ;;  %v6575_v50 = vor.u32 %v8852_v35, %v6572_v37  ;;  %v7052_v17 = vld [vmem:[#allocation5 + $0x9b8] sm:$0xf0] }
 0x1c6   :  { %v6922_v61 = vld [vmem:[#allocation5 + $0x898] sm:$0xf]  ;;  %v7211_v2 = vor.u32 %v9016_v47, %v7210_v45  ;;  %3178 = vmatpush.bf16.msra.mxu2 %v5967_v43  ;;  %3140 = vmatpush.bf16.msrb.mxu1 %v6955_v51  ;;  %v8668_v43 = vld [vmem:[#allocation5 + $0x1c] sm:$0xf] }
 0x1c7   :  { %v8944_v63 = vld [vmem:[#allocation5 + $0x8b4] sm:$0xf0]  ;;  %v5836_v45 = vld [vmem:[#allocation5 + $0x38] sm:$0xf0] }
 0x1c8   :  { %v7178_v5 = vld [vmem:[#allocation5 + $0xa98] sm:$0xf]  ;;  %v6923_v11 = vor.u32 %v8944_v63, %v6922_v61  ;;  %3153 = vmatpush.bf16.msra.mxu3 %v7211_v2  ;;  %v8732_v47 = vld [vmem:[#allocation5 + $0x21c] sm:$0xf]  ;;  %v5839_v1 = vor.u32 %v8668_v43, %v5836_v45 }
 0x1c9   :  { %v9008_v6 = vld [vmem:[#allocation5 + $0xab4] sm:$0xf0]  ;;  %3192 = vmatpush.bf16.msra.mxu0 %v6191_v4  ;;  %v8916_v51 = vld [vmem:[#allocation5 + $0x7dc] sm:$0xf] }
 0x1ca   :  { %v6890_v13 = vld [vmem:[#allocation5 + $0x858] sm:$0xf]  ;;  %v7179_v20 = vor.u32 %v9008_v6, %v7178_v5  ;;  %3179 = vmatpush.bf16.msra.mxu2 %v5935_v60  ;;  %3141 = vmatpush.bf16.msrb.mxu1 %v6923_v11  ;;  %v7084_v61 = vld [vmem:[#allocation5 + $0x9f8] sm:$0xf0]  ;;  %v6095_v60 = vor.u32 %v8732_v47, %v6092_v48  ;;  %v6831_v4 = vor.u32 %v8916_v51, %v6828_v53  ;;  %v2900_v5 = vpop.f32.mrf.mxu1  ;;  %v562_v47 = vperm.slane %v9775_v42, 4 }
 0x1cb   :  { %v8936_v18 = vld [vmem:[#allocation5 + $0x874] sm:$0xf0]  ;;  %v9044_v63 = vld [vmem:[#allocation5 + $0xbdc] sm:$0xf]  ;;  %v7087_v6 = vor.u32 %v8980_v55, %v7084_v61 }
 0x1cc   :  { %v7146_v24 = vld [vmem:[#allocation5 + $0xa58] sm:$0xf]  ;;  %v6891_v28 = vor.u32 %v8936_v18, %v6890_v13  ;;  %3154 = vmatpush.bf16.msra.mxu3 %v7179_v20  ;;  %v8844_v2 = vld [vmem:[#allocation5 + $0x59c] sm:$0xf]  ;;  %v7343_v7 = vor.u32 %v9044_v63, %v7340_v0 }
 0x1cd   :  { %v9000_v25 = vld [vmem:[#allocation5 + $0xa74] sm:$0xf0]  ;;  %3193 = vmatpush.bf16.msra.mxu0 %v6159_v23  ;;  %v8908_v11 = vld [vmem:[#allocation5 + $0x79c] sm:$0xf]  ;;  %v6543_v16 = vor.u32 %v8844_v2, %v6540_v3 }
 0x1ce   :  { %v6858_v10 = vld [vmem:[#allocation5 + $0x818] sm:$0xf]  ;;  %v7147_v34 = vor.u32 %v9000_v25, %v7146_v24  ;;  %3180 = vmatpush.bf16.msra.mxu2 %v5903_v21  ;;  %3142 = vmatpush.bf16.msrb.mxu1 %v6891_v28  ;;  %v9036_v13 = vld [vmem:[#allocation5 + $0xb9c] sm:$0xf]  ;;  %v6799_v22 = vor.u32 %v8908_v11, %v6796_v12  ;;  %v7055_v21 = vor.u32 %v8972_v14, %v7052_v17 }
 0x1cf   :  { %v8928_v33 = vld [vmem:[#allocation5 + $0x834] sm:$0xf0]  ;;  %v7308_v18 = vld [vmem:[#allocation5 + $0xbb8] sm:$0xf0] }
 0x1d0   :  { %v7114_v40 = vld [vmem:[#allocation5 + $0xa18] sm:$0xf]  ;;  %v6859_v44 = vor.u32 %v8928_v33, %v6858_v10  ;;  %3155 = vmatpush.bf16.msra.mxu3 %v7147_v34  ;;  %v8836_v19 = vld [vmem:[#allocation5 + $0x55c] sm:$0xf]  ;;  %v7311_v23 = vor.u32 %v9036_v13, %v7308_v18 }
 0x1d1   :  { %v8992_v41 = vld [vmem:[#allocation5 + $0xa34] sm:$0xf0]  ;;  %3194 = vmatpush.bf16.msra.mxu0 %v6127_v39  ;;  %v6508_v20 = vld [vmem:[#allocation5 + $0x578] sm:$0xf0] }
 0x1d2   :  { %v7115_v59 = vor.u32 %v8992_v41, %v7114_v40  ;;  %3181 = vmatpush.bf16.msra.mxu2 %v5871_v38  ;;  %3143 = vmatpush.bf16.msrb.mxu1 %v6859_v44  ;;  %v8900_v24 = vld [vmem:[#allocation5 + $0x75c] sm:$0xf]  ;;  %v6511_v27 = vor.u32 %v8836_v19, %v6508_v20  ;;  %v2924_v43 = vpop.f32.mrf.mxu1 }
 0x1d3   :  { %v6764_v25 = vld [vmem:[#allocation5 + $0x778] sm:$0xf0] }
 0x1d4   :  { %3156 = vmatpush.bf16.msra.mxu3 %v7115_v59  ;;  %v8964_v26 = vld [vmem:[#allocation5 + $0x95c] sm:$0xf]  ;;  %v6767_v33 = vor.u32 %v8900_v24, %v6764_v25 }
 0x1d5   :  { %3144 = vmatmul.bf16.vlgmr.msrb.gmra.mxu1 %v9708_v31  ;;  %3195 = vmatpush.bf16.msra.mxu0 %v6095_v60  ;;  %v7020_v28 = vld [vmem:[#allocation5 + $0x978] sm:$0xf0] }
 0x1d6   :  { %3201 = vmatpush.bf16.msra.mxu1 %v6575_v50  ;;  %3182 = vmatpush.bf16.msra.mxu2 %v5839_v1  ;;  %v9028_v62 = vld [vmem:[#allocation5 + $0xb5c] sm:$0xf]  ;;  %v7023_v34 = vor.u32 %v8964_v26, %v7020_v28  ;;  %v2911_v1 = vpop.f32.mrf.mxu3 }
 0x1d7   :  { %3157 = vmatmul.bf16.vlgmr.msra.gmra.mxu3 %v9710_v36  ;;  %v7276_v29 = vld [vmem:[#allocation5 + $0xb78] sm:$0xf0]  ;;  %v2912_v60 = vadd.f32 %v2911_v1, %v562_v47  ;;  %v9151_v1 = vld [vmem:[#allocation8 + $0x2ec] sm:$0xf0] }
 0x1d8   :  { %3214 = vmatpush.bf16.msrb.mxu3 %v6831_v4  ;;  %v8828_v30 = vld [vmem:[#allocation5 + $0x51c] sm:$0xf]  ;;  %3196 = vmatmul.bf16.vlgmr.msra.gmra.mxu0 %v9700_v8  ;;  %v7279_v35 = vor.u32 %v9028_v62, %v7276_v29  ;;  %v2937_v4 = vpop.f32.mrf.mxu2 }
 0x1d9   :  { %3240 = vmatpush.bf16.msrb.mxu0 %v7343_v7  ;;  %v6476_v10 = vld [vmem:[#allocation5 + $0x538] sm:$0xf0]  ;;  %3183 = vmatmul.bf16.vlgmr.msra.gmra.mxu2 %v9694_v56  ;;  %v2950_v56 = vpop.f32.mrf.mxu0  ;;  %v2925_v14 = vadd.f32 %v2924_v43, %v2912_v60  ;;  %v9183_v60 = vld [vmem:[#allocation8 + $0x3ec] sm:$0xf0] }
 0x1da   :  { %3227 = vmatpush.bf16.msrb.mxu2 %v7087_v6  ;;  %3202 = vmatpush.bf16.msra.mxu1 %v6543_v16  ;;  %v8892_v37 = vld [vmem:[#allocation5 + $0x71c] sm:$0xf]  ;;  %v6479_v38 = vor.u32 %v8828_v30, %v6476_v10  ;;  %v2926_v19 = vpop.f32.mrf.mxu1 }
 0x1db   :  { %v6732_v57 = vld [vmem:[#allocation5 + $0x738] sm:$0xf0]  ;;  %v7866_v19 = vld [vmem:[#allocation8 + $0x3c0] sm:$0xf] }
 0x1dc   :  { %3215 = vmatpush.bf16.msrb.mxu3 %v6799_v22  ;;  %v8956_v15 = vld [vmem:[#allocation5 + $0x91c] sm:$0xf]  ;;  %v6735_v8 = vor.u32 %v8892_v37, %v6732_v57 }
 0x1dd   :  { %3241 = vmatpush.bf16.msrb.mxu0 %v7311_v23  ;;  %v6988_v39 = vld [vmem:[#allocation5 + $0x938] sm:$0xf0]  ;;  %v2938_v23 = vadd.f32 %v2937_v4, %v2925_v14 }
 0x1de   :  { %3228 = vmatpush.bf16.msrb.mxu2 %v7055_v21  ;;  %3203 = vmatpush.bf16.msra.mxu1 %v6511_v27  ;;  %v9020_v40 = vld [vmem:[#allocation5 + $0xb1c] sm:$0xf]  ;;  %v6991_v48 = vor.u32 %v8956_v15, %v6988_v39  ;;  %v2913_v57 = vpop.f32.mrf.mxu3 }
 0x1df   :  { %v7244_v41 = vld [vmem:[#allocation5 + $0xb38] sm:$0xf0]  ;;  %v9799_v29 = vadd.f32 %v2950_v56, %v2938_v23  ;;  %v9075_v57 = vld [vmem:[#allocation8 + $0x8c] sm:$0xf0] }
 0x1e0   :  { %v8820_v44 = vld [vmem:[#allocation5 + $0x4dc] sm:$0xf]  ;;  %3216 = vmatpush.bf16.msrb.mxu3 %v6767_v33  ;;  %v7247_v50 = vor.u32 %v9020_v40, %v7244_v41  ;;  %v2939_v15 = vpop.f32.mrf.mxu2 }
 0x1e1   :  { %v6444_v45 = vld [vmem:[#allocation5 + $0x4f8] sm:$0xf0]  ;;  %3242 = vmatpush.bf16.msrb.mxu0 %v7279_v35  ;;  %v2952_v21 = vpop.f32.mrf.mxu0  ;;  %v7578_v15 = vld [vmem:[#allocation8 + $0x180] sm:$0xf] }
 0x1e2   :  { %3229 = vmatpush.bf16.msrb.mxu2 %v7023_v34  ;;  %v8884_v51 = vld [vmem:[#allocation5 + $0x6dc] sm:$0xf]  ;;  %3204 = vmatpush.bf16.msra.mxu1 %v6479_v38  ;;  %v6447_v59 = vor.u32 %v8820_v44, %v6444_v45 }
 0x1e3   :  { %v6700_v53 = vld [vmem:[#allocation5 + $0x6f8] sm:$0xf0] }
 0x1e4   :  { %v8948_v55 = vld [vmem:[#allocation5 + $0x8dc] sm:$0xf]  ;;  %3217 = vmatpush.bf16.msrb.mxu3 %v6735_v8  ;;  %v6703_v5 = vor.u32 %v8884_v51, %v6700_v53  ;;  %v7498_v53 = vld [vmem:[#allocation8 + $0xe0] sm:$0xf] }
 0x1e5   :  { %v6956_v61 = vld [vmem:[#allocation5 + $0x8f8] sm:$0xf0]  ;;  %3243 = vmatpush.bf16.msrb.mxu0 %v7247_v50 }
 0x1e6   :  { %v9012_v63 = vld [vmem:[#allocation5 + $0xadc] sm:$0xf]  ;;  %3230 = vmatpush.bf16.msrb.mxu2 %v6991_v48  ;;  %v6959_v42 = vor.u32 %v8948_v55, %v6956_v61  ;;  %3205 = vmatpush.bf16.msra.mxu1 %v6447_v59  ;;  %v9087_v55 = vld [vmem:[#allocation8 + $0xec] sm:$0xf0]  ;;  %v7626_v59 = vld [vmem:[#allocation8 + $0x1e0] sm:$0xf] }
 0x1e7   :  { %v7212_v0 = vld [vmem:[#allocation5 + $0xaf8] sm:$0xf0] }
 0x1e8   :  { %v8812_v2 = vld [vmem:[#allocation5 + $0x49c] sm:$0xf]  ;;  %v7215_v6 = vor.u32 %v9012_v63, %v7212_v0  ;;  %3218 = vmatpush.bf16.msrb.mxu3 %v6703_v5  ;;  %v9119_v63 = vld [vmem:[#allocation8 + $0x1ec] sm:$0xf0]  ;;  %v7754_v0 = vld [vmem:[#allocation8 + $0x2e0] sm:$0xf]  ;;  %v7499_v5 = vor.u32 %v9087_v55, %v7498_v53 }
 0x1e9   :  { %v6412_v3 = vld [vmem:[#allocation5 + $0x4b8] sm:$0xf0]  ;;  %v9103_v53 = vld [vmem:[#allocation8 + $0x16c] sm:$0xf0]  ;;  %v7690_v55 = vld [vmem:[#allocation8 + $0x260] sm:$0xf] }
 0x1ea   :  { %v8876_v7 = vld [vmem:[#allocation5 + $0x69c] sm:$0xf]  ;;  %v6415_v16 = vor.u32 %v8812_v2, %v6412_v3  ;;  %3231 = vmatpush.bf16.msrb.mxu2 %v6959_v42  ;;  %3244 = vmatpush.bf16.msrb.mxu0 %v7215_v6  ;;  %v7882_v3 = vld [vmem:[#allocation8 + $0x3e0] sm:$0xf]  ;;  %v7627_v42 = vor.u32 %v9119_v63, %v7626_v59  ;;  %v7755_v6 = vor.u32 %v9151_v1, %v7754_v0  ;;  %v9135_v59 = vld [vmem:[#allocation8 + $0x26c] sm:$0xf0] }
 0x1eb   :  { %v6668_v11 = vld [vmem:[#allocation5 + $0x6b8] sm:$0xf0]  ;;  %v7883_v14 = vor.u32 %v9183_v60, %v7882_v3  ;;  %v7818_v63 = vld [vmem:[#allocation8 + $0x360] sm:$0xf]  ;;  %v9167_v0 = vld [vmem:[#allocation8 + $0x36c] sm:$0xf0]  ;;  %v7691_v3 = vor.u32 %v9135_v59, %v7690_v55 }
 0x1ec   :  { %v8940_v12 = vld [vmem:[#allocation5 + $0x89c] sm:$0xf]  ;;  %v6671_v24 = vor.u32 %v8876_v7, %v6668_v11  ;;  %3206 = vmatpush.bf16.msra.mxu1 %v6415_v16  ;;  %v7482_v7 = vld [vmem:[#allocation8 + $0xc0] sm:$0xf]  ;;  %v9083_v11 = vld [vmem:[#allocation8 + $0xcc] sm:$0xf0] }
 0x1ed   :  { %v6924_v17 = vld [vmem:[#allocation5 + $0x8b8] sm:$0xf0]  ;;  %v9115_v16 = vld [vmem:[#allocation8 + $0x1cc] sm:$0xf0]  ;;  %v7418_v60 = vld [vmem:[#allocation8 + $0x40] sm:$0xf] }
 0x1ee   :  { %v9004_v13 = vld [vmem:[#allocation5 + $0xa9c] sm:$0xf]  ;;  %v6927_v25 = vor.u32 %v8940_v12, %v6924_v17  ;;  %3219 = vmatpush.bf16.msrb.mxu3 %v6671_v24  ;;  %v7610_v12 = vld [vmem:[#allocation8 + $0x1c0] sm:$0xf] }
 0x1ef   :  { %v7180_v18 = vld [vmem:[#allocation5 + $0xab8] sm:$0xf0]  ;;  %v7738_v17 = vld [vmem:[#allocation8 + $0x2c0] sm:$0xf]  ;;  %v7611_v21 = vor.u32 %v9115_v16, %v7610_v12  ;;  %v9163_v16 = vld [vmem:[#allocation8 + $0x34c] sm:$0xf0] }
 0x1f0   :  { %v8804_v20 = vld [vmem:[#allocation5 + $0x45c] sm:$0xf]  ;;  %v7183_v26 = vor.u32 %v9004_v13, %v7180_v18  ;;  %3232 = vmatpush.bf16.msrb.mxu2 %v6927_v25  ;;  %v9147_v13 = vld [vmem:[#allocation8 + $0x2cc] sm:$0xf0]  ;;  %v9801_v18 = vpop.f32.mrf.mxu2  ;;  %v7466_v24 = vld [vmem:[#allocation8 + $0xa0] sm:$0xf] }
 0x1f1   :  { %v6380_v22 = vld [vmem:[#allocation5 + $0x478] sm:$0xf0]  ;;  %v7739_v23 = vor.u32 %v9147_v13, %v7738_v17  ;;  %v9079_v25 = vld [vmem:[#allocation8 + $0xac] sm:$0xf0] }
 0x1f2   :  { %v8868_v27 = vld [vmem:[#allocation5 + $0x65c] sm:$0xf]  ;;  %v6383_v30 = vor.u32 %v8804_v20, %v6380_v22  ;;  %3245 = vmatpush.bf16.msrb.mxu0 %v7183_v26  ;;  %v9179_v20 = vld [vmem:[#allocation8 + $0x3cc] sm:$0xf0]  ;;  %v7483_v22 = vor.u32 %v9083_v11, %v7482_v7  ;;  %v7594_v26 = vld [vmem:[#allocation8 + $0x1a0] sm:$0xf] }
 0x1f3   :  { %v6636_v28 = vld [vmem:[#allocation5 + $0x678] sm:$0xf0]  ;;  %v7674_v7 = vld [vmem:[#allocation8 + $0x240] sm:$0xf]  ;;  %v9131_v11 = vld [vmem:[#allocation8 + $0x24c] sm:$0xf0] }
 0x1f4   :  { %v8932_v62 = vld [vmem:[#allocation5 + $0x85c] sm:$0xf]  ;;  %v6639_v38 = vor.u32 %v8868_v27, %v6636_v28  ;;  %3207 = vmatpush.bf16.msra.mxu1 %v6383_v30  ;;  %v7867_v27 = vor.u32 %v9179_v20, %v7866_v19  ;;  %v9111_v28 = vld [vmem:[#allocation8 + $0x1ac] sm:$0xf0]  ;;  %v7850_v30 = vld [vmem:[#allocation8 + $0x3a0] sm:$0xf] }
 0x1f5   :  { %v6892_v10 = vld [vmem:[#allocation5 + $0x878] sm:$0xf0]  ;;  %v3266_v19 = vmul.f32 0.2, %v9742_v54 }
 0x1f6   :  { %v8996_v33 = vld [vmem:[#allocation5 + $0xa5c] sm:$0xf]  ;;  %v6895_v41 = vor.u32 %v8932_v62, %v6892_v10  ;;  %3220 = vmatpush.bf16.msrb.mxu3 %v6639_v38  ;;  %v7722_v62 = vld [vmem:[#allocation8 + $0x2a0] sm:$0xf]  ;;  %v9175_v10 = vld [vmem:[#allocation8 + $0x3ac] sm:$0xf0] }
 0x1f7   :  { %v7148_v34 = vld [vmem:[#allocation5 + $0xa78] sm:$0xf0]  ;;  %v9107_v38 = vld [vmem:[#allocation8 + $0x18c] sm:$0xf0] }
 0x1f8   :  { %v8796_v35 = vld [vmem:[#allocation5 + $0x41c] sm:$0xf]  ;;  %v7151_v43 = vor.u32 %v8996_v33, %v7148_v34  ;;  %3233 = vmatpush.bf16.msrb.mxu2 %v6895_v41  ;;  %v7467_v33 = vor.u32 %v9079_v25, %v7466_v24  ;;  %v7595_v34 = vor.u32 %v9111_v28, %v7594_v26  ;;  %v9807_v41 = vpop.f32.mrf.mxu1  ;;  %v9063_v24 = vld [vmem:[#allocation8 + $0x2c] sm:$0xf0]  ;;  %v7530_v25 = vld [vmem:[#allocation8 + $0x120] sm:$0xf] }
 0x1f9   :  { %v6348_v37 = vld [vmem:[#allocation5 + $0x438] sm:$0xf0]  ;;  %v9127_v28 = vld [vmem:[#allocation8 + $0x22c] sm:$0xf0] }
 0x1fa   :  { %v9052_v39 = vld [vmem:[#allocation5 + $0xc1c] sm:$0xf]  ;;  %v6351_v8 = vor.u32 %v8796_v35, %v6348_v37  ;;  %3246 = vmatpush.bf16.msrb.mxu0 %v7151_v43  ;;  %v7450_v37 = vld [vmem:[#allocation8 + $0x80] sm:$0xf]  ;;  %v9171_v43 = vld [vmem:[#allocation8 + $0x38c] sm:$0xf0] }
 0x1fb   :  { %v7372_v40 = vld [vmem:[#allocation5 + $0xc38] sm:$0xf0] }
 0x1fc   :  { %v8860_v44 = vld [vmem:[#allocation5 + $0x61c] sm:$0xf]  ;;  %v7375_v51 = vor.u32 %v9052_v39, %v7372_v40  ;;  %3208 = vmatpush.bf16.msra.mxu1 %v6351_v8  ;;  %v7706_v39 = vld [vmem:[#allocation8 + $0x280] sm:$0xf]  ;;  %v9139_v40 = vld [vmem:[#allocation8 + $0x28c] sm:$0xf0] }
 0x1fd   :  { %v6604_v45 = vld [vmem:[#allocation5 + $0x638] sm:$0xf0]  ;;  %v7707_v8 = vor.u32 %v9139_v40, %v7706_v39  ;;  %v9091_v39 = vld [vmem:[#allocation8 + $0x10c] sm:$0xf0] }
 0x1fe   :  { %v8924_v56 = vld [vmem:[#allocation5 + $0x81c] sm:$0xf]  ;;  %v6607_v61 = vor.u32 %v8860_v44, %v6604_v45  ;;  %v9809_v44 = vpop.f32.mrf.mxu0  ;;  %v7451_v45 = vor.u32 %v9075_v57, %v7450_v37  ;;  %v7386_v37 = vld [vmem:[#allocation8] sm:$0xf] }
 0x1ff   :  { %v6860_v47 = vld [vmem:[#allocation5 + $0x838] sm:$0xf0]  ;;  %3209 = vmatmul.bf16.vlgmr.msra.gmra.mxu1 %v9692_v52  ;;  %v9143_v52 = vld [vmem:[#allocation8 + $0x2ac] sm:$0xf0] }
 0x200   :  { %v8988_v48 = vld [vmem:[#allocation5 + $0xa1c] sm:$0xf]  ;;  %v6863_v2 = vor.u32 %v8924_v56, %v6860_v47  ;;  %3260 = vmatpush.bf16.msrb.mxu1 %v7375_v51  ;;  %3221 = vmatpush.bf16.msrb.mxu3 %v6607_v61  ;;  %v7723_v35 = vor.u32 %v9143_v52, %v7722_v62  ;;  %v7579_v56 = vor.u32 %v9107_v38, %v7578_v15  ;;  %v7434_v47 = vld [vmem:[#allocation8 + $0x60] sm:$0xf]  ;;  %v9811_v61 = vpop.f32.mrf.mxu3  ;;  %v2978_v12 = vpop.f32.mrf.mxu1  ;;  %v3267_v62 = vmul.f32 0.2, %v9759_v49 }
 0x201   :  { %v7116_v50 = vld [vmem:[#allocation5 + $0xa38] sm:$0xf0]  ;;  %v7786_v52 = vld [vmem:[#allocation8 + $0x320] sm:$0xf] }
 0x202   :  { %v7119_v4 = vor.u32 %v8988_v48, %v7116_v50  ;;  %3234 = vmatpush.bf16.msrb.mxu2 %v6863_v2  ;;  %v9071_v48 = vld [vmem:[#allocation8 + $0x6c] sm:$0xf0]  ;;  %v7562_v50 = vld [vmem:[#allocation8 + $0x160] sm:$0xf] }
 0x203   :  { %3222 = vmatmul.bf16.vlgmr.msrb.gmra.mxu3 %v9696_v58  ;;  %v7851_v58 = vor.u32 %v9175_v10, %v7850_v30  ;;  %v7435_v1 = vor.u32 %v9071_v48, %v7434_v47  ;;  %v7563_v2 = vor.u32 %v9103_v53, %v7562_v50  ;;  %v9159_v30 = vld [vmem:[#allocation8 + $0x32c] sm:$0xf0]  ;;  %v7514_v38 = vld [vmem:[#allocation8 + $0x100] sm:$0xf]  ;;  %v3274_v53 = vmax.f32 %v9742_v54, %v3266_v19 }
 0x204   :  { %3247 = vmatpush.bf16.msrb.mxu0 %v7119_v4  ;;  %4836 = vmatpush.bf16.msra.mxu3 %v7499_v5  ;;  %v9067_v4 = vld [vmem:[#allocation8 + $0x4c] sm:$0xf0]  ;;  %v7546_v5 = vld [vmem:[#allocation8 + $0x140] sm:$0xf]  ;;  %v7787_v40 = vor.u32 %v9159_v30, %v7786_v52  ;;  %v7515_v55 = vor.u32 %v9091_v39, %v7514_v38 }
 0x205   :  { %4849 = vmatpush.bf16.msra.mxu1 %v7627_v42  ;;  %3235 = vmatmul.bf16.vlgmr.msrb.gmra.mxu2 %v9708_v31  ;;  %v2991_v31 = vpop.f32.mrf.mxu2  ;;  %v7819_v42 = vor.u32 %v9167_v0, %v7818_v63  ;;  %v7419_v20 = vor.u32 %v9067_v4, %v7418_v60  ;;  %v8138_v50 = vld [vmem:[#allocation8 + $0x5e0] sm:$0xf]  ;;  %v3275_v63 = vmax.f32 %v9759_v49, %v3267_v62  ;;  %v9279_v60 = vld [vmem:[#allocation8 + $0x6ec] sm:$0xf0] }
 0x206   :  { %4862 = vmatpush.bf16.msra.mxu2 %v7755_v6  ;;  %v9099_v6 = vld [vmem:[#allocation8 + $0x14c] sm:$0xf0]  ;;  %v3004_v13 = vpop.f32.mrf.mxu0  ;;  %v7642_v31 = vld [vmem:[#allocation8 + $0x200] sm:$0xf] }
 0x207   :  { %3248 = vmatmul.bf16.vlgmr.msrb.gmra.mxu0 %v9710_v36  ;;  %v7834_v36 = vld [vmem:[#allocation8 + $0x380] sm:$0xf]  ;;  %v9827_v12 = vpack.c.bf16 %v3275_v63, %v3275_v63  ;;  %v9203_v30 = vld [vmem:[#allocation8 + $0x48c] sm:$0xf0] }
 0x208   :  { %4875 = vmatpush.bf16.msra.mxu0 %v7883_v14  ;;  %4837 = vmatpush.bf16.msra.mxu3 %v7483_v22  ;;  %v7835_v51 = vor.u32 %v9171_v43, %v7834_v36  ;;  %v7802_v14 = vld [vmem:[#allocation8 + $0x340] sm:$0xf]  ;;  %v7547_v22 = vor.u32 %v9099_v6, %v7546_v5  ;;  %v2965_v10 = vpop.f32.mrf.mxu3  ;;  %v9123_v36 = vld [vmem:[#allocation8 + $0x20c] sm:$0xf0] }
 0x209   :  { %4850 = vmatpush.bf16.msra.mxu1 %v7611_v21  ;;  %v7675_v21 = vor.u32 %v9131_v11, %v7674_v7  ;;  %v7803_v26 = vor.u32 %v9163_v16, %v7802_v14  ;;  %v7770_v43 = vld [vmem:[#allocation8 + $0x300] sm:$0xf]  ;;  %v7643_v59 = vor.u32 %v9123_v36, %v7642_v31  ;;  %v9211_v6 = vld [vmem:[#allocation8 + $0x4cc] sm:$0xf0]  ;;  %v9825_v11 = vpack.c.bf16 %v3274_v53, %v3274_v53 }
 0x20a   :  { %4863 = vmatpush.bf16.msra.mxu2 %v7739_v23  ;;  %v7402_v23 = vld [vmem:[#allocation8 + $0x20] sm:$0xf]  ;;  %v9243_v7 = vld [vmem:[#allocation8 + $0x5cc] sm:$0xf0] }
 0x20b   :  { %v8122_v54 = vld [vmem:[#allocation8 + $0x5c0] sm:$0xf]  ;;  %v9267_v38 = vld [vmem:[#allocation8 + $0x68c] sm:$0xf0] }
 0x20c   :  { %4876 = vmatpush.bf16.msra.mxu0 %v7867_v27  ;;  %4838 = vmatpush.bf16.msra.mxu3 %v7467_v33  ;;  %v9095_v27 = vld [vmem:[#allocation8 + $0x12c] sm:$0xf0]  ;;  %v3268_v33 = vmul.f32 0.2, %v9779_v9  ;;  %v8250_v16 = vld [vmem:[#allocation8 + $0x6c0] sm:$0xf]  ;;  %v8123_v19 = vor.u32 %v9243_v7, %v8122_v54 }
 0x20d   :  { %4851 = vmatpush.bf16.msra.mxu1 %v7595_v34  ;;  %v9815_v17 = vpop.f32.mrf.mxu2  ;;  %v3269_v34 = vmul.f32 0.2, %v9792_v32  ;;  %v7531_v57 = vor.u32 %v9095_v27, %v7530_v25  ;;  %v9239_v25 = vld [vmem:[#allocation8 + $0x5ac] sm:$0xf0]  ;;  %v7962_v52 = vld [vmem:[#allocation8 + $0x480] sm:$0xf] }
 0x20e   :  { %4864 = vmatpush.bf16.msra.mxu2 %v7723_v35  ;;  %v7403_v35 = vor.u32 %v9063_v24, %v7402_v23  ;;  %v3276_v0 = vmax.f32 %v9779_v9, %v3268_v33  ;;  %v8106_v24 = vld [vmem:[#allocation8 + $0x5a0] sm:$0xf]  ;;  %v9199_v31 = vld [vmem:[#allocation8 + $0x46c] sm:$0xf0] }
 0x20f   :  { %7383 = vmatmul.msk.bf16.vlgmr.msrb.gmra.mxu1 %vm2534_vm0, %v9704_v46  ;;  %v7658_v46 = vld [vmem:[#allocation8 + $0x220] sm:$0xf]  ;;  %v3277_v4 = vmax.f32 %v9792_v32, %v3269_v34  ;;  %v9275_v32 = vld [vmem:[#allocation8 + $0x6cc] sm:$0xf0]  ;;  %v8107_v62 = vor.u32 %v9239_v25, %v8106_v24  ;;  %v3041_v36 = vpop.f32.mrf.mxu1 }
 0x210   :  { %4877 = vmatpush.bf16.msra.mxu0 %v7851_v58  ;;  %4839 = vmatpush.bf16.msra.mxu3 %v7451_v45  ;;  %v7659_v15 = vor.u32 %v9127_v28, %v7658_v46  ;;  %v9059_v58 = vld [vmem:[#allocation8 + $0xc] sm:$0xf0]  ;;  %v9829_v9 = vpack.c.bf16 %v3276_v0, %v3276_v0  ;;  %v8234_v46 = vld [vmem:[#allocation8 + $0x6a0] sm:$0xf] }
 0x211   :  { %4852 = vmatpush.bf16.msra.mxu1 %v7579_v56  ;;  %v9155_v45 = vld [vmem:[#allocation8 + $0x30c] sm:$0xf0]  ;;  %v8010_v56 = vld [vmem:[#allocation8 + $0x4e0] sm:$0xf]  ;;  %v7387_v48 = vor.u32 %v9059_v58, %v7386_v37  ;;  %v9831_v13 = vpack.c.bf16 %v3277_v4, %v3277_v4 }
 0x212   :  { %4865 = vmatpush.bf16.msra.mxu2 %v7707_v8  ;;  %v9215_v8 = vld [vmem:[#allocation8 + $0x4ec] sm:$0xf0]  ;;  %v8090_v33 = vld [vmem:[#allocation8 + $0x580] sm:$0xf] }
 0x213   :  { %v9271_v28 = vld [vmem:[#allocation8 + $0x6ac] sm:$0xf0]  ;;  %v8218_v58 = vld [vmem:[#allocation8 + $0x680] sm:$0xf] }
 0x214   :  { %4878 = vmatpush.bf16.msra.mxu0 %v7835_v51  ;;  %4840 = vmatpush.bf16.msra.mxu3 %v7435_v1  ;;  %v9247_v51 = vld [vmem:[#allocation8 + $0x5ec] sm:$0xf0]  ;;  %v7771_v1 = vor.u32 %v9155_v45, %v7770_v43  ;;  %v8235_v37 = vor.u32 %v9271_v28, %v8234_v46  ;;  %v8042_v7 = vld [vmem:[#allocation8 + $0x520] sm:$0xf]  ;;  %v9085_v46 = vld [vmem:[#allocation8 + $0xe4] sm:$0xf] }
 0x215   :  { %4853 = vmatpush.bf16.msra.mxu1 %v7563_v2  ;;  %v3017_v47 = vpop.f32.mrf.mxu2  ;;  %v8011_v2 = vor.u32 %v9215_v8, %v8010_v56  ;;  %v8139_v5 = vor.u32 %v9247_v51, %v8138_v50  ;;  %v9235_v34 = vld [vmem:[#allocation8 + $0x58c] sm:$0xf0]  ;;  %v3028_v56 = vpop.f32.mrf.mxu3  ;;  %v8219_v8 = vor.u32 %v9267_v38, %v8218_v58  ;;  %v7930_v51 = vld [vmem:[#allocation8 + $0x440] sm:$0xf]  ;;  %v7500_v28 = vld [vmem:[#allocation8 + $0xf0] sm:$0xf0] }
 0x216   :  { %4866 = vmatpush.bf16.msra.mxu2 %v7691_v3  ;;  %v8266_v3 = vld [vmem:[#allocation8 + $0x6e0] sm:$0xf]  ;;  %v8091_v39 = vor.u32 %v9235_v34, %v8090_v33  ;;  %v9231_v45 = vld [vmem:[#allocation8 + $0x56c] sm:$0xf0]  ;;  %v7503_v58 = vor.u32 %v9085_v46, %v7500_v28  ;;  %v9149_v38 = vld [vmem:[#allocation8 + $0x2e4] sm:$0xf] }
 0x217   :  { %v8267_v49 = vor.u32 %v9279_v60, %v8266_v3  ;;  %v9195_v53 = vld [vmem:[#allocation8 + $0x44c] sm:$0xf0]  ;;  %v8026_v25 = vld [vmem:[#allocation8 + $0x500] sm:$0xf] }
 0x218   :  { %4879 = vmatpush.bf16.msra.mxu0 %v7819_v42  ;;  %4841 = vmatpush.bf16.msra.mxu3 %v7419_v20  ;;  %v7994_v42 = vld [vmem:[#allocation8 + $0x4c0] sm:$0xf]  ;;  %v9227_v63 = vld [vmem:[#allocation8 + $0x54c] sm:$0xf0]  ;;  %v7931_v3 = vor.u32 %v9195_v53, %v7930_v51  ;;  %v9145_v51 = vld [vmem:[#allocation8 + $0x2c4] sm:$0xf] }
 0x219   :  { %4854 = vmatpush.bf16.msra.mxu1 %v7547_v22  ;;  %v7995_v14 = vor.u32 %v9211_v6, %v7994_v42  ;;  %v7978_v20 = vld [vmem:[#allocation8 + $0x4a0] sm:$0xf]  ;;  %v9207_v22 = vld [vmem:[#allocation8 + $0x4ac] sm:$0xf0]  ;;  %v3043_v6 = vpop.f32.mrf.mxu1  ;;  %v7740_v53 = vld [vmem:[#allocation8 + $0x2d0] sm:$0xf0] }
 0x21a   :  { %4867 = vmatpush.bf16.msra.mxu2 %v7675_v21  ;;  %v9836_v21 = vld [vmem:[#allocation7] sm:$0xff]  ;;  %v7979_v27 = vor.u32 %v9207_v22, %v7978_v20  ;;  %v9259_v60 = vld [vmem:[#allocation8 + $0x64c] sm:$0xf0]  ;;  %v8170_v20 = vld [vmem:[#allocation8 + $0x620] sm:$0xf] }
 0x21b   :  { %v563_v23 = vperm.slane %v9836_v21, 5  ;;  %v9191_v42 = vld [vmem:[#allocation8 + $0x42c] sm:$0xf0]  ;;  %v8154_v34 = vld [vmem:[#allocation8 + $0x600] sm:$0xf] }
 0x21c   :  { %4880 = vmatpush.bf16.msra.mxu0 %v7803_v26  ;;  %4842 = vmatpush.bf16.msra.mxu3 %v7403_v35  ;;  %v8251_v26 = vor.u32 %v9275_v32, %v8250_v16  ;;  %v3054_v35 = vpop.f32.mrf.mxu0  ;;  %v9187_v24 = vld [vmem:[#allocation8 + $0x40c] sm:$0xf0]  ;;  %v7724_v6 = vld [vmem:[#allocation8 + $0x2b0] sm:$0xf0] }
 0x21d   :  { %4855 = vmatpush.bf16.msra.mxu1 %v7531_v57  ;;  %v3003_v10 = vadd.f32 %v9809_v44, %v563_v23  ;;  %v2964_v57 = vadd.f32 %v9811_v61, %v9799_v29  ;;  %v8074_v44 = vld [vmem:[#allocation8 + $0x560] sm:$0xf]  ;;  %v3067_v0 = vpop.f32.mrf.mxu2 }
 0x21e   :  { %4868 = vmatpush.bf16.msra.mxu2 %v7659_v15  ;;  %v7963_v15 = vor.u32 %v9203_v30, %v7962_v52  ;;  %v8202_v61 = vld [vmem:[#allocation8 + $0x660] sm:$0xf]  ;;  %v8075_v50 = vor.u32 %v9231_v45, %v8074_v44  ;;  %v9117_v52 = vld [vmem:[#allocation8 + $0x1e4] sm:$0xf]  ;;  %v7628_v30 = vld [vmem:[#allocation8 + $0x1f0] sm:$0xf0] }
 0x21f   :  { %v3016_v43 = vadd.f32 %v9815_v17, %v3003_v10  ;;  %v2977_v47 = vadd.f32 %v9807_v41, %v2964_v57  ;;  %v8186_v41 = vld [vmem:[#allocation8 + $0x640] sm:$0xf]  ;;  %v9113_v44 = vld [vmem:[#allocation8 + $0x1c4] sm:$0xf]  ;;  %v7612_v45 = vld [vmem:[#allocation8 + $0x1d0] sm:$0xf0] }
 0x220   :  { %4881 = vmatpush.bf16.msra.mxu0 %v7787_v40  ;;  %4843 = vmatpush.bf16.msra.mxu3 %v7387_v48  ;;  %v7946_v40 = vld [vmem:[#allocation8 + $0x460] sm:$0xf]  ;;  %v9263_v48 = vld [vmem:[#allocation8 + $0x66c] sm:$0xf0]  ;;  %v8187_v16 = vor.u32 %v9259_v60, %v8186_v41  ;;  %v7743_v41 = vor.u32 %v9145_v51, %v7740_v53  ;;  %v7676_v51 = vld [vmem:[#allocation8 + $0x250] sm:$0xf0] }
 0x221   :  { %4856 = vmatpush.bf16.msra.mxu1 %v7515_v55  ;;  %v7947_v29 = vor.u32 %v9199_v31, %v7946_v40  ;;  %v3029_v55 = vadd.f32 %v3028_v56, %v3016_v43  ;;  %v7898_v23 = vld [vmem:[#allocation8 + $0x400] sm:$0xf]  ;;  %v9081_v31 = vld [vmem:[#allocation8 + $0xc4] sm:$0xf] }
 0x222   :  { %4869 = vmatpush.bf16.msra.mxu2 %v7643_v59  ;;  %v8058_v59 = vld [vmem:[#allocation8 + $0x540] sm:$0xf]  ;;  %v7899_v33 = vor.u32 %v9187_v24, %v7898_v23  ;;  %v9303_v24 = vld [vmem:[#allocation8 + $0x7ac] sm:$0xf0] }
 0x223   :  { %4844 = vmatmul.bf16.vlgmr.msra.gmra.mxu3 %v9825_v11  ;;  %v8059_v4 = vor.u32 %v9227_v63, %v8058_v59  ;;  %v3042_v54 = vadd.f32 %v3041_v36, %v3029_v55  ;;  %v7484_v36 = vld [vmem:[#allocation8 + $0xd0] sm:$0xf0]  ;;  %v7615_v63 = vor.u32 %v9113_v44, %v7612_v45  ;;  %v8378_v60 = vld [vmem:[#allocation8 + $0x7c0] sm:$0xf]  ;;  %v9097_v44 = vld [vmem:[#allocation8 + $0x144] sm:$0xf] }
 0x224   :  { %4882 = vmatpush.bf16.msra.mxu0 %v7771_v1  ;;  %4888 = vmatpush.bf16.msrb.mxu3 %v8011_v2  ;;  %v3056_v17 = vpop.f32.mrf.mxu0  ;;  %v8203_v1 = vor.u32 %v9263_v48, %v8202_v61  ;;  %v2990_v2 = vadd.f32 %v9801_v18, %v2977_v47  ;;  %v9255_v18 = vld [vmem:[#allocation8 + $0x62c] sm:$0xf0]  ;;  %v7548_v45 = vld [vmem:[#allocation8 + $0x150] sm:$0xf0] }
 0x225   :  { %4901 = vmatpush.bf16.msrb.mxu1 %v8139_v5  ;;  %4870 = vmatmul.bf16.vlgmr.msra.gmra.mxu2 %v9829_v9  ;;  %v7914_v5 = vld [vmem:[#allocation8 + $0x420] sm:$0xf]  ;;  %v8171_v10 = vor.u32 %v9255_v18, %v8170_v20  ;;  %v9311_v61 = vld [vmem:[#allocation8 + $0x7ec] sm:$0xf0]  ;;  %v7468_v17 = vld [vmem:[#allocation8 + $0xb0] sm:$0xf0] }
 0x226   :  { %4857 = vmatmul.bf16.vlgmr.msra.gmra.mxu1 %v9827_v12  ;;  %4914 = vmatpush.bf16.msrb.mxu2 %v8267_v49  ;;  %v9223_v49 = vld [vmem:[#allocation8 + $0x52c] sm:$0xf0]  ;;  %v3270_v32 = vmul.f32 0.2, %v2990_v2  ;;  %v9105_v20 = vld [vmem:[#allocation8 + $0x184] sm:$0xf] }
 0x227   :  { %4883 = vmatmul.bf16.vlgmr.msra.gmra.mxu0 %v9831_v13  ;;  %v8043_v22 = vor.u32 %v9223_v49, %v8042_v7  ;;  %v7580_v18 = vld [vmem:[#allocation8 + $0x190] sm:$0xf0] }
 0x228   :  { %4889 = vmatpush.bf16.msrb.mxu3 %v7995_v14  ;;  %v3030_v14 = vpop.f32.mrf.mxu3  ;;  %v3278_v57 = vmax.f32 %v2990_v2, %v3270_v32  ;;  %v7596_v2 = vld [vmem:[#allocation8 + $0x1b0] sm:$0xf0]  ;;  %v7583_v28 = vor.u32 %v9105_v20, %v7580_v18  ;;  %v9245_v18 = vld [vmem:[#allocation8 + $0x5e4] sm:$0xf] }
 0x229   :  { %4902 = vmatpush.bf16.msrb.mxu1 %v8123_v19  ;;  %v7915_v19 = vor.u32 %v9191_v42, %v7914_v5  ;;  %v9141_v42 = vld [vmem:[#allocation8 + $0x2a4] sm:$0xf]  ;;  %v8012_v20 = vld [vmem:[#allocation8 + $0x4f0] sm:$0xf0] }
 0x22a   :  { %4915 = vmatpush.bf16.msrb.mxu2 %v8251_v26  ;;  %v3055_v26 = vadd.f32 %v3054_v35, %v3042_v54  ;;  %v7631_v35 = vor.u32 %v9117_v52, %v7628_v30  ;;  %v9846_v48 = vpack.c.bf16 %v3278_v57, %v3278_v57  ;;  %v9073_v14 = vld [vmem:[#allocation8 + $0x84] sm:$0xf]  ;;  %v7727_v23 = vor.u32 %v9141_v42, %v7724_v6  ;;  %v7436_v30 = vld [vmem:[#allocation8 + $0x70] sm:$0xf0]  ;;  %v9299_v57 = vld [vmem:[#allocation8 + $0x78c] sm:$0xf0] }
 0x22b   :  { %v9069_v52 = vld [vmem:[#allocation8 + $0x64] sm:$0xf]  ;;  %v7660_v42 = vld [vmem:[#allocation8 + $0x230] sm:$0xf0] }
 0x22c   :  { %4890 = vmatpush.bf16.msrb.mxu3 %v7979_v27  ;;  %v9219_v27 = vld [vmem:[#allocation8 + $0x50c] sm:$0xf0]  ;;  %v3068_v40 = vadd.f32 %v3067_v0, %v3055_v26  ;;  %v9077_v0 = vld [vmem:[#allocation8 + $0xa4] sm:$0xf] }
 0x22d   :  { %4903 = vmatpush.bf16.msrb.mxu1 %v8107_v62  ;;  %v3069_v62 = vpop.f32.mrf.mxu2  ;;  %v7471_v5 = vor.u32 %v9077_v0, %v7468_v17  ;;  %v9137_v26 = vld [vmem:[#allocation8 + $0x284] sm:$0xf] }
 0x22e   :  { %4916 = vmatpush.bf16.msrb.mxu2 %v8235_v37  ;;  %v9251_v37 = vld [vmem:[#allocation8 + $0x60c] sm:$0xf0]  ;;  %v9093_v17 = vld [vmem:[#allocation8 + $0x124] sm:$0xf] }
 0x22f   :  { %v8155_v56 = vor.u32 %v9251_v37, %v8154_v34  ;;  %v9854_v62 = vpop.f32.mrf.mxu1  ;;  %v8346_v34 = vld [vmem:[#allocation8 + $0x780] sm:$0xf] }
 0x230   :  { %4891 = vmatpush.bf16.msrb.mxu3 %v7963_v15  ;;  %v8027_v15 = vor.u32 %v9219_v27, %v8026_v25  ;;  %v3080_v43 = vpop.f32.mrf.mxu3  ;;  %v7708_v27 = vld [vmem:[#allocation8 + $0x290] sm:$0xf0] }
 0x231   :  { %4904 = vmatpush.bf16.msrb.mxu1 %v8091_v39  ;;  %v7756_v39 = vld [vmem:[#allocation8 + $0x2f0] sm:$0xf0]  ;;  %v7711_v37 = vor.u32 %v9137_v26, %v7708_v27  ;;  %v8298_v27 = vld [vmem:[#allocation8 + $0x720] sm:$0xf] }
 0x232   :  { %4917 = vmatpush.bf16.msrb.mxu2 %v8219_v8  ;;  %v3081_v8 = vadd.f32 %v3080_v43, %v3068_v40  ;;  %v7759_v47 = vor.u32 %v9149_v38, %v7756_v39  ;;  %v7692_v38 = vld [vmem:[#allocation8 + $0x270] sm:$0xf0]  ;;  %v8347_v39 = vor.u32 %v9299_v57, %v8346_v34 }
 0x234   :  { %4892 = vmatpush.bf16.msrb.mxu3 %v7947_v29  ;;  %v8394_v29 = vld [vmem:[#allocation8 + $0x7e0] sm:$0xf]  ;;  %v3271_v59 = vmul.f32 0.2, %v3081_v8 }
 0x235   :  { %4905 = vmatpush.bf16.msrb.mxu1 %v8075_v50  ;;  %v7487_v50 = vor.u32 %v9081_v31, %v7484_v36  ;;  %v8395_v55 = vor.u32 %v9311_v61, %v8394_v29  ;;  %v7420_v31 = vld [vmem:[#allocation8 + $0x50] sm:$0xf0]  ;;  %v9295_v29 = vld [vmem:[#allocation8 + $0x76c] sm:$0xf0] }
 0x236   :  { %4918 = vmatpush.bf16.msrb.mxu2 %v8203_v1  ;;  %v9109_v1 = vld [vmem:[#allocation8 + $0x1a4] sm:$0xf] }
 0x237   :  { %4927 = vmatpush.bf16.msrb.mxu0 %v8395_v55  ;;  %v7599_v49 = vor.u32 %v9109_v1, %v7596_v2  ;;  %v7551_v55 = vor.u32 %v9097_v44, %v7548_v45  ;;  %v3095_v0 = vpop.f32.mrf.mxu1  ;;  %v7532_v1 = vld [vmem:[#allocation8 + $0x130] sm:$0xf0]  ;;  %v9181_v44 = vld [vmem:[#allocation8 + $0x3e4] sm:$0xf] }
 0x238   :  { %4893 = vmatpush.bf16.msrb.mxu3 %v7931_v3  ;;  %v3279_v3 = vmax.f32 %v3081_v8, %v3271_v59  ;;  %v3082_v32 = vpop.f32.mrf.mxu3  ;;  %v9061_v59 = vld [vmem:[#allocation8 + $0x24] sm:$0xf]  ;;  %v7884_v45 = vld [vmem:[#allocation8 + $0x3f0] sm:$0xf0] }
 0x239   :  { %4906 = vmatpush.bf16.msrb.mxu1 %v8059_v4  ;;  %v9307_v4 = vld [vmem:[#allocation8 + $0x7cc] sm:$0xf0]  ;;  %v9213_v32 = vld [vmem:[#allocation8 + $0x4e4] sm:$0xf]  ;;  %v7868_v0 = vld [vmem:[#allocation8 + $0x3d0] sm:$0xf0] }
 0x23a   :  { %4919 = vmatpush.bf16.msrb.mxu2 %v8187_v16  ;;  %v8379_v54 = vor.u32 %v9307_v4, %v8378_v60  ;;  %v9849_v7 = vpack.c.bf16 %v3279_v3, %v3279_v3  ;;  %v7452_v16 = vld [vmem:[#allocation8 + $0x90] sm:$0xf0]  ;;  %v8314_v3 = vld [vmem:[#allocation8 + $0x740] sm:$0xf]  ;;  %v9057_v4 = vld [vmem:[#allocation8 + $0x4] sm:$0xf] }
 0x23b   :  { %v7455_v25 = vor.u32 %v9073_v14, %v7452_v16  ;;  %v9089_v14 = vld [vmem:[#allocation8 + $0x104] sm:$0xf]  ;;  %v7516_v16 = vld [vmem:[#allocation8 + $0x110] sm:$0xf0] }
 0x23c   :  { %4894 = vmatpush.bf16.msrb.mxu3 %v7915_v19  ;;  %v9851_v19 = vpop.f32.mrf.mxu0  ;;  %4928 = vmatpush.bf16.msrb.mxu0 %v8379_v54  ;;  %v7535_v54 = vor.u32 %v9093_v17, %v7532_v1  ;;  %v7519_v34 = vor.u32 %v9089_v14, %v7516_v16  ;;  %v9197_v16 = vld [vmem:[#allocation8 + $0x464] sm:$0xf] }
 0x23d   :  { %4907 = vmatpush.bf16.msrb.mxu1 %v8043_v22  ;;  %v8362_v22 = vld [vmem:[#allocation8 + $0x7a0] sm:$0xf] }
 0x23e   :  { %4920 = vmatpush.bf16.msrb.mxu2 %v8171_v10  ;;  %v8363_v46 = vor.u32 %v9303_v24, %v8362_v22  ;;  %v9101_v10 = vld [vmem:[#allocation8 + $0x164] sm:$0xf]  ;;  %v8140_v24 = vld [vmem:[#allocation8 + $0x5f0] sm:$0xf0] }
 0x23f   :  { %v8143_v57 = vor.u32 %v9245_v18, %v8140_v24  ;;  %v8076_v18 = vld [vmem:[#allocation8 + $0x570] sm:$0xf0]  ;;  %v9169_v24 = vld [vmem:[#allocation8 + $0x384] sm:$0xf] }
 0x240   :  { %4895 = vmatpush.bf16.msrb.mxu3 %v7899_v33  ;;  %v7564_v33 = vld [vmem:[#allocation8 + $0x170] sm:$0xf0]  ;;  %4929 = vmatpush.bf16.msrb.mxu0 %v8363_v46  ;;  %v9856_v36 = vpop.f32.mrf.mxu3  ;;  %v9287_v46 = vld [vmem:[#allocation8 + $0x72c] sm:$0xf0] }
 0x241   :  { %4908 = vmatpush.bf16.msrb.mxu1 %v8027_v15  ;;  %v7439_v15 = vor.u32 %v9069_v52, %v7436_v30  ;;  %v7567_v40 = vor.u32 %v9101_v10, %v7564_v33  ;;  %v9121_v52 = vld [vmem:[#allocation8 + $0x204] sm:$0xf]  ;;  %v7644_v30 = vld [vmem:[#allocation8 + $0x210] sm:$0xf0]  ;;  %v8299_v10 = vor.u32 %v9287_v46, %v8298_v27  ;;  %v564_v33 = vperm.slane %v9836_v21, 6 }
 0x242   :  { %4921 = vmatpush.bf16.msrb.mxu2 %v8155_v56  ;;  %v9858_v56 = vpop.f32.mrf.mxu2 }
 0x243   :  { %4896 = vmatmul.bf16.vlgmr.msrb.gmra.mxu3 %v9846_v48 }
 0x244   :  { %4940 = vmatpush.bf16.msra.mxu3 %v7503_v58  ;;  %4909 = vmatmul.bf16.vlgmr.msrb.gmra.mxu1 %v9849_v7  ;;  %v9133_v58 = vld [vmem:[#allocation8 + $0x264] sm:$0xf]  ;;  %v3121_v43 = vpop.f32.mrf.mxu0 }
 0x245   :  { %4953 = vmatpush.bf16.msra.mxu1 %v7631_v35  ;;  %v9065_v35 = vld [vmem:[#allocation8 + $0x44] sm:$0xf]  ;;  %v7695_v8 = vor.u32 %v9133_v58, %v7692_v38  ;;  %4930 = vmatpush.bf16.msrb.mxu0 %v8347_v39  ;;  %v7996_v58 = vld [vmem:[#allocation8 + $0x4d0] sm:$0xf0] }
 0x246   :  { %4966 = vmatpush.bf16.msra.mxu2 %v7759_v47  ;;  %v8330_v47 = vld [vmem:[#allocation8 + $0x760] sm:$0xf]  ;;  %v7423_v61 = vor.u32 %v9065_v35, %v7420_v31  ;;  %v9241_v38 = vld [vmem:[#allocation8 + $0x5c4] sm:$0xf]  ;;  %v8124_v39 = vld [vmem:[#allocation8 + $0x5d0] sm:$0xf0] }
 0x247   :  { %v8331_v53 = vor.u32 %v9295_v29, %v8330_v47  ;;  %v8282_v35 = vld [vmem:[#allocation8 + $0x700] sm:$0xf]  ;;  %v9283_v31 = vld [vmem:[#allocation8 + $0x70c] sm:$0xf0]  ;;  %v7887_v29 = vor.u32 %v9181_v44, %v7884_v45  ;;  %v9221_v44 = vld [vmem:[#allocation8 + $0x524] sm:$0xf] }
 0x248   :  { %4941 = vmatpush.bf16.msra.mxu3 %v7487_v50  ;;  %v9129_v50 = vld [vmem:[#allocation8 + $0x244] sm:$0xf]  ;;  %v3108_v22 = vpop.f32.mrf.mxu3  ;;  %v8283_v43 = vor.u32 %v9283_v31, %v8282_v35  ;;  %v7916_v31 = vld [vmem:[#allocation8 + $0x430] sm:$0xf0] }
 0x249   :  { %4954 = vmatpush.bf16.msra.mxu1 %v7615_v63  ;;  %v7404_v63 = vld [vmem:[#allocation8 + $0x30] sm:$0xf0]  ;;  %v7679_v2 = vor.u32 %v9129_v50, %v7676_v51  ;;  %4931 = vmatpush.bf16.msrb.mxu0 %v8331_v53  ;;  %v9205_v50 = vld [vmem:[#allocation8 + $0x4a4] sm:$0xf] }
 0x24a   :  { %4967 = vmatpush.bf16.msra.mxu2 %v7743_v41  ;;  %v9291_v41 = vld [vmem:[#allocation8 + $0x74c] sm:$0xf0]  ;;  %v7407_v60 = vor.u32 %v9061_v59, %v7404_v63  ;;  %v7980_v51 = vld [vmem:[#allocation8 + $0x4b0] sm:$0xf0]  ;;  %v9177_v63 = vld [vmem:[#allocation8 + $0x3c4] sm:$0xf] }
 0x24b   :  { %v8315_v6 = vor.u32 %v9291_v41, %v8314_v3  ;;  %v8108_v59 = vld [vmem:[#allocation8 + $0x5b0] sm:$0xf0]  ;;  %v7983_v17 = vor.u32 %v9205_v50, %v7980_v51  ;;  %v7871_v1 = vor.u32 %v9177_v63, %v7868_v0  ;;  %v9201_v3 = vld [vmem:[#allocation8 + $0x484] sm:$0xf] }
 0x24c   :  { %4942 = vmatpush.bf16.msra.mxu3 %v7471_v5  ;;  %v9125_v5 = vld [vmem:[#allocation8 + $0x224] sm:$0xf]  ;;  %v7964_v41 = vld [vmem:[#allocation8 + $0x490] sm:$0xf0] }
 0x24d   :  { %4955 = vmatpush.bf16.msra.mxu1 %v7599_v49  ;;  %v7388_v49 = vld [vmem:[#allocation8 + $0x10] sm:$0xf0]  ;;  %v7663_v26 = vor.u32 %v9125_v5, %v7660_v42  ;;  %4932 = vmatpush.bf16.msrb.mxu0 %v8315_v6  ;;  %v9173_v42 = vld [vmem:[#allocation8 + $0x3a4] sm:$0xf] }
 0x24e   :  { %4968 = vmatpush.bf16.msra.mxu2 %v7727_v23  ;;  %v9860_v23 = vpop.f32.mrf.mxu0  ;;  %v8092_v5 = vld [vmem:[#allocation8 + $0x590] sm:$0xf0]  ;;  %v9189_v35 = vld [vmem:[#allocation8 + $0x424] sm:$0xf] }
 0x24f   :  { %v7852_v6 = vld [vmem:[#allocation8 + $0x3b0] sm:$0xf0]  ;;  %v7919_v51 = vor.u32 %v9189_v35, %v7916_v31 }
 0x250   :  { %4943 = vmatpush.bf16.msra.mxu3 %v7455_v25  ;;  %v3134_v25 = vpop.f32.mrf.mxu2  ;;  %v7855_v14 = vor.u32 %v9173_v42, %v7852_v6  ;;  %v8044_v45 = vld [vmem:[#allocation8 + $0x530] sm:$0xf0] }
 0x251   :  { %4956 = vmatpush.bf16.msra.mxu1 %v7583_v28  ;;  %v7391_v28 = vor.u32 %v9057_v4, %v7388_v49  ;;  %4933 = vmatpush.bf16.msrb.mxu0 %v8299_v10  ;;  %v9233_v4 = vld [vmem:[#allocation8 + $0x584] sm:$0xf]  ;;  %v7967_v49 = vor.u32 %v9201_v3, %v7964_v41  ;;  %v7836_v25 = vld [vmem:[#allocation8 + $0x390] sm:$0xf0]  ;;  %v8047_v63 = vor.u32 %v9221_v44, %v8044_v45  ;;  %v7634_v3 = vld [vmem:[#allocation8 + $0x1e8] sm:$0xf] }
 0x252   :  { %4969 = vmatpush.bf16.msra.mxu2 %v7711_v37  ;;  %v8015_v37 = vor.u32 %v9213_v32, %v8012_v20  ;;  %v7948_v32 = vld [vmem:[#allocation8 + $0x470] sm:$0xf0]  ;;  %v9229_v20 = vld [vmem:[#allocation8 + $0x564] sm:$0xf]  ;;  %v7458_v44 = vld [vmem:[#allocation8 + $0x88] sm:$0xf] }
 0x253   :  { %v7951_v27 = vor.u32 %v9197_v16, %v7948_v32  ;;  %v8079_v46 = vor.u32 %v9229_v20, %v8076_v18  ;;  %v9225_v10 = vld [vmem:[#allocation8 + $0x544] sm:$0xf]  ;;  %v7900_v0 = vld [vmem:[#allocation8 + $0x410] sm:$0xf0]  ;;  %v9076_v45 = vld [vmem:[#allocation8 + $0x94] sm:$0xf0] }
 0x254   :  { %4944 = vmatpush.bf16.msra.mxu3 %v7439_v15  ;;  %v9209_v15 = vld [vmem:[#allocation8 + $0x4c4] sm:$0xf]  ;;  %v7788_v42 = vld [vmem:[#allocation8 + $0x330] sm:$0xf0] }
 0x255   :  { %4957 = vmatpush.bf16.msra.mxu1 %v7567_v40  ;;  %v7647_v40 = vor.u32 %v9121_v52, %v7644_v30  ;;  %v7999_v47 = vor.u32 %v9209_v15, %v7996_v58  ;;  %4934 = vmatpush.bf16.msrb.mxu0 %v8283_v43  ;;  %v7932_v52 = vld [vmem:[#allocation8 + $0x450] sm:$0xf0] }
 0x256   :  { %4970 = vmatpush.bf16.msra.mxu2 %v7695_v8  ;;  %v3094_v8 = vadd.f32 %v9854_v62, %v564_v33  ;;  %v3173_v53 = vpop.f32.mrf.mxu0  ;;  %v8060_v33 = vld [vmem:[#allocation8 + $0x550] sm:$0xf0] }
 0x257   :  { %v7820_v15 = vld [vmem:[#allocation8 + $0x370] sm:$0xf0]  ;;  %v9277_v53 = vld [vmem:[#allocation8 + $0x6e4] sm:$0xf] }
 0x258   :  { %4945 = vmatpush.bf16.msra.mxu3 %v7423_v61  ;;  %v8127_v61 = vor.u32 %v9241_v38, %v8124_v39  ;;  %v3107_v62 = vadd.f32 %v9856_v36, %v3094_v8  ;;  %v8095_v36 = vor.u32 %v9233_v4, %v8092_v5  ;;  %v9157_v5 = vld [vmem:[#allocation8 + $0x324] sm:$0xf]  ;;  %v8220_v35 = vld [vmem:[#allocation8 + $0x690] sm:$0xf0] }
 0x259   :  { %4958 = vmatpush.bf16.msra.mxu1 %v7551_v55  ;;  %v9237_v55 = vld [vmem:[#allocation8 + $0x5a4] sm:$0xf]  ;;  %4979 = vmatpush.bf16.msra.mxu0 %v7887_v29  ;;  %v7791_v16 = vor.u32 %v9157_v5, %v7788_v42  ;;  %v7554_v42 = vld [vmem:[#allocation8 + $0x148] sm:$0xf] }
 0x25a   :  { %4971 = vmatpush.bf16.msra.mxu2 %v7679_v2  ;;  %v8111_v2 = vor.u32 %v9237_v55, %v8108_v59  ;;  %v9161_v29 = vld [vmem:[#allocation8 + $0x344] sm:$0xf]  ;;  %v8268_v55 = vld [vmem:[#allocation8 + $0x6f0] sm:$0xf0] }
 0x25b   :  { %v8271_v41 = vor.u32 %v9277_v53, %v8268_v55  ;;  %v7459_v53 = vor.u32 %v9076_v45, %v7458_v44 }
 0x25c   :  { %4946 = vmatpush.bf16.msra.mxu3 %v7407_v60  ;;  %v3145_v60 = vpop.f32.mrf.mxu1  ;;  %v9871_v39 = vpop.f32.mrf.mxu2 }
 0x25d   :  { %4959 = vmatpush.bf16.msra.mxu1 %v7535_v54  ;;  %v3120_v54 = vadd.f32 %v9851_v19, %v3107_v62  ;;  %4980 = vmatpush.bf16.msra.mxu0 %v7871_v1  ;;  %v7839_v19 = vor.u32 %v9169_v24, %v7836_v25  ;;  %v9217_v62 = vld [vmem:[#allocation8 + $0x504] sm:$0xf]  ;;  %v7490_v24 = vld [vmem:[#allocation8 + $0xc8] sm:$0xf]  ;;  %v9084_v25 = vld [vmem:[#allocation8 + $0xd4] sm:$0xf0] }
 0x25e   :  { %4972 = vmatpush.bf16.msra.mxu2 %v7663_v26  ;;  %v9868_v22 = vpop.f32.mrf.mxu0 }
 0x25f   :  { %v3133_v26 = vadd.f32 %v9858_v56, %v3120_v54 }
 0x260   :  { %4947 = vmatpush.bf16.msra.mxu3 %v7391_v28  ;;  %v9193_v28 = vld [vmem:[#allocation8 + $0x444] sm:$0xf] }
 0x261   :  { %4960 = vmatpush.bf16.msra.mxu1 %v7519_v34  ;;  %4981 = vmatpush.bf16.msra.mxu0 %v7855_v14  ;;  %v3146_v30 = vadd.f32 %v3145_v60, %v3133_v26  ;;  %v7935_v38 = vor.u32 %v9193_v28, %v7932_v52  ;;  %v9120_v60 = vld [vmem:[#allocation8 + $0x1f4] sm:$0xf0]  ;;  %v8252_v14 = vld [vmem:[#allocation8 + $0x6d0] sm:$0xf0]  ;;  %v7618_v26 = vld [vmem:[#allocation8 + $0x1c8] sm:$0xf] }
 0x262   :  { %4973 = vmatpush.bf16.msra.mxu2 %v7647_v40  ;;  %v8063_v40 = vor.u32 %v9225_v10, %v8060_v33  ;;  %v7635_v18 = vor.u32 %v9120_v60, %v7634_v3  ;;  %v7772_v28 = vld [vmem:[#allocation8 + $0x310] sm:$0xf0]  ;;  %v9269_v52 = vld [vmem:[#allocation8 + $0x6a4] sm:$0xf]  ;;  %v7491_v33 = vor.u32 %v9084_v25, %v7490_v24  ;;  %v7426_v60 = vld [vmem:[#allocation8 + $0x48] sm:$0xf] }
 0x263   :  { %4948 = vmatmul.bf16.vlgmr.msra.gmra.mxu3 %v9825_v11  ;;  %v8188_v3 = vld [vmem:[#allocation8 + $0x650] sm:$0xf0]  ;;  %v7410_v25 = vld [vmem:[#allocation8 + $0x28] sm:$0xf] }
 0x264   :  { %4992 = vmatpush.bf16.msrb.mxu3 %v8015_v37  ;;  %4961 = vmatmul.bf16.vlgmr.msra.gmra.mxu1 %v9827_v12  ;;  %v3147_v34 = vpop.f32.mrf.mxu1  ;;  %v3158_v37 = vpop.f32.mrf.mxu3 }
 0x265   :  { %5005 = vmatpush.bf16.msrb.mxu1 %v8143_v57  ;;  %v9165_v57 = vld [vmem:[#allocation8 + $0x364] sm:$0xf]  ;;  %v3159_v58 = vadd.f32 %v3158_v37, %v3146_v30  ;;  %4982 = vmatpush.bf16.msra.mxu0 %v7839_v19  ;;  %v9116_v19 = vld [vmem:[#allocation8 + $0x1d4] sm:$0xf0]  ;;  %v8236_v30 = vld [vmem:[#allocation8 + $0x6b0] sm:$0xf0] }
 0x266   :  { %v7823_v56 = vor.u32 %v9165_v57, %v7820_v15  ;;  %v3199_v8 = vpop.f32.mrf.mxu0  ;;  %v7619_v34 = vor.u32 %v9116_v19, %v7618_v26  ;;  %v7474_v37 = vld [vmem:[#allocation8 + $0xa8] sm:$0xf]  ;;  %v9080_v57 = vld [vmem:[#allocation8 + $0xb4] sm:$0xf0]  ;;  %v8239_v15 = vor.u32 %v9269_v52, %v8236_v30  ;;  %v9249_v30 = vld [vmem:[#allocation8 + $0x604] sm:$0xf] }
 0x267   :  { %v3172_v43 = vadd.f32 %v9860_v23, %v3159_v58  ;;  %v7506_v23 = vld [vmem:[#allocation8 + $0xe8] sm:$0xf]  ;;  %v7475_v31 = vor.u32 %v9080_v57, %v7474_v37  ;;  %v9064_v26 = vld [vmem:[#allocation8 + $0x34] sm:$0xf0] }
 0x268   :  { %4993 = vmatpush.bf16.msrb.mxu3 %v7999_v47  ;;  %v9185_v47 = vld [vmem:[#allocation8 + $0x404] sm:$0xf]  ;;  %v7602_v58 = vld [vmem:[#allocation8 + $0x1a8] sm:$0xf]  ;;  %v9152_v37 = vld [vmem:[#allocation8 + $0x2f4] sm:$0xf0] }
 0x269   :  { %5006 = vmatpush.bf16.msrb.mxu1 %v8127_v61  ;;  %v7804_v61 = vld [vmem:[#allocation8 + $0x350] sm:$0xf0]  ;;  %v3272_v50 = vmul.f32 0.2, %v3172_v43  ;;  %4983 = vmatpush.bf16.msra.mxu0 %v7823_v56  ;;  %v7903_v54 = vor.u32 %v9185_v47, %v7900_v0  ;;  %v565_v56 = vperm.slane %v9836_v21, 7 }
 0x26a   :  { %v7807_v59 = vor.u32 %v9161_v29, %v7804_v61  ;;  %v7586_v47 = vld [vmem:[#allocation8 + $0x188] sm:$0xf]  ;;  %v9108_v29 = vld [vmem:[#allocation8 + $0x194] sm:$0xf0]  ;;  %v8204_v21 = vld [vmem:[#allocation8 + $0x670] sm:$0xf0] }
 0x26b   :  { %v3280_v1 = vmax.f32 %v3172_v43, %v3272_v50  ;;  %v3185_v61 = vadd.f32 %v9871_v39, %v565_v56  ;;  %v7587_v55 = vor.u32 %v9108_v29, %v7586_v47  ;;  %v7538_v19 = vld [vmem:[#allocation8 + $0x128] sm:$0xf]  ;;  %v9248_v47 = vld [vmem:[#allocation8 + $0x5f4] sm:$0xf0] }
 0x26c   :  { %4994 = vmatpush.bf16.msrb.mxu3 %v7983_v17  ;;  %v8028_v17 = vld [vmem:[#allocation8 + $0x510] sm:$0xf0]  ;;  %v3160_v4 = vpop.f32.mrf.mxu3  ;;  %v7522_v56 = vld [vmem:[#allocation8 + $0x108] sm:$0xf] }
 0x26d   :  { %5007 = vmatpush.bf16.msrb.mxu1 %v8111_v2  ;;  %v9088_v2 = vld [vmem:[#allocation8 + $0xf4] sm:$0xf0]  ;;  %v9874_v6 = vpack.c.bf16 %v3280_v1, %v3280_v1  ;;  %4984 = vmatpush.bf16.msra.mxu0 %v7807_v59  ;;  %v8031_v32 = vor.u32 %v9217_v62, %v8028_v17  ;;  %v7442_v59 = vld [vmem:[#allocation8 + $0x68] sm:$0xf]  ;;  %v3198_v1 = vadd.f32 %v9868_v22, %v3185_v61 }
 0x26e   :  { %v7507_v20 = vor.u32 %v9088_v2, %v7506_v23  ;;  %v7570_v62 = vld [vmem:[#allocation8 + $0x168] sm:$0xf]  ;;  %v9104_v17 = vld [vmem:[#allocation8 + $0x174] sm:$0xf0]  ;;  %v9257_v2 = vld [vmem:[#allocation8 + $0x644] sm:$0xf] }
 0x26f   :  { %4922 = vmatmul.bf16.vlgmr.msrb.gmra.mxu2 %v9874_v6  ;;  %v9068_v4 = vld [vmem:[#allocation8 + $0x54] sm:$0xf0]  ;;  %v8191_v5 = vor.u32 %v9257_v2, %v8188_v3  ;;  %v8130_v3 = vld [vmem:[#allocation8 + $0x5c8] sm:$0xf] }
 0x270   :  { %4995 = vmatpush.bf16.msrb.mxu3 %v7967_v49  ;;  %v9273_v49 = vld [vmem:[#allocation8 + $0x6c4] sm:$0xf]  ;;  %5018 = vmatpush.bf16.msrb.mxu2 %v8271_v41  ;;  %v7571_v41 = vor.u32 %v9104_v17, %v7570_v62 }
 0x271   :  { %5008 = vmatpush.bf16.msrb.mxu1 %v8095_v36  ;;  %v3186_v36 = vpop.f32.mrf.mxu2  ;;  %4985 = vmatpush.bf16.msra.mxu0 %v7791_v16  ;;  %v8172_v16 = vld [vmem:[#allocation8 + $0x630] sm:$0xf0] }
 0x272   :  { %v9253_v36 = vld [vmem:[#allocation8 + $0x624] sm:$0xf] }
 0x274   :  { %4996 = vmatpush.bf16.msrb.mxu3 %v7951_v27  ;;  %v8255_v27 = vor.u32 %v9273_v49, %v8252_v14 }
 0x275   :  { %5009 = vmatpush.bf16.msrb.mxu1 %v8079_v46  ;;  %v9153_v46 = vld [vmem:[#allocation8 + $0x304] sm:$0xf] }
 0x276   :  { %v7775_v10 = vor.u32 %v9153_v46, %v7772_v28  ;;  %5019 = vmatpush.bf16.msrb.mxu2 %v8255_v27  ;;  %v8175_v27 = vor.u32 %v9253_v36, %v8172_v16  ;;  %v9096_v46 = vld [vmem:[#allocation8 + $0x134] sm:$0xf0]  ;;  %v8380_v36 = vld [vmem:[#allocation8 + $0x7d0] sm:$0xf0]  ;;  %v7986_v16 = vld [vmem:[#allocation8 + $0x4a8] sm:$0xf] }
 0x278   :  { %4997 = vmatpush.bf16.msrb.mxu3 %v7935_v38  ;;  %v9112_v38 = vld [vmem:[#allocation8 + $0x1b4] sm:$0xf0]  ;;  %4986 = vmatpush.bf16.msra.mxu0 %v7775_v10  ;;  %v8156_v10 = vld [vmem:[#allocation8 + $0x610] sm:$0xf0] }
 0x279   :  { %5010 = vmatpush.bf16.msrb.mxu1 %v8063_v40  ;;  %v9265_v40 = vld [vmem:[#allocation8 + $0x684] sm:$0xf]  ;;  %v7603_v43 = vor.u32 %v9112_v38, %v7602_v58  ;;  %v7394_v58 = vld [vmem:[#allocation8 + $0x8] sm:$0xf]  ;;  %v9060_v38 = vld [vmem:[#allocation8 + $0x14] sm:$0xf0] }
 0x27a   :  { %5020 = vmatpush.bf16.msrb.mxu2 %v8239_v15  ;;  %v8223_v8 = vor.u32 %v9265_v40, %v8220_v35  ;;  %v7539_v15 = vor.u32 %v9096_v46, %v7538_v19  ;;  %v8159_v40 = vor.u32 %v9249_v30, %v8156_v10  ;;  %v9092_v35 = vld [vmem:[#allocation8 + $0x114] sm:$0xf0]  ;;  %v9301_v46 = vld [vmem:[#allocation8 + $0x7a4] sm:$0xf]  ;;  %v7970_v30 = vld [vmem:[#allocation8 + $0x488] sm:$0xf] }
 0x27b   :  { %v9204_v10 = vld [vmem:[#allocation8 + $0x494] sm:$0xf0] }
 0x27c   :  { %4998 = vmatpush.bf16.msrb.mxu3 %v7919_v51  ;;  %v3210_v50 = vpop.f32.mrf.mxu1  ;;  %v9261_v51 = vld [vmem:[#allocation8 + $0x664] sm:$0xf] }
 0x27d   :  { %5011 = vmatpush.bf16.msrb.mxu1 %v8047_v63  ;;  %v9072_v63 = vld [vmem:[#allocation8 + $0x74] sm:$0xf0]  ;;  %v8207_v0 = vor.u32 %v9261_v51, %v8204_v21  ;;  %v3211_v49 = vadd.f32 %v3210_v50, %v3198_v1  ;;  %v7395_v50 = vor.u32 %v9060_v38, %v7394_v58  ;;  %v7746_v51 = vld [vmem:[#allocation8 + $0x2c8] sm:$0xf]  ;;  %v7971_v38 = vor.u32 %v9204_v10, %v7970_v30  ;;  %v8300_v30 = vld [vmem:[#allocation8 + $0x730] sm:$0xf0] }
 0x27e   :  { %5021 = vmatpush.bf16.msrb.mxu2 %v8223_v8  ;;  %v7443_v39 = vor.u32 %v9072_v63, %v7442_v59  ;;  %v8146_v8 = vld [vmem:[#allocation8 + $0x5e8] sm:$0xf]  ;;  %v9148_v21 = vld [vmem:[#allocation8 + $0x2d4] sm:$0xf0]  ;;  %v9309_v63 = vld [vmem:[#allocation8 + $0x7e4] sm:$0xf] }
 0x27f   :  { %4974 = vmatmul.bf16.vlgmr.msra.gmra.mxu2 %v9829_v9  ;;  %v8147_v17 = vor.u32 %v9248_v47, %v8146_v8  ;;  %v8002_v1 = vld [vmem:[#allocation8 + $0x4c8] sm:$0xf]  ;;  %v7747_v2 = vor.u32 %v9148_v21, %v7746_v51  ;;  %v9232_v47 = vld [vmem:[#allocation8 + $0x574] sm:$0xf0] }
 0x280   :  { %4999 = vmatpush.bf16.msrb.mxu3 %v7903_v54  ;;  %v9100_v54 = vld [vmem:[#allocation8 + $0x154] sm:$0xf0]  ;;  %v8082_v8 = vld [vmem:[#allocation8 + $0x568] sm:$0xf] }
 0x281   :  { %5012 = vmatpush.bf16.msrb.mxu1 %v8031_v32  ;;  %v7427_v32 = vor.u32 %v9068_v4, %v7426_v60  ;;  %v7555_v24 = vor.u32 %v9100_v54, %v7554_v42  ;;  %v7730_v60 = vld [vmem:[#allocation8 + $0x2a8] sm:$0xf]  ;;  %v9144_v4 = vld [vmem:[#allocation8 + $0x2b4] sm:$0xf0]  ;;  %v9305_v54 = vld [vmem:[#allocation8 + $0x7c4] sm:$0xf] }
 0x282   :  { %5022 = vmatpush.bf16.msrb.mxu2 %v8207_v0  ;;  %v8396_v0 = vld [vmem:[#allocation8 + $0x7f0] sm:$0xf0]  ;;  %v8274_v10 = vld [vmem:[#allocation8 + $0x6e8] sm:$0xf] }
 0x283   :  { %5000 = vmatmul.bf16.vlgmr.msrb.gmra.mxu3 %v9846_v48 }
 0x284   :  { %5044 = vmatpush.bf16.msra.mxu3 %v7507_v20  ;;  %5013 = vmatmul.bf16.vlgmr.msrb.gmra.mxu1 %v9849_v7  ;;  %v3249_v23 = vpop.f32.mrf.mxu0  ;;  %v3212_v14 = vpop.f32.mrf.mxu1 }
 0x285   :  { %5057 = vmatpush.bf16.msra.mxu1 %v7635_v18 }
 0x286   :  { %v3223_v22 = vpop.f32.mrf.mxu3  ;;  %5023 = vmatpush.bf16.msrb.mxu2 %v8191_v5  ;;  %v8399_v5 = vor.u32 %v9309_v63, %v8396_v0  ;;  %v8083_v63 = vor.u32 %v9232_v47, %v8082_v8  ;;  %v8332_v0 = vld [vmem:[#allocation8 + $0x770] sm:$0xf0] }
 0x287   :  { %v3224_v20 = vadd.f32 %v3223_v22, %v3211_v49  ;;  %v9208_v22 = vld [vmem:[#allocation8 + $0x4b4] sm:$0xf0] }
 0x288   :  { %5045 = vmatpush.bf16.msra.mxu3 %v7491_v33  ;;  %v3236_v18 = vpop.f32.mrf.mxu2  ;;  %v7411_v33 = vor.u32 %v9064_v26, %v7410_v25  ;;  %v7714_v25 = vld [vmem:[#allocation8 + $0x288] sm:$0xf]  ;;  %v9140_v26 = vld [vmem:[#allocation8 + $0x294] sm:$0xf0]  ;;  %v7987_v19 = vor.u32 %v9208_v22, %v7986_v16 }
 0x289   :  { %5058 = vmatpush.bf16.msra.mxu1 %v7619_v34  ;;  %v3237_v28 = vadd.f32 %v3236_v18, %v3224_v20  ;;  %v7762_v34 = vld [vmem:[#allocation8 + $0x2e8] sm:$0xf]  ;;  %v7731_v20 = vor.u32 %v9144_v4, %v7730_v60  ;;  %v9192_v22 = vld [vmem:[#allocation8 + $0x434] sm:$0xf0] }
 0x28a   :  { %5024 = vmatpush.bf16.msrb.mxu2 %v8175_v27  ;;  %v7763_v45 = vor.u32 %v9152_v37, %v7762_v34  ;;  %v8114_v18 = vld [vmem:[#allocation8 + $0x5a8] sm:$0xf]  ;;  %v8383_v27 = vor.u32 %v9305_v54, %v8380_v36  ;;  %v9236_v37 = vld [vmem:[#allocation8 + $0x594] sm:$0xf0]  ;;  %v8316_v36 = vld [vmem:[#allocation8 + $0x750] sm:$0xf0] }
 0x28b   :  { %v3250_v57 = vadd.f32 %v3249_v23, %v3237_v28  ;;  %v9212_v23 = vld [vmem:[#allocation8 + $0x4d4] sm:$0xf0]  ;;  %v8098_v34 = vld [vmem:[#allocation8 + $0x588] sm:$0xf] }
 0x28c   :  { %5046 = vmatpush.bf16.msra.mxu3 %v7475_v31  ;;  %v3251_v52 = vpop.f32.mrf.mxu0  ;;  %v8018_v31 = vld [vmem:[#allocation8 + $0x4e8] sm:$0xf]  ;;  %v3262_v44 = vpop.f32.mrf.mxu1  ;;  %v8003_v42 = vor.u32 %v9212_v23, %v8002_v1 }
 0x28d   :  { %5059 = vmatpush.bf16.msra.mxu1 %v7603_v43  ;;  %v9216_v43 = vld [vmem:[#allocation8 + $0x4f4] sm:$0xf0]  ;;  %v3263_v29 = vadd.f32 %v3262_v44, %v3250_v57  ;;  %v8364_v52 = vld [vmem:[#allocation8 + $0x7b0] sm:$0xf0]  ;;  %v7698_v57 = vld [vmem:[#allocation8 + $0x268] sm:$0xf] }
 0x28e   :  { %v3225_v61 = vpop.f32.mrf.mxu3  ;;  %v8019_v59 = vor.u32 %v9216_v43, %v8018_v31  ;;  %5025 = vmatpush.bf16.msrb.mxu2 %v8159_v40  ;;  %v8367_v58 = vor.u32 %v9301_v46, %v8364_v52  ;;  %v8348_v40 = vld [vmem:[#allocation8 + $0x790] sm:$0xf0]  ;;  %v7954_v31 = vld [vmem:[#allocation8 + $0x468] sm:$0xf]  ;;  %v9200_v43 = vld [vmem:[#allocation8 + $0x474] sm:$0xf0] }
 0x28f   :  { %v3273_v62 = vmul.f32 0.2, %v3263_v29  ;;  %v9889_v44 = vld [vmem:[#allocation10] sm:$0xf]  ;;  %v7682_v61 = vld [vmem:[#allocation8 + $0x248] sm:$0xf] }
 0x290   :  { %5047 = vmatpush.bf16.msra.mxu3 %v7459_v53  ;;  %v3238_v53 = vpop.f32.mrf.mxu2  ;;  %v8066_v23 = vld [vmem:[#allocation8 + $0x548] sm:$0xf] }
 0x291   :  { %5060 = vmatpush.bf16.msra.mxu1 %v7587_v55  ;;  %v7523_v55 = vor.u32 %v9092_v35, %v7522_v56  ;;  %5026 = vmatmul.bf16.vlgmr.msrb.gmra.mxu2 %v9874_v6  ;;  %v9297_v56 = vld [vmem:[#allocation8 + $0x784] sm:$0xf]  ;;  %v8099_v35 = vor.u32 %v9236_v37, %v8098_v34  ;;  %v7955_v53 = vor.u32 %v9200_v43, %v7954_v31  ;;  %v7922_v16 = vld [vmem:[#allocation8 + $0x428] sm:$0xf]  ;;  %v9118_v43 = vld [vmem:[#allocation8 + $0x1ec] sm:$0xf] }
 0x292   :  { %5070 = vmatpush.bf16.msra.mxu2 %v7763_v45  ;;  %v8351_v21 = vor.u32 %v9297_v56, %v8348_v40  ;;  %v7923_v52 = vor.u32 %v9192_v22, %v7922_v16  ;;  %v9220_v56 = vld [vmem:[#allocation8 + $0x514] sm:$0xf0]  ;;  %v9086_v40 = vld [vmem:[#allocation8 + $0xec] sm:$0xf]  ;;  %v7476_v22 = vld [vmem:[#allocation8 + $0xb8] sm:$0xf0] }
 0x293   :  { %v9078_v16 = vld [vmem:[#allocation8 + $0xac] sm:$0xf] }
 0x294   :  { %5048 = vmatpush.bf16.msra.mxu3 %v7443_v39  ;;  %v9244_v39 = vld [vmem:[#allocation8 + $0x5d4] sm:$0xf0] }
 0x295   :  { %5061 = vmatpush.bf16.msra.mxu1 %v7571_v41  ;;  %v3281_v41 = vmax.f32 %v3263_v29, %v3273_v62  ;;  %v8131_v14 = vor.u32 %v9244_v39, %v8130_v3  ;;  %v7938_v62 = vld [vmem:[#allocation8 + $0x448] sm:$0xf]  ;;  %v9128_v39 = vld [vmem:[#allocation8 + $0x234] sm:$0xf0] }
 0x296   :  { %5071 = vmatpush.bf16.msra.mxu2 %v7747_v2  ;;  %v9228_v2 = vld [vmem:[#allocation8 + $0x554] sm:$0xf0]  ;;  %v7666_v3 = vld [vmem:[#allocation8 + $0x228] sm:$0xf] }
 0x297   :  { %v9883_v49 = vpack.c.bf16 %v3281_v41, %v3281_v41 }
 0x298   :  { %5049 = vmatpush.bf16.msra.mxu3 %v7427_v32  ;;  %v3264_v32 = vpop.f32.mrf.mxu1 }
 0x299   :  { %5062 = vmatpush.bf16.msra.mxu1 %v7555_v24  ;;  %v9240_v24 = vld [vmem:[#allocation8 + $0x5b4] sm:$0xf0]  ;;  %4935 = vmatmul.bf16.vlgmr.msrb.gmra.mxu0 %v9883_v49  ;;  %v7667_v32 = vor.u32 %v9128_v39, %v7666_v3  ;;  %v9114_v3 = vld [vmem:[#allocation8 + $0x1cc] sm:$0xf]  ;;  %v7620_v39 = vld [vmem:[#allocation8 + $0x1d8] sm:$0xf0] }
 0x29a   :  { %5031 = vmatpush.bf16.msrb.mxu0 %v8399_v5  ;;  %v8115_v28 = vor.u32 %v9240_v24, %v8114_v18  ;;  %5072 = vmatpush.bf16.msra.mxu2 %v7731_v20  ;;  %v9289_v5 = vld [vmem:[#allocation8 + $0x744] sm:$0xf]  ;;  %v8050_v20 = vld [vmem:[#allocation8 + $0x528] sm:$0xf]  ;;  %v9224_v18 = vld [vmem:[#allocation8 + $0x534] sm:$0xf0] }
 0x29b   :  { %v8051_v37 = vor.u32 %v9224_v18, %v8050_v20  ;;  %v9110_v20 = vld [vmem:[#allocation8 + $0x1ac] sm:$0xf]  ;;  %v7604_v18 = vld [vmem:[#allocation8 + $0x1b8] sm:$0xf0] }
 0x29c   :  { %5050 = vmatpush.bf16.msra.mxu3 %v7411_v33  ;;  %v7715_v33 = vor.u32 %v9140_v26, %v7714_v25  ;;  %v7650_v26 = vld [vmem:[#allocation8 + $0x208] sm:$0xf] }
 0x29d   :  { %5063 = vmatpush.bf16.msra.mxu1 %v7539_v15  ;;  %v9136_v15 = vld [vmem:[#allocation8 + $0x274] sm:$0xf0] }
 0x29e   :  { %5032 = vmatpush.bf16.msrb.mxu0 %v8383_v27  ;;  %5073 = vmatpush.bf16.msra.mxu2 %v7715_v33  ;;  %v7699_v45 = vor.u32 %v9136_v15, %v7698_v57  ;;  %v9124_v27 = vld [vmem:[#allocation8 + $0x214] sm:$0xf0]  ;;  %v7906_v57 = vld [vmem:[#allocation8 + $0x408] sm:$0xf] }
 0x29f   :  { %v9280_v33 = vld [vmem:[#allocation8 + $0x6f4] sm:$0xf0] }
 0x2a0   :  { %5051 = vmatpush.bf16.msra.mxu3 %v7395_v50  ;;  %v9132_v50 = vld [vmem:[#allocation8 + $0x254] sm:$0xf0]  ;;  %v8275_v31 = vor.u32 %v9280_v33, %v8274_v10  ;;  %v9106_v33 = vld [vmem:[#allocation8 + $0x18c] sm:$0xf] }
 0x2a1   :  { %5064 = vmatpush.bf16.msra.mxu1 %v7523_v55  ;;  %v3548_v55 = vperm.slane %v9889_v44, 0  ;;  %v7683_v1 = vor.u32 %v9132_v50, %v7682_v61  ;;  %v9188_v15 = vld [vmem:[#allocation8 + $0x414] sm:$0xf0]  ;;  %v8258_v50 = vld [vmem:[#allocation8 + $0x6c8] sm:$0xf] }
 0x2a2   :  { %5033 = vmatpush.bf16.msrb.mxu0 %v8367_v58  ;;  %5074 = vmatpush.bf16.msra.mxu2 %v7699_v45  ;;  %v8034_v58 = vld [vmem:[#allocation8 + $0x508] sm:$0xf]  ;;  %v7636_v45 = vld [vmem:[#allocation8 + $0x1f8] sm:$0xf0]  ;;  %v7907_v61 = vor.u32 %v9188_v15, %v7906_v57  ;;  %v9264_v57 = vld [vmem:[#allocation8 + $0x674] sm:$0xf0] }
 0x2a3   :  { %5052 = vmatmul.bf16.vlgmr.msra.gmra.mxu3 %v9825_v11  ;;  %v4858_v29 = vpop.f32.mrf.mxu1 }
 0x2a4   :  { %5096 = vmatpush.bf16.msrb.mxu3 %v8019_v59  ;;  %5065 = vmatmul.bf16.vlgmr.msra.gmra.mxu1 %v9827_v12  ;;  %v9891_v51 = vpop.f32.mrf.mxu0  ;;  %v9293_v59 = vld [vmem:[#allocation8 + $0x764] sm:$0xf] }
 0x2a5   :  { %5109 = vmatpush.bf16.msrb.mxu1 %v8147_v17  ;;  %v9196_v17 = vld [vmem:[#allocation8 + $0x454] sm:$0xf0]  ;;  %v8335_v60 = vor.u32 %v9293_v59, %v8332_v0  ;;  %v8284_v0 = vld [vmem:[#allocation8 + $0x710] sm:$0xf0] }
 0x2a6   :  { %5034 = vmatpush.bf16.msrb.mxu0 %v8351_v21  ;;  %v4845_v41 = vpop.f32.mrf.mxu3  ;;  %v7939_v4 = vor.u32 %v9196_v17, %v7938_v62  ;;  %5075 = vmatpush.bf16.msra.mxu2 %v7683_v1  ;;  %v9276_v21 = vld [vmem:[#allocation8 + $0x6d4] sm:$0xf0]  ;;  %v7890_v62 = vld [vmem:[#allocation8 + $0x3e8] sm:$0xf]  ;;  %v7639_v17 = vor.u32 %v9118_v43, %v7636_v45  ;;  %v9102_v45 = vld [vmem:[#allocation8 + $0x16c] sm:$0xf] }
 0x2a7   :  { %v9184_v1 = vld [vmem:[#allocation8 + $0x3f4] sm:$0xf0] }
 0x2a8   :  { %5097 = vmatpush.bf16.msrb.mxu3 %v8003_v42  ;;  %v4846_v42 = vadd.f32 %v4845_v41, %v3548_v55  ;;  %v4871_v54 = vpop.f32.mrf.mxu2  ;;  %v8035_v55 = vor.u32 %v9220_v56, %v8034_v58 }
 0x2a9   :  { %5110 = vmatpush.bf16.msrb.mxu1 %v8131_v14  ;;  %v8067_v14 = vor.u32 %v9228_v2, %v8066_v23  ;;  %4987 = vmatmul.bf16.vlgmr.msra.gmra.mxu0 %v9831_v13  ;;  %v9082_v23 = vld [vmem:[#allocation8 + $0xcc] sm:$0xf]  ;;  %v8259_v2 = vor.u32 %v9276_v21, %v8258_v50 }
 0x2aa   :  { %v4859_v24 = vadd.f32 %v4858_v29, %v4846_v42  ;;  %5035 = vmatpush.bf16.msrb.mxu0 %v8335_v60  ;;  %5076 = vmatpush.bf16.msra.mxu2 %v7667_v32  ;;  %v8242_v60 = vld [vmem:[#allocation8 + $0x6a8] sm:$0xf] }
 0x2ab   :  { %v4860_v25 = vpop.f32.mrf.mxu1 }
 0x2ac   :  { %5098 = vmatpush.bf16.msrb.mxu3 %v7987_v19  ;;  %v9285_v19 = vld [vmem:[#allocation8 + $0x724] sm:$0xf]  ;;  %v4886_v46 = vpop.f32.mrf.mxu0  ;;  %v4872_v34 = vadd.f32 %v4871_v54, %v4859_v24  ;;  %v7874_v54 = vld [vmem:[#allocation8 + $0x3c8] sm:$0xf]  ;;  %v9268_v25 = vld [vmem:[#allocation8 + $0x694] sm:$0xf0] }
 0x2ad   :  { %5111 = vmatpush.bf16.msrb.mxu1 %v8115_v28  ;;  %v8319_v28 = vor.u32 %v9289_v5, %v8316_v36  ;;  %v8303_v29 = vor.u32 %v9285_v19, %v8300_v30  ;;  %v7891_v5 = vor.u32 %v9184_v1, %v7890_v62  ;;  %v9180_v36 = vld [vmem:[#allocation8 + $0x3d4] sm:$0xf0]  ;;  %v8226_v24 = vld [vmem:[#allocation8 + $0x688] sm:$0xf]  ;;  %v7607_v46 = vor.u32 %v9110_v20, %v7604_v18  ;;  %v7460_v30 = vld [vmem:[#allocation8 + $0x98] sm:$0xf0] }
 0x2ae   :  { %v9896_v8 = vadd.f32 %v9891_v51, %v4872_v34  ;;  %v4847_v47 = vpop.f32.mrf.mxu3  ;;  %v7492_v51 = vld [vmem:[#allocation8 + $0xd8] sm:$0xf0]  ;;  %v7858_v19 = vld [vmem:[#allocation8 + $0x3a8] sm:$0xf]  ;;  %v8227_v10 = vor.u32 %v9268_v25, %v8226_v24  ;;  %v9252_v20 = vld [vmem:[#allocation8 + $0x614] sm:$0xf0] }
 0x2af   :  { %5036 = vmatpush.bf16.msrb.mxu0 %v8319_v28  ;;  %v7495_v42 = vor.u32 %v9082_v23, %v7492_v51  ;;  %v9176_v28 = vld [vmem:[#allocation8 + $0x3b4] sm:$0xf0]  ;;  %v7588_v34 = vld [vmem:[#allocation8 + $0x198] sm:$0xf0]  ;;  %v8178_v23 = vld [vmem:[#allocation8 + $0x628] sm:$0xf] }
 0x2b0   :  { %5099 = vmatpush.bf16.msrb.mxu3 %v7971_v38  ;;  %v7651_v38 = vor.u32 %v9124_v27, %v7650_v26  ;;  %v7875_v26 = vor.u32 %v9180_v36, %v7874_v54  ;;  %v7479_v27 = vor.u32 %v9078_v16, %v7476_v22  ;;  %v7859_v15 = vor.u32 %v9176_v28, %v7858_v19  ;;  %v7572_v47 = vld [vmem:[#allocation8 + $0x178] sm:$0xf0]  ;;  %v9256_v51 = vld [vmem:[#allocation8 + $0x634] sm:$0xf0]  ;;  %v9094_v16 = vld [vmem:[#allocation8 + $0x12c] sm:$0xf] }
 0x2b1   :  { %5112 = vmatpush.bf16.msrb.mxu1 %v8099_v35  ;;  %v7508_v35 = vld [vmem:[#allocation8 + $0xf8] sm:$0xf0]  ;;  %v7591_v56 = vor.u32 %v9106_v33, %v7588_v34  ;;  %v8179_v36 = vor.u32 %v9256_v51, %v8178_v23  ;;  %v7794_v18 = vld [vmem:[#allocation8 + $0x328] sm:$0xf]  ;;  %v9150_v19 = vld [vmem:[#allocation8 + $0x2ec] sm:$0xf] }
 0x2b2   :  { %v7511_v59 = vor.u32 %v9086_v40, %v7508_v35  ;;  %5077 = vmatpush.bf16.msra.mxu2 %v7651_v38  ;;  %v7842_v38 = vld [vmem:[#allocation8 + $0x388] sm:$0xf]  ;;  %v9172_v40 = vld [vmem:[#allocation8 + $0x394] sm:$0xf0]  ;;  %v9070_v35 = vld [vmem:[#allocation8 + $0x6c] sm:$0xf] }
 0x2b3   :  { %5037 = vmatpush.bf16.msrb.mxu0 %v8303_v29  ;;  %v8194_v29 = vld [vmem:[#allocation8 + $0x648] sm:$0xf]  ;;  %v7843_v50 = vor.u32 %v9172_v40, %v7842_v38  ;;  %v7556_v1 = vld [vmem:[#allocation8 + $0x158] sm:$0xf0]  ;;  %v9214_v34 = vld [vmem:[#allocation8 + $0x4ec] sm:$0xf] }
 0x2b4   :  { %5100 = vmatpush.bf16.msrb.mxu3 %v7955_v53  ;;  %v4873_v53 = vpop.f32.mrf.mxu2  ;;  %v7412_v54 = vld [vmem:[#allocation8 + $0x38] sm:$0xf0] }
 0x2b5   :  { %5113 = vmatpush.bf16.msrb.mxu1 %v8083_v63  ;;  %v9281_v63 = vld [vmem:[#allocation8 + $0x704] sm:$0xf]  ;;  %5078 = vmatmul.bf16.vlgmr.msra.gmra.mxu2 %v9829_v9  ;;  %v7826_v53 = vld [vmem:[#allocation8 + $0x368] sm:$0xf]  ;;  %v7540_v22 = vld [vmem:[#allocation8 + $0x138] sm:$0xf0] }
 0x2b6   :  { %5122 = vmatpush.bf16.msrb.mxu2 %v8275_v31  ;;  %v8287_v41 = vor.u32 %v9281_v63, %v8284_v0  ;;  %v7444_v31 = vld [vmem:[#allocation8 + $0x78] sm:$0xf0]  ;;  %v9066_v63 = vld [vmem:[#allocation8 + $0x4c] sm:$0xf]  ;;  %v7543_v28 = vor.u32 %v9094_v16, %v7540_v22 }
 0x2b7   :  { %v7447_v21 = vor.u32 %v9070_v35, %v7444_v31  ;;  %v7428_v0 = vld [vmem:[#allocation8 + $0x58] sm:$0xf0]  ;;  %v9146_v35 = vld [vmem:[#allocation8 + $0x2cc] sm:$0xf] }
 0x2b8   :  { %5101 = vmatpush.bf16.msrb.mxu3 %v7939_v4  ;;  %v9272_v4 = vld [vmem:[#allocation8 + $0x6b4] sm:$0xf0]  ;;  %5038 = vmatpush.bf16.msrb.mxu0 %v8287_v41  ;;  %v7810_v41 = vld [vmem:[#allocation8 + $0x348] sm:$0xf]  ;;  %v7524_v33 = vld [vmem:[#allocation8 + $0x118] sm:$0xf0] }
 0x2b9   :  { %5114 = vmatpush.bf16.msrb.mxu1 %v8067_v14  ;;  %v7623_v14 = vor.u32 %v9114_v3, %v7620_v39  ;;  %v8243_v32 = vor.u32 %v9272_v4, %v8242_v60  ;;  %v7431_v39 = vor.u32 %v9066_v63, %v7428_v0  ;;  %v7748_v31 = vld [vmem:[#allocation8 + $0x2d8] sm:$0xf0]  ;;  %v9242_v0 = vld [vmem:[#allocation8 + $0x5cc] sm:$0xf] }
 0x2ba   :  { %5123 = vmatpush.bf16.msrb.mxu2 %v8259_v2  ;;  %v7751_v63 = vor.u32 %v9146_v35, %v7748_v31  ;;  %v7732_v23 = vld [vmem:[#allocation8 + $0x2b8] sm:$0xf0]  ;;  %v8338_v31 = vld [vmem:[#allocation8 + $0x768] sm:$0xf] }
 0x2bb   :  { %5039 = vmatmul.bf16.vlgmr.msrb.gmra.mxu0 %v9883_v49 }
 0x2bc   :  { %5102 = vmatpush.bf16.msrb.mxu3 %v7923_v52  ;;  %5083 = vmatpush.bf16.msra.mxu0 %v7891_v5  ;;  %v9074_v52 = vld [vmem:[#allocation8 + $0x8c] sm:$0xf]  ;;  %v9164_v5 = vld [vmem:[#allocation8 + $0x354] sm:$0xf0] }
 0x2bd   :  { %5115 = vmatpush.bf16.msrb.mxu1 %v8051_v37  ;;  %v8210_v37 = vld [vmem:[#allocation8 + $0x668] sm:$0xf]  ;;  %v7463_v58 = vor.u32 %v9074_v52, %v7460_v30  ;;  %v7811_v25 = vor.u32 %v9164_v5, %v7810_v41  ;;  %v9058_v52 = vld [vmem:[#allocation8 + $0xc] sm:$0xf]  ;;  %v9308_v41 = vld [vmem:[#allocation8 + $0x7d4] sm:$0xf0] }
 0x2be   :  { %5124 = vmatpush.bf16.msrb.mxu2 %v8243_v32  ;;  %v8211_v43 = vor.u32 %v9264_v57, %v8210_v37  ;;  %v8162_v32 = vld [vmem:[#allocation8 + $0x608] sm:$0xf]  ;;  %v9090_v30 = vld [vmem:[#allocation8 + $0x10c] sm:$0xf]  ;;  %v8020_v37 = vld [vmem:[#allocation8 + $0x4f8] sm:$0xf0] }
 0x2c0   :  { %5103 = vmatpush.bf16.msrb.mxu3 %v7907_v61  ;;  %5084 = vmatpush.bf16.msra.mxu0 %v7875_v26  ;;  %v9260_v61 = vld [vmem:[#allocation8 + $0x654] sm:$0xf0] }
 0x2c1   :  { %5116 = vmatpush.bf16.msrb.mxu1 %v8035_v55  ;;  %v7575_v55 = vor.u32 %v9102_v45, %v7572_v47  ;;  %v8195_v62 = vor.u32 %v9260_v61, %v8194_v29  ;;  %v4910_v2 = vpop.f32.mrf.mxu1  ;;  %v7527_v45 = vor.u32 %v9090_v30, %v7524_v33  ;;  %v8023_v47 = vor.u32 %v9214_v34, %v8020_v37  ;;  %v7778_v29 = vld [vmem:[#allocation8 + $0x308] sm:$0xf]  ;;  %v9156_v61 = vld [vmem:[#allocation8 + $0x314] sm:$0xf0]  ;;  %v9198_v33 = vld [vmem:[#allocation8 + $0x46c] sm:$0xf] }
 0x2c2   :  { %5125 = vmatpush.bf16.msrb.mxu2 %v8227_v10  ;;  %v8163_v10 = vor.u32 %v9252_v20, %v8162_v32  ;;  %v8370_v32 = vld [vmem:[#allocation8 + $0x7a8] sm:$0xf]  ;;  %v7956_v34 = vld [vmem:[#allocation8 + $0x478] sm:$0xf0] }
 0x2c3   :  { %5104 = vmatmul.bf16.vlgmr.msrb.gmra.mxu3 %v9846_v48  ;;  %v7959_v35 = vor.u32 %v9198_v33, %v7956_v34  ;;  %v8290_v34 = vld [vmem:[#allocation8 + $0x708] sm:$0xf] }
 0x2c4   :  { %5148 = vmatpush.bf16.msra.mxu3 %v7511_v59  ;;  %5117 = vmatmul.bf16.vlgmr.msrb.gmra.mxu1 %v9849_v7  ;;  %v9168_v59 = vld [vmem:[#allocation8 + $0x374] sm:$0xf0] }
 0x2c5   :  { %5161 = vmatpush.bf16.msra.mxu1 %v7639_v17  ;;  %5085 = vmatpush.bf16.msra.mxu0 %v7859_v15  ;;  %v9098_v17 = vld [vmem:[#allocation8 + $0x14c] sm:$0xf]  ;;  %v7827_v3 = vor.u32 %v9168_v59, %v7826_v53  ;;  %v9312_v53 = vld [vmem:[#allocation8 + $0x7f4] sm:$0xf0]  ;;  %v8004_v59 = vld [vmem:[#allocation8 + $0x4d8] sm:$0xf0] }
 0x2c6   :  { %5126 = vmatpush.bf16.msrb.mxu2 %v8211_v43  ;;  %v4897_v60 = vpop.f32.mrf.mxu3  ;;  %v7559_v4 = vor.u32 %v9098_v17, %v7556_v1  ;;  %v9246_v15 = vld [vmem:[#allocation8 + $0x5ec] sm:$0xf]  ;;  %v7779_v17 = vor.u32 %v9156_v61, %v7778_v29  ;;  %v7940_v29 = vld [vmem:[#allocation8 + $0x458] sm:$0xf0]  ;;  %v3549_v61 = vperm.slane %v9889_v44, 1 }
 0x2c7   :  { %v9142_v1 = vld [vmem:[#allocation8 + $0x2ac] sm:$0xf] }
 0x2c8   :  { %5149 = vmatpush.bf16.msra.mxu3 %v7495_v42  ;;  %v9062_v42 = vld [vmem:[#allocation8 + $0x2c] sm:$0xf]  ;;  %v7735_v5 = vor.u32 %v9142_v1, %v7732_v23  ;;  %v9292_v23 = vld [vmem:[#allocation8 + $0x754] sm:$0xf0] }
 0x2c9   :  { %5162 = vmatpush.bf16.msra.mxu1 %v7623_v14  ;;  %5086 = vmatpush.bf16.msra.mxu0 %v7843_v50  ;;  %v4898_v14 = vadd.f32 %v4897_v60, %v9896_v8  ;;  %v7415_v26 = vor.u32 %v9062_v42, %v7412_v54  ;;  %v7396_v8 = vld [vmem:[#allocation8 + $0x18] sm:$0xf0]  ;;  %v4912_v38 = vpop.f32.mrf.mxu1  ;;  %v8402_v50 = vld [vmem:[#allocation8 + $0x7e8] sm:$0xf]  ;;  %v9206_v60 = vld [vmem:[#allocation8 + $0x4ac] sm:$0xf] }
 0x2ca   :  { %5127 = vmatpush.bf16.msrb.mxu2 %v8195_v62  ;;  %v7399_v40 = vor.u32 %v9058_v52, %v7396_v8  ;;  %v8132_v62 = vld [vmem:[#allocation8 + $0x5d8] sm:$0xf0]  ;;  %v8403_v51 = vor.u32 %v9312_v53, %v8402_v50  ;;  %v9238_v42 = vld [vmem:[#allocation8 + $0x5ac] sm:$0xf]  ;;  %v8354_v8 = vld [vmem:[#allocation8 + $0x788] sm:$0xf] }
 0x2cb   :  { %v9903_v24 = vadd.f32 %v4910_v2, %v4898_v14  ;;  %v8116_v54 = vld [vmem:[#allocation8 + $0x5b8] sm:$0xf0]  ;;  %v9138_v14 = vld [vmem:[#allocation8 + $0x28c] sm:$0xf] }
 0x2cc   :  { %5150 = vmatpush.bf16.msra.mxu3 %v7479_v27  ;;  %v9160_v27 = vld [vmem:[#allocation8 + $0x334] sm:$0xf0]  ;;  %v8119_v20 = vor.u32 %v9238_v42, %v8116_v54  ;;  %v7684_v38 = vld [vmem:[#allocation8 + $0x258] sm:$0xf0]  ;;  %v9222_v44 = vld [vmem:[#allocation8 + $0x52c] sm:$0xf] }
 0x2cd   :  { %5163 = vmatpush.bf16.msra.mxu1 %v7607_v46  ;;  %5087 = vmatpush.bf16.msra.mxu0 %v7827_v3  ;;  %v7764_v46 = vld [vmem:[#allocation8 + $0x2f8] sm:$0xf0]  ;;  %v8386_v3 = vld [vmem:[#allocation8 + $0x7c8] sm:$0xf] }
 0x2ce   :  { %5128 = vmatpush.bf16.msrb.mxu2 %v8179_v36  ;;  %v7767_v57 = vor.u32 %v9150_v19, %v7764_v46  ;;  %v4899_v43 = vpop.f32.mrf.mxu3  ;;  %v7716_v36 = vld [vmem:[#allocation8 + $0x298] sm:$0xf0]  ;;  %v8387_v16 = vor.u32 %v9308_v41, %v8386_v3 }
 0x2cf   :  { %v8100_v19 = vld [vmem:[#allocation8 + $0x598] sm:$0xf0] }
 0x2d0   :  { %5151 = vmatpush.bf16.msra.mxu3 %v7463_v58  ;;  %v8148_v58 = vld [vmem:[#allocation8 + $0x5f8] sm:$0xf0] }
 0x2d1   :  { %5164 = vmatpush.bf16.msra.mxu1 %v7591_v56  ;;  %5088 = vmatpush.bf16.msra.mxu0 %v7811_v25  ;;  %v7795_v56 = vor.u32 %v9160_v27, %v7794_v18  ;;  %v9304_v18 = vld [vmem:[#allocation8 + $0x7b4] sm:$0xf0]  ;;  %v9202_v25 = vld [vmem:[#allocation8 + $0x48c] sm:$0xf]  ;;  %v7700_v46 = vld [vmem:[#allocation8 + $0x278] sm:$0xf0] }
 0x2d2   :  { %5129 = vmatpush.bf16.msrb.mxu2 %v8163_v10  ;;  %v9234_v27 = vld [vmem:[#allocation8 + $0x58c] sm:$0xf]  ;;  %v9300_v10 = vld [vmem:[#allocation8 + $0x794] sm:$0xf0]  ;;  %v8068_v53 = vld [vmem:[#allocation8 + $0x558] sm:$0xf0] }
 0x2d3   :  { %v8103_v30 = vor.u32 %v9234_v27, %v8100_v19  ;;  %v8052_v41 = vld [vmem:[#allocation8 + $0x538] sm:$0xf0] }
 0x2d4   :  { %5152 = vmatpush.bf16.msra.mxu3 %v7447_v21  ;;  %v8151_v21 = vor.u32 %v9246_v15, %v8148_v58  ;;  %v8084_v15 = vld [vmem:[#allocation8 + $0x578] sm:$0xf0]  ;;  %v9130_v58 = vld [vmem:[#allocation8 + $0x24c] sm:$0xf] }
 0x2d5   :  { %5165 = vmatpush.bf16.msra.mxu1 %v7575_v55  ;;  %v9210_v55 = vld [vmem:[#allocation8 + $0x4cc] sm:$0xf]  ;;  %5089 = vmatpush.bf16.msra.mxu0 %v7795_v56  ;;  %v7687_v50 = vor.u32 %v9130_v58, %v7684_v38  ;;  %v8036_v27 = vld [vmem:[#allocation8 + $0x518] sm:$0xf0] }
 0x2d6   :  { %5174 = vmatpush.bf16.msra.mxu2 %v7767_v57  ;;  %v8007_v2 = vor.u32 %v9210_v55, %v8004_v59  ;;  %v9230_v57 = vld [vmem:[#allocation8 + $0x56c] sm:$0xf]  ;;  %v7668_v59 = vld [vmem:[#allocation8 + $0x238] sm:$0xf0] }
 0x2d7   :  { %5130 = vmatmul.bf16.vlgmr.msrb.gmra.mxu2 %v9874_v6  ;;  %v8087_v43 = vor.u32 %v9230_v57, %v8084_v15  ;;  %v9126_v55 = vld [vmem:[#allocation8 + $0x22c] sm:$0xf]  ;;  %v7892_v15 = vld [vmem:[#allocation8 + $0x3f8] sm:$0xf0] }
 0x2d8   :  { %5153 = vmatpush.bf16.msra.mxu3 %v7431_v39  ;;  %v8135_v39 = vor.u32 %v9242_v0, %v8132_v62  ;;  %v8322_v62 = vld [vmem:[#allocation8 + $0x748] sm:$0xf]  ;;  %v9182_v57 = vld [vmem:[#allocation8 + $0x3ec] sm:$0xf] }
 0x2d9   :  { %5166 = vmatpush.bf16.msra.mxu1 %v7559_v4  ;;  %v7988_v4 = vld [vmem:[#allocation8 + $0x4b8] sm:$0xf0]  ;;  %5090 = vmatpush.bf16.msra.mxu0 %v7779_v17  ;;  %v8323_v42 = vor.u32 %v9292_v23, %v8322_v62  ;;  %v8442_v23 = vld [vmem:[#allocation11 + $0x40] sm:$0xf] }
 0x2da   :  { %5175 = vmatpush.bf16.msra.mxu2 %v7751_v63  ;;  %v7991_v22 = vor.u32 %v9206_v60, %v7988_v4  ;;  %v9122_v60 = vld [vmem:[#allocation8 + $0x20c] sm:$0xf]  ;;  %v7652_v4 = vld [vmem:[#allocation8 + $0x218] sm:$0xf0] }
 0x2dc   :  { %5154 = vmatpush.bf16.msra.mxu3 %v7415_v26  ;;  %v7972_v26 = vld [vmem:[#allocation8 + $0x498] sm:$0xf0]  ;;  %5091 = vmatmul.bf16.vlgmr.msra.gmra.mxu0 %v9831_v13 }
 0x2dd   :  { %5167 = vmatpush.bf16.msra.mxu1 %v7543_v28  ;;  %5135 = vmatpush.bf16.msrb.mxu0 %v8403_v51  ;;  %v8371_v28 = vor.u32 %v9304_v18, %v8370_v32  ;;  %v7975_v52 = vor.u32 %v9202_v25, %v7972_v26  ;;  %v9190_v51 = vld [vmem:[#allocation8 + $0x42c] sm:$0xf]  ;;  %v8055_v32 = vor.u32 %v9222_v44, %v8052_v41  ;;  %v7908_v25 = vld [vmem:[#allocation8 + $0x418] sm:$0xf0] }
 0x2de   :  { %5176 = vmatpush.bf16.msra.mxu2 %v7735_v5  ;;  %v9186_v18 = vld [vmem:[#allocation8 + $0x40c] sm:$0xf]  ;;  %v7655_v26 = vor.u32 %v9122_v60, %v7652_v4  ;;  %v7844_v41 = vld [vmem:[#allocation8 + $0x398] sm:$0xf0]  ;;  %v8522_v4 = vld [vmem:[#allocation11 + $0xe0] sm:$0xf] }
 0x2df   :  { %v9170_v44 = vld [vmem:[#allocation8 + $0x38c] sm:$0xf] }
 0x2e0   :  { %5155 = vmatpush.bf16.msra.mxu3 %v7399_v40  ;;  %v8355_v40 = vor.u32 %v9300_v10, %v8354_v8  ;;  %v9274_v8 = vld [vmem:[#allocation8 + $0x6cc] sm:$0xf] }
 0x2e1   :  { %5168 = vmatpush.bf16.msra.mxu1 %v7527_v45  ;;  %5136 = vmatpush.bf16.msrb.mxu0 %v8387_v16  ;;  %v4962_v56 = vpop.f32.mrf.mxu1  ;;  %v9296_v45 = vld [vmem:[#allocation8 + $0x774] sm:$0xf0]  ;;  %v8276_v16 = vld [vmem:[#allocation8 + $0x6f8] sm:$0xf0] }
 0x2e2   :  { %v8339_v63 = vor.u32 %v9296_v45, %v8338_v31  ;;  %v9270_v31 = vld [vmem:[#allocation8 + $0x6ac] sm:$0xf]  ;;  %v7895_v45 = vor.u32 %v9182_v57, %v7892_v15  ;;  %v7812_v57 = vld [vmem:[#allocation8 + $0x358] sm:$0xf0] }
 0x2e3   :  { %5156 = vmatmul.bf16.vlgmr.msra.gmra.mxu3 %v9825_v11  ;;  %v7719_v11 = vor.u32 %v9138_v14, %v7716_v36  ;;  %v8306_v14 = vld [vmem:[#allocation8 + $0x728] sm:$0xf]  ;;  %v9278_v36 = vld [vmem:[#allocation8 + $0x6ec] sm:$0xf] }
 0x2e4   :  { %5200 = vmatpush.bf16.msrb.mxu3 %v8023_v47  ;;  %5169 = vmatmul.bf16.vlgmr.msra.gmra.mxu1 %v9827_v12  ;;  %v9134_v12 = vld [vmem:[#allocation8 + $0x26c] sm:$0xf]  ;;  %v8279_v19 = vor.u32 %v9278_v36, %v8276_v16 }
 0x2e5   :  { %5213 = vmatpush.bf16.msrb.mxu1 %v8151_v21  ;;  %5177 = vmatpush.bf16.msra.mxu2 %v7719_v11  ;;  %v7703_v37 = vor.u32 %v9134_v12, %v7700_v46  ;;  %v9194_v47 = vld [vmem:[#allocation8 + $0x44c] sm:$0xf]  ;;  %v8466_v12 = vld [vmem:[#allocation11 + $0x70] sm:$0xf]  ;;  %v9328_v46 = vld [vmem:[#allocation11 + $0x74] sm:$0xf0] }
 0x2e6   :  { %5137 = vmatpush.bf16.msrb.mxu0 %v8371_v28  ;;  %v9226_v21 = vld [vmem:[#allocation8 + $0x54c] sm:$0xf]  ;;  %v7943_v0 = vor.u32 %v9194_v47, %v7940_v29  ;;  %v4949_v17 = vpop.f32.mrf.mxu3  ;;  %v8467_v58 = vor.u32 %v9328_v46, %v8466_v12  ;;  %v7876_v29 = vld [vmem:[#allocation8 + $0x3d8] sm:$0xf0] }
 0x2e7   :  { %v8071_v1 = vor.u32 %v9226_v21, %v8068_v53  ;;  %v4950_v3 = vadd.f32 %v4949_v17, %v3549_v61  ;;  %v9218_v11 = vld [vmem:[#allocation8 + $0x50c] sm:$0xf]  ;;  %v8450_v21 = vld [vmem:[#allocation11 + $0x50] sm:$0xf]  ;;  %v9324_v53 = vld [vmem:[#allocation11 + $0x54] sm:$0xf0] }
 0x2e8   :  { %5201 = vmatpush.bf16.msrb.mxu3 %v8007_v2  ;;  %v7924_v2 = vld [vmem:[#allocation8 + $0x438] sm:$0xf0]  ;;  %v8039_v33 = vor.u32 %v9218_v11, %v8036_v27  ;;  %v9178_v47 = vld [vmem:[#allocation8 + $0x3cc] sm:$0xf]  ;;  %v8451_v62 = vor.u32 %v9324_v53, %v8450_v21  ;;  %v8530_v17 = vld [vmem:[#allocation11 + $0xf0] sm:$0xf] }
 0x2e9   :  { %5214 = vmatpush.bf16.msrb.mxu1 %v8135_v39  ;;  %5178 = vmatpush.bf16.msra.mxu2 %v7703_v37  ;;  %v7671_v39 = vor.u32 %v9126_v55, %v7668_v59  ;;  %v4964_v5 = vpop.f32.mrf.mxu1  ;;  %v7927_v54 = vor.u32 %v9190_v51, %v7924_v2  ;;  %v9284_v37 = vld [vmem:[#allocation8 + $0x714] sm:$0xf0]  ;;  %v9266_v55 = vld [vmem:[#allocation8 + $0x68c] sm:$0xf]  ;;  %v8228_v59 = vld [vmem:[#allocation8 + $0x698] sm:$0xf0] }
 0x2ea   :  { %5138 = vmatpush.bf16.msrb.mxu0 %v8355_v40  ;;  %v9326_v40 = vld [vmem:[#allocation11 + $0x64] sm:$0xf0]  ;;  %v7828_v11 = vld [vmem:[#allocation8 + $0x378] sm:$0xf0] }
 0x2eb   :  { %v9322_v51 = vld [vmem:[#allocation11 + $0x44] sm:$0xf0]  ;;  %v9340_v12 = vld [vmem:[#allocation11 + $0xd4] sm:$0xf0] }
 0x2ec   :  { %5202 = vmatpush.bf16.msrb.mxu3 %v7991_v22  ;;  %v9910_v22 = vadd.f32 %v4962_v56, %v4950_v3  ;;  %v8458_v56 = vld [vmem:[#allocation11 + $0x60] sm:$0xf]  ;;  %v9262_v3 = vld [vmem:[#allocation8 + $0x66c] sm:$0xf]  ;;  %v8443_v60 = vor.u32 %v9322_v51, %v8442_v23  ;;  %v7796_v21 = vld [vmem:[#allocation8 + $0x338] sm:$0xf0] }
 0x2ed   :  { %5215 = vmatpush.bf16.msrb.mxu1 %v8119_v20  ;;  %5179 = vmatpush.bf16.msra.mxu2 %v7687_v50  ;;  %v9288_v20 = vld [vmem:[#allocation8 + $0x734] sm:$0xf0]  ;;  %v8459_v61 = vor.u32 %v9326_v40, %v8458_v56  ;;  %v9342_v5 = vld [vmem:[#allocation11 + $0xe4] sm:$0xf0]  ;;  %v8418_v40 = vld [vmem:[#allocation11 + $0x10] sm:$0xf] }
 0x2ee   :  { %5139 = vmatpush.bf16.msrb.mxu0 %v8339_v63  ;;  %v8307_v28 = vor.u32 %v9288_v20, %v8306_v14  ;;  %v4951_v10 = vpop.f32.mrf.mxu3  ;;  %v7879_v63 = vor.u32 %v9178_v47, %v7876_v29  ;;  %v9320_v14 = vld [vmem:[#allocation11 + $0x34] sm:$0xf0]  ;;  %v8523_v36 = vor.u32 %v9342_v5, %v8522_v4  ;;  %v9258_v16 = vld [vmem:[#allocation8 + $0x64c] sm:$0xf]  ;;  %v9325_v5 = vld [vmem:[#allocation11 + $0x64] sm:$0xf] }
 0x2ef   :  { %v8180_v10 = vld [vmem:[#allocation8 + $0x638] sm:$0xf0]  ;;  %v9154_v23 = vld [vmem:[#allocation8 + $0x30c] sm:$0xf] }
 0x2f0   :  { %5203 = vmatpush.bf16.msrb.mxu3 %v7975_v52  ;;  %v7911_v52 = vor.u32 %v9186_v18, %v7908_v25  ;;  %v7847_v25 = vor.u32 %v9170_v44, %v7844_v41  ;;  %v9310_v44 = vld [vmem:[#allocation8 + $0x7ec] sm:$0xf]  ;;  %v8404_v41 = vld [vmem:[#allocation8 + $0x7f8] sm:$0xf0] }
 0x2f1   :  { %5216 = vmatpush.bf16.msrb.mxu1 %v8103_v30  ;;  %5180 = vmatpush.bf16.msra.mxu2 %v7671_v39  ;;  %v8260_v30 = vld [vmem:[#allocation8 + $0x6d8] sm:$0xf0] }
 0x2f2   :  { %5140 = vmatpush.bf16.msrb.mxu0 %v8323_v42  ;;  %v8263_v38 = vor.u32 %v9274_v8, %v8260_v30  ;;  %v9918_v18 = vpop.f32.mrf.mxu2  ;;  %v9254_v30 = vld [vmem:[#allocation8 + $0x62c] sm:$0xf] }
 0x2f3   :  { %v8183_v56 = vor.u32 %v9254_v30, %v8180_v10 }
 0x2f4   :  { %5204 = vmatpush.bf16.msrb.mxu3 %v7959_v35  ;;  %v8291_v35 = vor.u32 %v9284_v37, %v8290_v34  ;;  %v9162_v34 = vld [vmem:[#allocation8 + $0x34c] sm:$0xf] }
 0x2f5   :  { %5217 = vmatpush.bf16.msrb.mxu1 %v8087_v43  ;;  %5181 = vmatpush.bf16.msra.mxu2 %v7655_v26  ;;  %v8244_v43 = vld [vmem:[#allocation8 + $0x6b8] sm:$0xf0]  ;;  %v9166_v26 = vld [vmem:[#allocation8 + $0x36c] sm:$0xf] }
 0x2f6   :  { %5141 = vmatpush.bf16.msrb.mxu0 %v8307_v28  ;;  %v8247_v50 = vor.u32 %v9270_v31, %v8244_v43  ;;  %v8426_v28 = vld [vmem:[#allocation11 + $0x20] sm:$0xf]  ;;  %v9250_v43 = vld [vmem:[#allocation8 + $0x60c] sm:$0xf] }
 0x2f8   :  { %5205 = vmatpush.bf16.msrb.mxu3 %v7943_v0  ;;  %5182 = vmatmul.bf16.vlgmr.msra.gmra.mxu2 %v9829_v9  ;;  %v9174_v0 = vld [vmem:[#allocation8 + $0x3ac] sm:$0xf]  ;;  %v7860_v9 = vld [vmem:[#allocation8 + $0x3b8] sm:$0xf0] }
 0x2f9   :  { %5218 = vmatpush.bf16.msrb.mxu1 %v8071_v1  ;;  %5226 = vmatpush.bf16.msrb.mxu2 %v8279_v19  ;;  %v9344_v1 = vld [vmem:[#allocation11 + $0xf4] sm:$0xf0]  ;;  %v7863_v39 = vor.u32 %v9174_v0, %v7860_v9  ;;  %v8514_v19 = vld [vmem:[#allocation11 + $0xd0] sm:$0xf]  ;;  %v8410_v0 = vld [vmem:[#allocation11] sm:$0xf] }
 0x2fa   :  { %5142 = vmatpush.bf16.msrb.mxu0 %v8291_v35  ;;  %v8531_v2 = vor.u32 %v9344_v1, %v8530_v17  ;;  %v8515_v8 = vor.u32 %v9340_v12, %v8514_v19  ;;  %v9316_v35 = vld [vmem:[#allocation11 + $0x14] sm:$0xf0]  ;;  %v4925_v29 = vpop.f32.mrf.mxu2  ;;  %v9314_v9 = vld [vmem:[#allocation11 + $0x4] sm:$0xf0]  ;;  %v9327_v17 = vld [vmem:[#allocation11 + $0x74] sm:$0xf] }
 0x2fb   :  { %v8419_v53 = vor.u32 %v9316_v35, %v8418_v40  ;;  %v8468_v1 = vld [vmem:[#allocation11 + $0x78] sm:$0xf0]  ;;  %v9323_v19 = vld [vmem:[#allocation11 + $0x54] sm:$0xf]  ;;  %v9298_v40 = vld [vmem:[#allocation8 + $0x78c] sm:$0xf] }
 0x2fc   :  { %5206 = vmatpush.bf16.msrb.mxu3 %v7927_v54  ;;  %v8434_v54 = vld [vmem:[#allocation11 + $0x30] sm:$0xf]  ;;  %v8452_v12 = vld [vmem:[#allocation11 + $0x58] sm:$0xf0]  ;;  %v8356_v35 = vld [vmem:[#allocation8 + $0x798] sm:$0xf0] }
 0x2fd   :  { %5219 = vmatpush.bf16.msrb.mxu1 %v8055_v32  ;;  %5227 = vmatpush.bf16.msrb.mxu2 %v8263_v38  ;;  %v8196_v32 = vld [vmem:[#allocation8 + $0x658] sm:$0xf0]  ;;  %v8435_v27 = vor.u32 %v9320_v14, %v8434_v54  ;;  %v9338_v38 = vld [vmem:[#allocation11 + $0xc4] sm:$0xf0]  ;;  %v8455_v30 = vor.u32 %v9323_v19, %v8452_v12  ;;  %v8436_v29 = vld [vmem:[#allocation11 + $0x38] sm:$0xf0] }
 0x2fe   :  { %5187 = vmatpush.bf16.msra.mxu0 %v7895_v45  ;;  %v8199_v46 = vor.u32 %v9258_v16, %v8196_v32  ;;  %v8164_v45 = vld [vmem:[#allocation8 + $0x618] sm:$0xf0]  ;;  %v8482_v16 = vld [vmem:[#allocation11 + $0x90] sm:$0xf]  ;;  %v9335_v12 = vld [vmem:[#allocation11 + $0xb4] sm:$0xf] }
 0x2ff   :  { %5143 = vmatmul.bf16.vlgmr.msrb.gmra.mxu0 %v9883_v49  ;;  %v9332_v32 = vld [vmem:[#allocation11 + $0x94] sm:$0xf0] }
 0x300   :  { %5207 = vmatpush.bf16.msrb.mxu3 %v7911_v52  ;;  %v9318_v52 = vld [vmem:[#allocation11 + $0x24] sm:$0xf0]  ;;  %v8308_v19 = vld [vmem:[#allocation8 + $0x738] sm:$0xf0] }
 0x301   :  { %5220 = vmatpush.bf16.msrb.mxu1 %v8039_v33  ;;  %5228 = vmatpush.bf16.msrb.mxu2 %v8247_v50  ;;  %v9916_v20 = vpop.f32.mrf.mxu1  ;;  %v7831_v33 = vor.u32 %v9166_v26, %v7828_v11  ;;  %v8427_v15 = vor.u32 %v9318_v52, %v8426_v28  ;;  %v9158_v50 = vld [vmem:[#allocation8 + $0x32c] sm:$0xf]  ;;  %v8388_v26 = vld [vmem:[#allocation8 + $0x7d8] sm:$0xf0]  ;;  %v8474_v52 = vld [vmem:[#allocation11 + $0x80] sm:$0xf] }
 0x302   :  { %5188 = vmatpush.bf16.msra.mxu0 %v7879_v63  ;;  %v8167_v63 = vor.u32 %v9250_v43, %v8164_v45  ;;  %v9922_v54 = vpop.f32.mrf.mxu2  ;;  %v9302_v28 = vld [vmem:[#allocation8 + $0x7ac] sm:$0xf]  ;;  %v9341_v43 = vld [vmem:[#allocation11 + $0xe4] sm:$0xf]  ;;  %v8524_v45 = vld [vmem:[#allocation11 + $0xe8] sm:$0xf0] }
 0x303   :  { %5208 = vmatmul.bf16.vlgmr.msrb.gmra.mxu3 %v9846_v48  ;;  %v8231_v48 = vor.u32 %v9266_v55, %v8228_v59  ;;  %v8498_v55 = vld [vmem:[#allocation11 + $0xb0] sm:$0xf]  ;;  %v9336_v59 = vld [vmem:[#allocation11 + $0xb4] sm:$0xf0] }
 0x304   :  { %5654 = vmatpush.bf16.msra.mxu3 %v8467_v58  ;;  %5221 = vmatmul.bf16.vlgmr.msrb.gmra.mxu1 %v9849_v7  ;;  %v8212_v7 = vld [vmem:[#allocation8 + $0x678] sm:$0xf0]  ;;  %v8506_v58 = vld [vmem:[#allocation11 + $0xc0] sm:$0xf] }
 0x305   :  { %5667 = vmatpush.bf16.msra.mxu1 %v8531_v2  ;;  %5229 = vmatpush.bf16.msrb.mxu2 %v8231_v48  ;;  %v8215_v42 = vor.u32 %v9262_v3, %v8212_v7  ;;  %v8507_v31 = vor.u32 %v9338_v38, %v8506_v58  ;;  %v7799_v48 = vor.u32 %v9158_v50, %v7796_v21  ;;  %v7780_v2 = vld [vmem:[#allocation8 + $0x318] sm:$0xf0]  ;;  %v8490_v7 = vld [vmem:[#allocation11 + $0xa0] sm:$0xf] }
 0x306   :  { %5189 = vmatpush.bf16.msra.mxu0 %v7863_v39  ;;  %v9920_v37 = vpop.f32.mrf.mxu3  ;;  %v8411_v3 = vor.u32 %v9314_v9, %v8410_v0  ;;  %v9334_v39 = vld [vmem:[#allocation11 + $0xa4] sm:$0xf0]  ;;  %v7783_v14 = vor.u32 %v9154_v23, %v7780_v2  ;;  %v9339_v9 = vld [vmem:[#allocation11 + $0xd4] sm:$0xf] }
 0x307   :  { %v8491_v4 = vor.u32 %v9334_v39, %v8490_v7 }
 0x308   :  { %5655 = vmatpush.bf16.msra.mxu3 %v8459_v61  ;;  %v7815_v61 = vor.u32 %v9162_v34, %v7812_v57  ;;  %v8532_v34 = vld [vmem:[#allocation11 + $0xf8] sm:$0xf0]  ;;  %v9321_v57 = vld [vmem:[#allocation11 + $0x44] sm:$0xf] }
 0x309   :  { %5668 = vmatpush.bf16.msra.mxu1 %v8523_v36  ;;  %5230 = vmatpush.bf16.msrb.mxu2 %v8215_v42  ;;  %v5016_v47 = vpop.f32.mrf.mxu1  ;;  %v8460_v42 = vld [vmem:[#allocation11 + $0x68] sm:$0xf0]  ;;  %v8407_v36 = vor.u32 %v9310_v44, %v8404_v41  ;;  %v8324_v44 = vld [vmem:[#allocation8 + $0x758] sm:$0xf0]  ;;  %v9337_v41 = vld [vmem:[#allocation11 + $0xc4] sm:$0xf] }
 0x30a   :  { %5190 = vmatpush.bf16.msra.mxu0 %v7847_v25  ;;  %v9306_v25 = vld [vmem:[#allocation8 + $0x7cc] sm:$0xf]  ;;  %v8463_v11 = vor.u32 %v9325_v5, %v8460_v42  ;;  %v4977_v38 = vpop.f32.mrf.mxu2  ;;  %v9319_v47 = vld [vmem:[#allocation11 + $0x34] sm:$0xf] }
 0x30b   :  { %v8439_v0 = vor.u32 %v9319_v47, %v8436_v29 }
 0x30c   :  { %5656 = vmatpush.bf16.msra.mxu3 %v8451_v62  ;;  %v8499_v62 = vor.u32 %v9336_v59, %v8498_v55  ;;  %v9294_v55 = vld [vmem:[#allocation8 + $0x76c] sm:$0xf] }
 0x30d   :  { %5669 = vmatpush.bf16.msra.mxu1 %v8515_v8  ;;  %5231 = vmatpush.bf16.msrb.mxu2 %v8199_v46  ;;  %v8391_v46 = vor.u32 %v9306_v25, %v8388_v26  ;;  %v9330_v8 = vld [vmem:[#allocation11 + $0x84] sm:$0xf0] }
 0x30e   :  { %5191 = vmatpush.bf16.msra.mxu0 %v7831_v33  ;;  %v5003_v51 = vpop.f32.mrf.mxu3  ;;  %v8475_v10 = vor.u32 %v9330_v8, %v8474_v52  ;;  %v9343_v33 = vld [vmem:[#allocation11 + $0xf4] sm:$0xf]  ;;  %v9313_v52 = vld [vmem:[#allocation11 + $0x4] sm:$0xf] }
 0x30f   :  { %v8535_v58 = vor.u32 %v9343_v33, %v8532_v34  ;;  %v9317_v51 = vld [vmem:[#allocation11 + $0x24] sm:$0xf]  ;;  %v8594_v33 = vld [vmem:[#allocation11 + $0x170] sm:$0xf]  ;;  %v9360_v34 = vld [vmem:[#allocation11 + $0x174] sm:$0xf0] }
 0x310   :  { %5657 = vmatpush.bf16.msra.mxu3 %v8443_v60  ;;  %v8471_v60 = vor.u32 %v9327_v17, %v8468_v1  ;;  %v9928_v17 = vld [vmem:[#allocation10] sm:$0xf] }
 0x311   :  { %5670 = vmatpush.bf16.msra.mxu1 %v8507_v31  ;;  %5232 = vmatpush.bf16.msrb.mxu2 %v8183_v56  ;;  %v3550_v1 = vperm.slane %v9928_v17, 2 }
 0x312   :  { %5192 = vmatpush.bf16.msra.mxu0 %v7815_v61  ;;  %v8527_v61 = vor.u32 %v9341_v43, %v8524_v45  ;;  %v8484_v43 = vld [vmem:[#allocation11 + $0x98] sm:$0xf0] }
 0x314   :  { %5658 = vmatpush.bf16.msra.mxu3 %v8435_v27  ;;  %v8483_v27 = vor.u32 %v9332_v32, %v8482_v16  ;;  %v8420_v16 = vld [vmem:[#allocation11 + $0x18] sm:$0xf0] }
 0x315   :  { %5671 = vmatpush.bf16.msra.mxu1 %v8499_v62  ;;  %5233 = vmatpush.bf16.msrb.mxu2 %v8167_v63  ;;  %v8340_v63 = vld [vmem:[#allocation8 + $0x778] sm:$0xf0]  ;;  %v8516_v62 = vld [vmem:[#allocation11 + $0xd8] sm:$0xf0] }
 0x316   :  { %5193 = vmatpush.bf16.msra.mxu0 %v7799_v48  ;;  %v4936_v21 = vpop.f32.mrf.mxu0  ;;  %v8519_v48 = vor.u32 %v9339_v9, %v8516_v62  ;;  %v8343_v2 = vor.u32 %v9294_v55, %v8340_v63  ;;  %v9358_v9 = vld [vmem:[#allocation11 + $0x164] sm:$0xf0] }
 0x318   :  { %5659 = vmatpush.bf16.msra.mxu3 %v8427_v15  ;;  %5234 = vmatmul.bf16.vlgmr.msrb.gmra.mxu2 %v9874_v6  ;;  %v8372_v6 = vld [vmem:[#allocation8 + $0x7b8] sm:$0xf0]  ;;  %v8444_v15 = vld [vmem:[#allocation11 + $0x48] sm:$0xf0] }
 0x319   :  { %5672 = vmatpush.bf16.msra.mxu1 %v8491_v4  ;;  %v8375_v56 = vor.u32 %v9302_v28, %v8372_v6  ;;  %v8447_v31 = vor.u32 %v9321_v57, %v8444_v15  ;;  %v9333_v6 = vld [vmem:[#allocation11 + $0xa4] sm:$0xf] }
 0x31a   :  { %5194 = vmatpush.bf16.msra.mxu0 %v7783_v14 }
 0x31c   :  { %5660 = vmatpush.bf16.msra.mxu3 %v8419_v53  ;;  %v8359_v53 = vor.u32 %v9298_v40, %v8356_v35  ;;  %v8292_v35 = vld [vmem:[#allocation8 + $0x718] sm:$0xf0] }
 0x31d   :  { %5673 = vmatpush.bf16.msra.mxu1 %v8483_v27  ;;  %5195 = vmatmul.bf16.vlgmr.msra.gmra.mxu0 %v9831_v13  ;;  %v4924_v13 = vadd.f32 %v9918_v18, %v9903_v24  ;;  %v8428_v24 = vld [vmem:[#allocation11 + $0x28] sm:$0xf0]  ;;  %v9931_v18 = vpop.f32.mrf.mxu2 }
 0x31e   :  { %5239 = vmatpush.bf16.msrb.mxu0 %v8407_v36  ;;  %v8431_v5 = vor.u32 %v9317_v51, %v8428_v24  ;;  %v9315_v36 = vld [vmem:[#allocation11 + $0x14] sm:$0xf]  ;;  %v4938_v25 = vpop.f32.mrf.mxu0 }
 0x31f   :  { %v4937_v59 = vadd.f32 %v4936_v21, %v4924_v13  ;;  %v8423_v28 = vor.u32 %v9315_v36, %v8420_v16  ;;  %v4976_v13 = vadd.f32 %v9922_v54, %v9910_v22  ;;  %v8476_v21 = vld [vmem:[#allocation11 + $0x88] sm:$0xf0]  ;;  %v8578_v54 = vld [vmem:[#allocation11 + $0x150] sm:$0xf] }
 0x320   :  { %5661 = vmatpush.bf16.msra.mxu3 %v8411_v3  ;;  %v9290_v3 = vld [vmem:[#allocation8 + $0x74c] sm:$0xf]  ;;  %v8546_v25 = vld [vmem:[#allocation11 + $0x110] sm:$0xf] }
 0x321   :  { %5674 = vmatpush.bf16.msra.mxu1 %v8475_v10  ;;  %v5066_v50 = vpop.f32.mrf.mxu1  ;;  %v5252_v23 = vmul.f32 0.2, %v4937_v59  ;;  %v8327_v26 = vor.u32 %v9290_v3, %v8324_v44  ;;  %v8412_v10 = vld [vmem:[#allocation11 + $0x8] sm:$0xf0]  ;;  %v9354_v3 = vld [vmem:[#allocation11 + $0x144] sm:$0xf0] }
 0x322   :  { %5240 = vmatpush.bf16.msrb.mxu0 %v8391_v46  ;;  %v8500_v46 = vld [vmem:[#allocation11 + $0xb8] sm:$0xf0]  ;;  %v8415_v45 = vor.u32 %v9313_v52, %v8412_v10  ;;  %v8588_v10 = vld [vmem:[#allocation11 + $0x168] sm:$0xf0] }
 0x323   :  { %v5256_v7 = vmax.f32 %v4937_v59, %v5252_v23  ;;  %v8503_v8 = vor.u32 %v9335_v12, %v8500_v46  ;;  %v8538_v12 = vld [vmem:[#allocation11 + $0x100] sm:$0xf]  ;;  %v9346_v46 = vld [vmem:[#allocation11 + $0x104] sm:$0xf0]  ;;  %v8596_v52 = vld [vmem:[#allocation11 + $0x178] sm:$0xf0] }
 0x324   :  { %5706 = vmatpush.bf16.msrb.mxu3 %v8471_v60  ;;  %v8508_v60 = vld [vmem:[#allocation11 + $0xc8] sm:$0xf0] }
 0x325   :  { %5719 = vmatpush.bf16.msrb.mxu1 %v8535_v58  ;;  %v8511_v42 = vor.u32 %v9337_v41, %v8508_v60  ;;  %v5260_v14 = vpack.c.bf16 %v5256_v7, %v5256_v7  ;;  %v5029_v57 = vpop.f32.mrf.mxu2  ;;  %v9282_v58 = vld [vmem:[#allocation8 + $0x70c] sm:$0xf]  ;;  %v8562_v60 = vld [vmem:[#allocation11 + $0x130] sm:$0xf] }
 0x326   :  { %5241 = vmatpush.bf16.msrb.mxu0 %v8375_v56  ;;  %v5053_v39 = vpop.f32.mrf.mxu3  ;;  %v8595_v56 = vor.u32 %v9360_v34, %v8594_v33  ;;  %v4988_v47 = vpop.f32.mrf.mxu0  ;;  %v8295_v29 = vor.u32 %v9282_v58, %v8292_v35  ;;  %v9355_v57 = vld [vmem:[#allocation11 + $0x154] sm:$0xf]  ;;  %v9353_v35 = vld [vmem:[#allocation11 + $0x144] sm:$0xf] }
 0x327   :  { %v5054_v4 = vadd.f32 %v5053_v39, %v3550_v1  ;;  %5662 = vmatmul.bf16.vlgmr.msra.gmra.mxu3 %v5260_v14 }
 0x328   :  { %5707 = vmatpush.bf16.msrb.mxu3 %v8463_v11  ;;  %v9286_v11 = vld [vmem:[#allocation8 + $0x72c] sm:$0xf]  ;;  %5680 = vmatpush.bf16.msra.mxu2 %v8595_v56 }
 0x329   :  { %5720 = vmatpush.bf16.msrb.mxu1 %v8527_v61  ;;  %v5068_v32 = vpop.f32.mrf.mxu1  ;;  %v9933_v27 = vadd.f32 %v5066_v50, %v5054_v4  ;;  %v8311_v15 = vor.u32 %v9286_v11, %v8308_v19  ;;  %v9329_v50 = vld [vmem:[#allocation11 + $0x84] sm:$0xf]  ;;  %v9352_v4 = vld [vmem:[#allocation11 + $0x134] sm:$0xf0] }
 0x32a   :  { %5242 = vmatpush.bf16.msrb.mxu0 %v8359_v53  ;;  %v4989_v53 = vadd.f32 %v4988_v47, %v4976_v13  ;;  %v8479_v55 = vor.u32 %v9329_v50, %v8476_v21  ;;  %v9351_v13 = vld [vmem:[#allocation11 + $0x134] sm:$0xf]  ;;  %v8564_v50 = vld [vmem:[#allocation11 + $0x138] sm:$0xf0] }
 0x32b   :  { %v8567_v21 = vor.u32 %v9351_v13, %v8564_v50  ;;  %v8644_v13 = vld [vmem:[#allocation11 + $0x1d8] sm:$0xf0] }
 0x32c   :  { %5708 = vmatpush.bf16.msrb.mxu3 %v8455_v30  ;;  %v8492_v30 = vld [vmem:[#allocation11 + $0xa8] sm:$0xf0]  ;;  %v5002_v59 = vadd.f32 %v9920_v37, %v4989_v53  ;;  %v9349_v53 = vld [vmem:[#allocation11 + $0x124] sm:$0xf] }
 0x32d   :  { %5721 = vmatpush.bf16.msrb.mxu1 %v8519_v48  ;;  %v8495_v38 = vor.u32 %v9333_v6, %v8492_v30  ;;  %v9356_v48 = vld [vmem:[#allocation11 + $0x154] sm:$0xf0]  ;;  %v9357_v30 = vld [vmem:[#allocation11 + $0x164] sm:$0xf] }
 0x32e   :  { %5243 = vmatpush.bf16.msrb.mxu0 %v8343_v2  ;;  %v5055_v40 = vpop.f32.mrf.mxu3  ;;  %v4990_v63 = vpop.f32.mrf.mxu0  ;;  %v5015_v1 = vadd.f32 %v9916_v20, %v5002_v59  ;;  %v8579_v23 = vor.u32 %v9356_v48, %v8578_v54  ;;  %v8570_v2 = vld [vmem:[#allocation11 + $0x140] sm:$0xf]  ;;  %v8591_v33 = vor.u32 %v9357_v30, %v8588_v10 }
 0x32f   :  { %v8571_v39 = vor.u32 %v9354_v3, %v8570_v2  ;;  %v9347_v63 = vld [vmem:[#allocation11 + $0x114] sm:$0xf] }
 0x330   :  { %5709 = vmatpush.bf16.msrb.mxu3 %v8447_v31  ;;  %v9331_v31 = vld [vmem:[#allocation11 + $0x94] sm:$0xf]  ;;  %v5028_v51 = vadd.f32 %v9931_v18, %v5015_v1  ;;  %v9350_v18 = vld [vmem:[#allocation11 + $0x124] sm:$0xf0]  ;;  %v9376_v1 = vld [vmem:[#allocation11 + $0x1f4] sm:$0xf0] }
 0x331   :  { %5722 = vmatpush.bf16.msrb.mxu1 %v8511_v42  ;;  %v8487_v61 = vor.u32 %v9331_v31, %v8484_v43  ;;  %v8572_v31 = vld [vmem:[#allocation11 + $0x148] sm:$0xf0] }
 0x332   :  { %5244 = vmatpush.bf16.msrb.mxu0 %v8327_v26  ;;  %v9348_v26 = vld [vmem:[#allocation11 + $0x114] sm:$0xf0] }
 0x333   :  { %v8547_v19 = vor.u32 %v9348_v26, %v8546_v25 }
 0x334   :  { %5710 = vmatpush.bf16.msrb.mxu3 %v8439_v0  ;;  %v8586_v0 = vld [vmem:[#allocation11 + $0x160] sm:$0xf] }
 0x335   :  { %5723 = vmatpush.bf16.msrb.mxu1 %v8503_v8  ;;  %v8587_v62 = vor.u32 %v9358_v9, %v8586_v0  ;;  %v8539_v8 = vor.u32 %v9346_v46, %v8538_v12  ;;  %v8548_v9 = vld [vmem:[#allocation11 + $0x118] sm:$0xf0]  ;;  %v9368_v12 = vld [vmem:[#allocation11 + $0x1b4] sm:$0xf0]  ;;  %v8618_v46 = vld [vmem:[#allocation11 + $0x1a0] sm:$0xf] }
 0x336   :  { %5245 = vmatpush.bf16.msrb.mxu0 %v8311_v15  ;;  %v8580_v15 = vld [vmem:[#allocation11 + $0x158] sm:$0xf0] }
 0x337   :  { %5681 = vmatpush.bf16.msra.mxu2 %v8587_v62  ;;  %v8583_v58 = vor.u32 %v9355_v57, %v8580_v15  ;;  %v8658_v62 = vld [vmem:[#allocation11 + $0x1f0] sm:$0xf] }
 0x338   :  { %5711 = vmatpush.bf16.msrb.mxu3 %v8431_v5  ;;  %v5040_v24 = vpop.f32.mrf.mxu0  ;;  %v8563_v5 = vor.u32 %v9352_v4, %v8562_v60  ;;  %v8659_v48 = vor.u32 %v9376_v1, %v8658_v62  ;;  %v9365_v62 = vld [vmem:[#allocation11 + $0x1a4] sm:$0xf]  ;;  %v8620_v1 = vld [vmem:[#allocation11 + $0x1a8] sm:$0xf0] }
 0x339   :  { %5724 = vmatpush.bf16.msrb.mxu1 %v8495_v38  ;;  %v5041_v37 = vadd.f32 %v5040_v24, %v5028_v51  ;;  %v3551_v38 = vperm.slane %v9928_v17, 3  ;;  %v9345_v51 = vld [vmem:[#allocation11 + $0x104] sm:$0xf]  ;;  %v8540_v24 = vld [vmem:[#allocation11 + $0x108] sm:$0xf0] }
 0x33a   :  { %5246 = vmatpush.bf16.msrb.mxu0 %v8295_v29  ;;  %v8543_v3 = vor.u32 %v9345_v51, %v8540_v24  ;;  %v9363_v51 = vld [vmem:[#allocation11 + $0x194] sm:$0xf]  ;;  %v8612_v24 = vld [vmem:[#allocation11 + $0x198] sm:$0xf0] }
 0x33b   :  { %5682 = vmatpush.bf16.msra.mxu2 %v8579_v23  ;;  %v5253_v44 = vmul.f32 0.2, %v5041_v37  ;;  %v8551_v23 = vor.u32 %v9347_v63, %v8548_v9  ;;  %v9367_v63 = vld [vmem:[#allocation11 + $0x1b4] sm:$0xf] }
 0x33c   :  { %5712 = vmatpush.bf16.msrb.mxu3 %v8423_v28  ;;  %v9359_v28 = vld [vmem:[#allocation11 + $0x174] sm:$0xf] }
 0x33d   :  { %5725 = vmatpush.bf16.msrb.mxu1 %v8487_v61  ;;  %5247 = vmatmul.bf16.vlgmr.msrb.gmra.mxu0 %v9883_v49  ;;  %v9943_v49 = vpop.f32.mrf.mxu2  ;;  %v5257_v20 = vmax.f32 %v5041_v37, %v5253_v44  ;;  %v8599_v6 = vor.u32 %v9359_v28, %v8596_v52  ;;  %v8650_v44 = vld [vmem:[#allocation11 + $0x1e0] sm:$0xf]  ;;  %v9366_v52 = vld [vmem:[#allocation11 + $0x1a4] sm:$0xf0] }
 0x33e   :  { %5693 = vmatpush.bf16.msra.mxu0 %v8659_v48  ;;  %v5080_v37 = vadd.f32 %v9943_v49, %v9933_v27  ;;  %v8619_v10 = vor.u32 %v9366_v52, %v8618_v46 }
 0x33f   :  { %5683 = vmatpush.bf16.msra.mxu2 %v8571_v39  ;;  %v5261_v42 = vpack.c.bf16 %v5257_v20, %v5257_v20  ;;  %v9374_v20 = vld [vmem:[#allocation11 + $0x1e4] sm:$0xf0] }
 0x340   :  { %5713 = vmatpush.bf16.msrb.mxu3 %v8415_v45  ;;  %v5042_v36 = vpop.f32.mrf.mxu0  ;;  %v8575_v45 = vor.u32 %v9353_v35, %v8572_v31  ;;  %v8660_v35 = vld [vmem:[#allocation11 + $0x1f8] sm:$0xf0] }
 0x341   :  { %5726 = vmatpush.bf16.msrb.mxu1 %v8479_v55  ;;  %v9940_v22 = vpop.f32.mrf.mxu1  ;;  %v8556_v55 = vld [vmem:[#allocation11 + $0x128] sm:$0xf0] }
 0x342   :  { %5675 = vmatmul.bf16.vlgmr.msra.gmra.mxu1 %v5261_v42  ;;  %v8559_v17 = vor.u32 %v9349_v53, %v8556_v55  ;;  %v9369_v55 = vld [vmem:[#allocation11 + $0x1c4] sm:$0xf] }
 0x343   :  { %5714 = vmatmul.bf16.vlgmr.msrb.gmra.mxu3 %v5260_v14  ;;  %v8554_v14 = vld [vmem:[#allocation11 + $0x120] sm:$0xf]  ;;  %5684 = vmatpush.bf16.msra.mxu2 %v8563_v5  ;;  %v8642_v5 = vld [vmem:[#allocation11 + $0x1d0] sm:$0xf] }
 0x344   :  { %v8555_v16 = vor.u32 %v9350_v18, %v8554_v14 }
 0x345   :  { %v5081_v32 = vpop.f32.mrf.mxu2 }
 0x346   :  { %v9945_v7 = vpop.f32.mrf.mxu3 }
 0x347   :  { %5685 = vmatpush.bf16.msra.mxu2 %v8555_v16  ;;  %v8634_v16 = vld [vmem:[#allocation11 + $0x1c0] sm:$0xf] }
 0x349   :  { %v5120_v41 = vpop.f32.mrf.mxu1 }
 0x34a   :  { %v8651_v41 = vor.u32 %v9374_v20, %v8650_v44  ;;  %v8604_v44 = vld [vmem:[#allocation11 + $0x188] sm:$0xf0] }
 0x34b   :  { %5686 = vmatpush.bf16.msra.mxu2 %v8547_v19  ;;  %v8626_v19 = vld [vmem:[#allocation11 + $0x1b0] sm:$0xf] }
 0x34c   :  { %5694 = vmatpush.bf16.msra.mxu0 %v8651_v41  ;;  %v8627_v28 = vor.u32 %v9368_v12, %v8626_v19 }
 0x34e   :  { %v5107_v11 = vpop.f32.mrf.mxu3 }
 0x34f   :  { %5687 = vmatpush.bf16.msra.mxu2 %v8539_v8 }
 0x352   :  { %5727 = vmatmul.bf16.vlgmr.msrb.gmra.mxu1 %v5261_v42  ;;  %v9372_v42 = vld [vmem:[#allocation11 + $0x1d4] sm:$0xf0] }
 0x353   :  { %5732 = vmatpush.bf16.msrb.mxu2 %v8599_v6  ;;  %v8643_v14 = vor.u32 %v9372_v42, %v8642_v5 }
 0x355   :  { %5695 = vmatpush.bf16.msra.mxu0 %v8643_v14 }
 0x357   :  { %5733 = vmatpush.bf16.msrb.mxu2 %v8591_v33  ;;  %v8610_v33 = vld [vmem:[#allocation11 + $0x190] sm:$0xf] }
 0x359   :  { %v5092_v56 = vpop.f32.mrf.mxu0 }
 0x35a   :  { %v5131_v40 = vpop.f32.mrf.mxu2  ;;  %v5093_v2 = vadd.f32 %v5092_v56, %v5080_v37 }
 0x35b   :  { %5734 = vmatpush.bf16.msrb.mxu2 %v8583_v58  ;;  %v8602_v58 = vld [vmem:[#allocation11 + $0x180] sm:$0xf] }
 0x35c   :  { %v5106_v39 = vadd.f32 %v9945_v7, %v5093_v2  ;;  %v9370_v7 = vld [vmem:[#allocation11 + $0x1c4] sm:$0xf0]  ;;  %v8615_v2 = vor.u32 %v9363_v51, %v8612_v24 }
 0x35d   :  { %v8635_v25 = vor.u32 %v9370_v7, %v8634_v16 }
 0x35e   :  { %v5119_v60 = vadd.f32 %v9940_v22, %v5106_v39  ;;  %v9361_v39 = vld [vmem:[#allocation11 + $0x184] sm:$0xf] }
 0x35f   :  { %5735 = vmatpush.bf16.msrb.mxu2 %v8575_v45  ;;  %5696 = vmatpush.bf16.msra.mxu0 %v8635_v25  ;;  %v8652_v45 = vld [vmem:[#allocation11 + $0x1e8] sm:$0xf0]  ;;  %v8607_v20 = vor.u32 %v9361_v39, %v8604_v44  ;;  %v5328_v25 = vld [vmem:[#allocation13] sm:$0x3] }
 0x360   :  { %v5132_v18 = vadd.f32 %v5131_v40, %v5119_v60  ;;  %v9375_v40 = vld [vmem:[#allocation11 + $0x1f4] sm:$0xf]  ;;  %v5331_v46 = vperm.slane %v5328_v25, 1 }
 0x361   :  { %v5170_v34 = vpop.f32.mrf.mxu1  ;;  %v5094_v59 = vpop.f32.mrf.mxu0  ;;  %v8663_v31 = vor.u32 %v9375_v40, %v8660_v35  ;;  %v5762_v35 = vld [vmem:[#allocation14] sm:$0x3] }
 0x362   :  { %v5133_v0 = vpop.f32.mrf.mxu2  ;;  %v8636_v59 = vld [vmem:[#allocation11 + $0x1c8] sm:$0xf0] }
 0x363   :  { %5736 = vmatpush.bf16.msrb.mxu2 %v8567_v21  ;;  %5697 = vmatpush.bf16.msra.mxu0 %v8627_v28  ;;  %v8628_v0 = vld [vmem:[#allocation11 + $0x1b8] sm:$0xf0] }
 0x364   :  { %v8631_v9 = vor.u32 %v9367_v63, %v8628_v0 }
 0x366   :  { %v5157_v43 = vpop.f32.mrf.mxu3 }
 0x367   :  { %v5158_v47 = vadd.f32 %v5157_v43, %v3551_v38  ;;  %5737 = vmatpush.bf16.msrb.mxu2 %v8559_v17  ;;  %5698 = vmatpush.bf16.msra.mxu0 %v8619_v10  ;;  %v9362_v38 = vld [vmem:[#allocation11 + $0x184] sm:$0xf0]  ;;  %v9373_v43 = vld [vmem:[#allocation11 + $0x1e4] sm:$0xf]  ;;  %v8639_v17 = vor.u32 %v9369_v55, %v8636_v59  ;;  %v9391_v59 = vld [vmem:[#allocation2] ss:$0 sm:$0xff] }
 0x368   :  { %v8603_v56 = vor.u32 %v9362_v38, %v8602_v58 }
 0x369   :  { %v5172_v29 = vpop.f32.mrf.mxu1  ;;  %v9948_v61 = vadd.f32 %v5170_v34, %v5158_v47  ;;  %v9364_v34 = vld [vmem:[#allocation11 + $0x194] sm:$0xf0]  ;;  %v8655_v47 = vor.u32 %v9373_v43, %v8652_v45 }
 0x36a   :  { %v8611_v15 = vor.u32 %v9364_v34, %v8610_v33  ;;  %v9371_v29 = vld [vmem:[#allocation11 + $0x1d4] sm:$0xf] }
 0x36b   :  { %5738 = vmatpush.bf16.msrb.mxu2 %v8551_v23  ;;  %v8647_v50 = vor.u32 %v9371_v29, %v8644_v13  ;;  %v8623_v23 = vor.u32 %v9365_v62, %v8620_v1  ;;  %v5765_v29 = vperm.slane %v5762_v35, 1 }
 0x36c   :  { %5699 = vmatpush.bf16.msra.mxu0 %v8611_v15 }
 0x36e   :  { %v5159_v54 = vpop.f32.mrf.mxu3 }
 0x36f   :  { %5739 = vmatpush.bf16.msrb.mxu2 %v8543_v3 }
 0x370   :  { %5700 = vmatpush.bf16.msra.mxu0 %v8603_v56 }
 0x374   :  { %5745 = vmatpush.bf16.msrb.mxu0 %v8663_v31 }
 0x378   :  { %5746 = vmatpush.bf16.msrb.mxu0 %v8655_v47  ;;  %v5764_v47 = vperm.slane %v5762_v35, 0 }
 0x37b   :  { %v9956_v27 = vpop.f32.mrf.mxu2 }
 0x37c   :  { %v5144_v36 = vpop.f32.mrf.mxu0  ;;  %5747 = vmatpush.bf16.msrb.mxu0 %v8647_v50  ;;  %v5184_v37 = vadd.f32 %v9956_v27, %v9948_v61 }
 0x37d   :  { %v5145_v49 = vadd.f32 %v5144_v36, %v5132_v18 }
 0x37f   :  { %v5254_v26 = vmul.f32 0.2, %v5145_v49 }
 0x380   :  { %5748 = vmatpush.bf16.msrb.mxu0 %v8639_v17 }
 0x381   :  { %v9954_v4 = vpop.f32.mrf.mxu1  ;;  %v5258_v22 = vmax.f32 %v5145_v49, %v5254_v26  ;;  %v5330_v26 = vperm.slane %v5328_v25, 0 }
 0x383   :  { %v5262_v8 = vpack.c.bf16 %v5258_v22, %v5258_v22  ;;  %v5185_v30 = vpop.f32.mrf.mxu2 }
 0x384   :  { %v5146_v6 = vpop.f32.mrf.mxu0  ;;  %5749 = vmatpush.bf16.msrb.mxu0 %v8631_v9 }
 0x385   :  { %5688 = vmatmul.bf16.vlgmr.msra.gmra.mxu2 %v5262_v8 }
 0x386   :  { %v9958_v32 = vpop.f32.mrf.mxu3 }
 0x388   :  { %5750 = vmatpush.bf16.msrb.mxu0 %v8623_v23 }
 0x389   :  { %v5224_v11 = vpop.f32.mrf.mxu1 }
 0x38c   :  { %5751 = vmatpush.bf16.msrb.mxu0 %v8615_v2 }
 0x38e   :  { %v5211_v57 = vpop.f32.mrf.mxu3 }
 0x390   :  { %5752 = vmatpush.bf16.msrb.mxu0 %v8607_v20 }
 0x395   :  { %5740 = vmatmul.bf16.vlgmr.msrb.gmra.mxu2 %v5262_v8 }
 0x39a   :  { %v5196_v21 = vpop.f32.mrf.mxu0 }
 0x39b   :  { %v5235_v53 = vpop.f32.mrf.mxu2  ;;  %v5197_v3 = vadd.f32 %v5196_v21, %v5184_v37 }
 0x39d   :  { %v5210_v41 = vadd.f32 %v9958_v32, %v5197_v3 }
 0x39f   :  { %v5223_v5 = vadd.f32 %v9954_v4, %v5210_v41 }
 0x3a1   :  { %v5236_v42 = vadd.f32 %v5235_v53, %v5223_v5 }
 0x3a2   :  { %v5198_v54 = vpop.f32.mrf.mxu0 }
 0x3a3   :  { %v5237_v48 = vpop.f32.mrf.mxu2 }
 0x3aa   :  { %v5663_v60 = vpop.f32.mrf.mxu3 }
 0x3ab   :  { %v5664_v11 = vadd.f32 %v5663_v60, %v5330_v26 }
 0x3b2   :  { %v5665_v18 = vpop.f32.mrf.mxu3 }
 0x3ba   :  { %v5248_v14 = vpop.f32.mrf.mxu0 }
 0x3bb   :  { %v5249_v36 = vadd.f32 %v5248_v14, %v5236_v42 }
 0x3bd   :  { %v5255_v49 = vmul.f32 0.2, %v5249_v36 }
 0x3bf   :  { %v5259_v16 = vmax.f32 %v5249_v36, %v5255_v49  ;;  %v5676_v19 = vpop.f32.mrf.mxu1 }
 0x3c0   :  { %v5677_v32 = vadd.f32 %v5676_v19, %v5664_v11 }
 0x3c1   :  { %v5263_v7 = vpack.c.bf16 %v5259_v16, %v5259_v16 }
 0x3c2   :  { %v5250_v61 = vpop.f32.mrf.mxu0 }
 0x3c3   :  { %5701 = vmatmul.bf16.vlgmr.msra.gmra.mxu0 %v5263_v7 }
 0x3c6   :  { %v5715_v27 = vpop.f32.mrf.mxu3 }
 0x3c7   :  { %v5678_v12 = vpop.f32.mrf.mxu1  ;;  %v5716_v4 = vadd.f32 %v5715_v27, %v5331_v46 }
 0x3ce   :  { %v5717_v22 = vpop.f32.mrf.mxu3 }
 0x3cf   :  { %v5728_v28 = vpop.f32.mrf.mxu1 }
 0x3d0   :  { %v5729_v52 = vadd.f32 %v5728_v28, %v5716_v4 }
 0x3d3   :  { %5753 = vmatmul.bf16.vlgmr.msrb.gmra.mxu0 %v5263_v7 }
 0x3d7   :  { %v5730_v8 = vpop.f32.mrf.mxu1 }
 0x408   :  { %v5689_v6 = vpop.f32.mrf.mxu2 }
 0x409   :  { %v5690_v30 = vadd.f32 %v5689_v6, %v5677_v32 }
 0x410   :  { %v5691_v10 = vpop.f32.mrf.mxu2 }
 0x418   :  { %v5741_v33 = vpop.f32.mrf.mxu2 }
 0x419   :  { %v5742_v38 = vadd.f32 %v5741_v33, %v5729_v52 }
 0x420   :  { %v5743_v34 = vpop.f32.mrf.mxu2 }
 0x440   :  { %v5702_v57 = vpop.f32.mrf.mxu0 }
 0x441   :  { %v5703_v58 = vadd.f32 %v5702_v57, %v5690_v30 }
 0x443   :  { %v5758_v56 = vmul.f32 0.2, %v5703_v58 }
 0x445   :  { %v5760_v43 = vmax.f32 %v5703_v58, %v5758_v56 }
 0x447   :  { %v5768_v50 = vmul.f32 %v5764_v47, %v5760_v43 }
 0x448   :  { %v5704_v15 = vpop.f32.mrf.mxu0 }
 0x450   :  { %v5754_v40 = vpop.f32.mrf.mxu0 }
 0x451   :  { %v5755_v31 = vadd.f32 %v5754_v40, %v5742_v38 }
 0x453   :  { %v5759_v45 = vmul.f32 0.2, %v5755_v31 }
 0x455   :  { %v5761_v13 = vmax.f32 %v5755_v31, %v5759_v45 }
 0x457   :  { %v5769_v21 = vmul.f32 %v5765_v29, %v5761_v13 }
 0x458   :  { %v5756_v53 = vpop.f32.mrf.mxu0 }
 0x459   :  { %v5770_v55 = vadd.f32 %v5769_v21, %v5768_v50 }
 0x45b   :  { %5771 = vadd.xlane.f32.xlu0 %v5770_v55 }
 0x4ce   :  { %v5772_v17 = vpop.xlane.xlu0 %5771 }
 0x4cf   :  { %v5777_v63 = vadd.f32 %v9391_v59, %v5772_v17 }
 0x4d1   :  { %v8664_v0 = vmul.f32 -1.442695, %v5777_v63 }
 0x4d3   :  { %9392 = vpow2.f32 %v8664_v0 }
 0x4d9   :  { %v9393_v9 = vpop.eup %9392 }
 0x4da   :  { %v5781_v62 = vadd.f32 1.0, %v9393_v9 }
 0x4dc   :  { %9394 = vrcp.f32 %v5781_v62  ;;  %v5793_v23 = vand.u32 2147483648, %v5781_v62  ;;  %v5791_v24 = vand.u32 2147483647, %v5781_v62  ;;  %vm5787_vm2 = vweird.f32 %v5781_v62 }
 0x4de   :  { %v5794_v2 = vor.u32 1.1754944e-38, %v5793_v23  ;;  %vm5792_vm5 = vcmp.eq.f32.partialorder %v5791_v24, 8.507059e+37 }
 0x4e2   :  { %v9395_v1 = vpop.eup %9394 }
 0x4e3   :  { %v5783_v54 = vmul.f32 %v9395_v1, %v5781_v62  ;;  %vm5788_vm1 = vweird.f32 %v9395_v1 }
 0x4e4   :  { %vm5789_vm3 = vmor %vm5787_vm2, %vm5788_vm1 }
 0x4e5   :  { %v5784_v48 = vsub.f32 1.0, %v5783_v54 }
 0x4e7   :  { %v5785_v51 = vmul.f32 %v9395_v1, %v5784_v48 }
 0x4e9   :  { %v5786_v37 = vadd.f32 %v9395_v1, %v5785_v51 }
 0x4eb   :  { %v5790_v3 = vsel %vm5789_vm3, %v9395_v1, %v5786_v37 }
 0x4ec   :  { %v5795_v39 = vsel %vm5792_vm5, %v5794_v2, %v5790_v3 }
 0x4ed   :  { %5798 = vst.msk [vmem:[%s9976_s9] sm:$0xff] %vm5797_vm4, %v5795_v39 }
 0x4ee   :  { %5803 = vsyncpa [#allocation4], 1 }
 0x4ef   :  { %5804 = vsyncpa [#allocation6], 1 }
 0x4f0   :  { %5805 = vsyncpa [#allocation9], 1 }
 0x4f1   :  { %5806 = vsyncpa [#allocation12], 1 }
 0x4f2   :  { %5807 = vsyncpa [#allocation15], 1 }

// kernel: tpu_custom_call.1
= control target key start
LH: loop header
LB: loop body
LE: loop exit
PB: predicated region body
PF: predicated region fallthrough
CT: control target
= control target key end

     0   :  { %s9967_s0 = inlined_call_operand.hbm [shape: f32[8,784], index: 0, kind: input, shape index: {}]   ;;  %s9968_s1 = inlined_call_operand.hbm [shape: bf16[784,1024], index: 1, kind: input, shape index: {}]   ;;  %s9969_s2 = inlined_call_operand.hbm [shape: f32[1,1024], index: 2, kind: input, shape index: {}]   ;;  %s9970_s3 = inlined_call_operand.hbm [shape: bf16[1024,512], index: 3, kind: input, shape index: {}]   ;;  %s9971_s4 = inlined_call_operand.hbm [shape: f32[1,512], index: 4, kind: input, shape index: {}]   ;;  %s9972_s5 = inlined_call_operand.hbm [shape: bf16[512,256], index: 5, kind: input, shape index: {}]   ;;  %s9973_s6 = inlined_call_operand.hbm [shape: f32[1,256], index: 6, kind: input, shape index: {}]   ;;  %s9974_s7 = inlined_call_operand.hbm [shape: f32[1,256], index: 7, kind: input, shape index: {}]   ;;  %s9975_s8 = inlined_call_operand.<no memory space> [shape: f32[1,1], index: 8, kind: input, shape index: {}]   ;;  %s9976_s9 = inlined_call_operand.vmem [shape: f32[8,1], index: 9, kind: output, shape index: {}]  }
   0x1   :  { %v14_v0 = vstv %s9975_s8 }
   0x2   :  { %15 = vst [vmem:[#allocation2] sm:$0x1] %v14_v0 }
   0x3   :  { %16 = vsyncpa [#allocation4], 0 }
   0x4   :  { %17 = vsyncpa [#allocation6], 0 }
   0x5   :  { %18 = vsyncpa [#allocation9], 0 }
   0x6   :  { %19 = vsyncpa [#allocation12], 0  ;;  %s36_s13 = sshll.u32 %s9968_s1, 4  ;;  %s37_s13 = int_to_ptr.hbm [resolvable:$true] %s36_s13 }
   0x7   :  { %20 = vsyncpa [#allocation15], 0  ;;  %s9601_s14 = smov [#allocation5]   ;;  %s60_s18 = sshll.u32 %s9970_s3, 4  ;;  %s61_s18 = int_to_ptr.hbm [resolvable:$true] %s60_s18 }
   0x8   :  { %s38_s15 = sshll.u32 %s9601_s14, 4  ;;  %s9602_s19 = smov 512   ;;  %s39_s15 = int_to_ptr.vmem [resolvable:$true] %s38_s15 }
   0x9   :  { %s9603_s8 = smov 32   ;;  %s9604_s20 = smov [#allocation8]  }
   0xa   :  { %44 = dma.hbm_to_vmem [thread:$0]  %s37_s13, 50176, %s39_s15, [#allocation6], %s9602_s19, %s9602_s19, %s9603_s8  }
   0xb   :  { %s62_s21 = sshll.u32 %s9604_s20, 4  ;;  %s9605_s22 = smov 256   ;;  %s63_s21 = int_to_ptr.vmem [resolvable:$true] %s62_s21 }
   0xc   :  { %s9606_s23 = smov 16   ;;  %s84_s25 = sshll.u32 %s9972_s5, 4  ;;  %s85_s25 = int_to_ptr.hbm [resolvable:$true] %s84_s25 }
   0xd   :  { %68 = dma.hbm_to_vmem [thread:$0]  %s61_s18, 32768, %s63_s21, [#allocation9], %s9605_s22, %s9605_s22, %s9606_s23  }
   0xe   :  { %s9607_s26 = smov [#allocation11]   ;;  %s26_s29 = sshll.u32 %s9967_s0, 4  ;;  %s27_s29 = int_to_ptr.hbm [resolvable:$true] %s26_s29 }
   0xf   :  { %s86_s27 = sshll.u32 %s9607_s26, 4  ;;  %s9608_s30 = smov 128   ;;  %s87_s27 = int_to_ptr.vmem [resolvable:$true] %s86_s27 }
  0x10   :  { %s9609_s10 = smov 8   ;;  %s9610_s11 = smov [#allocation3]  }
  0x11   :  { %92 = dma.hbm_to_vmem [thread:$0]  %s85_s25, 8192, %s87_s27, [#allocation12], %s9608_s30, %s9608_s30, %s9609_s10  }
  0x12   :  { %s28_s12 = sshll.u32 %s9610_s11, 4  ;;  %s50_s15 = sshll.u32 %s9969_s2, 4  ;;  %s29_s12 = int_to_ptr.vmem [resolvable:$true] %s28_s12  ;;  %s51_s15 = int_to_ptr.hbm [resolvable:$true] %s50_s15 }
  0x13   :  { %31 = dma.hbm_to_vmem [thread:$0]  %s27_s29, 896, %s29_s12, [#allocation4]  }
  0x14   :  { %s74_s17 = sshll.u32 %s9971_s4, 4  ;;  %s9611_s18 = smov [#allocation7]   ;;  %s75_s17 = int_to_ptr.hbm [resolvable:$true] %s74_s17 }
  0x15   :  { %s52_s19 = sshll.u32 %s9611_s18, 4  ;;  %s9612_s0 = smov [#allocation10]   ;;  %s53_s19 = int_to_ptr.vmem [resolvable:$true] %s52_s19 }
  0x16   :  { %55 = dma.hbm_to_vmem [thread:$0]  %s51_s15, 128, %s53_s19, [#allocation6]  }
  0x17   :  { %s76_s8 = sshll.u32 %s9612_s0, 4  ;;  %s98_s22 = sshll.u32 %s9973_s6, 4  ;;  %s77_s8 = int_to_ptr.vmem [resolvable:$true] %s76_s8  ;;  %s99_s22 = int_to_ptr.hbm [resolvable:$true] %s98_s22 }
  0x18   :  { %79 = dma.hbm_to_vmem [thread:$0]  %s75_s17, 64, %s77_s8, [#allocation9]  }
  0x19   :  { %s109_s1 = sshll.u32 %s9974_s7, 4  ;;  %s9613_s24 = smov [#allocation13]   ;;  %s110_s1 = int_to_ptr.hbm [resolvable:$true] %s109_s1 }
  0x1a   :  { %s100_s4 = sshll.u32 %s9613_s24, 4  ;;  %s9614_s25 = smov [#allocation14]   ;;  %s101_s4 = int_to_ptr.vmem [resolvable:$true] %s100_s4 }
  0x1b   :  { %103 = dma.hbm_to_vmem [thread:$0]  %s99_s22, 32, %s101_s4, [#allocation12]  }
  0x1c   :  { %s111_s26 = sshll.u32 %s9614_s25, 4  ;;  %s112_s26 = int_to_ptr.vmem [resolvable:$true] %s111_s26 }
  0x1d   :  { %114 = dma.hbm_to_vmem [thread:$0]  %s110_s1, 32, %s112_s26, [#allocation15]  }
  0x1e   :  { %9591 = dma.done.wait [#allocation4], 896  }
  0x1f   :  { %9592 = vsyncadd [#allocation4], 4294966400 }
  0x20   :  { %9593 = dma.done.wait [#allocation6], 50304  }
  0x21   :  { %9594 = vsyncadd [#allocation6], 4294916992 }
  0x22   :  { %9595 = dma.done.wait [#allocation9], 32832  }
  0x23   :  { %9596 = vsyncadd [#allocation9], 4294934464 }
  0x24   :  { %9597 = dma.done.wait [#allocation12], 8224  }
  0x25   :  { %9598 = vsyncadd [#allocation12], 4294959072 }
  0x26   :  { %9599 = dma.done.wait [#allocation15], 32  }
  0x27   :  { %9600 = vsyncadd [#allocation15], 4294967264  ;;  %v6034_v1 = vld [vmem:[#allocation5 + $0x1c0] sm:$0xf]  ;;  %vm2534_vm0 = vcmask 130048   ;;  %vm5797_vm4 = vcmask 7168  }
  0x28   :  { %v8725_v2 = vld [vmem:[#allocation5 + $0x1dc] sm:$0xf0] }
  0x29   :  { %v6290_v3 = vld [vmem:[#allocation5 + $0x3c0] sm:$0xf]  ;;  %v6035_v4 = vor.u32 %v8725_v2, %v6034_v1 }
  0x2a   :  { %v8789_v5 = vld [vmem:[#allocation5 + $0x3dc] sm:$0xf0] }
  0x2b   :  { %v6546_v6 = vld [vmem:[#allocation5 + $0x5c0] sm:$0xf]  ;;  %v6291_v8 = vor.u32 %v8789_v5, %v6290_v3  ;;  %2538 = vmatpush.bf16.msra.mxu0 %v6035_v4 }
  0x2c   :  { %v8853_v7 = vld [vmem:[#allocation5 + $0x5dc] sm:$0xf0] }
  0x2d   :  { %v6547_v9 = vor.u32 %v8853_v7, %v6546_v6  ;;  %v6802_v10 = vld [vmem:[#allocation5 + $0x7c0] sm:$0xf]  ;;  %2551 = vmatpush.bf16.msra.mxu1 %v6291_v8 }
  0x2e   :  { %v8917_v11 = vld [vmem:[#allocation5 + $0x7dc] sm:$0xf0] }
  0x2f   :  { %v6002_v12 = vld [vmem:[#allocation5 + $0x180] sm:$0xf]  ;;  %v6803_v13 = vor.u32 %v8917_v11, %v6802_v10  ;;  %2564 = vmatpush.bf16.msra.mxu2 %v6547_v9 }
  0x30   :  { %v8717_v14 = vld [vmem:[#allocation5 + $0x19c] sm:$0xf0] }
  0x31   :  { %v6258_v15 = vld [vmem:[#allocation5 + $0x380] sm:$0xf]  ;;  %v6003_v17 = vor.u32 %v8717_v14, %v6002_v12  ;;  %2577 = vmatpush.bf16.msra.mxu3 %v6803_v13 }
  0x32   :  { %v8781_v16 = vld [vmem:[#allocation5 + $0x39c] sm:$0xf0] }
  0x33   :  { %v6259_v18 = vor.u32 %v8781_v16, %v6258_v15  ;;  %v6514_v19 = vld [vmem:[#allocation5 + $0x580] sm:$0xf]  ;;  %2539 = vmatpush.bf16.msra.mxu0 %v6003_v17 }
  0x34   :  { %v8845_v20 = vld [vmem:[#allocation5 + $0x59c] sm:$0xf0] }
  0x35   :  { %v6770_v21 = vld [vmem:[#allocation5 + $0x780] sm:$0xf]  ;;  %v6515_v22 = vor.u32 %v8845_v20, %v6514_v19  ;;  %2552 = vmatpush.bf16.msra.mxu1 %v6259_v18 }
  0x36   :  { %v8909_v23 = vld [vmem:[#allocation5 + $0x79c] sm:$0xf0] }
  0x37   :  { %v5970_v24 = vld [vmem:[#allocation5 + $0x140] sm:$0xf]  ;;  %v6771_v26 = vor.u32 %v8909_v23, %v6770_v21  ;;  %2565 = vmatpush.bf16.msra.mxu2 %v6515_v22 }
  0x38   :  { %v8709_v25 = vld [vmem:[#allocation5 + $0x15c] sm:$0xf0] }
  0x39   :  { %v6226_v27 = vld [vmem:[#allocation5 + $0x340] sm:$0xf]  ;;  %v5971_v30 = vor.u32 %v8709_v25, %v5970_v24  ;;  %2578 = vmatpush.bf16.msra.mxu3 %v6771_v26 }
  0x3a   :  { %v8773_v28 = vld [vmem:[#allocation5 + $0x35c] sm:$0xf0] }
  0x3b   :  { %v6482_v29 = vld [vmem:[#allocation5 + $0x540] sm:$0xf]  ;;  %v6227_v34 = vor.u32 %v8773_v28, %v6226_v27  ;;  %2540 = vmatpush.bf16.msra.mxu0 %v5971_v30 }
  0x3c   :  { %v8837_v31 = vld [vmem:[#allocation5 + $0x55c] sm:$0xf0] }
  0x3d   :  { %v6738_v32 = vld [vmem:[#allocation5 + $0x740] sm:$0xf]  ;;  %v6483_v35 = vor.u32 %v8837_v31, %v6482_v29  ;;  %2553 = vmatpush.bf16.msra.mxu1 %v6227_v34  ;;  %v8721_v34 = vld [vmem:[#allocation5 + $0x1c4] sm:$0xf] }
  0x3e   :  { %v8901_v33 = vld [vmem:[#allocation5 + $0x75c] sm:$0xf0] }
  0x3f   :  { %v5938_v36 = vld [vmem:[#allocation5 + $0x100] sm:$0xf]  ;;  %v6739_v39 = vor.u32 %v8901_v33, %v6738_v32  ;;  %2566 = vmatpush.bf16.msra.mxu2 %v6483_v35  ;;  %v6036_v35 = vld [vmem:[#allocation5 + $0x1e0] sm:$0xf0] }
  0x40   :  { %v8701_v37 = vld [vmem:[#allocation5 + $0x11c] sm:$0xf0] }
  0x41   :  { %v6194_v38 = vld [vmem:[#allocation5 + $0x300] sm:$0xf]  ;;  %v5939_v45 = vor.u32 %v8701_v37, %v5938_v36  ;;  %2579 = vmatpush.bf16.msra.mxu3 %v6739_v39  ;;  %v152_v36 = vld [vmem:[#allocation3 + $0x10] sm:$0xff] }
  0x42   :  { %v8765_v40 = vld [vmem:[#allocation5 + $0x31c] sm:$0xf0] }
  0x43   :  { %v6450_v41 = vld [vmem:[#allocation5 + $0x500] sm:$0xf]  ;;  %v6195_v46 = vor.u32 %v8765_v40, %v6194_v38  ;;  %2541 = vmatpush.bf16.msra.mxu0 %v5939_v45  ;;  %v6292_v45 = vld [vmem:[#allocation5 + $0x3e0] sm:$0xf0] }
  0x44   :  { %v8829_v42 = vld [vmem:[#allocation5 + $0x51c] sm:$0xf0] }
  0x45   :  { %v6706_v43 = vld [vmem:[#allocation5 + $0x700] sm:$0xf]  ;;  %v6451_v47 = vor.u32 %v8829_v42, %v6450_v41  ;;  %2554 = vmatpush.bf16.msra.mxu1 %v6195_v46  ;;  %v150_v41 = vld [vmem:[#allocation3] sm:$0xff] }
  0x46   :  { %v8893_v44 = vld [vmem:[#allocation5 + $0x71c] sm:$0xf0] }
  0x47   :  { %v5906_v48 = vld [vmem:[#allocation5 + $0xc0] sm:$0xf]  ;;  %v6707_v51 = vor.u32 %v8893_v44, %v6706_v43  ;;  %2567 = vmatpush.bf16.msra.mxu2 %v6451_v47  ;;  %v8785_v44 = vld [vmem:[#allocation5 + $0x3c4] sm:$0xf] }
  0x48   :  { %v8693_v49 = vld [vmem:[#allocation5 + $0xdc] sm:$0xf0] }
  0x49   :  { %v6162_v50 = vld [vmem:[#allocation5 + $0x2c0] sm:$0xf]  ;;  %v5907_v57 = vor.u32 %v8693_v49, %v5906_v48  ;;  %2580 = vmatpush.bf16.msra.mxu3 %v6707_v51  ;;  %v6039_v48 = vor.u32 %v8721_v34, %v6036_v35 }
  0x4a   :  { %v8757_v52 = vld [vmem:[#allocation5 + $0x2dc] sm:$0xf0] }
  0x4b   :  { %v6418_v53 = vld [vmem:[#allocation5 + $0x4c0] sm:$0xf]  ;;  %v6163_v58 = vor.u32 %v8757_v52, %v6162_v50  ;;  %2542 = vmatpush.bf16.msra.mxu0 %v5907_v57  ;;  %v9692_v52 = vpack.c.bf16 %v152_v36, %v152_v36  ;;  %v8753_v36 = vld [vmem:[#allocation5 + $0x2c4] sm:$0xf] }
  0x4c   :  { %v8821_v54 = vld [vmem:[#allocation5 + $0x4dc] sm:$0xf0] }
  0x4d   :  { %v6674_v55 = vld [vmem:[#allocation5 + $0x6c0] sm:$0xf]  ;;  %v6419_v59 = vor.u32 %v8821_v54, %v6418_v53  ;;  %2555 = vmatpush.bf16.msra.mxu1 %v6163_v58  ;;  %v8713_v54 = vld [vmem:[#allocation5 + $0x184] sm:$0xf] }
  0x4e   :  { %v8885_v56 = vld [vmem:[#allocation5 + $0x6dc] sm:$0xf0] }
  0x4f   :  { %v5874_v60 = vld [vmem:[#allocation5 + $0x80] sm:$0xf]  ;;  %v6675_v63 = vor.u32 %v8885_v56, %v6674_v55  ;;  %2568 = vmatpush.bf16.msra.mxu2 %v6419_v59  ;;  %v6004_v55 = vld [vmem:[#allocation5 + $0x1a0] sm:$0xf0]  ;;  %v9694_v56 = vpack.c.bf16 %v150_v41, %v150_v41  ;;  %v151_v59 = vld [vmem:[#allocation3 + $0x8] sm:$0xff] }
  0x50   :  { %v8685_v61 = vld [vmem:[#allocation5 + $0x9c] sm:$0xf0] }
  0x51   :  { %v6130_v62 = vld [vmem:[#allocation5 + $0x280] sm:$0xf]  ;;  %v5875_v5 = vor.u32 %v8685_v61, %v5874_v60  ;;  %2581 = vmatpush.bf16.msra.mxu3 %v6675_v63  ;;  %v6295_v60 = vor.u32 %v8785_v44, %v6292_v45  ;;  %v6260_v63 = vld [vmem:[#allocation5 + $0x3a0] sm:$0xf0] }
  0x52   :  { %v8749_v0 = vld [vmem:[#allocation5 + $0x29c] sm:$0xf0]  ;;  %v8681_v44 = vld [vmem:[#allocation5 + $0x84] sm:$0xf] }
  0x53   :  { %v6386_v1 = vld [vmem:[#allocation5 + $0x480] sm:$0xf]  ;;  %v6131_v6 = vor.u32 %v8749_v0, %v6130_v62  ;;  %2543 = vmatpush.bf16.msra.mxu0 %v5875_v5  ;;  %v8777_v62 = vld [vmem:[#allocation5 + $0x384] sm:$0xf] }
  0x54   :  { %v8813_v2 = vld [vmem:[#allocation5 + $0x49c] sm:$0xf0]  ;;  %v5876_v45 = vld [vmem:[#allocation5 + $0xa0] sm:$0xf0] }
  0x55   :  { %v6642_v3 = vld [vmem:[#allocation5 + $0x680] sm:$0xf]  ;;  %v6387_v7 = vor.u32 %v8813_v2, %v6386_v1  ;;  %2556 = vmatpush.bf16.msra.mxu1 %v6131_v6  ;;  %v6007_v1 = vor.u32 %v8713_v54, %v6004_v55  ;;  %v8705_v6 = vld [vmem:[#allocation5 + $0x144] sm:$0xf] }
  0x56   :  { %v8877_v4 = vld [vmem:[#allocation5 + $0x69c] sm:$0xf0] }
  0x57   :  { %v5842_v8 = vld [vmem:[#allocation5 + $0x40] sm:$0xf]  ;;  %v6643_v11 = vor.u32 %v8877_v4, %v6642_v3  ;;  %2569 = vmatpush.bf16.msra.mxu2 %v6387_v7  ;;  %v5972_v7 = vld [vmem:[#allocation5 + $0x160] sm:$0xf0] }
  0x58   :  { %v8677_v9 = vld [vmem:[#allocation5 + $0x5c] sm:$0xf0] }
  0x59   :  { %v6098_v10 = vld [vmem:[#allocation5 + $0x240] sm:$0xf]  ;;  %v5843_v17 = vor.u32 %v8677_v9, %v5842_v8  ;;  %2582 = vmatpush.bf16.msra.mxu3 %v6643_v11  ;;  %v9700_v8 = vpack.c.bf16 %v151_v59, %v151_v59  ;;  %v6263_v9 = vor.u32 %v8777_v62, %v6260_v63  ;;  %v8769_v11 = vld [vmem:[#allocation5 + $0x344] sm:$0xf] }
  0x5a   :  { %v8741_v12 = vld [vmem:[#allocation5 + $0x25c] sm:$0xf0] }
  0x5b   :  { %v6354_v13 = vld [vmem:[#allocation5 + $0x440] sm:$0xf]  ;;  %v6099_v21 = vor.u32 %v8741_v12, %v6098_v10  ;;  %2544 = vmatpush.bf16.msra.mxu0 %v5843_v17  ;;  %v6228_v12 = vld [vmem:[#allocation5 + $0x360] sm:$0xf0] }
  0x5c   :  { %v8805_v14 = vld [vmem:[#allocation5 + $0x45c] sm:$0xf0] }
  0x5d   :  { %v6610_v15 = vld [vmem:[#allocation5 + $0x640] sm:$0xf]  ;;  %v6355_v22 = vor.u32 %v8805_v14, %v6354_v13  ;;  %2557 = vmatpush.bf16.msra.mxu1 %v6099_v21  ;;  %v5975_v14 = vor.u32 %v8705_v6, %v5972_v7  ;;  %v6231_v21 = vor.u32 %v8769_v11, %v6228_v12  ;;  %v8849_v11 = vld [vmem:[#allocation5 + $0x5c4] sm:$0xf] }
  0x5e   :  { %v8869_v16 = vld [vmem:[#allocation5 + $0x65c] sm:$0xf0]  ;;  %v6548_v12 = vld [vmem:[#allocation5 + $0x5e0] sm:$0xf0] }
  0x5f   :  { %v5810_v18 = vld [vmem:[#allocation5] sm:$0xf]  ;;  %v6611_v26 = vor.u32 %v8869_v16, %v6610_v15  ;;  %2570 = vmatpush.bf16.msra.mxu2 %v6355_v22 }
  0x60   :  { %v8669_v19 = vld [vmem:[#allocation5 + $0x1c] sm:$0xf0] }
  0x61   :  { %v6066_v20 = vld [vmem:[#allocation5 + $0x200] sm:$0xf]  ;;  %v5811_v33 = vor.u32 %v8669_v19, %v5810_v18  ;;  %2583 = vmatpush.bf16.msra.mxu3 %v6611_v26  ;;  %v8697_v19 = vld [vmem:[#allocation5 + $0x104] sm:$0xf] }
  0x62   :  { %v8733_v23 = vld [vmem:[#allocation5 + $0x21c] sm:$0xf0] }
  0x63   :  { %v6322_v24 = vld [vmem:[#allocation5 + $0x400] sm:$0xf]  ;;  %v6067_v37 = vor.u32 %v8733_v23, %v6066_v20  ;;  %2545 = vmatpush.bf16.msra.mxu0 %v5811_v33  ;;  %v5940_v20 = vld [vmem:[#allocation5 + $0x120] sm:$0xf0]  ;;  %v156_v33 = vld [vmem:[#allocation3 + $0x30] sm:$0xff] }
  0x64   :  { %v8797_v25 = vld [vmem:[#allocation5 + $0x41c] sm:$0xf0]  ;;  %v8761_v23 = vld [vmem:[#allocation5 + $0x304] sm:$0xf]  ;;  %v5943_v26 = vor.u32 %v8697_v19, %v5940_v20  ;;  %v154_v19 = vld [vmem:[#allocation3 + $0x20] sm:$0xff] }
  0x65   :  { %v6578_v27 = vld [vmem:[#allocation5 + $0x600] sm:$0xf]  ;;  %v6323_v38 = vor.u32 %v8797_v25, %v6322_v24  ;;  %2558 = vmatpush.bf16.msra.mxu1 %v6067_v37  ;;  %v6196_v24 = vld [vmem:[#allocation5 + $0x320] sm:$0xf0] }
  0x66   :  { %v8861_v28 = vld [vmem:[#allocation5 + $0x61c] sm:$0xf0]  ;;  %2546 = vmatmul.bf16.vlgmr.msra.gmra.mxu0 %v9694_v56  ;;  %v6199_v34 = vor.u32 %v8761_v23, %v6196_v24  ;;  %v6164_v37 = vld [vmem:[#allocation5 + $0x2e0] sm:$0xf0]  ;;  %v155_v24 = vld [vmem:[#allocation3 + $0x28] sm:$0xff] }
  0x67   :  { %v7058_v29 = vld [vmem:[#allocation5 + $0x9c0] sm:$0xf]  ;;  %v6579_v42 = vor.u32 %v8861_v28, %v6578_v27  ;;  %2571 = vmatpush.bf16.msra.mxu2 %v6323_v38  ;;  %v6068_v23 = vld [vmem:[#allocation5 + $0x220] sm:$0xf0] }
  0x68   :  { %v8981_v30 = vld [vmem:[#allocation5 + $0x9dc] sm:$0xf0]  ;;  %2559 = vmatmul.bf16.vlgmr.msra.gmra.mxu1 %v9700_v8 }
  0x69   :  { %v7314_v31 = vld [vmem:[#allocation5 + $0xbc0] sm:$0xf]  ;;  %v7059_v43 = vor.u32 %v8981_v30, %v7058_v29  ;;  %2584 = vmatpush.bf16.msra.mxu3 %v6579_v42 }
  0x6a   :  { %v9045_v32 = vld [vmem:[#allocation5 + $0xbdc] sm:$0xf0]  ;;  %2572 = vmatmul.bf16.vlgmr.msra.gmra.mxu2 %v9692_v52 }
  0x6b   :  { %v7346_v39 = vld [vmem:[#allocation5 + $0xc00] sm:$0xf]  ;;  %v7315_v47 = vor.u32 %v9045_v32, %v7314_v31  ;;  %2590 = vmatpush.bf16.msrb.mxu0 %v7059_v43  ;;  %v8689_v31 = vld [vmem:[#allocation5 + $0xc4] sm:$0xf] }
  0x6c   :  { %v9053_v40 = vld [vmem:[#allocation5 + $0xc1c] sm:$0xf0]  ;;  %v5908_v32 = vld [vmem:[#allocation5 + $0xe0] sm:$0xf0] }
  0x6d   :  { %v153_v46 = vld [vmem:[#allocation3 + $0x18] sm:$0xff]  ;;  %v7347_v57 = vor.u32 %v9053_v40, %v7346_v39  ;;  %2603 = vmatpush.bf16.msrb.mxu1 %v7315_v47  ;;  %2629 = vmatpush.bf16.msrb.mxu3 %v6039_v48  ;;  %v5911_v39 = vor.u32 %v8689_v31, %v5908_v32  ;;  %v6167_v47 = vor.u32 %v8753_v36, %v6164_v37 }
  0x6e   :  { %v7026_v49 = vld [vmem:[#allocation5 + $0x980] sm:$0xf]  ;;  %v9696_v58 = vpack.c.bf16 %v153_v46, %v153_v46  ;;  %v9704_v46 = vpack.c.bf16 %v156_v33, %v156_v33  ;;  %v9708_v31 = vpack.c.bf16 %v154_v19, %v154_v19  ;;  %v6516_v32 = vld [vmem:[#allocation5 + $0x5a0] sm:$0xf0]  ;;  %v9710_v36 = vpack.c.bf16 %v155_v24, %v155_v24 }
  0x6f   :  { %v8973_v50 = vld [vmem:[#allocation5 + $0x99c] sm:$0xf0]  ;;  %2623 = vmatpush.bf16.msrb.mxu2 %v7347_v57  ;;  %v8905_v33 = vld [vmem:[#allocation5 + $0x784] sm:$0xf] }
  0x70   :  { %v7282_v51 = vld [vmem:[#allocation5 + $0xb80] sm:$0xf]  ;;  %v7027_v61 = vor.u32 %v8973_v50, %v7026_v49  ;;  %2585 = vmatmul.bf16.vlgmr.msra.gmra.mxu3 %v9696_v58  ;;  %v8745_v49 = vld [vmem:[#allocation5 + $0x284] sm:$0xf] }
  0x71   :  { %v9037_v53 = vld [vmem:[#allocation5 + $0xb9c] sm:$0xf0]  ;;  %2630 = vmatpush.bf16.msrb.mxu3 %v6007_v1  ;;  %v6132_v50 = vld [vmem:[#allocation5 + $0x2a0] sm:$0xf0] }
  0x72   :  { %v7283_v0 = vor.u32 %v9037_v53, %v7282_v51  ;;  %v6994_v2 = vld [vmem:[#allocation5 + $0x940] sm:$0xf]  ;;  %2591 = vmatpush.bf16.msrb.mxu0 %v7027_v61  ;;  %v5879_v53 = vor.u32 %v8681_v44, %v5876_v45  ;;  %v5844_v61 = vld [vmem:[#allocation5 + $0x60] sm:$0xf0]  ;;  %v6135_v62 = vor.u32 %v8745_v49, %v6132_v50 }
  0x73   :  { %v8965_v3 = vld [vmem:[#allocation5 + $0x95c] sm:$0xf0]  ;;  %2642 = vmatpush.bf16.msra.mxu2 %v6295_v60  ;;  %v8673_v60 = vld [vmem:[#allocation5 + $0x44] sm:$0xf] }
  0x74   :  { %v7250_v4 = vld [vmem:[#allocation5 + $0xb40] sm:$0xf]  ;;  %v6995_v10 = vor.u32 %v8965_v3, %v6994_v2  ;;  %2604 = vmatpush.bf16.msrb.mxu1 %v7283_v0  ;;  %v8737_v0 = vld [vmem:[#allocation5 + $0x244] sm:$0xf] }
  0x75   :  { %v9029_v5 = vld [vmem:[#allocation5 + $0xb5c] sm:$0xf0]  ;;  %2631 = vmatpush.bf16.msrb.mxu3 %v5975_v14  ;;  %v6100_v1 = vld [vmem:[#allocation5 + $0x260] sm:$0xf0] }
  0x76   :  { %v7251_v13 = vor.u32 %v9029_v5, %v7250_v4  ;;  %v6962_v15 = vld [vmem:[#allocation5 + $0x900] sm:$0xf]  ;;  %2592 = vmatpush.bf16.msrb.mxu0 %v6995_v10  ;;  %v5847_v4 = vor.u32 %v8673_v60, %v5844_v61  ;;  %v5812_v10 = vld [vmem:[#allocation5 + $0x20] sm:$0xf0] }
  0x77   :  { %v8957_v16 = vld [vmem:[#allocation5 + $0x91c] sm:$0xf0]  ;;  %2643 = vmatpush.bf16.msra.mxu2 %v6263_v9  ;;  %v8665_v9 = vld [vmem:[#allocation5 + $0x4] sm:$0xf] }
  0x78   :  { %v7218_v17 = vld [vmem:[#allocation5 + $0xb00] sm:$0xf]  ;;  %v6963_v22 = vor.u32 %v8957_v16, %v6962_v15  ;;  %2605 = vmatpush.bf16.msrb.mxu1 %v7251_v13  ;;  %v8913_v13 = vld [vmem:[#allocation5 + $0x7c4] sm:$0xf]  ;;  %v6103_v15 = vor.u32 %v8737_v0, %v6100_v1 }
  0x79   :  { %v9021_v18 = vld [vmem:[#allocation5 + $0xb1c] sm:$0xf0]  ;;  %2632 = vmatpush.bf16.msrb.mxu3 %v5943_v26  ;;  %v6804_v14 = vld [vmem:[#allocation5 + $0x7e0] sm:$0xf0] }
  0x7a   :  { %v7219_v25 = vor.u32 %v9021_v18, %v7218_v17  ;;  %v6930_v27 = vld [vmem:[#allocation5 + $0x8c0] sm:$0xf]  ;;  %2593 = vmatpush.bf16.msrb.mxu0 %v6963_v22  ;;  %7376 = vmatmul.msk.bf16.vlgmr.msrb.gmra.mxu2 %vm2534_vm0, %v9704_v46  ;;  %v8977_v17 = vld [vmem:[#allocation5 + $0x9c4] sm:$0xf]  ;;  %v6807_v26 = vor.u32 %v8913_v13, %v6804_v14 }
  0x7b   :  { %v8949_v28 = vld [vmem:[#allocation5 + $0x8dc] sm:$0xf0]  ;;  %2644 = vmatpush.bf16.msra.mxu2 %v6231_v21  ;;  %v7060_v18 = vld [vmem:[#allocation5 + $0x9e0] sm:$0xf0]  ;;  %v5815_v21 = vor.u32 %v8665_v9, %v5812_v10 }
  0x7c   :  { %v7186_v29 = vld [vmem:[#allocation5 + $0xac0] sm:$0xf]  ;;  %v6931_v35 = vor.u32 %v8949_v28, %v6930_v27  ;;  %2606 = vmatpush.bf16.msrb.mxu1 %v7219_v25  ;;  %v8729_v22 = vld [vmem:[#allocation5 + $0x204] sm:$0xf]  ;;  %v6551_v25 = vor.u32 %v8849_v11, %v6548_v12 }
  0x7d   :  { %v9013_v30 = vld [vmem:[#allocation5 + $0xadc] sm:$0xf0]  ;;  %2633 = vmatpush.bf16.msrb.mxu3 %v5911_v39  ;;  %v9041_v27 = vld [vmem:[#allocation5 + $0xbc4] sm:$0xf] }
  0x7e   :  { %v7187_v38 = vor.u32 %v9013_v30, %v7186_v29  ;;  %v6898_v40 = vld [vmem:[#allocation5 + $0x880] sm:$0xf]  ;;  %2594 = vmatpush.bf16.msrb.mxu0 %v6931_v35  ;;  %v7316_v28 = vld [vmem:[#allocation5 + $0xbe0] sm:$0xf0]  ;;  %v7063_v30 = vor.u32 %v8977_v17, %v7060_v18  ;;  %v6071_v35 = vor.u32 %v8729_v22, %v6068_v23 }
  0x7f   :  { %v8941_v41 = vld [vmem:[#allocation5 + $0x89c] sm:$0xf0]  ;;  %2645 = vmatpush.bf16.msra.mxu2 %v6199_v34  ;;  %v8841_v29 = vld [vmem:[#allocation5 + $0x584] sm:$0xf]  ;;  %v7319_v39 = vor.u32 %v9041_v27, %v7316_v28 }
  0x80   :  { %v7154_v42 = vld [vmem:[#allocation5 + $0xa80] sm:$0xf]  ;;  %v6899_v48 = vor.u32 %v8941_v41, %v6898_v40  ;;  %2607 = vmatpush.bf16.msrb.mxu1 %v7187_v38  ;;  %v6772_v34 = vld [vmem:[#allocation5 + $0x7a0] sm:$0xf0]  ;;  %v6519_v40 = vor.u32 %v8841_v29, %v6516_v32 }
  0x81   :  { %v9005_v43 = vld [vmem:[#allocation5 + $0xa9c] sm:$0xf0]  ;;  %2634 = vmatpush.bf16.msrb.mxu3 %v5879_v53  ;;  %v8969_v37 = vld [vmem:[#allocation5 + $0x984] sm:$0xf]  ;;  %v6775_v41 = vor.u32 %v8905_v33, %v6772_v34 }
  0x82   :  { %v7155_v51 = vor.u32 %v9005_v43, %v7154_v42  ;;  %v6866_v54 = vld [vmem:[#allocation5 + $0x840] sm:$0xf]  ;;  %2595 = vmatpush.bf16.msrb.mxu0 %v6899_v48  ;;  %v7028_v38 = vld [vmem:[#allocation5 + $0x9a0] sm:$0xf0] }
  0x83   :  { %v8933_v55 = vld [vmem:[#allocation5 + $0x85c] sm:$0xf0]  ;;  %2646 = vmatpush.bf16.msra.mxu2 %v6167_v47  ;;  %v9033_v42 = vld [vmem:[#allocation5 + $0xb84] sm:$0xf]  ;;  %v7031_v45 = vor.u32 %v8969_v37, %v7028_v38 }
  0x84   :  { %v7122_v57 = vld [vmem:[#allocation5 + $0xa40] sm:$0xf]  ;;  %v6867_v63 = vor.u32 %v8933_v55, %v6866_v54  ;;  %2608 = vmatpush.bf16.msrb.mxu1 %v7155_v51  ;;  %v7284_v43 = vld [vmem:[#allocation5 + $0xba0] sm:$0xf0] }
  0x85   :  { %v8997_v59 = vld [vmem:[#allocation5 + $0xa5c] sm:$0xf0]  ;;  %2635 = vmatpush.bf16.msrb.mxu3 %v5847_v4  ;;  %v8833_v44 = vld [vmem:[#allocation5 + $0x544] sm:$0xf]  ;;  %v7287_v53 = vor.u32 %v9033_v42, %v7284_v43 }
  0x86   :  { %v6834_v2 = vld [vmem:[#allocation5 + $0x800] sm:$0xf]  ;;  %v7123_v3 = vor.u32 %v8997_v59, %v7122_v57  ;;  %2596 = vmatpush.bf16.msrb.mxu0 %v6867_v63  ;;  %v6484_v47 = vld [vmem:[#allocation5 + $0x560] sm:$0xf0] }
  0x87   :  { %v8925_v5 = vld [vmem:[#allocation5 + $0x81c] sm:$0xf0]  ;;  %2647 = vmatpush.bf16.msra.mxu2 %v6135_v62  ;;  %v8897_v48 = vld [vmem:[#allocation5 + $0x744] sm:$0xf]  ;;  %v6487_v54 = vor.u32 %v8833_v44, %v6484_v47 }
  0x88   :  { %v7090_v6 = vld [vmem:[#allocation5 + $0xa00] sm:$0xf]  ;;  %v6835_v16 = vor.u32 %v8925_v5, %v6834_v2  ;;  %2609 = vmatpush.bf16.msrb.mxu1 %v7123_v3  ;;  %v6740_v49 = vld [vmem:[#allocation5 + $0x760] sm:$0xf0] }
  0x89   :  { %v8989_v7 = vld [vmem:[#allocation5 + $0xa1c] sm:$0xf0]  ;;  %2636 = vmatpush.bf16.msrb.mxu3 %v5815_v21  ;;  %v8961_v50 = vld [vmem:[#allocation5 + $0x944] sm:$0xf]  ;;  %v6743_v55 = vor.u32 %v8897_v48, %v6740_v49 }
  0x8a   :  { %v7091_v20 = vor.u32 %v8989_v7, %v7090_v6  ;;  %2597 = vmatpush.bf16.msrb.mxu0 %v6835_v16  ;;  %v6996_v51 = vld [vmem:[#allocation5 + $0x960] sm:$0xf0] }
  0x8b   :  { %2648 = vmatpush.bf16.msra.mxu2 %v6103_v15  ;;  %v9025_v57 = vld [vmem:[#allocation5 + $0xb44] sm:$0xf]  ;;  %v6999_v61 = vor.u32 %v8961_v50, %v6996_v51 }
  0x8c   :  { %2610 = vmatpush.bf16.msrb.mxu1 %v7091_v20  ;;  %2637 = vmatmul.bf16.vlgmr.msrb.gmra.mxu3 %v9694_v56  ;;  %v7252_v59 = vld [vmem:[#allocation5 + $0xb60] sm:$0xf0] }
  0x8d   :  { %2681 = vmatpush.bf16.msra.mxu3 %v7063_v30  ;;  %2598 = vmatmul.bf16.vlgmr.msrb.gmra.mxu0 %v9708_v31  ;;  %v8825_v60 = vld [vmem:[#allocation5 + $0x504] sm:$0xf]  ;;  %v7255_v3 = vor.u32 %v9025_v57, %v7252_v59  ;;  %v6042_v57 = vld [vmem:[#allocation5 + $0x1c8] sm:$0xf] }
  0x8e   :  { %2655 = vmatpush.bf16.msra.mxu0 %v6551_v25  ;;  %v6452_v62 = vld [vmem:[#allocation5 + $0x520] sm:$0xf0]  ;;  %v8726_v59 = vld [vmem:[#allocation5 + $0x1e4] sm:$0xf0] }
  0x8f   :  { %2649 = vmatpush.bf16.msra.mxu2 %v6071_v35  ;;  %2611 = vmatmul.bf16.vlgmr.msrb.gmra.mxu1 %v9710_v36  ;;  %v8889_v63 = vld [vmem:[#allocation5 + $0x704] sm:$0xf]  ;;  %v6455_v4 = vor.u32 %v8825_v60, %v6452_v62  ;;  %v6554_v60 = vld [vmem:[#allocation5 + $0x5c8] sm:$0xf] }
  0x90   :  { %2668 = vmatpush.bf16.msra.mxu1 %v6807_v26  ;;  %v6708_v0 = vld [vmem:[#allocation5 + $0x720] sm:$0xf0]  ;;  %v8854_v62 = vld [vmem:[#allocation5 + $0x5e4] sm:$0xf0] }
  0x91   :  { %2682 = vmatpush.bf16.msra.mxu3 %v7031_v45  ;;  %v8953_v1 = vld [vmem:[#allocation5 + $0x904] sm:$0xf]  ;;  %v6711_v5 = vor.u32 %v8889_v63, %v6708_v0 }
  0x92   :  { %2656 = vmatpush.bf16.msra.mxu0 %v6519_v40  ;;  %2650 = vmatmul.bf16.vlgmr.msra.gmra.mxu2 %v9700_v8  ;;  %v6964_v2 = vld [vmem:[#allocation5 + $0x920] sm:$0xf0] }
  0x93   :  { %2694 = vmatpush.bf16.msrb.mxu2 %v7319_v39  ;;  %v9017_v6 = vld [vmem:[#allocation5 + $0xb04] sm:$0xf]  ;;  %v6967_v10 = vor.u32 %v8953_v1, %v6964_v2 }
  0x94   :  { %2669 = vmatpush.bf16.msra.mxu1 %v6775_v41  ;;  %v7220_v7 = vld [vmem:[#allocation5 + $0xb20] sm:$0xf0] }
  0x95   :  { %v8817_v9 = vld [vmem:[#allocation5 + $0x4c4] sm:$0xf]  ;;  %2683 = vmatpush.bf16.msra.mxu3 %v6999_v61  ;;  %v7223_v16 = vor.u32 %v9017_v6, %v7220_v7  ;;  %v6043_v6 = vor.u32 %v8726_v59, %v6042_v57  ;;  %v6810_v7 = vld [vmem:[#allocation5 + $0x7c8] sm:$0xf] }
  0x96   :  { %2657 = vmatpush.bf16.msra.mxu0 %v6487_v54  ;;  %v6420_v11 = vld [vmem:[#allocation5 + $0x4e0] sm:$0xf0]  ;;  %v8694_v57 = vld [vmem:[#allocation5 + $0xe4] sm:$0xf0] }
  0x97   :  { %2695 = vmatpush.bf16.msrb.mxu2 %v7287_v53  ;;  %v8881_v12 = vld [vmem:[#allocation5 + $0x6c4] sm:$0xf]  ;;  %v6423_v17 = vor.u32 %v8817_v9, %v6420_v11  ;;  %v8918_v9 = vld [vmem:[#allocation5 + $0x7e4] sm:$0xf0] }
  0x98   :  { %2670 = vmatpush.bf16.msra.mxu1 %v6743_v55  ;;  %v6676_v13 = vld [vmem:[#allocation5 + $0x6e0] sm:$0xf0]  ;;  %v6426_v59 = vld [vmem:[#allocation5 + $0x4c8] sm:$0xf] }
  0x99   :  { %v8945_v14 = vld [vmem:[#allocation5 + $0x8c4] sm:$0xf]  ;;  %v6679_v18 = vor.u32 %v8881_v12, %v6676_v13  ;;  %2684 = vmatpush.bf16.msra.mxu3 %v6967_v10  ;;  %v6555_v10 = vor.u32 %v8854_v62, %v6554_v60  ;;  %v6298_v12 = vld [vmem:[#allocation5 + $0x3c8] sm:$0xf] }
  0x9a   :  { %v6932_v15 = vld [vmem:[#allocation5 + $0x8e0] sm:$0xf0]  ;;  %2658 = vmatpush.bf16.msra.mxu0 %v6455_v4  ;;  %v8790_v13 = vld [vmem:[#allocation5 + $0x3e4] sm:$0xf0] }
  0x9b   :  { %2696 = vmatpush.bf16.msrb.mxu2 %v7255_v3  ;;  %v9009_v19 = vld [vmem:[#allocation5 + $0xac4] sm:$0xf]  ;;  %v6935_v22 = vor.u32 %v8945_v14, %v6932_v15  ;;  %v6010_v14 = vld [vmem:[#allocation5 + $0x188] sm:$0xf] }
  0x9c   :  { %2671 = vmatpush.bf16.msra.mxu1 %v6711_v5  ;;  %v7188_v20 = vld [vmem:[#allocation5 + $0xae0] sm:$0xf0]  ;;  %v8822_v60 = vld [vmem:[#allocation5 + $0x4e4] sm:$0xf0] }
  0x9d   :  { %v8809_v21 = vld [vmem:[#allocation5 + $0x484] sm:$0xf]  ;;  %v7191_v28 = vor.u32 %v9009_v19, %v7188_v20  ;;  %2685 = vmatpush.bf16.msra.mxu3 %v6935_v22  ;;  %v6811_v19 = vor.u32 %v8918_v9, %v6810_v7  ;;  %v6299_v20 = vor.u32 %v8790_v13, %v6298_v12  ;;  %v8910_v22 = vld [vmem:[#allocation5 + $0x7a4] sm:$0xf0] }
  0x9e   :  { %v6388_v23 = vld [vmem:[#allocation5 + $0x4a0] sm:$0xf0]  ;;  %2659 = vmatpush.bf16.msra.mxu0 %v6423_v17  ;;  %v6522_v17 = vld [vmem:[#allocation5 + $0x588] sm:$0xf] }
  0x9f   :  { %v8873_v24 = vld [vmem:[#allocation5 + $0x684] sm:$0xf]  ;;  %2697 = vmatpush.bf16.msrb.mxu2 %v7223_v16  ;;  %v6391_v29 = vor.u32 %v8809_v21, %v6388_v23  ;;  %v8718_v16 = vld [vmem:[#allocation5 + $0x1a4] sm:$0xf0] }
  0xa0   :  { %v6644_v25 = vld [vmem:[#allocation5 + $0x6a0] sm:$0xf0]  ;;  %2672 = vmatpush.bf16.msra.mxu1 %v6679_v18  ;;  %v8846_v18 = vld [vmem:[#allocation5 + $0x5a4] sm:$0xf0]  ;;  %v6011_v23 = vor.u32 %v8718_v16, %v6010_v14 }
  0xa1   :  { %v8937_v26 = vld [vmem:[#allocation5 + $0x884] sm:$0xf]  ;;  %v6647_v30 = vor.u32 %v8873_v24, %v6644_v25  ;;  %v6778_v21 = vld [vmem:[#allocation5 + $0x788] sm:$0xf]  ;;  %v6523_v24 = vor.u32 %v8846_v18, %v6522_v17 }
  0xa2   :  { %v6900_v27 = vld [vmem:[#allocation5 + $0x8a0] sm:$0xf0]  ;;  %2660 = vmatpush.bf16.msra.mxu0 %v6391_v29  ;;  %v6266_v25 = vld [vmem:[#allocation5 + $0x388] sm:$0xf] }
  0xa3   :  { %v9001_v32 = vld [vmem:[#allocation5 + $0xa84] sm:$0xf]  ;;  %v6903_v35 = vor.u32 %v8937_v26, %v6900_v27  ;;  %2698 = vmatpush.bf16.msrb.mxu2 %v7191_v28  ;;  %v8782_v26 = vld [vmem:[#allocation5 + $0x3a4] sm:$0xf0] }
  0xa4   :  { %v7156_v33 = vld [vmem:[#allocation5 + $0xaa0] sm:$0xf0]  ;;  %2673 = vmatpush.bf16.msra.mxu1 %v6647_v30  ;;  %v5978_v27 = vld [vmem:[#allocation5 + $0x148] sm:$0xf] }
  0xa5   :  { %v8801_v34 = vld [vmem:[#allocation5 + $0x444] sm:$0xf]  ;;  %v7159_v42 = vor.u32 %v9001_v32, %v7156_v33  ;;  %2686 = vmatpush.bf16.msra.mxu3 %v6903_v35  ;;  %v8710_v28 = vld [vmem:[#allocation5 + $0x164] sm:$0xf0]  ;;  %v6779_v32 = vor.u32 %v8910_v22, %v6778_v21  ;;  %v6267_v33 = vor.u32 %v8782_v26, %v6266_v25 }
  0xa6   :  { %v6356_v37 = vld [vmem:[#allocation5 + $0x460] sm:$0xf0]  ;;  %v6490_v29 = vld [vmem:[#allocation5 + $0x548] sm:$0xf] }
  0xa7   :  { %v8865_v38 = vld [vmem:[#allocation5 + $0x644] sm:$0xf]  ;;  %v6359_v45 = vor.u32 %v8801_v34, %v6356_v37  ;;  %2699 = vmatpush.bf16.msrb.mxu2 %v7159_v42  ;;  %v8838_v30 = vld [vmem:[#allocation5 + $0x564] sm:$0xf0]  ;;  %v5979_v37 = vor.u32 %v8710_v28, %v5978_v27 }
  0xa8   :  { %v6612_v39 = vld [vmem:[#allocation5 + $0x660] sm:$0xf0]  ;;  %v6746_v34 = vld [vmem:[#allocation5 + $0x748] sm:$0xf] }
  0xa9   :  { %v8929_v40 = vld [vmem:[#allocation5 + $0x844] sm:$0xf]  ;;  %v6615_v47 = vor.u32 %v8865_v38, %v6612_v39  ;;  %2661 = vmatpush.bf16.msra.mxu0 %v6359_v45  ;;  %v8902_v35 = vld [vmem:[#allocation5 + $0x764] sm:$0xf0]  ;;  %v6491_v38 = vor.u32 %v8838_v30, %v6490_v29 }
  0xaa   :  { %v6868_v41 = vld [vmem:[#allocation5 + $0x860] sm:$0xf0]  ;;  %v6234_v39 = vld [vmem:[#allocation5 + $0x348] sm:$0xf]  ;;  %v6747_v45 = vor.u32 %v8902_v35, %v6746_v34 }
  0xab   :  { %v8993_v43 = vld [vmem:[#allocation5 + $0xa44] sm:$0xf]  ;;  %v6871_v51 = vor.u32 %v8929_v40, %v6868_v41  ;;  %2674 = vmatpush.bf16.msra.mxu1 %v6615_v47  ;;  %v8774_v40 = vld [vmem:[#allocation5 + $0x364] sm:$0xf0] }
  0xac   :  { %v7124_v44 = vld [vmem:[#allocation5 + $0xa60] sm:$0xf0]  ;;  %v5946_v41 = vld [vmem:[#allocation5 + $0x108] sm:$0xf]  ;;  %v6235_v47 = vor.u32 %v8774_v40, %v6234_v39 }
  0xad   :  { %v8793_v48 = vld [vmem:[#allocation5 + $0x404] sm:$0xf]  ;;  %v7127_v61 = vor.u32 %v8993_v43, %v7124_v44  ;;  %2687 = vmatpush.bf16.msra.mxu3 %v6871_v51  ;;  %v8702_v42 = vld [vmem:[#allocation5 + $0x124] sm:$0xf0] }
  0xae   :  { %v6324_v49 = vld [vmem:[#allocation5 + $0x420] sm:$0xf0]  ;;  %v6458_v43 = vld [vmem:[#allocation5 + $0x508] sm:$0xf] }
  0xaf   :  { %v8857_v50 = vld [vmem:[#allocation5 + $0x604] sm:$0xf]  ;;  %v6327_v1 = vor.u32 %v8793_v48, %v6324_v49  ;;  %2700 = vmatpush.bf16.msrb.mxu2 %v7127_v61  ;;  %v8830_v44 = vld [vmem:[#allocation5 + $0x524] sm:$0xf0] }
  0xb0   :  { %v6580_v53 = vld [vmem:[#allocation5 + $0x620] sm:$0xf0]  ;;  %v6714_v48 = vld [vmem:[#allocation5 + $0x708] sm:$0xf]  ;;  %v6459_v51 = vor.u32 %v8830_v44, %v6458_v43 }
  0xb1   :  { %v8921_v54 = vld [vmem:[#allocation5 + $0x804] sm:$0xf]  ;;  %v6583_v2 = vor.u32 %v8857_v50, %v6580_v53  ;;  %2662 = vmatpush.bf16.msra.mxu0 %v6327_v1  ;;  %v8894_v49 = vld [vmem:[#allocation5 + $0x724] sm:$0xf0]  ;;  %v5947_v50 = vor.u32 %v8702_v42, %v5946_v41 }
  0xb2   :  { %v6836_v55 = vld [vmem:[#allocation5 + $0x820] sm:$0xf0]  ;;  %v6202_v53 = vld [vmem:[#allocation5 + $0x308] sm:$0xf]  ;;  %v6715_v61 = vor.u32 %v8894_v49, %v6714_v48 }
  0xb3   :  { %v9049_v63 = vld [vmem:[#allocation5 + $0xc04] sm:$0xf]  ;;  %v6839_v5 = vor.u32 %v8921_v54, %v6836_v55  ;;  %2675 = vmatpush.bf16.msra.mxu1 %v6583_v2  ;;  %v8766_v54 = vld [vmem:[#allocation5 + $0x324] sm:$0xf0]  ;;  %v6427_v2 = vor.u32 %v8822_v60, %v6426_v59  ;;  %v6300_v60 = vld [vmem:[#allocation5 + $0x3e8] sm:$0xf0] }
  0xb4   :  { %v7348_v0 = vld [vmem:[#allocation5 + $0xc20] sm:$0xf0]  ;;  %2663 = vmatmul.bf16.vlgmr.msra.gmra.mxu0 %v9692_v52  ;;  %v5914_v55 = vld [vmem:[#allocation5 + $0xc8] sm:$0xf]  ;;  %v6203_v62 = vor.u32 %v8766_v54, %v6202_v53  ;;  %v8722_v54 = vld [vmem:[#allocation5 + $0x1cc] sm:$0xf] }
  0xb5   :  { %v8985_v3 = vld [vmem:[#allocation5 + $0xa04] sm:$0xf]  ;;  %v7351_v11 = vor.u32 %v9049_v63, %v7348_v0  ;;  %2688 = vmatpush.bf16.msra.mxu3 %v6839_v5  ;;  %2746 = vmatpush.bf16.msrb.mxu0 %v6555_v10  ;;  %v6682_v63 = vld [vmem:[#allocation5 + $0x6c8] sm:$0xf]  ;;  %v5915_v1 = vor.u32 %v8694_v57, %v5914_v55  ;;  %v6044_v55 = vld [vmem:[#allocation5 + $0x1e8] sm:$0xf0] }
  0xb6   :  { %v7092_v4 = vld [vmem:[#allocation5 + $0xa20] sm:$0xf0]  ;;  %2676 = vmatmul.bf16.vlgmr.msra.gmra.mxu1 %v9696_v58  ;;  %v8886_v0 = vld [vmem:[#allocation5 + $0x6e4] sm:$0xf0]  ;;  %v8786_v57 = vld [vmem:[#allocation5 + $0x3cc] sm:$0xf] }
  0xb7   :  { %v7095_v15 = vor.u32 %v8985_v3, %v7092_v4  ;;  %2720 = vmatpush.bf16.msrb.mxu1 %v6043_v6  ;;  %v6170_v3 = vld [vmem:[#allocation5 + $0x2c8] sm:$0xf]  ;;  %v6683_v10 = vor.u32 %v8886_v0, %v6682_v63 }
  0xb8   :  { %2689 = vmatmul.bf16.vlgmr.msra.gmra.mxu3 %v9708_v31  ;;  %v8758_v4 = vld [vmem:[#allocation5 + $0x2e4] sm:$0xf0] }
  0xb9   :  { %2714 = vmatpush.bf16.msrb.mxu3 %v7351_v11  ;;  %2701 = vmatpush.bf16.msrb.mxu2 %v7095_v15  ;;  %v5882_v5 = vld [vmem:[#allocation5 + $0x88] sm:$0xf]  ;;  %v6171_v11 = vor.u32 %v8758_v4, %v6170_v3  ;;  %v6303_v4 = vor.u32 %v8786_v57, %v6300_v60 }
  0xba   :  { %2747 = vmatpush.bf16.msrb.mxu0 %v6523_v24  ;;  %v8686_v6 = vld [vmem:[#allocation5 + $0xa4] sm:$0xf0] }
  0xbb   :  { %2721 = vmatpush.bf16.msrb.mxu1 %v6011_v23  ;;  %v6394_v7 = vld [vmem:[#allocation5 + $0x488] sm:$0xf]  ;;  %v5883_v14 = vor.u32 %v8686_v6, %v5882_v5  ;;  %v8714_v6 = vld [vmem:[#allocation5 + $0x18c] sm:$0xf] }
  0xbc   :  { %2702 = vmatmul.bf16.vlgmr.msrb.gmra.mxu2 %v9710_v36  ;;  %v8814_v9 = vld [vmem:[#allocation5 + $0x4a4] sm:$0xf0] }
  0xbd   :  { %2759 = vmatpush.bf16.msra.mxu2 %v6811_v19  ;;  %2733 = vmatpush.bf16.msra.mxu3 %v6299_v20  ;;  %v6650_v12 = vld [vmem:[#allocation5 + $0x688] sm:$0xf]  ;;  %v6395_v15 = vor.u32 %v8814_v9, %v6394_v7  ;;  %v6012_v7 = vld [vmem:[#allocation5 + $0x1a8] sm:$0xf0] }
  0xbe   :  { %2748 = vmatpush.bf16.msrb.mxu0 %v6491_v38  ;;  %v8878_v13 = vld [vmem:[#allocation5 + $0x6a4] sm:$0xf0]  ;;  %v8778_v9 = vld [vmem:[#allocation5 + $0x38c] sm:$0xf] }
  0xbf   :  { %2722 = vmatpush.bf16.msrb.mxu1 %v5979_v37  ;;  %v6138_v16 = vld [vmem:[#allocation5 + $0x288] sm:$0xf]  ;;  %v6651_v22 = vor.u32 %v8878_v13, %v6650_v12 }
  0xc0   :  { %v8750_v17 = vld [vmem:[#allocation5 + $0x2a4] sm:$0xf0] }
  0xc1   :  { %2760 = vmatpush.bf16.msra.mxu2 %v6779_v32  ;;  %2734 = vmatpush.bf16.msra.mxu3 %v6267_v33  ;;  %v5850_v18 = vld [vmem:[#allocation5 + $0x48] sm:$0xf]  ;;  %v6139_v23 = vor.u32 %v8750_v17, %v6138_v16 }
  0xc2   :  { %2749 = vmatpush.bf16.msrb.mxu0 %v6459_v51  ;;  %v8678_v19 = vld [vmem:[#allocation5 + $0x64] sm:$0xf0] }
  0xc3   :  { %2723 = vmatpush.bf16.msrb.mxu1 %v5947_v50  ;;  %v6362_v20 = vld [vmem:[#allocation5 + $0x448] sm:$0xf]  ;;  %v5851_v27 = vor.u32 %v8678_v19, %v5850_v18  ;;  %v8706_v19 = vld [vmem:[#allocation5 + $0x14c] sm:$0xf] }
  0xc4   :  { %v8806_v21 = vld [vmem:[#allocation5 + $0x464] sm:$0xf0] }
  0xc5   :  { %2761 = vmatpush.bf16.msra.mxu2 %v6747_v45  ;;  %2735 = vmatpush.bf16.msra.mxu3 %v6235_v47  ;;  %v6106_v24 = vld [vmem:[#allocation5 + $0x248] sm:$0xf]  ;;  %v6363_v28 = vor.u32 %v8806_v21, %v6362_v20  ;;  %v5980_v20 = vld [vmem:[#allocation5 + $0x168] sm:$0xf0] }
  0xc6   :  { %2750 = vmatpush.bf16.msrb.mxu0 %v6427_v2  ;;  %v6618_v25 = vld [vmem:[#allocation5 + $0x648] sm:$0xf]  ;;  %v8770_v21 = vld [vmem:[#allocation5 + $0x34c] sm:$0xf] }
  0xc7   :  { %2724 = vmatpush.bf16.msrb.mxu1 %v5915_v1  ;;  %v8870_v26 = vld [vmem:[#allocation5 + $0x664] sm:$0xf0]  ;;  %v6047_v1 = vor.u32 %v8722_v54, %v6044_v55 }
  0xc8   :  { %7377 = vmatmul.msk.bf16.vlgmr.msrb.gmra.mxu3 %vm2534_vm0, %v9704_v46  ;;  %v8742_v29 = vld [vmem:[#allocation5 + $0x264] sm:$0xf0]  ;;  %v6619_v37 = vor.u32 %v8870_v26, %v6618_v25  ;;  %v5983_v26 = vor.u32 %v8706_v19, %v5980_v20 }
  0xc9   :  { %2762 = vmatpush.bf16.msra.mxu2 %v6715_v61  ;;  %2736 = vmatpush.bf16.msra.mxu3 %v6203_v62  ;;  %v5818_v30 = vld [vmem:[#allocation5 + $0x8] sm:$0xf]  ;;  %v6107_v41 = vor.u32 %v8742_v29, %v6106_v24 }
  0xca   :  { %2751 = vmatpush.bf16.msrb.mxu0 %v6395_v15  ;;  %v8670_v32 = vld [vmem:[#allocation5 + $0x24] sm:$0xf0] }
  0xcb   :  { %2725 = vmatpush.bf16.msrb.mxu1 %v5883_v14  ;;  %v6330_v33 = vld [vmem:[#allocation5 + $0x408] sm:$0xf]  ;;  %v5819_v45 = vor.u32 %v8670_v32, %v5818_v30  ;;  %v6015_v14 = vor.u32 %v8714_v6, %v6012_v7  ;;  %v8698_v32 = vld [vmem:[#allocation5 + $0x10c] sm:$0xf] }
  0xcc   :  { %v8798_v34 = vld [vmem:[#allocation5 + $0x424] sm:$0xf0] }
  0xcd   :  { %2763 = vmatpush.bf16.msra.mxu2 %v6683_v10  ;;  %2737 = vmatpush.bf16.msra.mxu3 %v6171_v11  ;;  %v7066_v35 = vld [vmem:[#allocation5 + $0x9c8] sm:$0xf]  ;;  %v6331_v47 = vor.u32 %v8798_v34, %v6330_v33  ;;  %v6268_v10 = vld [vmem:[#allocation5 + $0x3a8] sm:$0xf0] }
  0xce   :  { %v8982_v38 = vld [vmem:[#allocation5 + $0x9e4] sm:$0xf0]  ;;  %2752 = vmatpush.bf16.msrb.mxu0 %v6363_v28  ;;  %v6271_v17 = vor.u32 %v8778_v9, %v6268_v10  ;;  %v5948_v33 = vld [vmem:[#allocation5 + $0x128] sm:$0xf0] }
  0xcf   :  { %v7354_v39 = vld [vmem:[#allocation5 + $0xc08] sm:$0xf]  ;;  %2726 = vmatpush.bf16.msrb.mxu1 %v5851_v27  ;;  %v7067_v51 = vor.u32 %v8982_v38, %v7066_v35  ;;  %v8762_v34 = vld [vmem:[#allocation5 + $0x30c] sm:$0xf] }
  0xd0   :  { %v9054_v40 = vld [vmem:[#allocation5 + $0xc24] sm:$0xf0]  ;;  %v6204_v35 = vld [vmem:[#allocation5 + $0x328] sm:$0xf0] }
  0xd1   :  { %2764 = vmatpush.bf16.msra.mxu2 %v6651_v22  ;;  %2738 = vmatpush.bf16.msra.mxu3 %v6139_v23  ;;  %v6074_v42 = vld [vmem:[#allocation5 + $0x208] sm:$0xf]  ;;  %v7355_v53 = vor.u32 %v9054_v40, %v7354_v39  ;;  %v6236_v22 = vld [vmem:[#allocation5 + $0x368] sm:$0xf0]  ;;  %v5951_v40 = vor.u32 %v8698_v32, %v5948_v33 }
  0xd2   :  { %v6586_v43 = vld [vmem:[#allocation5 + $0x608] sm:$0xf]  ;;  %2753 = vmatpush.bf16.msrb.mxu0 %v6331_v47  ;;  %v6239_v29 = vor.u32 %v8770_v21, %v6236_v22  ;;  %v5916_v47 = vld [vmem:[#allocation5 + $0xe8] sm:$0xf0] }
  0xd3   :  { %v8862_v44 = vld [vmem:[#allocation5 + $0x624] sm:$0xf0]  ;;  %2727 = vmatpush.bf16.msrb.mxu1 %v5819_v45  ;;  %v8690_v45 = vld [vmem:[#allocation5 + $0xcc] sm:$0xf] }
  0xd4   :  { %v8734_v48 = vld [vmem:[#allocation5 + $0x224] sm:$0xf0]  ;;  %v6587_v59 = vor.u32 %v8862_v44, %v6586_v43  ;;  %v6207_v43 = vor.u32 %v8762_v34, %v6204_v35  ;;  %v5919_v54 = vor.u32 %v8690_v45, %v5916_v47  ;;  %v8674_v10 = vld [vmem:[#allocation5 + $0x4c] sm:$0xf] }
  0xd5   :  { %v7322_v49 = vld [vmem:[#allocation5 + $0xbc8] sm:$0xf]  ;;  %2765 = vmatpush.bf16.msra.mxu2 %v6619_v37  ;;  %2739 = vmatpush.bf16.msra.mxu3 %v6107_v41  ;;  %v6075_v63 = vor.u32 %v8734_v48, %v6074_v42  ;;  %v8754_v48 = vld [vmem:[#allocation5 + $0x2cc] sm:$0xf] }
  0xd6   :  { %v9046_v50 = vld [vmem:[#allocation5 + $0xbe4] sm:$0xf0]  ;;  %2805 = vmatpush.bf16.msra.mxu0 %v7355_v53  ;;  %2728 = vmatmul.bf16.vlgmr.msrb.gmra.mxu1 %v9694_v56  ;;  %v8978_v32 = vld [vmem:[#allocation5 + $0x9cc] sm:$0xf] }
  0xd7   :  { %v7034_v61 = vld [vmem:[#allocation5 + $0x988] sm:$0xf]  ;;  %v7323_v0 = vor.u32 %v9046_v50, %v7322_v49  ;;  %2772 = vmatpush.bf16.msra.mxu1 %v7067_v51  ;;  %2754 = vmatmul.bf16.vlgmr.msrb.gmra.mxu0 %v9692_v52  ;;  %v6172_v49 = vld [vmem:[#allocation5 + $0x2e8] sm:$0xf0] }
  0xd8   :  { %v8974_v62 = vld [vmem:[#allocation5 + $0x9a4] sm:$0xf0]  ;;  %v7068_v33 = vld [vmem:[#allocation5 + $0x9e8] sm:$0xf0] }
  0xd9   :  { %v7290_v2 = vld [vmem:[#allocation5 + $0xb88] sm:$0xf]  ;;  %v7035_v5 = vor.u32 %v8974_v62, %v7034_v61  ;;  %2766 = vmatpush.bf16.msra.mxu2 %v6587_v59  ;;  %2740 = vmatpush.bf16.msra.mxu3 %v6075_v63  ;;  %v6175_v59 = vor.u32 %v8754_v48, %v6172_v49  ;;  %v8682_v61 = vld [vmem:[#allocation5 + $0x8c] sm:$0xf] }
  0xda   :  { %v9038_v3 = vld [vmem:[#allocation5 + $0xba4] sm:$0xf0]  ;;  %2824 = vmatpush.bf16.msrb.mxu0 %v6303_v4  ;;  %v5884_v62 = vld [vmem:[#allocation5 + $0xa8] sm:$0xf0] }
  0xdb   :  { %v7002_v11 = vld [vmem:[#allocation5 + $0x948] sm:$0xf]  ;;  %v7291_v13 = vor.u32 %v9038_v3, %v7290_v2  ;;  %2773 = vmatpush.bf16.msra.mxu1 %v7035_v5  ;;  %v8746_v63 = vld [vmem:[#allocation5 + $0x28c] sm:$0xf]  ;;  %v5887_v4 = vor.u32 %v8682_v61, %v5884_v62 }
  0xdc   :  { %v8966_v12 = vld [vmem:[#allocation5 + $0x964] sm:$0xf0]  ;;  %2741 = vmatmul.bf16.vlgmr.msra.gmra.mxu3 %v9700_v8  ;;  %2767 = vmatmul.bf16.vlgmr.msra.gmra.mxu2 %v9696_v58  ;;  %v9042_v34 = vld [vmem:[#allocation5 + $0xbcc] sm:$0xf] }
  0xdd   :  { %2785 = vmatpush.bf16.msrb.mxu3 %v7323_v0  ;;  %2811 = vmatpush.bf16.msrb.mxu2 %v6047_v1  ;;  %v7258_v15 = vld [vmem:[#allocation5 + $0xb48] sm:$0xf]  ;;  %v7003_v18 = vor.u32 %v8966_v12, %v7002_v11  ;;  %v6140_v0 = vld [vmem:[#allocation5 + $0x2a8] sm:$0xf0] }
  0xde   :  { %v9030_v16 = vld [vmem:[#allocation5 + $0xb64] sm:$0xf0]  ;;  %2825 = vmatpush.bf16.msrb.mxu0 %v6271_v17  ;;  %v6143_v7 = vor.u32 %v8746_v63, %v6140_v0  ;;  %v5852_v11 = vld [vmem:[#allocation5 + $0x68] sm:$0xf0] }
  0xdf   :  { %v6970_v23 = vld [vmem:[#allocation5 + $0x908] sm:$0xf]  ;;  %v7259_v25 = vor.u32 %v9030_v16, %v7258_v15  ;;  %2774 = vmatpush.bf16.msra.mxu1 %v7003_v18  ;;  %v8738_v12 = vld [vmem:[#allocation5 + $0x24c] sm:$0xf]  ;;  %v5855_v19 = vor.u32 %v8674_v10, %v5852_v11 }
  0xe0   :  { %v8958_v24 = vld [vmem:[#allocation5 + $0x924] sm:$0xf0]  ;;  %v8850_v16 = vld [vmem:[#allocation5 + $0x5cc] sm:$0xf] }
  0xe1   :  { %2786 = vmatpush.bf16.msrb.mxu3 %v7291_v13  ;;  %2812 = vmatpush.bf16.msrb.mxu2 %v6015_v14  ;;  %v7226_v27 = vld [vmem:[#allocation5 + $0xb08] sm:$0xf]  ;;  %v6971_v30 = vor.u32 %v8958_v24, %v6970_v23  ;;  %v6108_v13 = vld [vmem:[#allocation5 + $0x268] sm:$0xf0] }
  0xe2   :  { %v9022_v28 = vld [vmem:[#allocation5 + $0xb24] sm:$0xf0]  ;;  %2826 = vmatpush.bf16.msrb.mxu0 %v6239_v29  ;;  %v6556_v17 = vld [vmem:[#allocation5 + $0x5e8] sm:$0xf0]  ;;  %v6111_v22 = vor.u32 %v8738_v12, %v6108_v13 }
  0xe3   :  { %v6938_v37 = vld [vmem:[#allocation5 + $0x8c8] sm:$0xf]  ;;  %v7227_v39 = vor.u32 %v9022_v28, %v7226_v27  ;;  %2775 = vmatpush.bf16.msra.mxu1 %v6971_v30  ;;  %v8666_v24 = vld [vmem:[#allocation5 + $0xc] sm:$0xf]  ;;  %v6559_v27 = vor.u32 %v8850_v16, %v6556_v17 }
  0xe4   :  { %v8950_v38 = vld [vmem:[#allocation5 + $0x8e4] sm:$0xf0]  ;;  %v6076_v28 = vld [vmem:[#allocation5 + $0x228] sm:$0xf0] }
  0xe5   :  { %2787 = vmatpush.bf16.msrb.mxu3 %v7259_v25  ;;  %2813 = vmatpush.bf16.msrb.mxu2 %v5983_v26  ;;  %v7194_v41 = vld [vmem:[#allocation5 + $0xac8] sm:$0xf]  ;;  %v6939_v44 = vor.u32 %v8950_v38, %v6938_v37  ;;  %v5820_v25 = vld [vmem:[#allocation5 + $0x28] sm:$0xf0] }
  0xe6   :  { %v9014_v42 = vld [vmem:[#allocation5 + $0xae4] sm:$0xf0]  ;;  %2827 = vmatpush.bf16.msrb.mxu0 %v6207_v43  ;;  %v8730_v26 = vld [vmem:[#allocation5 + $0x20c] sm:$0xf]  ;;  %v7071_v43 = vor.u32 %v8978_v32, %v7068_v33 }
  0xe7   :  { %v6906_v50 = vld [vmem:[#allocation5 + $0x888] sm:$0xf]  ;;  %v7195_v53 = vor.u32 %v9014_v42, %v7194_v41  ;;  %2776 = vmatpush.bf16.msra.mxu1 %v6939_v44  ;;  %7378 = vmatmul.msk.bf16.vlgmr.msra.gmra.mxu0 %vm2534_vm0, %v9704_v46  ;;  %v8914_v29 = vld [vmem:[#allocation5 + $0x7cc] sm:$0xf]  ;;  %v6079_v41 = vor.u32 %v8730_v26, %v6076_v28 }
  0xe8   :  { %v8942_v51 = vld [vmem:[#allocation5 + $0x8a4] sm:$0xf0]  ;;  %v6812_v30 = vld [vmem:[#allocation5 + $0x7e8] sm:$0xf0] }
  0xe9   :  { %2788 = vmatpush.bf16.msrb.mxu3 %v7227_v39  ;;  %2814 = vmatpush.bf16.msrb.mxu2 %v5951_v40  ;;  %v7162_v55 = vld [vmem:[#allocation5 + $0xa88] sm:$0xf]  ;;  %v6907_v60 = vor.u32 %v8942_v51, %v6906_v50  ;;  %v7324_v37 = vld [vmem:[#allocation5 + $0xbe8] sm:$0xf0]  ;;  %v5823_v40 = vor.u32 %v8666_v24, %v5820_v25  ;;  %v6815_v42 = vor.u32 %v8914_v29, %v6812_v30  ;;  %v2560_v29 = vpop.f32.mrf.mxu1 }
  0xea   :  { %v9006_v57 = vld [vmem:[#allocation5 + $0xaa4] sm:$0xf0]  ;;  %2828 = vmatpush.bf16.msrb.mxu0 %v6175_v59  ;;  %v8842_v38 = vld [vmem:[#allocation5 + $0x58c] sm:$0xf]  ;;  %v7327_v47 = vor.u32 %v9042_v34, %v7324_v37 }
  0xeb   :  { %v6874_v1 = vld [vmem:[#allocation5 + $0x848] sm:$0xf]  ;;  %v7163_v3 = vor.u32 %v9006_v57, %v7162_v55  ;;  %2777 = vmatpush.bf16.msra.mxu1 %v6907_v60  ;;  %v6524_v39 = vld [vmem:[#allocation5 + $0x5a8] sm:$0xf0]  ;;  %v9729_v57 = vld [vmem:[#allocation7] sm:$0xff] }
  0xec   :  { %v8934_v2 = vld [vmem:[#allocation5 + $0x864] sm:$0xf0]  ;;  %v8906_v44 = vld [vmem:[#allocation5 + $0x78c] sm:$0xf]  ;;  %v6527_v48 = vor.u32 %v8842_v38, %v6524_v39 }
  0xed   :  { %2789 = vmatpush.bf16.msrb.mxu3 %v7195_v53  ;;  %2815 = vmatpush.bf16.msrb.mxu2 %v5919_v54  ;;  %v7130_v5 = vld [vmem:[#allocation5 + $0xa48] sm:$0xf]  ;;  %v6875_v9 = vor.u32 %v8934_v2, %v6874_v1  ;;  %v6780_v45 = vld [vmem:[#allocation5 + $0x7a8] sm:$0xf0]  ;;  %v2573_v39 = vpop.f32.mrf.mxu2 }
  0xee   :  { %v8998_v6 = vld [vmem:[#allocation5 + $0xa64] sm:$0xf0]  ;;  %2829 = vmatpush.bf16.msrb.mxu0 %v6143_v7  ;;  %v8970_v49 = vld [vmem:[#allocation5 + $0x98c] sm:$0xf]  ;;  %v6783_v59 = vor.u32 %v8906_v44, %v6780_v45  ;;  %v558_v7 = vperm.slane %v9729_v57, 0 }
  0xef   :  { %v6842_v14 = vld [vmem:[#allocation5 + $0x808] sm:$0xf]  ;;  %v7131_v18 = vor.u32 %v8998_v6, %v7130_v5  ;;  %2778 = vmatpush.bf16.msra.mxu1 %v6875_v9  ;;  %v7036_v50 = vld [vmem:[#allocation5 + $0x9a8] sm:$0xf0] }
  0xf0   :  { %v8926_v15 = vld [vmem:[#allocation5 + $0x824] sm:$0xf0]  ;;  %v9034_v51 = vld [vmem:[#allocation5 + $0xb8c] sm:$0xf]  ;;  %v7039_v60 = vor.u32 %v8970_v49, %v7036_v50 }
  0xf1   :  { %2790 = vmatpush.bf16.msrb.mxu3 %v7163_v3  ;;  %2816 = vmatpush.bf16.msrb.mxu2 %v5887_v4  ;;  %v7098_v20 = vld [vmem:[#allocation5 + $0xa08] sm:$0xf]  ;;  %v6843_v23 = vor.u32 %v8926_v15, %v6842_v14  ;;  %v7292_v53 = vld [vmem:[#allocation5 + $0xba8] sm:$0xf0] }
  0xf2   :  { %v8990_v21 = vld [vmem:[#allocation5 + $0xa24] sm:$0xf0]  ;;  %2830 = vmatpush.bf16.msrb.mxu0 %v6111_v22  ;;  %v8834_v54 = vld [vmem:[#allocation5 + $0x54c] sm:$0xf]  ;;  %v7295_v0 = vor.u32 %v9034_v51, %v7292_v53 }
  0xf3   :  { %v7099_v35 = vor.u32 %v8990_v21, %v7098_v20  ;;  %2779 = vmatpush.bf16.msra.mxu1 %v6843_v23  ;;  %v6492_v55 = vld [vmem:[#allocation5 + $0x568] sm:$0xf0] }
  0xf4   :  { %v8898_v61 = vld [vmem:[#allocation5 + $0x74c] sm:$0xf]  ;;  %v6495_v1 = vor.u32 %v8834_v54, %v6492_v55 }
  0xf5   :  { %2791 = vmatpush.bf16.msrb.mxu3 %v7131_v18  ;;  %2817 = vmatpush.bf16.msrb.mxu2 %v5855_v19  ;;  %v6748_v62 = vld [vmem:[#allocation5 + $0x768] sm:$0xf0]  ;;  %v2547_v18 = vpop.f32.mrf.mxu0 }
  0xf6   :  { %2780 = vmatmul.bf16.vlgmr.msra.gmra.mxu1 %v9708_v31  ;;  %2831 = vmatpush.bf16.msrb.mxu0 %v6079_v41  ;;  %v8962_v63 = vld [vmem:[#allocation5 + $0x94c] sm:$0xf]  ;;  %v6751_v9 = vor.u32 %v8898_v61, %v6748_v62  ;;  %v2548_v22 = vadd.f32 %v2547_v18, %v558_v7 }
  0xf7   :  { %2837 = vmatpush.bf16.msrb.mxu1 %v6559_v27  ;;  %v7004_v2 = vld [vmem:[#allocation5 + $0x968] sm:$0xf0] }
  0xf8   :  { %v9026_v3 = vld [vmem:[#allocation5 + $0xb4c] sm:$0xf]  ;;  %v7007_v10 = vor.u32 %v8962_v63, %v7004_v2  ;;  %v2561_v34 = vadd.f32 %v2560_v29, %v2548_v22  ;;  %v8791_v29 = vld [vmem:[#allocation5 + $0x3ec] sm:$0xf0] }
  0xf9   :  { %2792 = vmatpush.bf16.msrb.mxu3 %v7099_v35  ;;  %2818 = vmatpush.bf16.msrb.mxu2 %v5823_v40  ;;  %v7260_v4 = vld [vmem:[#allocation5 + $0xb68] sm:$0xf0] }
  0xfa   :  { %2876 = vmatpush.bf16.msra.mxu0 %v7327_v47  ;;  %v8826_v5 = vld [vmem:[#allocation5 + $0x50c] sm:$0xf]  ;;  %v7263_v13 = vor.u32 %v9026_v3, %v7260_v4 }
  0xfb   :  { %2838 = vmatpush.bf16.msrb.mxu1 %v6527_v48  ;;  %v6460_v6 = vld [vmem:[#allocation5 + $0x528] sm:$0xf0]  ;;  %2832 = vmatmul.bf16.vlgmr.msrb.gmra.mxu0 %v9700_v8 }
  0xfc   :  { %2793 = vmatmul.bf16.vlgmr.msrb.gmra.mxu3 %v9710_v36  ;;  %2819 = vmatmul.bf16.vlgmr.msrb.gmra.mxu2 %v9694_v56  ;;  %v8890_v11 = vld [vmem:[#allocation5 + $0x70c] sm:$0xf]  ;;  %v6463_v14 = vor.u32 %v8826_v5, %v6460_v6  ;;  %v2562_v6 = vpop.f32.mrf.mxu1 }
  0xfd   :  { %2850 = vmatpush.bf16.msra.mxu3 %v6815_v42  ;;  %2863 = vmatpush.bf16.msra.mxu2 %v7071_v43  ;;  %v6716_v12 = vld [vmem:[#allocation5 + $0x728] sm:$0xf0]  ;;  %v2574_v42 = vadd.f32 %v2573_v39, %v2561_v34  ;;  %v2586_v43 = vpop.f32.mrf.mxu3  ;;  %v2549_v53 = vpop.f32.mrf.mxu0  ;;  %v6818_v34 = vld [vmem:[#allocation5 + $0x7d0] sm:$0xf] }
  0xfe   :  { %2877 = vmatpush.bf16.msra.mxu0 %v7295_v0  ;;  %v8954_v15 = vld [vmem:[#allocation5 + $0x90c] sm:$0xf]  ;;  %v6719_v23 = vor.u32 %v8890_v11, %v6716_v12  ;;  %v2575_v11 = vpop.f32.mrf.mxu2  ;;  %v8911_v53 = vld [vmem:[#allocation5 + $0x7ac] sm:$0xf0] }
  0xff   :  { %2839 = vmatpush.bf16.msrb.mxu1 %v6495_v1  ;;  %v6972_v16 = vld [vmem:[#allocation5 + $0x928] sm:$0xf0]  ;;  %v9735_v54 = vadd.f32 %v2586_v43, %v2574_v42  ;;  %v8719_v42 = vld [vmem:[#allocation5 + $0x1ac] sm:$0xf0] }
 0x100   :  { %v9018_v17 = vld [vmem:[#allocation5 + $0xb0c] sm:$0xf]  ;;  %v6975_v24 = vor.u32 %v8954_v15, %v6972_v16  ;;  %v8703_v11 = vld [vmem:[#allocation5 + $0x12c] sm:$0xf0] }
 0x101   :  { %2851 = vmatpush.bf16.msra.mxu3 %v6783_v59  ;;  %2864 = vmatpush.bf16.msra.mxu2 %v7039_v60  ;;  %v7228_v19 = vld [vmem:[#allocation5 + $0xb28] sm:$0xf0] }
 0x102   :  { %v8818_v20 = vld [vmem:[#allocation5 + $0x4cc] sm:$0xf]  ;;  %2878 = vmatpush.bf16.msra.mxu0 %v7263_v13  ;;  %v7231_v27 = vor.u32 %v9018_v17, %v7228_v19 }
 0x103   :  { %v6428_v21 = vld [vmem:[#allocation5 + $0x4e8] sm:$0xf0]  ;;  %2840 = vmatpush.bf16.msrb.mxu1 %v6463_v14 }
 0x104   :  { %v8882_v25 = vld [vmem:[#allocation5 + $0x6cc] sm:$0xf]  ;;  %v6431_v28 = vor.u32 %v8818_v20, %v6428_v21 }
 0x105   :  { %2852 = vmatpush.bf16.msra.mxu3 %v6751_v9  ;;  %2865 = vmatpush.bf16.msra.mxu2 %v7007_v10  ;;  %v6684_v26 = vld [vmem:[#allocation5 + $0x6e8] sm:$0xf0]  ;;  %v2588_v18 = vpop.f32.mrf.mxu3 }
 0x106   :  { %v8946_v30 = vld [vmem:[#allocation5 + $0x8cc] sm:$0xf]  ;;  %v6687_v40 = vor.u32 %v8882_v25, %v6684_v26  ;;  %2879 = vmatpush.bf16.msra.mxu0 %v7231_v27  ;;  %v6050_v26 = vld [vmem:[#allocation5 + $0x1d0] sm:$0xf] }
 0x107   :  { %v6940_v32 = vld [vmem:[#allocation5 + $0x8e8] sm:$0xf0]  ;;  %2841 = vmatpush.bf16.msrb.mxu1 %v6431_v28  ;;  %v8727_v27 = vld [vmem:[#allocation5 + $0x1ec] sm:$0xf0] }
 0x108   :  { %v9010_v33 = vld [vmem:[#allocation5 + $0xacc] sm:$0xf]  ;;  %v6943_v41 = vor.u32 %v8946_v30, %v6940_v32  ;;  %v6306_v28 = vld [vmem:[#allocation5 + $0x3d0] sm:$0xf]  ;;  %v6051_v39 = vor.u32 %v8727_v27, %v6050_v26 }
 0x109   :  { %v7196_v35 = vld [vmem:[#allocation5 + $0xae8] sm:$0xf0]  ;;  %2853 = vmatpush.bf16.msra.mxu3 %v6719_v23  ;;  %2866 = vmatpush.bf16.msra.mxu2 %v6975_v24  ;;  %v6562_v30 = vld [vmem:[#allocation5 + $0x5d0] sm:$0xf] }
 0x10a   :  { %v8810_v37 = vld [vmem:[#allocation5 + $0x48c] sm:$0xf]  ;;  %v7199_v47 = vor.u32 %v9010_v33, %v7196_v35  ;;  %v8855_v33 = vld [vmem:[#allocation5 + $0x5ec] sm:$0xf0]  ;;  %v2599_v6 = vpop.f32.mrf.mxu0 }
 0x10b   :  { %v6396_v38 = vld [vmem:[#allocation5 + $0x4a8] sm:$0xf0]  ;;  %v8919_v35 = vld [vmem:[#allocation5 + $0x7ec] sm:$0xf0]  ;;  %v6563_v43 = vor.u32 %v8855_v33, %v6562_v30 }
 0x10c   :  { %v8874_v44 = vld [vmem:[#allocation5 + $0x68c] sm:$0xf]  ;;  %v6399_v48 = vor.u32 %v8810_v37, %v6396_v38  ;;  %2880 = vmatpush.bf16.msra.mxu0 %v7199_v47  ;;  %v8783_v47 = vld [vmem:[#allocation5 + $0x3ac] sm:$0xf0] }
 0x10d   :  { %v6652_v45 = vld [vmem:[#allocation5 + $0x6a8] sm:$0xf0]  ;;  %2854 = vmatpush.bf16.msra.mxu3 %v6687_v40  ;;  %2867 = vmatpush.bf16.msra.mxu2 %v6943_v41  ;;  %v6307_v40 = vor.u32 %v8791_v29, %v6306_v28  ;;  %v6018_v41 = vld [vmem:[#allocation5 + $0x190] sm:$0xf] }
 0x10e   :  { %v8938_v49 = vld [vmem:[#allocation5 + $0x88c] sm:$0xf]  ;;  %v6655_v61 = vor.u32 %v8874_v44, %v6652_v45  ;;  %2842 = vmatpush.bf16.msrb.mxu1 %v6399_v48  ;;  %v6819_v44 = vor.u32 %v8919_v35, %v6818_v34  ;;  %v6274_v45 = vld [vmem:[#allocation5 + $0x390] sm:$0xf]  ;;  %v559_v34 = vperm.slane %v9729_v57, 1 }
 0x10f   :  { %v6908_v50 = vld [vmem:[#allocation5 + $0x8a8] sm:$0xf0]  ;;  %v6530_v48 = vld [vmem:[#allocation5 + $0x590] sm:$0xf] }
 0x110   :  { %v9002_v51 = vld [vmem:[#allocation5 + $0xa8c] sm:$0xf]  ;;  %v6911_v62 = vor.u32 %v8938_v49, %v6908_v50  ;;  %v2625_v49 = vpop.f32.mrf.mxu2  ;;  %v8847_v50 = vld [vmem:[#allocation5 + $0x5ac] sm:$0xf0] }
 0x111   :  { %v7164_v55 = vld [vmem:[#allocation5 + $0xaa8] sm:$0xf0]  ;;  %2855 = vmatpush.bf16.msra.mxu3 %v6655_v61  ;;  %v8711_v61 = vld [vmem:[#allocation5 + $0x16c] sm:$0xf0] }
 0x112   :  { %v8802_v59 = vld [vmem:[#allocation5 + $0x44c] sm:$0xf]  ;;  %v7167_v1 = vor.u32 %v9002_v51, %v7164_v55  ;;  %2868 = vmatpush.bf16.msra.mxu2 %v6911_v62  ;;  %v6786_v51 = vld [vmem:[#allocation5 + $0x790] sm:$0xf]  ;;  %v6019_v55 = vor.u32 %v8719_v42, %v6018_v41  ;;  %v6531_v62 = vor.u32 %v8847_v50, %v6530_v48 }
 0x113   :  { %v6364_v60 = vld [vmem:[#allocation5 + $0x468] sm:$0xf0]  ;;  %v6466_v18 = vld [vmem:[#allocation5 + $0x510] sm:$0xf] }
 0x114   :  { %v8866_v63 = vld [vmem:[#allocation5 + $0x64c] sm:$0xf]  ;;  %v6367_v2 = vor.u32 %v8802_v59, %v6364_v60  ;;  %2881 = vmatpush.bf16.msra.mxu0 %v7167_v1  ;;  %v6275_v59 = vor.u32 %v8783_v47, %v6274_v45  ;;  %v5986_v60 = vld [vmem:[#allocation5 + $0x150] sm:$0xf] }
 0x115   :  { %v6620_v0 = vld [vmem:[#allocation5 + $0x668] sm:$0xf0]  ;;  %v8775_v1 = vld [vmem:[#allocation5 + $0x36c] sm:$0xf0] }
 0x116   :  { %v8930_v3 = vld [vmem:[#allocation5 + $0x84c] sm:$0xf]  ;;  %v6623_v14 = vor.u32 %v8866_v63, %v6620_v0  ;;  %2843 = vmatpush.bf16.msrb.mxu1 %v6367_v2  ;;  %v6787_v63 = vor.u32 %v8911_v53, %v6786_v51  ;;  %v6242_v0 = vld [vmem:[#allocation5 + $0x350] sm:$0xf] }
 0x117   :  { %v6876_v4 = vld [vmem:[#allocation5 + $0x868] sm:$0xf0]  ;;  %v6498_v2 = vld [vmem:[#allocation5 + $0x550] sm:$0xf] }
 0x118   :  { %v8994_v5 = vld [vmem:[#allocation5 + $0xa4c] sm:$0xf]  ;;  %v6879_v15 = vor.u32 %v8930_v3, %v6876_v4  ;;  %2856 = vmatpush.bf16.msra.mxu3 %v6623_v14  ;;  %v8839_v3 = vld [vmem:[#allocation5 + $0x56c] sm:$0xf0] }
 0x119   :  { %v7132_v7 = vld [vmem:[#allocation5 + $0xa68] sm:$0xf0]  ;;  %v6754_v4 = vld [vmem:[#allocation5 + $0x750] sm:$0xf] }
 0x11a   :  { %v8794_v9 = vld [vmem:[#allocation5 + $0x40c] sm:$0xf]  ;;  %v7135_v19 = vor.u32 %v8994_v5, %v7132_v7  ;;  %2869 = vmatpush.bf16.msra.mxu2 %v6879_v15  ;;  %v8903_v5 = vld [vmem:[#allocation5 + $0x76c] sm:$0xf0]  ;;  %v5987_v7 = vor.u32 %v8711_v61, %v5986_v60  ;;  %v2612_v15 = vpop.f32.mrf.mxu1 }
 0x11b   :  { %v6332_v10 = vld [vmem:[#allocation5 + $0x428] sm:$0xf0]  ;;  %v6755_v14 = vor.u32 %v8903_v5, %v6754_v4  ;;  %v5922_v26 = vld [vmem:[#allocation5 + $0xd0] sm:$0xf] }
 0x11c   :  { %v9050_v12 = vld [vmem:[#allocation5 + $0xc0c] sm:$0xf]  ;;  %v6335_v20 = vor.u32 %v8794_v9, %v6332_v10  ;;  %2882 = vmatpush.bf16.msra.mxu0 %v7135_v19  ;;  %v6243_v9 = vor.u32 %v8775_v1, %v6242_v0  ;;  %v5954_v10 = vld [vmem:[#allocation5 + $0x110] sm:$0xf]  ;;  %v2627_v19 = vpop.f32.mrf.mxu2 }
 0x11d   :  { %v7356_v13 = vld [vmem:[#allocation5 + $0xc28] sm:$0xf0]  ;;  %v8695_v27 = vld [vmem:[#allocation5 + $0xec] sm:$0xf0] }
 0x11e   :  { %v8858_v16 = vld [vmem:[#allocation5 + $0x60c] sm:$0xf]  ;;  %v7359_v25 = vor.u32 %v9050_v12, %v7356_v13  ;;  %2844 = vmatpush.bf16.msrb.mxu1 %v6335_v20  ;;  %v2600_v12 = vadd.f32 %v2599_v6, %v9735_v54  ;;  %v6499_v13 = vor.u32 %v8839_v3, %v6498_v2  ;;  %v8831_v20 = vld [vmem:[#allocation5 + $0x52c] sm:$0xf0] }
 0x11f   :  { %v6588_v17 = vld [vmem:[#allocation5 + $0x628] sm:$0xf0]  ;;  %v6178_v28 = vld [vmem:[#allocation5 + $0x2d0] sm:$0xf]  ;;  %v6467_v29 = vor.u32 %v8831_v20, %v6466_v18 }
 0x120   :  { %v8922_v21 = vld [vmem:[#allocation5 + $0x80c] sm:$0xf]  ;;  %v6591_v32 = vor.u32 %v8858_v16, %v6588_v17  ;;  %v6210_v16 = vld [vmem:[#allocation5 + $0x310] sm:$0xf] }
 0x121   :  { %v6844_v22 = vld [vmem:[#allocation5 + $0x828] sm:$0xf0]  ;;  %2845 = vmatmul.bf16.vlgmr.msrb.gmra.mxu1 %v9692_v52  ;;  %v8767_v17 = vld [vmem:[#allocation5 + $0x32c] sm:$0xf0] }
 0x122   :  { %v8986_v23 = vld [vmem:[#allocation5 + $0xa0c] sm:$0xf]  ;;  %v6847_v37 = vor.u32 %v8922_v21, %v6844_v22  ;;  %2896 = vmatpush.bf16.msra.mxu1 %v7359_v25  ;;  %2857 = vmatpush.bf16.msra.mxu3 %v6591_v32  ;;  %v6722_v21 = vld [vmem:[#allocation5 + $0x710] sm:$0xf]  ;;  %v6211_v25 = vor.u32 %v8767_v17, %v6210_v16  ;;  %v2614_v53 = vpop.f32.mrf.mxu1 }
 0x123   :  { %v7100_v24 = vld [vmem:[#allocation5 + $0xa28] sm:$0xf0]  ;;  %v8895_v22 = vld [vmem:[#allocation5 + $0x72c] sm:$0xf0] }
 0x124   :  { %v7103_v38 = vor.u32 %v8986_v23, %v7100_v24  ;;  %2870 = vmatpush.bf16.msra.mxu2 %v6847_v37  ;;  %v2613_v23 = vadd.f32 %v2612_v15, %v2600_v12  ;;  %v5955_v24 = vor.u32 %v8703_v11, %v5954_v10  ;;  %v6723_v30 = vor.u32 %v8895_v22, %v6722_v21  ;;  %v8759_v32 = vld [vmem:[#allocation5 + $0x2ec] sm:$0xf0]  ;;  %v2651_v61 = vpop.f32.mrf.mxu2 }
 0x125   :  { %2858 = vmatmul.bf16.vlgmr.msra.gmra.mxu3 %v9696_v58  ;;  %v6434_v33 = vld [vmem:[#allocation5 + $0x4d0] sm:$0xf] }
 0x126   :  { %2883 = vmatpush.bf16.msra.mxu0 %v7103_v38  ;;  %2902 = vmatpush.bf16.msrb.mxu3 %v6051_v39  ;;  %v9742_v54 = vadd.f32 %v2625_v49, %v2613_v23  ;;  %v8823_v35 = vld [vmem:[#allocation5 + $0x4ec] sm:$0xf0]  ;;  %v5923_v39 = vor.u32 %v8695_v27, %v5922_v26 }
 0x127   :  { %2915 = vmatpush.bf16.msrb.mxu1 %v6307_v40  ;;  %2871 = vmatmul.bf16.vlgmr.msra.gmra.mxu2 %v9708_v31  ;;  %v6690_v37 = vld [vmem:[#allocation5 + $0x6d0] sm:$0xf]  ;;  %v6179_v40 = vor.u32 %v8759_v32, %v6178_v28  ;;  %v6435_v45 = vor.u32 %v8823_v35, %v6434_v33  ;;  %v8723_v33 = vld [vmem:[#allocation5 + $0x1d4] sm:$0xf] }
 0x128   :  { %2928 = vmatpush.bf16.msrb.mxu2 %v6563_v43  ;;  %v8887_v38 = vld [vmem:[#allocation5 + $0x6ec] sm:$0xf0]  ;;  %v2638_v43 = vpop.f32.mrf.mxu3 }
 0x129   :  { %2884 = vmatmul.bf16.vlgmr.msra.gmra.mxu0 %v9710_v36  ;;  %v5890_v41 = vld [vmem:[#allocation5 + $0x90] sm:$0xf]  ;;  %v6691_v47 = vor.u32 %v8887_v38, %v6690_v37  ;;  %v2639_v51 = vadd.f32 %v2638_v43, %v559_v34  ;;  %v6052_v34 = vld [vmem:[#allocation5 + $0x1f0] sm:$0xf0] }
 0x12a   :  { %2941 = vmatpush.bf16.msrb.mxu0 %v6819_v44  ;;  %2903 = vmatpush.bf16.msrb.mxu3 %v6019_v55  ;;  %v8687_v42 = vld [vmem:[#allocation5 + $0xac] sm:$0xf0]  ;;  %v2601_v44 = vpop.f32.mrf.mxu0  ;;  %v6308_v43 = vld [vmem:[#allocation5 + $0x3f0] sm:$0xf0] }
 0x12b   :  { %2916 = vmatpush.bf16.msrb.mxu1 %v6275_v59  ;;  %v6146_v48 = vld [vmem:[#allocation5 + $0x290] sm:$0xf]  ;;  %v6055_v44 = vor.u32 %v8723_v33, %v6052_v34  ;;  %v8691_v34 = vld [vmem:[#allocation5 + $0xd4] sm:$0xf] }
 0x12c   :  { %2929 = vmatpush.bf16.msrb.mxu2 %v6531_v62  ;;  %v8751_v49 = vld [vmem:[#allocation5 + $0x2ac] sm:$0xf0]  ;;  %v9747_v62 = vadd.f32 %v2651_v61, %v2639_v51  ;;  %v2653_v26 = vpop.f32.mrf.mxu2  ;;  %v6020_v51 = vld [vmem:[#allocation5 + $0x1b0] sm:$0xf0] }
 0x12d   :  { %v6402_v50 = vld [vmem:[#allocation5 + $0x490] sm:$0xf]  ;;  %v6147_v0 = vor.u32 %v8751_v49, %v6146_v48  ;;  %v6276_v61 = vld [vmem:[#allocation5 + $0x3b0] sm:$0xf0] }
 0x12e   :  { %2942 = vmatpush.bf16.msrb.mxu0 %v6787_v63  ;;  %2904 = vmatpush.bf16.msrb.mxu3 %v5987_v7  ;;  %v8815_v55 = vld [vmem:[#allocation5 + $0x4ac] sm:$0xf0]  ;;  %v5891_v63 = vor.u32 %v8687_v42, %v5890_v41  ;;  %v8787_v42 = vld [vmem:[#allocation5 + $0x3d4] sm:$0xf] }
 0x12f   :  { %2917 = vmatpush.bf16.msrb.mxu1 %v6243_v9  ;;  %v6658_v59 = vld [vmem:[#allocation5 + $0x690] sm:$0xf]  ;;  %v6403_v3 = vor.u32 %v8815_v55, %v6402_v50  ;;  %v8715_v50 = vld [vmem:[#allocation5 + $0x194] sm:$0xf]  ;;  %v6311_v55 = vor.u32 %v8787_v42, %v6308_v43 }
 0x130   :  { %2930 = vmatpush.bf16.msrb.mxu2 %v6499_v13  ;;  %v8879_v60 = vld [vmem:[#allocation5 + $0x6ac] sm:$0xf0]  ;;  %v2640_v17 = vpop.f32.mrf.mxu3  ;;  %v8763_v26 = vld [vmem:[#allocation5 + $0x314] sm:$0xf] }
 0x131   :  { %7379 = vmatmul.msk.bf16.vlgmr.msra.gmra.mxu1 %vm2534_vm0, %v9704_v46  ;;  %v5858_v1 = vld [vmem:[#allocation5 + $0x50] sm:$0xf]  ;;  %v6659_v4 = vor.u32 %v8879_v60, %v6658_v59  ;;  %v8779_v60 = vld [vmem:[#allocation5 + $0x394] sm:$0xf] }
 0x132   :  { %2943 = vmatpush.bf16.msrb.mxu0 %v6755_v14  ;;  %2905 = vmatpush.bf16.msrb.mxu3 %v5955_v24  ;;  %v8679_v2 = vld [vmem:[#allocation5 + $0x6c] sm:$0xf0]  ;;  %v6180_v42 = vld [vmem:[#allocation5 + $0x2f0] sm:$0xf0] }
 0x133   :  { %2918 = vmatpush.bf16.msrb.mxu1 %v6211_v25  ;;  %v6114_v5 = vld [vmem:[#allocation5 + $0x250] sm:$0xf]  ;;  %v5859_v12 = vor.u32 %v8679_v2, %v5858_v1 }
 0x134   :  { %2931 = vmatpush.bf16.msrb.mxu2 %v6467_v29  ;;  %v8743_v6 = vld [vmem:[#allocation5 + $0x26c] sm:$0xf0] }
 0x135   :  { %v6370_v7 = vld [vmem:[#allocation5 + $0x450] sm:$0xf]  ;;  %v6115_v13 = vor.u32 %v8743_v6, %v6114_v5  ;;  %v8707_v5 = vld [vmem:[#allocation5 + $0x154] sm:$0xf] }
 0x136   :  { %2944 = vmatpush.bf16.msrb.mxu0 %v6723_v30  ;;  %2906 = vmatpush.bf16.msrb.mxu3 %v5923_v39  ;;  %v8807_v9 = vld [vmem:[#allocation5 + $0x46c] sm:$0xf0]  ;;  %v5988_v6 = vld [vmem:[#allocation5 + $0x170] sm:$0xf0] }
 0x137   :  { %2919 = vmatpush.bf16.msrb.mxu1 %v6179_v40  ;;  %v6626_v10 = vld [vmem:[#allocation5 + $0x650] sm:$0xf]  ;;  %v6371_v18 = vor.u32 %v8807_v9, %v6370_v7  ;;  %v6279_v7 = vor.u32 %v8779_v60, %v6276_v61  ;;  %v2664_v9 = vpop.f32.mrf.mxu0 }
 0x138   :  { %2932 = vmatpush.bf16.msrb.mxu2 %v6435_v45  ;;  %v8871_v11 = vld [vmem:[#allocation5 + $0x66c] sm:$0xf0] }
 0x139   :  { %v5826_v14 = vld [vmem:[#allocation5 + $0x10] sm:$0xf]  ;;  %v6627_v19 = vor.u32 %v8871_v11, %v6626_v10  ;;  %v8771_v11 = vld [vmem:[#allocation5 + $0x354] sm:$0xf] }
 0x13a   :  { %2945 = vmatpush.bf16.msrb.mxu0 %v6691_v47  ;;  %2907 = vmatpush.bf16.msrb.mxu3 %v5891_v63  ;;  %v8671_v15 = vld [vmem:[#allocation5 + $0x2c] sm:$0xf0] }
 0x13b   :  { %2920 = vmatpush.bf16.msrb.mxu1 %v6147_v0  ;;  %v6082_v16 = vld [vmem:[#allocation5 + $0x210] sm:$0xf]  ;;  %v5827_v30 = vor.u32 %v8671_v15, %v5826_v14  ;;  %v6023_v0 = vor.u32 %v8715_v50, %v6020_v51  ;;  %v5991_v15 = vor.u32 %v8707_v5, %v5988_v6 }
 0x13c   :  { %2933 = vmatpush.bf16.msrb.mxu2 %v6403_v3  ;;  %v8735_v20 = vld [vmem:[#allocation5 + $0x22c] sm:$0xf0] }
 0x13d   :  { %v6338_v21 = vld [vmem:[#allocation5 + $0x410] sm:$0xf]  ;;  %v6083_v32 = vor.u32 %v8735_v20, %v6082_v16 }
 0x13e   :  { %2946 = vmatpush.bf16.msrb.mxu0 %v6659_v4  ;;  %v8799_v22 = vld [vmem:[#allocation5 + $0x42c] sm:$0xf0]  ;;  %2908 = vmatpush.bf16.msrb.mxu3 %v5859_v12  ;;  %v6244_v12 = vld [vmem:[#allocation5 + $0x370] sm:$0xf0] }
 0x13f   :  { %v6594_v23 = vld [vmem:[#allocation5 + $0x610] sm:$0xf]  ;;  %2921 = vmatpush.bf16.msrb.mxu1 %v6115_v13  ;;  %v6339_v35 = vor.u32 %v8799_v22, %v6338_v21  ;;  %v2665_v13 = vadd.f32 %v2664_v9, %v9747_v62  ;;  %v8699_v21 = vld [vmem:[#allocation5 + $0x114] sm:$0xf]  ;;  %v2666_v43 = vpop.f32.mrf.mxu0  ;;  %v2703_v50 = vpop.f32.mrf.mxu2 }
 0x140   :  { %v8863_v24 = vld [vmem:[#allocation5 + $0x62c] sm:$0xf0]  ;;  %2934 = vmatpush.bf16.msrb.mxu2 %v6371_v18  ;;  %v5956_v22 = vld [vmem:[#allocation5 + $0x130] sm:$0xf0] }
 0x141   :  { %v7074_v25 = vld [vmem:[#allocation5 + $0x9d0] sm:$0xf]  ;;  %v6595_v37 = vor.u32 %v8863_v24, %v6594_v23  ;;  %v6247_v24 = vor.u32 %v8771_v11, %v6244_v12  ;;  %v5959_v62 = vor.u32 %v8699_v21, %v5956_v22  ;;  %v8675_v9 = vld [vmem:[#allocation5 + $0x54] sm:$0xf] }
 0x142   :  { %v8983_v27 = vld [vmem:[#allocation5 + $0x9ec] sm:$0xf0]  ;;  %2947 = vmatpush.bf16.msrb.mxu0 %v6627_v19  ;;  %2909 = vmatpush.bf16.msrb.mxu3 %v5827_v30  ;;  %v2677_v19 = vpop.f32.mrf.mxu1  ;;  %v8667_v22 = vld [vmem:[#allocation5 + $0x14] sm:$0xf] }
 0x143   :  { %v7330_v28 = vld [vmem:[#allocation5 + $0xbd0] sm:$0xf]  ;;  %v7075_v39 = vor.u32 %v8983_v27, %v7074_v25  ;;  %2922 = vmatpush.bf16.msrb.mxu1 %v6083_v32  ;;  %v2678_v23 = vadd.f32 %v2677_v19, %v2665_v13  ;;  %v6212_v27 = vld [vmem:[#allocation5 + $0x330] sm:$0xf0] }
 0x144   :  { %v9047_v29 = vld [vmem:[#allocation5 + $0xbec] sm:$0xf0]  ;;  %2935 = vmatpush.bf16.msrb.mxu2 %v6339_v35  ;;  %v5924_v35 = vld [vmem:[#allocation5 + $0xf0] sm:$0xf0] }
 0x145   :  { %v7362_v38 = vld [vmem:[#allocation5 + $0xc10] sm:$0xf]  ;;  %v7331_v40 = vor.u32 %v9047_v29, %v7330_v28  ;;  %2910 = vmatmul.bf16.vlgmr.msrb.gmra.mxu3 %v9694_v56 }
 0x146   :  { %v9055_v41 = vld [vmem:[#allocation5 + $0xc2c] sm:$0xf0]  ;;  %2948 = vmatpush.bf16.msrb.mxu0 %v6595_v37  ;;  %2954 = vmatpush.bf16.msra.mxu3 %v7075_v39  ;;  %v2690_v37 = vpop.f32.mrf.mxu3  ;;  %v6215_v39 = vor.u32 %v8763_v26, %v6212_v27  ;;  %v6564_v26 = vld [vmem:[#allocation5 + $0x5f0] sm:$0xf0] }
 0x147   :  { %v7042_v45 = vld [vmem:[#allocation5 + $0x990] sm:$0xf]  ;;  %v7363_v53 = vor.u32 %v9055_v41, %v7362_v38  ;;  %2967 = vmatpush.bf16.msra.mxu1 %v7331_v40  ;;  %2936 = vmatmul.bf16.vlgmr.msrb.gmra.mxu2 %v9692_v52  ;;  %v2691_v38 = vadd.f32 %v2690_v37, %v2678_v23  ;;  %v8755_v41 = vld [vmem:[#allocation5 + $0x2d4] sm:$0xf] }
 0x148   :  { %v8975_v47 = vld [vmem:[#allocation5 + $0x9ac] sm:$0xf0]  ;;  %2923 = vmatmul.bf16.vlgmr.msrb.gmra.mxu1 %v9700_v8  ;;  %v6183_v61 = vor.u32 %v8755_v41, %v6180_v42  ;;  %v5828_v23 = vld [vmem:[#allocation5 + $0x30] sm:$0xf0] }
 0x149   :  { %v7298_v48 = vld [vmem:[#allocation5 + $0xb90] sm:$0xf]  ;;  %v7043_v59 = vor.u32 %v8975_v47, %v7042_v45  ;;  %2987 = vmatpush.bf16.msra.mxu2 %v7363_v53  ;;  %2949 = vmatmul.bf16.vlgmr.msrb.gmra.mxu0 %v9696_v58  ;;  %v5927_v45 = vor.u32 %v8691_v34, %v5924_v35  ;;  %v8683_v53 = vld [vmem:[#allocation5 + $0x94] sm:$0xf]  ;;  %v9754_v60 = vadd.f32 %v2703_v50, %v2691_v38 }
 0x14a   :  { %v9039_v49 = vld [vmem:[#allocation5 + $0xbac] sm:$0xf0]  ;;  %2993 = vmatpush.bf16.msra.mxu0 %v6055_v44  ;;  %v8915_v27 = vld [vmem:[#allocation5 + $0x7d4] sm:$0xf]  ;;  %v5831_v34 = vor.u32 %v8667_v22, %v5828_v23  ;;  %v560_v22 = vperm.slane %v9729_v57, 2 }
 0x14b   :  { %v7299_v63 = vor.u32 %v9039_v49, %v7298_v48  ;;  %v7010_v1 = vld [vmem:[#allocation5 + $0x950] sm:$0xf]  ;;  %2955 = vmatpush.bf16.msra.mxu3 %v7043_v59  ;;  %v2679_v59 = vpop.f32.mrf.mxu1  ;;  %v8731_v35 = vld [vmem:[#allocation5 + $0x214] sm:$0xf] }
 0x14c   :  { %v8967_v2 = vld [vmem:[#allocation5 + $0x96c] sm:$0xf0]  ;;  %v6084_v37 = vld [vmem:[#allocation5 + $0x230] sm:$0xf0] }
 0x14d   :  { %v7266_v3 = vld [vmem:[#allocation5 + $0xb50] sm:$0xf]  ;;  %3006 = vmatpush.bf16.msrb.mxu2 %v6311_v55  ;;  %v7011_v10 = vor.u32 %v8967_v2, %v7010_v1  ;;  %2968 = vmatpush.bf16.msra.mxu1 %v7299_v63  ;;  %v5892_v55 = vld [vmem:[#allocation5 + $0xb0] sm:$0xf0]  ;;  %v6087_v50 = vor.u32 %v8731_v35, %v6084_v37 }
 0x14e   :  { %v9031_v4 = vld [vmem:[#allocation5 + $0xb6c] sm:$0xf0]  ;;  %2994 = vmatpush.bf16.msra.mxu0 %v6023_v0  ;;  %v8747_v0 = vld [vmem:[#allocation5 + $0x294] sm:$0xf]  ;;  %v2692_v11 = vpop.f32.mrf.mxu3 }
 0x14f   :  { %v7267_v14 = vor.u32 %v9031_v4, %v7266_v3  ;;  %v6978_v16 = vld [vmem:[#allocation5 + $0x910] sm:$0xf]  ;;  %2956 = vmatpush.bf16.msra.mxu3 %v7011_v10  ;;  %v6148_v1 = vld [vmem:[#allocation5 + $0x2b0] sm:$0xf0]  ;;  %v5895_v3 = vor.u32 %v8683_v53, %v5892_v55 }
 0x150   :  { %v8959_v17 = vld [vmem:[#allocation5 + $0x92c] sm:$0xf0]  ;;  %v5860_v10 = vld [vmem:[#allocation5 + $0x70] sm:$0xf0]  ;;  %v6151_v12 = vor.u32 %v8747_v0, %v6148_v1 }
 0x151   :  { %v7234_v18 = vld [vmem:[#allocation5 + $0xb10] sm:$0xf]  ;;  %3007 = vmatpush.bf16.msrb.mxu2 %v6279_v7  ;;  %v6979_v25 = vor.u32 %v8959_v17, %v6978_v16  ;;  %2969 = vmatpush.bf16.msra.mxu1 %v7267_v14  ;;  %v8739_v14 = vld [vmem:[#allocation5 + $0x254] sm:$0xf] }
 0x152   :  { %v9023_v20 = vld [vmem:[#allocation5 + $0xb2c] sm:$0xf0]  ;;  %2995 = vmatpush.bf16.msra.mxu0 %v5991_v15  ;;  %v6116_v15 = vld [vmem:[#allocation5 + $0x270] sm:$0xf0] }
 0x153   :  { %v7235_v28 = vor.u32 %v9023_v20, %v7234_v18  ;;  %v6946_v29 = vld [vmem:[#allocation5 + $0x8d0] sm:$0xf]  ;;  %2957 = vmatpush.bf16.msra.mxu3 %v6979_v25  ;;  %v5863_v18 = vor.u32 %v8675_v9, %v5860_v10  ;;  %v2705_v25 = vpop.f32.mrf.mxu2  ;;  %v7332_v41 = vld [vmem:[#allocation5 + $0xbf0] sm:$0xf0] }
 0x154   :  { %v8951_v30 = vld [vmem:[#allocation5 + $0x8ec] sm:$0xf0]  ;;  %v8843_v42 = vld [vmem:[#allocation5 + $0x594] sm:$0xf] }
 0x155   :  { %v7202_v32 = vld [vmem:[#allocation5 + $0xad0] sm:$0xf]  ;;  %3008 = vmatpush.bf16.msrb.mxu2 %v6247_v24  ;;  %v6947_v40 = vor.u32 %v8951_v30, %v6946_v29  ;;  %2970 = vmatpush.bf16.msra.mxu1 %v7235_v28  ;;  %v8851_v24 = vld [vmem:[#allocation5 + $0x5d4] sm:$0xf] }
 0x156   :  { %v9015_v33 = vld [vmem:[#allocation5 + $0xaec] sm:$0xf0]  ;;  %2996 = vmatpush.bf16.msra.mxu0 %v5959_v62  ;;  %v6820_v28 = vld [vmem:[#allocation5 + $0x7f0] sm:$0xf0]  ;;  %v6119_v62 = vor.u32 %v8739_v14, %v6116_v15  ;;  %v6567_v38 = vor.u32 %v8851_v24, %v6564_v26  ;;  %v2729_v24 = vpop.f32.mrf.mxu1 }
 0x157   :  { %v7203_v44 = vor.u32 %v9015_v33, %v7202_v32  ;;  %v6914_v47 = vld [vmem:[#allocation5 + $0x890] sm:$0xf]  ;;  %2958 = vmatpush.bf16.msra.mxu3 %v6947_v40  ;;  %7380 = vmatmul.msk.bf16.vlgmr.msra.gmra.mxu2 %vm2534_vm0, %v9704_v46  ;;  %v8979_v30 = vld [vmem:[#allocation5 + $0x9d4] sm:$0xf] }
 0x158   :  { %v8943_v48 = vld [vmem:[#allocation5 + $0x8ac] sm:$0xf0]  ;;  %v7076_v32 = vld [vmem:[#allocation5 + $0x9f0] sm:$0xf0] }
 0x159   :  { %v7170_v49 = vld [vmem:[#allocation5 + $0xa90] sm:$0xf]  ;;  %3009 = vmatpush.bf16.msrb.mxu2 %v6215_v39  ;;  %v6915_v63 = vor.u32 %v8943_v48, %v6914_v47  ;;  %2971 = vmatpush.bf16.msra.mxu1 %v7203_v44  ;;  %v6823_v39 = vor.u32 %v8915_v27, %v6820_v28  ;;  %v9043_v40 = vld [vmem:[#allocation5 + $0xbd4] sm:$0xf]  ;;  %v7079_v43 = vor.u32 %v8979_v30, %v7076_v32  ;;  %v2716_v44 = vpop.f32.mrf.mxu3 }
 0x15a   :  { %v9007_v51 = vld [vmem:[#allocation5 + $0xaac] sm:$0xf0]  ;;  %2997 = vmatpush.bf16.msra.mxu0 %v5927_v45  ;;  %v6532_v45 = vld [vmem:[#allocation5 + $0x5b0] sm:$0xf0]  ;;  %v7335_v55 = vor.u32 %v9043_v40, %v7332_v41 }
 0x15b   :  { %v7171_v2 = vor.u32 %v9007_v51, %v7170_v49  ;;  %v6882_v4 = vld [vmem:[#allocation5 + $0x850] sm:$0xf]  ;;  %2959 = vmatpush.bf16.msra.mxu3 %v6915_v63  ;;  %v8907_v47 = vld [vmem:[#allocation5 + $0x794] sm:$0xf]  ;;  %v9759_v49 = vadd.f32 %v2716_v44, %v9754_v60  ;;  %v6535_v59 = vor.u32 %v8843_v42, %v6532_v45 }
 0x15c   :  { %v8935_v5 = vld [vmem:[#allocation5 + $0x86c] sm:$0xf0]  ;;  %v6788_v48 = vld [vmem:[#allocation5 + $0x7b0] sm:$0xf0] }
 0x15d   :  { %v7138_v6 = vld [vmem:[#allocation5 + $0xa50] sm:$0xf]  ;;  %3010 = vmatpush.bf16.msrb.mxu2 %v6183_v61  ;;  %v6883_v13 = vor.u32 %v8935_v5, %v6882_v4  ;;  %2972 = vmatpush.bf16.msra.mxu1 %v7171_v2  ;;  %v8971_v51 = vld [vmem:[#allocation5 + $0x994] sm:$0xf]  ;;  %v6791_v61 = vor.u32 %v8907_v47, %v6788_v48 }
 0x15e   :  { %v8999_v7 = vld [vmem:[#allocation5 + $0xa6c] sm:$0xf0]  ;;  %2998 = vmatpush.bf16.msra.mxu0 %v5895_v3  ;;  %v7044_v53 = vld [vmem:[#allocation5 + $0x9b0] sm:$0xf0] }
 0x15f   :  { %v6850_v16 = vld [vmem:[#allocation5 + $0x810] sm:$0xf]  ;;  %v7139_v17 = vor.u32 %v8999_v7, %v7138_v6  ;;  %2960 = vmatpush.bf16.msra.mxu3 %v6883_v13  ;;  %v9035_v63 = vld [vmem:[#allocation5 + $0xb94] sm:$0xf]  ;;  %v7047_v2 = vor.u32 %v8971_v51, %v7044_v53  ;;  %v2755_v13 = vpop.f32.mrf.mxu0 }
 0x160   :  { %v8927_v19 = vld [vmem:[#allocation5 + $0x82c] sm:$0xf0]  ;;  %v7300_v0 = vld [vmem:[#allocation5 + $0xbb0] sm:$0xf0] }
 0x161   :  { %v7106_v20 = vld [vmem:[#allocation5 + $0xa10] sm:$0xf]  ;;  %3011 = vmatpush.bf16.msrb.mxu2 %v6151_v12  ;;  %v6851_v29 = vor.u32 %v8927_v19, %v6850_v16  ;;  %2973 = vmatpush.bf16.msra.mxu1 %v7139_v17  ;;  %v8835_v1 = vld [vmem:[#allocation5 + $0x554] sm:$0xf]  ;;  %v7303_v7 = vor.u32 %v9035_v63, %v7300_v0  ;;  %v2718_v16 = vpop.f32.mrf.mxu3  ;;  %v2731_v63 = vpop.f32.mrf.mxu1 }
 0x162   :  { %v8991_v21 = vld [vmem:[#allocation5 + $0xa2c] sm:$0xf0]  ;;  %2999 = vmatpush.bf16.msra.mxu0 %v5863_v18  ;;  %v6500_v3 = vld [vmem:[#allocation5 + $0x570] sm:$0xf0]  ;;  %v6282_v63 = vld [vmem:[#allocation5 + $0x398] sm:$0xf] }
 0x163   :  { %v7107_v33 = vor.u32 %v8991_v21, %v7106_v20  ;;  %2961 = vmatpush.bf16.msra.mxu3 %v6851_v29  ;;  %v8899_v60 = vld [vmem:[#allocation5 + $0x754] sm:$0xf]  ;;  %v6503_v9 = vor.u32 %v8835_v1, %v6500_v3 }
 0x164   :  { %v6756_v4 = vld [vmem:[#allocation5 + $0x770] sm:$0xf0] }
 0x165   :  { %3012 = vmatpush.bf16.msrb.mxu2 %v6119_v62  ;;  %2974 = vmatpush.bf16.msra.mxu1 %v7107_v33  ;;  %v8963_v5 = vld [vmem:[#allocation5 + $0x954] sm:$0xf]  ;;  %v6759_v10 = vor.u32 %v8899_v60, %v6756_v4 }
 0x166   :  { %3000 = vmatpush.bf16.msra.mxu0 %v5831_v34  ;;  %2962 = vmatmul.bf16.vlgmr.msra.gmra.mxu3 %v9708_v31  ;;  %v7012_v6 = vld [vmem:[#allocation5 + $0x970] sm:$0xf0]  ;;  %v2730_v34 = vadd.f32 %v2729_v24, %v560_v22 }
 0x167   :  { %3019 = vmatpush.bf16.msrb.mxu3 %v6567_v38  ;;  %v9027_v11 = vld [vmem:[#allocation5 + $0xb54] sm:$0xf]  ;;  %v7015_v15 = vor.u32 %v8963_v5, %v7012_v6  ;;  %v2757_v42 = vpop.f32.mrf.mxu0 }
 0x168   :  { %2975 = vmatmul.bf16.vlgmr.msra.gmra.mxu1 %v9710_v36  ;;  %v7268_v12 = vld [vmem:[#allocation5 + $0xb70] sm:$0xf0]  ;;  %v8792_v42 = vld [vmem:[#allocation5 + $0x3f4] sm:$0xf0] }
 0x169   :  { %3032 = vmatpush.bf16.msrb.mxu1 %v6823_v39  ;;  %3013 = vmatpush.bf16.msrb.mxu2 %v6087_v50  ;;  %v8827_v14 = vld [vmem:[#allocation5 + $0x514] sm:$0xf]  ;;  %v7271_v23 = vor.u32 %v9027_v11, %v7268_v12  ;;  %v2742_v45 = vpop.f32.mrf.mxu3 }
 0x16a   :  { %3045 = vmatpush.bf16.msrb.mxu0 %v7079_v43  ;;  %v6468_v17 = vld [vmem:[#allocation5 + $0x530] sm:$0xf0]  ;;  %v2743_v51 = vadd.f32 %v2742_v45, %v2730_v34 }
 0x16b   :  { %3001 = vmatmul.bf16.vlgmr.msra.gmra.mxu0 %v9694_v56  ;;  %3020 = vmatpush.bf16.msrb.mxu3 %v6535_v59  ;;  %v8891_v18 = vld [vmem:[#allocation5 + $0x714] sm:$0xf]  ;;  %v6471_v25 = vor.u32 %v8827_v14, %v6468_v17  ;;  %v2768_v59 = vpop.f32.mrf.mxu2 }
 0x16c   :  { %v6724_v19 = vld [vmem:[#allocation5 + $0x730] sm:$0xf0]  ;;  %3014 = vmatmul.bf16.vlgmr.msrb.gmra.mxu2 %v9700_v8 }
 0x16d   :  { %3058 = vmatpush.bf16.msra.mxu2 %v7335_v55  ;;  %3033 = vmatpush.bf16.msrb.mxu1 %v6791_v61  ;;  %v8955_v20 = vld [vmem:[#allocation5 + $0x914] sm:$0xf]  ;;  %v6727_v26 = vor.u32 %v8891_v18, %v6724_v19 }
 0x16e   :  { %3046 = vmatpush.bf16.msrb.mxu0 %v7047_v2  ;;  %v6980_v21 = vld [vmem:[#allocation5 + $0x930] sm:$0xf0]  ;;  %v2756_v2 = vadd.f32 %v2755_v13, %v2743_v51 }
 0x16f   :  { %3021 = vmatpush.bf16.msrb.mxu3 %v6503_v9  ;;  %v9019_v27 = vld [vmem:[#allocation5 + $0xb14] sm:$0xf]  ;;  %v6983_v29 = vor.u32 %v8955_v20, %v6980_v21  ;;  %v9768_v21 = vpop.f32.mrf.mxu0 }
 0x170   :  { %v7236_v28 = vld [vmem:[#allocation5 + $0xb30] sm:$0xf0] }
 0x171   :  { %3059 = vmatpush.bf16.msra.mxu2 %v7303_v7  ;;  %3034 = vmatpush.bf16.msrb.mxu1 %v6759_v10  ;;  %v8819_v62 = vld [vmem:[#allocation5 + $0x4d4] sm:$0xf]  ;;  %v7239_v57 = vor.u32 %v9019_v27, %v7236_v28  ;;  %v9766_v10 = vadd.f32 %v2768_v59, %v2756_v2  ;;  %v6058_v27 = vld [vmem:[#allocation5 + $0x1d8] sm:$0xf] }
 0x172   :  { %3047 = vmatpush.bf16.msrb.mxu0 %v7015_v15  ;;  %v6436_v30 = vld [vmem:[#allocation5 + $0x4f0] sm:$0xf0]  ;;  %v8728_v28 = vld [vmem:[#allocation5 + $0x1f4] sm:$0xf0] }
 0x173   :  { %v8883_v32 = vld [vmem:[#allocation5 + $0x6d4] sm:$0xf]  ;;  %3022 = vmatpush.bf16.msrb.mxu3 %v6471_v25  ;;  %v6439_v38 = vor.u32 %v8819_v62, %v6436_v30  ;;  %v6570_v62 = vld [vmem:[#allocation5 + $0x5d8] sm:$0xf] }
 0x174   :  { %v6692_v33 = vld [vmem:[#allocation5 + $0x6f0] sm:$0xf0]  ;;  %v8784_v2 = vld [vmem:[#allocation5 + $0x3b4] sm:$0xf0] }
 0x175   :  { %v8947_v35 = vld [vmem:[#allocation5 + $0x8d4] sm:$0xf]  ;;  %3060 = vmatpush.bf16.msra.mxu2 %v7271_v23  ;;  %3035 = vmatpush.bf16.msrb.mxu1 %v6727_v26  ;;  %v6695_v39 = vor.u32 %v8883_v32, %v6692_v33  ;;  %v2744_v26 = vpop.f32.mrf.mxu3  ;;  %v8856_v32 = vld [vmem:[#allocation5 + $0x5f4] sm:$0xf0] }
 0x176   :  { %v6948_v37 = vld [vmem:[#allocation5 + $0x8f0] sm:$0xf0]  ;;  %3048 = vmatpush.bf16.msrb.mxu0 %v6983_v29  ;;  %v2770_v29 = vpop.f32.mrf.mxu2  ;;  %v6571_v45 = vor.u32 %v8856_v32, %v6570_v62  ;;  %v8896_v32 = vld [vmem:[#allocation5 + $0x734] sm:$0xf0] }
 0x177   :  { %v9011_v40 = vld [vmem:[#allocation5 + $0xad4] sm:$0xf]  ;;  %v6951_v44 = vor.u32 %v8947_v35, %v6948_v37  ;;  %3023 = vmatpush.bf16.msrb.mxu3 %v6439_v38  ;;  %v8768_v29 = vld [vmem:[#allocation5 + $0x334] sm:$0xf0] }
 0x178   :  { %v7204_v41 = vld [vmem:[#allocation5 + $0xaf0] sm:$0xf0] }
 0x179   :  { %v8811_v43 = vld [vmem:[#allocation5 + $0x494] sm:$0xf]  ;;  %3061 = vmatpush.bf16.msra.mxu2 %v7239_v57  ;;  %v7207_v61 = vor.u32 %v9011_v40, %v7204_v41  ;;  %3036 = vmatpush.bf16.msrb.mxu1 %v6695_v39  ;;  %v6314_v39 = vld [vmem:[#allocation5 + $0x3d8] sm:$0xf]  ;;  %v6059_v41 = vor.u32 %v8728_v28, %v6058_v27 }
 0x17a   :  { %v6404_v47 = vld [vmem:[#allocation5 + $0x4b0] sm:$0xf0]  ;;  %3049 = vmatpush.bf16.msrb.mxu0 %v6951_v44  ;;  %v8920_v44 = vld [vmem:[#allocation5 + $0x7f4] sm:$0xf0]  ;;  %v6315_v59 = vor.u32 %v8792_v42, %v6314_v39  ;;  %v9775_v42 = vld [vmem:[#allocation7] sm:$0xff] }
 0x17b   :  { %v8875_v48 = vld [vmem:[#allocation5 + $0x694] sm:$0xf]  ;;  %v6407_v0 = vor.u32 %v8811_v43, %v6404_v47  ;;  %v6826_v43 = vld [vmem:[#allocation5 + $0x7d8] sm:$0xf] }
 0x17c   :  { %v6660_v50 = vld [vmem:[#allocation5 + $0x6b0] sm:$0xf0]  ;;  %v6218_v28 = vld [vmem:[#allocation5 + $0x318] sm:$0xf] }
 0x17d   :  { %v8939_v53 = vld [vmem:[#allocation5 + $0x894] sm:$0xf]  ;;  %v6663_v1 = vor.u32 %v8875_v48, %v6660_v50  ;;  %3062 = vmatpush.bf16.msra.mxu2 %v7207_v61  ;;  %3024 = vmatpush.bf16.msrb.mxu3 %v6407_v0  ;;  %v6026_v48 = vld [vmem:[#allocation5 + $0x198] sm:$0xf]  ;;  %v6827_v61 = vor.u32 %v8920_v44, %v6826_v43  ;;  %v2809_v0 = vpop.f32.mrf.mxu0  ;;  %v561_v43 = vperm.slane %v9775_v42, 3 }
 0x17e   :  { %v6916_v55 = vld [vmem:[#allocation5 + $0x8b0] sm:$0xf0]  ;;  %v8720_v50 = vld [vmem:[#allocation5 + $0x1b4] sm:$0xf0] }
 0x17f   :  { %v9003_v3 = vld [vmem:[#allocation5 + $0xa94] sm:$0xf]  ;;  %v6919_v5 = vor.u32 %v8939_v53, %v6916_v55  ;;  %3037 = vmatpush.bf16.msrb.mxu1 %v6663_v1  ;;  %v6538_v53 = vld [vmem:[#allocation5 + $0x598] sm:$0xf]  ;;  %v6027_v1 = vor.u32 %v8720_v50, %v6026_v48  ;;  %v2820_v0 = vpop.f32.mrf.mxu2 }
 0x180   :  { %v7172_v60 = vld [vmem:[#allocation5 + $0xab0] sm:$0xf0]  ;;  %v8848_v55 = vld [vmem:[#allocation5 + $0x5b4] sm:$0xf0] }
 0x181   :  { %v8803_v4 = vld [vmem:[#allocation5 + $0x454] sm:$0xf]  ;;  %v7175_v14 = vor.u32 %v9003_v3, %v7172_v60  ;;  %3050 = vmatpush.bf16.msrb.mxu0 %v6919_v5  ;;  %v6794_v3 = vld [vmem:[#allocation5 + $0x798] sm:$0xf] }
 0x182   :  { %v6372_v6 = vld [vmem:[#allocation5 + $0x470] sm:$0xf0]  ;;  %v8912_v60 = vld [vmem:[#allocation5 + $0x7b4] sm:$0xf0] }
 0x183   :  { %v8867_v7 = vld [vmem:[#allocation5 + $0x654] sm:$0xf]  ;;  %v6375_v17 = vor.u32 %v8803_v4, %v6372_v6  ;;  %3063 = vmatpush.bf16.msra.mxu2 %v7175_v14  ;;  %v6539_v4 = vor.u32 %v8848_v55, %v6538_v53  ;;  %v5994_v5 = vld [vmem:[#allocation5 + $0x158] sm:$0xf]  ;;  %v2794_v55 = vpop.f32.mrf.mxu3 }
 0x184   :  { %v6628_v9 = vld [vmem:[#allocation5 + $0x670] sm:$0xf0]  ;;  %v8712_v6 = vld [vmem:[#allocation5 + $0x174] sm:$0xf0] }
 0x185   :  { %v8931_v11 = vld [vmem:[#allocation5 + $0x854] sm:$0xf]  ;;  %v6631_v13 = vor.u32 %v8867_v7, %v6628_v9  ;;  %3025 = vmatpush.bf16.msrb.mxu3 %v6375_v17  ;;  %v6506_v7 = vld [vmem:[#allocation5 + $0x558] sm:$0xf] }
 0x186   :  { %v6884_v12 = vld [vmem:[#allocation5 + $0x870] sm:$0xf0]  ;;  %v8840_v9 = vld [vmem:[#allocation5 + $0x574] sm:$0xf0] }
 0x187   :  { %v8995_v15 = vld [vmem:[#allocation5 + $0xa54] sm:$0xf]  ;;  %v6887_v22 = vor.u32 %v8931_v11, %v6884_v12  ;;  %3038 = vmatpush.bf16.msrb.mxu1 %v6631_v13  ;;  %v6283_v11 = vor.u32 %v8784_v2, %v6282_v63  ;;  %v6795_v12 = vor.u32 %v8912_v60, %v6794_v3  ;;  %v6250_v14 = vld [vmem:[#allocation5 + $0x358] sm:$0xf]  ;;  %v2821_v60 = vadd.f32 %v2820_v0, %v561_v43 }
 0x188   :  { %v7140_v16 = vld [vmem:[#allocation5 + $0xa70] sm:$0xf0]  ;;  %v8776_v17 = vld [vmem:[#allocation5 + $0x374] sm:$0xf0] }
 0x189   :  { %v8795_v18 = vld [vmem:[#allocation5 + $0x414] sm:$0xf]  ;;  %v7143_v30 = vor.u32 %v8995_v15, %v7140_v16  ;;  %3051 = vmatpush.bf16.msrb.mxu0 %v6887_v22  ;;  %v2781_v15 = vpop.f32.mrf.mxu1  ;;  %v5995_v16 = vor.u32 %v8712_v6, %v5994_v5  ;;  %v6762_v13 = vld [vmem:[#allocation5 + $0x758] sm:$0xf]  ;;  %v6251_v26 = vor.u32 %v8776_v17, %v6250_v14 }
 0x18a   :  { %v6340_v19 = vld [vmem:[#allocation5 + $0x430] sm:$0xf0]  ;;  %v5962_v22 = vld [vmem:[#allocation5 + $0x118] sm:$0xf] }
 0x18b   :  { %v8859_v20 = vld [vmem:[#allocation5 + $0x614] sm:$0xf]  ;;  %v6343_v35 = vor.u32 %v8795_v18, %v6340_v19  ;;  %3064 = vmatpush.bf16.msra.mxu2 %v7143_v30  ;;  %v8904_v18 = vld [vmem:[#allocation5 + $0x774] sm:$0xf0]  ;;  %v2782_v19 = vadd.f32 %v2781_v15, %v9766_v10 }
 0x18c   :  { %v6596_v23 = vld [vmem:[#allocation5 + $0x630] sm:$0xf0]  ;;  %v6763_v27 = vor.u32 %v8904_v18, %v6762_v13  ;;  %v6730_v30 = vld [vmem:[#allocation5 + $0x718] sm:$0xf] }
 0x18d   :  { %v8923_v24 = vld [vmem:[#allocation5 + $0x814] sm:$0xf]  ;;  %v6599_v37 = vor.u32 %v8859_v20, %v6596_v23  ;;  %3026 = vmatpush.bf16.msrb.mxu3 %v6343_v35  ;;  %v6507_v20 = vor.u32 %v8840_v9, %v6506_v7  ;;  %v8704_v23 = vld [vmem:[#allocation5 + $0x134] sm:$0xf0]  ;;  %v2833_v35 = vpop.f32.mrf.mxu0  ;;  %v6731_v39 = vor.u32 %v8896_v32, %v6730_v30  ;;  %v2796_v32 = vpop.f32.mrf.mxu3 }
 0x18e   :  { %v6852_v25 = vld [vmem:[#allocation5 + $0x830] sm:$0xf0]  ;;  %v5963_v62 = vor.u32 %v8704_v23, %v5962_v22  ;;  %v8688_v53 = vld [vmem:[#allocation5 + $0xb4] sm:$0xf0]  ;;  %v9781_v15 = vadd.f32 %v2833_v35, %v2821_v60 }
 0x18f   :  { %v9051_v33 = vld [vmem:[#allocation5 + $0xc14] sm:$0xf]  ;;  %v6855_v40 = vor.u32 %v8923_v24, %v6852_v25  ;;  %3039 = vmatpush.bf16.msrb.mxu1 %v6599_v37  ;;  %v6474_v24 = vld [vmem:[#allocation5 + $0x518] sm:$0xf] }
 0x190   :  { %v7364_v34 = vld [vmem:[#allocation5 + $0xc30] sm:$0xf0]  ;;  %3027 = vmatmul.bf16.vlgmr.msrb.gmra.mxu3 %v9692_v52  ;;  %v8832_v25 = vld [vmem:[#allocation5 + $0x534] sm:$0xf0] }
 0x191   :  { %v8987_v57 = vld [vmem:[#allocation5 + $0xa14] sm:$0xf]  ;;  %v7367_v47 = vor.u32 %v9051_v33, %v7364_v34  ;;  %3052 = vmatpush.bf16.msrb.mxu0 %v6855_v40  ;;  %v6475_v10 = vor.u32 %v8832_v25, %v6474_v24  ;;  %v5930_v33 = vld [vmem:[#allocation5 + $0xd8] sm:$0xf]  ;;  %v2783_v48 = vpop.f32.mrf.mxu1 }
 0x192   :  { %v7108_v38 = vld [vmem:[#allocation5 + $0xa30] sm:$0xf0]  ;;  %3040 = vmatmul.bf16.vlgmr.msrb.gmra.mxu1 %v9696_v58  ;;  %v8696_v34 = vld [vmem:[#allocation5 + $0xf4] sm:$0xf0]  ;;  %v8724_v48 = vld [vmem:[#allocation5 + $0x1dc] sm:$0xf] }
 0x193   :  { %v7111_v51 = vor.u32 %v8987_v57, %v7108_v38  ;;  %3084 = vmatpush.bf16.msra.mxu1 %v6059_v41  ;;  %3078 = vmatpush.bf16.msra.mxu3 %v7367_v47  ;;  %v6442_v37 = vld [vmem:[#allocation5 + $0x4d8] sm:$0xf]  ;;  %v6219_v38 = vor.u32 %v8768_v29, %v6218_v28  ;;  %v5931_v44 = vor.u32 %v8696_v34, %v5930_v33 }
 0x194   :  { %3053 = vmatmul.bf16.vlgmr.msrb.gmra.mxu0 %v9708_v31  ;;  %v8824_v57 = vld [vmem:[#allocation5 + $0x4f4] sm:$0xf0] }
 0x195   :  { %3110 = vmatpush.bf16.msra.mxu0 %v6571_v45  ;;  %3065 = vmatpush.bf16.msra.mxu2 %v7111_v51  ;;  %v6186_v40 = vld [vmem:[#allocation5 + $0x2d8] sm:$0xf]  ;;  %v6443_v50 = vor.u32 %v8824_v57, %v6442_v37 }
 0x196   :  { %v8760_v41 = vld [vmem:[#allocation5 + $0x2f4] sm:$0xf0] }
 0x197   :  { %3097 = vmatpush.bf16.msrb.mxu3 %v6315_v59  ;;  %3085 = vmatpush.bf16.msra.mxu1 %v6027_v1  ;;  %v6698_v45 = vld [vmem:[#allocation5 + $0x6d8] sm:$0xf]  ;;  %v6187_v59 = vor.u32 %v8760_v41, %v6186_v40  ;;  %v2795_v1 = vadd.f32 %v2794_v55, %v2782_v19  ;;  %v6316_v55 = vld [vmem:[#allocation5 + $0x3f8] sm:$0xf0] }
 0x198   :  { %3066 = vmatmul.bf16.vlgmr.msra.gmra.mxu2 %v9710_v36  ;;  %v8888_v47 = vld [vmem:[#allocation5 + $0x6f4] sm:$0xf0] }
 0x199   :  { %3123 = vmatpush.bf16.msrb.mxu2 %v6827_v61  ;;  %3111 = vmatpush.bf16.msra.mxu0 %v6539_v4  ;;  %v5898_v51 = vld [vmem:[#allocation5 + $0x98] sm:$0xf]  ;;  %v6699_v2 = vor.u32 %v8888_v47, %v6698_v45  ;;  %v9779_v9 = vadd.f32 %v9768_v21, %v2795_v1 }
 0x19a   :  { %v6410_v61 = vld [vmem:[#allocation5 + $0x498] sm:$0xf]  ;;  %v5899_v4 = vor.u32 %v8688_v53, %v5898_v51  ;;  %v6060_v51 = vld [vmem:[#allocation5 + $0x1f8] sm:$0xf0] }
 0x19b   :  { %3098 = vmatpush.bf16.msrb.mxu3 %v6283_v11  ;;  %3086 = vmatpush.bf16.msra.mxu1 %v5995_v16  ;;  %v8816_v63 = vld [vmem:[#allocation5 + $0x4b4] sm:$0xf0]  ;;  %v2835_v16 = vpop.f32.mrf.mxu0  ;;  %v8788_v53 = vld [vmem:[#allocation5 + $0x3dc] sm:$0xf] }
 0x19c   :  { %v6154_v3 = vld [vmem:[#allocation5 + $0x298] sm:$0xf]  ;;  %v6411_v11 = vor.u32 %v8816_v63, %v6410_v61 }
 0x19d   :  { %3124 = vmatpush.bf16.msrb.mxu2 %v6795_v12  ;;  %3112 = vmatpush.bf16.msra.mxu0 %v6507_v20  ;;  %v8752_v5 = vld [vmem:[#allocation5 + $0x2b4] sm:$0xf0] }
 0x19e   :  { %v6666_v6 = vld [vmem:[#allocation5 + $0x698] sm:$0xf]  ;;  %v6155_v18 = vor.u32 %v8752_v5, %v6154_v3  ;;  %v6319_v3 = vor.u32 %v8788_v53, %v6316_v55  ;;  %v8716_v5 = vld [vmem:[#allocation5 + $0x19c] sm:$0xf] }
 0x19f   :  { %3099 = vmatpush.bf16.msrb.mxu3 %v6251_v26  ;;  %3087 = vmatpush.bf16.msra.mxu1 %v5963_v62  ;;  %v8880_v7 = vld [vmem:[#allocation5 + $0x6b4] sm:$0xf0]  ;;  %v5932_v53 = vld [vmem:[#allocation5 + $0xf8] sm:$0xf0] }
 0x1a0   :  { %v5866_v12 = vld [vmem:[#allocation5 + $0x58] sm:$0xf]  ;;  %7381 = vmatmul.msk.bf16.vlgmr.msra.gmra.mxu3 %vm2534_vm0, %v9704_v46  ;;  %v6667_v19 = vor.u32 %v8880_v7, %v6666_v6  ;;  %v6028_v7 = vld [vmem:[#allocation5 + $0x1b8] sm:$0xf0] }
 0x1a1   :  { %3125 = vmatpush.bf16.msrb.mxu2 %v6763_v27  ;;  %3113 = vmatpush.bf16.msra.mxu0 %v6475_v10  ;;  %v8680_v14 = vld [vmem:[#allocation5 + $0x74] sm:$0xf0]  ;;  %v2822_v10 = vpop.f32.mrf.mxu2  ;;  %v8756_v55 = vld [vmem:[#allocation5 + $0x2dc] sm:$0xf] }
 0x1a2   :  { %v6378_v17 = vld [vmem:[#allocation5 + $0x458] sm:$0xf]  ;;  %v5867_v22 = vor.u32 %v8680_v14, %v5866_v12  ;;  %v6284_v12 = vld [vmem:[#allocation5 + $0x3b8] sm:$0xf0] }
 0x1a3   :  { %3100 = vmatpush.bf16.msrb.mxu3 %v6219_v38  ;;  %3088 = vmatpush.bf16.msra.mxu1 %v5931_v44  ;;  %v8808_v13 = vld [vmem:[#allocation5 + $0x474] sm:$0xf0] }
 0x1a4   :  { %v6122_v20 = vld [vmem:[#allocation5 + $0x258] sm:$0xf]  ;;  %v6379_v25 = vor.u32 %v8808_v13, %v6378_v17  ;;  %v6031_v13 = vor.u32 %v8716_v5, %v6028_v7  ;;  %v8684_v7 = vld [vmem:[#allocation5 + $0x9c] sm:$0xf] }
 0x1a5   :  { %3126 = vmatpush.bf16.msrb.mxu2 %v6731_v39  ;;  %3114 = vmatpush.bf16.msra.mxu0 %v6443_v50  ;;  %v8744_v21 = vld [vmem:[#allocation5 + $0x274] sm:$0xf0] }
 0x1a6   :  { %v6634_v23 = vld [vmem:[#allocation5 + $0x658] sm:$0xf]  ;;  %v6123_v33 = vor.u32 %v8744_v21, %v6122_v20  ;;  %v2846_v21 = vpop.f32.mrf.mxu1 }
 0x1a7   :  { %3101 = vmatpush.bf16.msrb.mxu3 %v6187_v59  ;;  %3089 = vmatpush.bf16.msra.mxu1 %v5899_v4  ;;  %v8872_v24 = vld [vmem:[#allocation5 + $0x674] sm:$0xf0] }
 0x1a8   :  { %v5834_v26 = vld [vmem:[#allocation5 + $0x18] sm:$0xf]  ;;  %v6635_v34 = vor.u32 %v8872_v24, %v6634_v23  ;;  %v5996_v24 = vld [vmem:[#allocation5 + $0x178] sm:$0xf0] }
 0x1a9   :  { %3127 = vmatpush.bf16.msrb.mxu2 %v6699_v2  ;;  %3115 = vmatpush.bf16.msra.mxu0 %v6411_v11  ;;  %v8672_v27 = vld [vmem:[#allocation5 + $0x34] sm:$0xf0]  ;;  %v6063_v2 = vor.u32 %v8724_v48, %v6060_v51  ;;  %v8780_v11 = vld [vmem:[#allocation5 + $0x39c] sm:$0xf] }
 0x1aa   :  { %v6346_v28 = vld [vmem:[#allocation5 + $0x418] sm:$0xf]  ;;  %v5835_v38 = vor.u32 %v8672_v27, %v5834_v26  ;;  %v6252_v26 = vld [vmem:[#allocation5 + $0x378] sm:$0xf0]  ;;  %v2847_v27 = vadd.f32 %v2846_v21, %v9781_v15 }
 0x1ab   :  { %v8800_v62 = vld [vmem:[#allocation5 + $0x434] sm:$0xf0]  ;;  %3102 = vmatpush.bf16.msrb.mxu3 %v6155_v18  ;;  %3090 = vmatpush.bf16.msra.mxu1 %v5867_v22  ;;  %v6287_v18 = vor.u32 %v8780_v11, %v6284_v12  ;;  %v8708_v22 = vld [vmem:[#allocation5 + $0x15c] sm:$0xf] }
 0x1ac   :  { %v7082_v29 = vld [vmem:[#allocation5 + $0x9d8] sm:$0xf]  ;;  %v6347_v43 = vor.u32 %v8800_v62, %v6346_v28  ;;  %v6220_v15 = vld [vmem:[#allocation5 + $0x338] sm:$0xf0] }
 0x1ad   :  { %v8984_v30 = vld [vmem:[#allocation5 + $0x9f4] sm:$0xf0]  ;;  %3128 = vmatpush.bf16.msrb.mxu2 %v6667_v19  ;;  %3116 = vmatpush.bf16.msra.mxu0 %v6379_v25  ;;  %v8772_v25 = vld [vmem:[#allocation5 + $0x35c] sm:$0xf] }
 0x1ae   :  { %v6090_v35 = vld [vmem:[#allocation5 + $0x218] sm:$0xf]  ;;  %v7083_v44 = vor.u32 %v8984_v30, %v7082_v29  ;;  %v5999_v30 = vor.u32 %v8708_v22, %v5996_v24  ;;  %v6255_v32 = vor.u32 %v8772_v25, %v6252_v26  ;;  %v8692_v48 = vld [vmem:[#allocation5 + $0xdc] sm:$0xf] }
 0x1af   :  { %v7370_v37 = vld [vmem:[#allocation5 + $0xc18] sm:$0xf]  ;;  %3103 = vmatpush.bf16.msrb.mxu3 %v6123_v33  ;;  %3091 = vmatpush.bf16.msra.mxu1 %v5835_v38  ;;  %v5900_v12 = vld [vmem:[#allocation5 + $0xb8] sm:$0xf0] }
 0x1b0   :  { %v9056_v57 = vld [vmem:[#allocation5 + $0xc34] sm:$0xf0]  ;;  %v5903_v21 = vor.u32 %v8684_v7, %v5900_v12  ;;  %v8676_v26 = vld [vmem:[#allocation5 + $0x5c] sm:$0xf] }
 0x1b1   :  { %v8736_v39 = vld [vmem:[#allocation5 + $0x234] sm:$0xf0]  ;;  %v7371_v50 = vor.u32 %v9056_v57, %v7370_v37  ;;  %3129 = vmatpush.bf16.msrb.mxu2 %v6635_v34  ;;  %3117 = vmatpush.bf16.msra.mxu0 %v6347_v43  ;;  %v8700_v34 = vld [vmem:[#allocation5 + $0x11c] sm:$0xf] }
 0x1b2   :  { %v6602_v40 = vld [vmem:[#allocation5 + $0x618] sm:$0xf]  ;;  %v6091_v59 = vor.u32 %v8736_v39, %v6090_v35  ;;  %3092 = vmatmul.bf16.vlgmr.msra.gmra.mxu1 %v9694_v56  ;;  %v5964_v37 = vld [vmem:[#allocation5 + $0x138] sm:$0xf0] }
 0x1b3   :  { %v8864_v41 = vld [vmem:[#allocation5 + $0x634] sm:$0xf0]  ;;  %3136 = vmatpush.bf16.msrb.mxu1 %v7083_v44  ;;  %v8764_v57 = vld [vmem:[#allocation5 + $0x31c] sm:$0xf]  ;;  %v5967_v43 = vor.u32 %v8700_v34, %v5964_v37 }
 0x1b4   :  { %v7338_v45 = vld [vmem:[#allocation5 + $0xbd8] sm:$0xf]  ;;  %v6603_v61 = vor.u32 %v8864_v41, %v6602_v40  ;;  %3104 = vmatpush.bf16.msrb.mxu3 %v6091_v59  ;;  %3118 = vmatmul.bf16.vlgmr.msra.gmra.mxu0 %v9692_v52  ;;  %v2885_v40 = vpop.f32.mrf.mxu0  ;;  %v6223_v44 = vor.u32 %v8764_v57, %v6220_v15  ;;  %v6188_v59 = vld [vmem:[#allocation5 + $0x2f8] sm:$0xf0] }
 0x1b5   :  { %v9048_v47 = vld [vmem:[#allocation5 + $0xbf4] sm:$0xf0]  ;;  %3169 = vmatpush.bf16.msrb.mxu0 %v7371_v50  ;;  %v2848_v50 = vpop.f32.mrf.mxu1  ;;  %v6572_v37 = vld [vmem:[#allocation5 + $0x5f8] sm:$0xf0] }
 0x1b6   :  { %v7050_v63 = vld [vmem:[#allocation5 + $0x998] sm:$0xf]  ;;  %v7339_v1 = vor.u32 %v9048_v47, %v7338_v45  ;;  %3130 = vmatpush.bf16.msrb.mxu2 %v6603_v61  ;;  %v6796_v12 = vld [vmem:[#allocation5 + $0x7b8] sm:$0xf0] }
 0x1b7   :  { %v8976_v0 = vld [vmem:[#allocation5 + $0x9b4] sm:$0xf0]  ;;  %3105 = vmatmul.bf16.vlgmr.msrb.gmra.mxu3 %v9700_v8 }
 0x1b8   :  { %v7306_v60 = vld [vmem:[#allocation5 + $0xb98] sm:$0xf]  ;;  %v7051_v6 = vor.u32 %v8976_v0, %v7050_v63  ;;  %3149 = vmatpush.bf16.msra.mxu3 %v7339_v1  ;;  %v2859_v0 = vpop.f32.mrf.mxu3  ;;  %v2872_v1 = vpop.f32.mrf.mxu2 }
 0x1b9   :  { %v9040_v4 = vld [vmem:[#allocation5 + $0xbb4] sm:$0xf0]  ;;  %3188 = vmatpush.bf16.msra.mxu0 %v6319_v3  ;;  %3131 = vmatmul.bf16.vlgmr.msrb.gmra.mxu2 %v9696_v58  ;;  %v2860_v3 = vadd.f32 %v2859_v0, %v2847_v27  ;;  %v7340_v0 = vld [vmem:[#allocation5 + $0xbf8] sm:$0xf0] }
 0x1ba   :  { %v7018_v14 = vld [vmem:[#allocation5 + $0x958] sm:$0xf]  ;;  %v7307_v17 = vor.u32 %v9040_v4, %v7306_v60  ;;  %3175 = vmatpush.bf16.msra.mxu2 %v6063_v2  ;;  %3137 = vmatpush.bf16.msrb.mxu1 %v7051_v6  ;;  %v5935_v60 = vor.u32 %v8692_v48, %v5932_v53  ;;  %v6191_v4 = vor.u32 %v8756_v55, %v6188_v59  ;;  %v6092_v48 = vld [vmem:[#allocation5 + $0x238] sm:$0xf0] }
 0x1bb   :  { %v8968_v16 = vld [vmem:[#allocation5 + $0x974] sm:$0xf0]  ;;  %v6828_v53 = vld [vmem:[#allocation5 + $0x7f8] sm:$0xf0] }
 0x1bc   :  { %v7274_v19 = vld [vmem:[#allocation5 + $0xb58] sm:$0xf]  ;;  %v7019_v23 = vor.u32 %v8968_v16, %v7018_v14  ;;  %3150 = vmatpush.bf16.msra.mxu3 %v7307_v17  ;;  %v8748_v14 = vld [vmem:[#allocation5 + $0x29c] sm:$0xf]  ;;  %v2873_v17 = vadd.f32 %v2872_v1, %v2860_v3 }
 0x1bd   :  { %v9032_v20 = vld [vmem:[#allocation5 + $0xb74] sm:$0xf0]  ;;  %3189 = vmatpush.bf16.msra.mxu0 %v6287_v18  ;;  %v6156_v16 = vld [vmem:[#allocation5 + $0x2b8] sm:$0xf0]  ;;  %v2898_v27 = vpop.f32.mrf.mxu1 }
 0x1be   :  { %v6986_v28 = vld [vmem:[#allocation5 + $0x918] sm:$0xf]  ;;  %v7275_v29 = vor.u32 %v9032_v20, %v7274_v19  ;;  %3176 = vmatpush.bf16.msra.mxu2 %v6031_v13  ;;  %3138 = vmatpush.bf16.msrb.mxu1 %v7019_v23  ;;  %v2887_v19 = vpop.f32.mrf.mxu0  ;;  %v2886_v22 = vadd.f32 %v2885_v40, %v2873_v17  ;;  %v6159_v23 = vor.u32 %v8748_v14, %v6156_v16  ;;  %v8980_v55 = vld [vmem:[#allocation5 + $0x9dc] sm:$0xf] }
 0x1bf   :  { %v8960_v62 = vld [vmem:[#allocation5 + $0x934] sm:$0xf0]  ;;  %v6540_v3 = vld [vmem:[#allocation5 + $0x5b8] sm:$0xf0] }
 0x1c0   :  { %v7242_v10 = vld [vmem:[#allocation5 + $0xb18] sm:$0xf]  ;;  %v6987_v35 = vor.u32 %v8960_v62, %v6986_v28  ;;  %3151 = vmatpush.bf16.msra.mxu3 %v7275_v29  ;;  %v5868_v62 = vld [vmem:[#allocation5 + $0x78] sm:$0xf0]  ;;  %v2874_v57 = vpop.f32.mrf.mxu2  ;;  %v2861_v15 = vpop.f32.mrf.mxu3 }
 0x1c1   :  { %v9024_v33 = vld [vmem:[#allocation5 + $0xb34] sm:$0xf0]  ;;  %3190 = vmatpush.bf16.msra.mxu0 %v6255_v32  ;;  %v8740_v29 = vld [vmem:[#allocation5 + $0x25c] sm:$0xf]  ;;  %v9792_v32 = vadd.f32 %v2898_v27, %v2886_v22 }
 0x1c2   :  { %v6954_v38 = vld [vmem:[#allocation5 + $0x8d8] sm:$0xf]  ;;  %v7243_v41 = vor.u32 %v9024_v33, %v7242_v10  ;;  %3177 = vmatpush.bf16.msra.mxu2 %v5999_v30  ;;  %3139 = vmatpush.bf16.msrb.mxu1 %v6987_v35  ;;  %v6124_v30 = vld [vmem:[#allocation5 + $0x278] sm:$0xf0] }
 0x1c3   :  { %v8952_v39 = vld [vmem:[#allocation5 + $0x8f4] sm:$0xf0]  ;;  %v8852_v35 = vld [vmem:[#allocation5 + $0x5dc] sm:$0xf] }
 0x1c4   :  { %v7210_v45 = vld [vmem:[#allocation5 + $0xad8] sm:$0xf]  ;;  %v6955_v51 = vor.u32 %v8952_v39, %v6954_v38  ;;  %3152 = vmatpush.bf16.msra.mxu3 %v7243_v41  ;;  %7382 = vmatmul.msk.bf16.vlgmr.msrb.gmra.mxu0 %vm2534_vm0, %v9704_v46  ;;  %v5871_v38 = vor.u32 %v8676_v26, %v5868_v62  ;;  %v6127_v39 = vor.u32 %v8740_v29, %v6124_v30  ;;  %v8972_v14 = vld [vmem:[#allocation5 + $0x99c] sm:$0xf] }
 0x1c5   :  { %v9016_v47 = vld [vmem:[#allocation5 + $0xaf4] sm:$0xf0]  ;;  %3191 = vmatpush.bf16.msra.mxu0 %v6223_v44  ;;  %v6575_v50 = vor.u32 %v8852_v35, %v6572_v37  ;;  %v7052_v17 = vld [vmem:[#allocation5 + $0x9b8] sm:$0xf0] }
 0x1c6   :  { %v6922_v61 = vld [vmem:[#allocation5 + $0x898] sm:$0xf]  ;;  %v7211_v2 = vor.u32 %v9016_v47, %v7210_v45  ;;  %3178 = vmatpush.bf16.msra.mxu2 %v5967_v43  ;;  %3140 = vmatpush.bf16.msrb.mxu1 %v6955_v51  ;;  %v8668_v43 = vld [vmem:[#allocation5 + $0x1c] sm:$0xf] }
 0x1c7   :  { %v8944_v63 = vld [vmem:[#allocation5 + $0x8b4] sm:$0xf0]  ;;  %v5836_v45 = vld [vmem:[#allocation5 + $0x38] sm:$0xf0] }
 0x1c8   :  { %v7178_v5 = vld [vmem:[#allocation5 + $0xa98] sm:$0xf]  ;;  %v6923_v11 = vor.u32 %v8944_v63, %v6922_v61  ;;  %3153 = vmatpush.bf16.msra.mxu3 %v7211_v2  ;;  %v8732_v47 = vld [vmem:[#allocation5 + $0x21c] sm:$0xf]  ;;  %v5839_v1 = vor.u32 %v8668_v43, %v5836_v45 }
 0x1c9   :  { %v9008_v6 = vld [vmem:[#allocation5 + $0xab4] sm:$0xf0]  ;;  %3192 = vmatpush.bf16.msra.mxu0 %v6191_v4  ;;  %v8916_v51 = vld [vmem:[#allocation5 + $0x7dc] sm:$0xf] }
 0x1ca   :  { %v6890_v13 = vld [vmem:[#allocation5 + $0x858] sm:$0xf]  ;;  %v7179_v20 = vor.u32 %v9008_v6, %v7178_v5  ;;  %3179 = vmatpush.bf16.msra.mxu2 %v5935_v60  ;;  %3141 = vmatpush.bf16.msrb.mxu1 %v6923_v11  ;;  %v7084_v61 = vld [vmem:[#allocation5 + $0x9f8] sm:$0xf0]  ;;  %v6095_v60 = vor.u32 %v8732_v47, %v6092_v48  ;;  %v6831_v4 = vor.u32 %v8916_v51, %v6828_v53  ;;  %v2900_v5 = vpop.f32.mrf.mxu1  ;;  %v562_v47 = vperm.slane %v9775_v42, 4 }
 0x1cb   :  { %v8936_v18 = vld [vmem:[#allocation5 + $0x874] sm:$0xf0]  ;;  %v9044_v63 = vld [vmem:[#allocation5 + $0xbdc] sm:$0xf]  ;;  %v7087_v6 = vor.u32 %v8980_v55, %v7084_v61 }
 0x1cc   :  { %v7146_v24 = vld [vmem:[#allocation5 + $0xa58] sm:$0xf]  ;;  %v6891_v28 = vor.u32 %v8936_v18, %v6890_v13  ;;  %3154 = vmatpush.bf16.msra.mxu3 %v7179_v20  ;;  %v8844_v2 = vld [vmem:[#allocation5 + $0x59c] sm:$0xf]  ;;  %v7343_v7 = vor.u32 %v9044_v63, %v7340_v0 }
 0x1cd   :  { %v9000_v25 = vld [vmem:[#allocation5 + $0xa74] sm:$0xf0]  ;;  %3193 = vmatpush.bf16.msra.mxu0 %v6159_v23  ;;  %v8908_v11 = vld [vmem:[#allocation5 + $0x79c] sm:$0xf]  ;;  %v6543_v16 = vor.u32 %v8844_v2, %v6540_v3 }
 0x1ce   :  { %v6858_v10 = vld [vmem:[#allocation5 + $0x818] sm:$0xf]  ;;  %v7147_v34 = vor.u32 %v9000_v25, %v7146_v24  ;;  %3180 = vmatpush.bf16.msra.mxu2 %v5903_v21  ;;  %3142 = vmatpush.bf16.msrb.mxu1 %v6891_v28  ;;  %v9036_v13 = vld [vmem:[#allocation5 + $0xb9c] sm:$0xf]  ;;  %v6799_v22 = vor.u32 %v8908_v11, %v6796_v12  ;;  %v7055_v21 = vor.u32 %v8972_v14, %v7052_v17 }
 0x1cf   :  { %v8928_v33 = vld [vmem:[#allocation5 + $0x834] sm:$0xf0]  ;;  %v7308_v18 = vld [vmem:[#allocation5 + $0xbb8] sm:$0xf0] }
 0x1d0   :  { %v7114_v40 = vld [vmem:[#allocation5 + $0xa18] sm:$0xf]  ;;  %v6859_v44 = vor.u32 %v8928_v33, %v6858_v10  ;;  %3155 = vmatpush.bf16.msra.mxu3 %v7147_v34  ;;  %v8836_v19 = vld [vmem:[#allocation5 + $0x55c] sm:$0xf]  ;;  %v7311_v23 = vor.u32 %v9036_v13, %v7308_v18 }
 0x1d1   :  { %v8992_v41 = vld [vmem:[#allocation5 + $0xa34] sm:$0xf0]  ;;  %3194 = vmatpush.bf16.msra.mxu0 %v6127_v39  ;;  %v6508_v20 = vld [vmem:[#allocation5 + $0x578] sm:$0xf0] }
 0x1d2   :  { %v7115_v59 = vor.u32 %v8992_v41, %v7114_v40  ;;  %3181 = vmatpush.bf16.msra.mxu2 %v5871_v38  ;;  %3143 = vmatpush.bf16.msrb.mxu1 %v6859_v44  ;;  %v8900_v24 = vld [vmem:[#allocation5 + $0x75c] sm:$0xf]  ;;  %v6511_v27 = vor.u32 %v8836_v19, %v6508_v20  ;;  %v2924_v43 = vpop.f32.mrf.mxu1 }
 0x1d3   :  { %v6764_v25 = vld [vmem:[#allocation5 + $0x778] sm:$0xf0] }
 0x1d4   :  { %3156 = vmatpush.bf16.msra.mxu3 %v7115_v59  ;;  %v8964_v26 = vld [vmem:[#allocation5 + $0x95c] sm:$0xf]  ;;  %v6767_v33 = vor.u32 %v8900_v24, %v6764_v25 }
 0x1d5   :  { %3144 = vmatmul.bf16.vlgmr.msrb.gmra.mxu1 %v9708_v31  ;;  %3195 = vmatpush.bf16.msra.mxu0 %v6095_v60  ;;  %v7020_v28 = vld [vmem:[#allocation5 + $0x978] sm:$0xf0] }
 0x1d6   :  { %3201 = vmatpush.bf16.msra.mxu1 %v6575_v50  ;;  %3182 = vmatpush.bf16.msra.mxu2 %v5839_v1  ;;  %v9028_v62 = vld [vmem:[#allocation5 + $0xb5c] sm:$0xf]  ;;  %v7023_v34 = vor.u32 %v8964_v26, %v7020_v28  ;;  %v2911_v1 = vpop.f32.mrf.mxu3 }
 0x1d7   :  { %3157 = vmatmul.bf16.vlgmr.msra.gmra.mxu3 %v9710_v36  ;;  %v7276_v29 = vld [vmem:[#allocation5 + $0xb78] sm:$0xf0]  ;;  %v2912_v60 = vadd.f32 %v2911_v1, %v562_v47  ;;  %v9151_v1 = vld [vmem:[#allocation8 + $0x2ec] sm:$0xf0] }
 0x1d8   :  { %3214 = vmatpush.bf16.msrb.mxu3 %v6831_v4  ;;  %v8828_v30 = vld [vmem:[#allocation5 + $0x51c] sm:$0xf]  ;;  %3196 = vmatmul.bf16.vlgmr.msra.gmra.mxu0 %v9700_v8  ;;  %v7279_v35 = vor.u32 %v9028_v62, %v7276_v29  ;;  %v2937_v4 = vpop.f32.mrf.mxu2 }
 0x1d9   :  { %3240 = vmatpush.bf16.msrb.mxu0 %v7343_v7  ;;  %v6476_v10 = vld [vmem:[#allocation5 + $0x538] sm:$0xf0]  ;;  %3183 = vmatmul.bf16.vlgmr.msra.gmra.mxu2 %v9694_v56  ;;  %v2950_v56 = vpop.f32.mrf.mxu0  ;;  %v2925_v14 = vadd.f32 %v2924_v43, %v2912_v60  ;;  %v9183_v60 = vld [vmem:[#allocation8 + $0x3ec] sm:$0xf0] }
 0x1da   :  { %3227 = vmatpush.bf16.msrb.mxu2 %v7087_v6  ;;  %3202 = vmatpush.bf16.msra.mxu1 %v6543_v16  ;;  %v8892_v37 = vld [vmem:[#allocation5 + $0x71c] sm:$0xf]  ;;  %v6479_v38 = vor.u32 %v8828_v30, %v6476_v10  ;;  %v2926_v19 = vpop.f32.mrf.mxu1 }
 0x1db   :  { %v6732_v57 = vld [vmem:[#allocation5 + $0x738] sm:$0xf0]  ;;  %v7866_v19 = vld [vmem:[#allocation8 + $0x3c0] sm:$0xf] }
 0x1dc   :  { %3215 = vmatpush.bf16.msrb.mxu3 %v6799_v22  ;;  %v8956_v15 = vld [vmem:[#allocation5 + $0x91c] sm:$0xf]  ;;  %v6735_v8 = vor.u32 %v8892_v37, %v6732_v57 }
 0x1dd   :  { %3241 = vmatpush.bf16.msrb.mxu0 %v7311_v23  ;;  %v6988_v39 = vld [vmem:[#allocation5 + $0x938] sm:$0xf0]  ;;  %v2938_v23 = vadd.f32 %v2937_v4, %v2925_v14 }
 0x1de   :  { %3228 = vmatpush.bf16.msrb.mxu2 %v7055_v21  ;;  %3203 = vmatpush.bf16.msra.mxu1 %v6511_v27  ;;  %v9020_v40 = vld [vmem:[#allocation5 + $0xb1c] sm:$0xf]  ;;  %v6991_v48 = vor.u32 %v8956_v15, %v6988_v39  ;;  %v2913_v57 = vpop.f32.mrf.mxu3 }
 0x1df   :  { %v7244_v41 = vld [vmem:[#allocation5 + $0xb38] sm:$0xf0]  ;;  %v9799_v29 = vadd.f32 %v2950_v56, %v2938_v23  ;;  %v9075_v57 = vld [vmem:[#allocation8 + $0x8c] sm:$0xf0] }
 0x1e0   :  { %v8820_v44 = vld [vmem:[#allocation5 + $0x4dc] sm:$0xf]  ;;  %3216 = vmatpush.bf16.msrb.mxu3 %v6767_v33  ;;  %v7247_v50 = vor.u32 %v9020_v40, %v7244_v41  ;;  %v2939_v15 = vpop.f32.mrf.mxu2 }
 0x1e1   :  { %v6444_v45 = vld [vmem:[#allocation5 + $0x4f8] sm:$0xf0]  ;;  %3242 = vmatpush.bf16.msrb.mxu0 %v7279_v35  ;;  %v2952_v21 = vpop.f32.mrf.mxu0  ;;  %v7578_v15 = vld [vmem:[#allocation8 + $0x180] sm:$0xf] }
 0x1e2   :  { %3229 = vmatpush.bf16.msrb.mxu2 %v7023_v34  ;;  %v8884_v51 = vld [vmem:[#allocation5 + $0x6dc] sm:$0xf]  ;;  %3204 = vmatpush.bf16.msra.mxu1 %v6479_v38  ;;  %v6447_v59 = vor.u32 %v8820_v44, %v6444_v45 }
 0x1e3   :  { %v6700_v53 = vld [vmem:[#allocation5 + $0x6f8] sm:$0xf0] }
 0x1e4   :  { %v8948_v55 = vld [vmem:[#allocation5 + $0x8dc] sm:$0xf]  ;;  %3217 = vmatpush.bf16.msrb.mxu3 %v6735_v8  ;;  %v6703_v5 = vor.u32 %v8884_v51, %v6700_v53  ;;  %v7498_v53 = vld [vmem:[#allocation8 + $0xe0] sm:$0xf] }
 0x1e5   :  { %v6956_v61 = vld [vmem:[#allocation5 + $0x8f8] sm:$0xf0]  ;;  %3243 = vmatpush.bf16.msrb.mxu0 %v7247_v50 }
 0x1e6   :  { %v9012_v63 = vld [vmem:[#allocation5 + $0xadc] sm:$0xf]  ;;  %3230 = vmatpush.bf16.msrb.mxu2 %v6991_v48  ;;  %v6959_v42 = vor.u32 %v8948_v55, %v6956_v61  ;;  %3205 = vmatpush.bf16.msra.mxu1 %v6447_v59  ;;  %v9087_v55 = vld [vmem:[#allocation8 + $0xec] sm:$0xf0]  ;;  %v7626_v59 = vld [vmem:[#allocation8 + $0x1e0] sm:$0xf] }
 0x1e7   :  { %v7212_v0 = vld [vmem:[#allocation5 + $0xaf8] sm:$0xf0] }
 0x1e8   :  { %v8812_v2 = vld [vmem:[#allocation5 + $0x49c] sm:$0xf]  ;;  %v7215_v6 = vor.u32 %v9012_v63, %v7212_v0  ;;  %3218 = vmatpush.bf16.msrb.mxu3 %v6703_v5  ;;  %v9119_v63 = vld [vmem:[#allocation8 + $0x1ec] sm:$0xf0]  ;;  %v7754_v0 = vld [vmem:[#allocation8 + $0x2e0] sm:$0xf]  ;;  %v7499_v5 = vor.u32 %v9087_v55, %v7498_v53 }
 0x1e9   :  { %v6412_v3 = vld [vmem:[#allocation5 + $0x4b8] sm:$0xf0]  ;;  %v9103_v53 = vld [vmem:[#allocation8 + $0x16c] sm:$0xf0]  ;;  %v7690_v55 = vld [vmem:[#allocation8 + $0x260] sm:$0xf] }
 0x1ea   :  { %v8876_v7 = vld [vmem:[#allocation5 + $0x69c] sm:$0xf]  ;;  %v6415_v16 = vor.u32 %v8812_v2, %v6412_v3  ;;  %3231 = vmatpush.bf16.msrb.mxu2 %v6959_v42  ;;  %3244 = vmatpush.bf16.msrb.mxu0 %v7215_v6  ;;  %v7882_v3 = vld [vmem:[#allocation8 + $0x3e0] sm:$0xf]  ;;  %v7627_v42 = vor.u32 %v9119_v63, %v7626_v59  ;;  %v7755_v6 = vor.u32 %v9151_v1, %v7754_v0  ;;  %v9135_v59 = vld [vmem:[#allocation8 + $0x26c] sm:$0xf0] }
 0x1eb   :  { %v6668_v11 = vld [vmem:[#allocation5 + $0x6b8] sm:$0xf0]  ;;  %v7883_v14 = vor.u32 %v9183_v60, %v7882_v3  ;;  %v7818_v63 = vld [vmem:[#allocation8 + $0x360] sm:$0xf]  ;;  %v9167_v0 = vld [vmem:[#allocation8 + $0x36c] sm:$0xf0]  ;;  %v7691_v3 = vor.u32 %v9135_v59, %v7690_v55 }
 0x1ec   :  { %v8940_v12 = vld [vmem:[#allocation5 + $0x89c] sm:$0xf]  ;;  %v6671_v24 = vor.u32 %v8876_v7, %v6668_v11  ;;  %3206 = vmatpush.bf16.msra.mxu1 %v6415_v16  ;;  %v7482_v7 = vld [vmem:[#allocation8 + $0xc0] sm:$0xf]  ;;  %v9083_v11 = vld [vmem:[#allocation8 + $0xcc] sm:$0xf0] }
 0x1ed   :  { %v6924_v17 = vld [vmem:[#allocation5 + $0x8b8] sm:$0xf0]  ;;  %v9115_v16 = vld [vmem:[#allocation8 + $0x1cc] sm:$0xf0]  ;;  %v7418_v60 = vld [vmem:[#allocation8 + $0x40] sm:$0xf] }
 0x1ee   :  { %v9004_v13 = vld [vmem:[#allocation5 + $0xa9c] sm:$0xf]  ;;  %v6927_v25 = vor.u32 %v8940_v12, %v6924_v17  ;;  %3219 = vmatpush.bf16.msrb.mxu3 %v6671_v24  ;;  %v7610_v12 = vld [vmem:[#allocation8 + $0x1c0] sm:$0xf] }
 0x1ef   :  { %v7180_v18 = vld [vmem:[#allocation5 + $0xab8] sm:$0xf0]  ;;  %v7738_v17 = vld [vmem:[#allocation8 + $0x2c0] sm:$0xf]  ;;  %v7611_v21 = vor.u32 %v9115_v16, %v7610_v12  ;;  %v9163_v16 = vld [vmem:[#allocation8 + $0x34c] sm:$0xf0] }
 0x1f0   :  { %v8804_v20 = vld [vmem:[#allocation5 + $0x45c] sm:$0xf]  ;;  %v7183_v26 = vor.u32 %v9004_v13, %v7180_v18  ;;  %3232 = vmatpush.bf16.msrb.mxu2 %v6927_v25  ;;  %v9147_v13 = vld [vmem:[#allocation8 + $0x2cc] sm:$0xf0]  ;;  %v9801_v18 = vpop.f32.mrf.mxu2  ;;  %v7466_v24 = vld [vmem:[#allocation8 + $0xa0] sm:$0xf] }
 0x1f1   :  { %v6380_v22 = vld [vmem:[#allocation5 + $0x478] sm:$0xf0]  ;;  %v7739_v23 = vor.u32 %v9147_v13, %v7738_v17  ;;  %v9079_v25 = vld [vmem:[#allocation8 + $0xac] sm:$0xf0] }
 0x1f2   :  { %v8868_v27 = vld [vmem:[#allocation5 + $0x65c] sm:$0xf]  ;;  %v6383_v30 = vor.u32 %v8804_v20, %v6380_v22  ;;  %3245 = vmatpush.bf16.msrb.mxu0 %v7183_v26  ;;  %v9179_v20 = vld [vmem:[#allocation8 + $0x3cc] sm:$0xf0]  ;;  %v7483_v22 = vor.u32 %v9083_v11, %v7482_v7  ;;  %v7594_v26 = vld [vmem:[#allocation8 + $0x1a0] sm:$0xf] }
 0x1f3   :  { %v6636_v28 = vld [vmem:[#allocation5 + $0x678] sm:$0xf0]  ;;  %v7674_v7 = vld [vmem:[#allocation8 + $0x240] sm:$0xf]  ;;  %v9131_v11 = vld [vmem:[#allocation8 + $0x24c] sm:$0xf0] }
 0x1f4   :  { %v8932_v62 = vld [vmem:[#allocation5 + $0x85c] sm:$0xf]  ;;  %v6639_v38 = vor.u32 %v8868_v27, %v6636_v28  ;;  %3207 = vmatpush.bf16.msra.mxu1 %v6383_v30  ;;  %v7867_v27 = vor.u32 %v9179_v20, %v7866_v19  ;;  %v9111_v28 = vld [vmem:[#allocation8 + $0x1ac] sm:$0xf0]  ;;  %v7850_v30 = vld [vmem:[#allocation8 + $0x3a0] sm:$0xf] }
 0x1f5   :  { %v6892_v10 = vld [vmem:[#allocation5 + $0x878] sm:$0xf0]  ;;  %v3266_v19 = vmul.f32 0.2, %v9742_v54 }
 0x1f6   :  { %v8996_v33 = vld [vmem:[#allocation5 + $0xa5c] sm:$0xf]  ;;  %v6895_v41 = vor.u32 %v8932_v62, %v6892_v10  ;;  %3220 = vmatpush.bf16.msrb.mxu3 %v6639_v38  ;;  %v7722_v62 = vld [vmem:[#allocation8 + $0x2a0] sm:$0xf]  ;;  %v9175_v10 = vld [vmem:[#allocation8 + $0x3ac] sm:$0xf0] }
 0x1f7   :  { %v7148_v34 = vld [vmem:[#allocation5 + $0xa78] sm:$0xf0]  ;;  %v9107_v38 = vld [vmem:[#allocation8 + $0x18c] sm:$0xf0] }
 0x1f8   :  { %v8796_v35 = vld [vmem:[#allocation5 + $0x41c] sm:$0xf]  ;;  %v7151_v43 = vor.u32 %v8996_v33, %v7148_v34  ;;  %3233 = vmatpush.bf16.msrb.mxu2 %v6895_v41  ;;  %v7467_v33 = vor.u32 %v9079_v25, %v7466_v24  ;;  %v7595_v34 = vor.u32 %v9111_v28, %v7594_v26  ;;  %v9807_v41 = vpop.f32.mrf.mxu1  ;;  %v9063_v24 = vld [vmem:[#allocation8 + $0x2c] sm:$0xf0]  ;;  %v7530_v25 = vld [vmem:[#allocation8 + $0x120] sm:$0xf] }
 0x1f9   :  { %v6348_v37 = vld [vmem:[#allocation5 + $0x438] sm:$0xf0]  ;;  %v9127_v28 = vld [vmem:[#allocation8 + $0x22c] sm:$0xf0] }
 0x1fa   :  { %v9052_v39 = vld [vmem:[#allocation5 + $0xc1c] sm:$0xf]  ;;  %v6351_v8 = vor.u32 %v8796_v35, %v6348_v37  ;;  %3246 = vmatpush.bf16.msrb.mxu0 %v7151_v43  ;;  %v7450_v37 = vld [vmem:[#allocation8 + $0x80] sm:$0xf]  ;;  %v9171_v43 = vld [vmem:[#allocation8 + $0x38c] sm:$0xf0] }
 0x1fb   :  { %v7372_v40 = vld [vmem:[#allocation5 + $0xc38] sm:$0xf0] }
 0x1fc   :  { %v8860_v44 = vld [vmem:[#allocation5 + $0x61c] sm:$0xf]  ;;  %v7375_v51 = vor.u32 %v9052_v39, %v7372_v40  ;;  %3208 = vmatpush.bf16.msra.mxu1 %v6351_v8  ;;  %v7706_v39 = vld [vmem:[#allocation8 + $0x280] sm:$0xf]  ;;  %v9139_v40 = vld [vmem:[#allocation8 + $0x28c] sm:$0xf0] }
 0x1fd   :  { %v6604_v45 = vld [vmem:[#allocation5 + $0x638] sm:$0xf0]  ;;  %v7707_v8 = vor.u32 %v9139_v40, %v7706_v39  ;;  %v9091_v39 = vld [vmem:[#allocation8 + $0x10c] sm:$0xf0] }
 0x1fe   :  { %v8924_v56 = vld [vmem:[#allocation5 + $0x81c] sm:$0xf]  ;;  %v6607_v61 = vor.u32 %v8860_v44, %v6604_v45  ;;  %v9809_v44 = vpop.f32.mrf.mxu0  ;;  %v7451_v45 = vor.u32 %v9075_v57, %v7450_v37  ;;  %v7386_v37 = vld [vmem:[#allocation8] sm:$0xf] }
 0x1ff   :  { %v6860_v47 = vld [vmem:[#allocation5 + $0x838] sm:$0xf0]  ;;  %3209 = vmatmul.bf16.vlgmr.msra.gmra.mxu1 %v9692_v52  ;;  %v9143_v52 = vld [vmem:[#allocation8 + $0x2ac] sm:$0xf0] }
 0x200   :  { %v8988_v48 = vld [vmem:[#allocation5 + $0xa1c] sm:$0xf]  ;;  %v6863_v2 = vor.u32 %v8924_v56, %v6860_v47  ;;  %3260 = vmatpush.bf16.msrb.mxu1 %v7375_v51  ;;  %3221 = vmatpush.bf16.msrb.mxu3 %v6607_v61  ;;  %v7723_v35 = vor.u32 %v9143_v52, %v7722_v62  ;;  %v7579_v56 = vor.u32 %v9107_v38, %v7578_v15  ;;  %v7434_v47 = vld [vmem:[#allocation8 + $0x60] sm:$0xf]  ;;  %v9811_v61 = vpop.f32.mrf.mxu3  ;;  %v2978_v12 = vpop.f32.mrf.mxu1  ;;  %v3267_v62 = vmul.f32 0.2, %v9759_v49 }
 0x201   :  { %v7116_v50 = vld [vmem:[#allocation5 + $0xa38] sm:$0xf0]  ;;  %v7786_v52 = vld [vmem:[#allocation8 + $0x320] sm:$0xf] }
 0x202   :  { %v7119_v4 = vor.u32 %v8988_v48, %v7116_v50  ;;  %3234 = vmatpush.bf16.msrb.mxu2 %v6863_v2  ;;  %v9071_v48 = vld [vmem:[#allocation8 + $0x6c] sm:$0xf0]  ;;  %v7562_v50 = vld [vmem:[#allocation8 + $0x160] sm:$0xf] }
 0x203   :  { %3222 = vmatmul.bf16.vlgmr.msrb.gmra.mxu3 %v9696_v58  ;;  %v7851_v58 = vor.u32 %v9175_v10, %v7850_v30  ;;  %v7435_v1 = vor.u32 %v9071_v48, %v7434_v47  ;;  %v7563_v2 = vor.u32 %v9103_v53, %v7562_v50  ;;  %v9159_v30 = vld [vmem:[#allocation8 + $0x32c] sm:$0xf0]  ;;  %v7514_v38 = vld [vmem:[#allocation8 + $0x100] sm:$0xf]  ;;  %v3274_v53 = vmax.f32 %v9742_v54, %v3266_v19 }
 0x204   :  { %3247 = vmatpush.bf16.msrb.mxu0 %v7119_v4  ;;  %4836 = vmatpush.bf16.msra.mxu3 %v7499_v5  ;;  %v9067_v4 = vld [vmem:[#allocation8 + $0x4c] sm:$0xf0]  ;;  %v7546_v5 = vld [vmem:[#allocation8 + $0x140] sm:$0xf]  ;;  %v7787_v40 = vor.u32 %v9159_v30, %v7786_v52  ;;  %v7515_v55 = vor.u32 %v9091_v39, %v7514_v38 }
 0x205   :  { %4849 = vmatpush.bf16.msra.mxu1 %v7627_v42  ;;  %3235 = vmatmul.bf16.vlgmr.msrb.gmra.mxu2 %v9708_v31  ;;  %v2991_v31 = vpop.f32.mrf.mxu2  ;;  %v7819_v42 = vor.u32 %v9167_v0, %v7818_v63  ;;  %v7419_v20 = vor.u32 %v9067_v4, %v7418_v60  ;;  %v8138_v50 = vld [vmem:[#allocation8 + $0x5e0] sm:$0xf]  ;;  %v3275_v63 = vmax.f32 %v9759_v49, %v3267_v62  ;;  %v9279_v60 = vld [vmem:[#allocation8 + $0x6ec] sm:$0xf0] }
 0x206   :  { %4862 = vmatpush.bf16.msra.mxu2 %v7755_v6  ;;  %v9099_v6 = vld [vmem:[#allocation8 + $0x14c] sm:$0xf0]  ;;  %v3004_v13 = vpop.f32.mrf.mxu0  ;;  %v7642_v31 = vld [vmem:[#allocation8 + $0x200] sm:$0xf] }
 0x207   :  { %3248 = vmatmul.bf16.vlgmr.msrb.gmra.mxu0 %v9710_v36  ;;  %v7834_v36 = vld [vmem:[#allocation8 + $0x380] sm:$0xf]  ;;  %v9827_v12 = vpack.c.bf16 %v3275_v63, %v3275_v63  ;;  %v9203_v30 = vld [vmem:[#allocation8 + $0x48c] sm:$0xf0] }
 0x208   :  { %4875 = vmatpush.bf16.msra.mxu0 %v7883_v14  ;;  %4837 = vmatpush.bf16.msra.mxu3 %v7483_v22  ;;  %v7835_v51 = vor.u32 %v9171_v43, %v7834_v36  ;;  %v7802_v14 = vld [vmem:[#allocation8 + $0x340] sm:$0xf]  ;;  %v7547_v22 = vor.u32 %v9099_v6, %v7546_v5  ;;  %v2965_v10 = vpop.f32.mrf.mxu3  ;;  %v9123_v36 = vld [vmem:[#allocation8 + $0x20c] sm:$0xf0] }
 0x209   :  { %4850 = vmatpush.bf16.msra.mxu1 %v7611_v21  ;;  %v7675_v21 = vor.u32 %v9131_v11, %v7674_v7  ;;  %v7803_v26 = vor.u32 %v9163_v16, %v7802_v14  ;;  %v7770_v43 = vld [vmem:[#allocation8 + $0x300] sm:$0xf]  ;;  %v7643_v59 = vor.u32 %v9123_v36, %v7642_v31  ;;  %v9211_v6 = vld [vmem:[#allocation8 + $0x4cc] sm:$0xf0]  ;;  %v9825_v11 = vpack.c.bf16 %v3274_v53, %v3274_v53 }
 0x20a   :  { %4863 = vmatpush.bf16.msra.mxu2 %v7739_v23  ;;  %v7402_v23 = vld [vmem:[#allocation8 + $0x20] sm:$0xf]  ;;  %v9243_v7 = vld [vmem:[#allocation8 + $0x5cc] sm:$0xf0] }
 0x20b   :  { %v8122_v54 = vld [vmem:[#allocation8 + $0x5c0] sm:$0xf]  ;;  %v9267_v38 = vld [vmem:[#allocation8 + $0x68c] sm:$0xf0] }
 0x20c   :  { %4876 = vmatpush.bf16.msra.mxu0 %v7867_v27  ;;  %4838 = vmatpush.bf16.msra.mxu3 %v7467_v33  ;;  %v9095_v27 = vld [vmem:[#allocation8 + $0x12c] sm:$0xf0]  ;;  %v3268_v33 = vmul.f32 0.2, %v9779_v9  ;;  %v8250_v16 = vld [vmem:[#allocation8 + $0x6c0] sm:$0xf]  ;;  %v8123_v19 = vor.u32 %v9243_v7, %v8122_v54 }
 0x20d   :  { %4851 = vmatpush.bf16.msra.mxu1 %v7595_v34  ;;  %v9815_v17 = vpop.f32.mrf.mxu2  ;;  %v3269_v34 = vmul.f32 0.2, %v9792_v32  ;;  %v7531_v57 = vor.u32 %v9095_v27, %v7530_v25  ;;  %v9239_v25 = vld [vmem:[#allocation8 + $0x5ac] sm:$0xf0]  ;;  %v7962_v52 = vld [vmem:[#allocation8 + $0x480] sm:$0xf] }
 0x20e   :  { %4864 = vmatpush.bf16.msra.mxu2 %v7723_v35  ;;  %v7403_v35 = vor.u32 %v9063_v24, %v7402_v23  ;;  %v3276_v0 = vmax.f32 %v9779_v9, %v3268_v33  ;;  %v8106_v24 = vld [vmem:[#allocation8 + $0x5a0] sm:$0xf]  ;;  %v9199_v31 = vld [vmem:[#allocation8 + $0x46c] sm:$0xf0] }
 0x20f   :  { %7383 = vmatmul.msk.bf16.vlgmr.msrb.gmra.mxu1 %vm2534_vm0, %v9704_v46  ;;  %v7658_v46 = vld [vmem:[#allocation8 + $0x220] sm:$0xf]  ;;  %v3277_v4 = vmax.f32 %v9792_v32, %v3269_v34  ;;  %v9275_v32 = vld [vmem:[#allocation8 + $0x6cc] sm:$0xf0]  ;;  %v8107_v62 = vor.u32 %v9239_v25, %v8106_v24  ;;  %v3041_v36 = vpop.f32.mrf.mxu1 }
 0x210   :  { %4877 = vmatpush.bf16.msra.mxu0 %v7851_v58  ;;  %4839 = vmatpush.bf16.msra.mxu3 %v7451_v45  ;;  %v7659_v15 = vor.u32 %v9127_v28, %v7658_v46  ;;  %v9059_v58 = vld [vmem:[#allocation8 + $0xc] sm:$0xf0]  ;;  %v9829_v9 = vpack.c.bf16 %v3276_v0, %v3276_v0  ;;  %v8234_v46 = vld [vmem:[#allocation8 + $0x6a0] sm:$0xf] }
 0x211   :  { %4852 = vmatpush.bf16.msra.mxu1 %v7579_v56  ;;  %v9155_v45 = vld [vmem:[#allocation8 + $0x30c] sm:$0xf0]  ;;  %v8010_v56 = vld [vmem:[#allocation8 + $0x4e0] sm:$0xf]  ;;  %v7387_v48 = vor.u32 %v9059_v58, %v7386_v37  ;;  %v9831_v13 = vpack.c.bf16 %v3277_v4, %v3277_v4 }
 0x212   :  { %4865 = vmatpush.bf16.msra.mxu2 %v7707_v8  ;;  %v9215_v8 = vld [vmem:[#allocation8 + $0x4ec] sm:$0xf0]  ;;  %v8090_v33 = vld [vmem:[#allocation8 + $0x580] sm:$0xf] }
 0x213   :  { %v9271_v28 = vld [vmem:[#allocation8 + $0x6ac] sm:$0xf0]  ;;  %v8218_v58 = vld [vmem:[#allocation8 + $0x680] sm:$0xf] }
 0x214   :  { %4878 = vmatpush.bf16.msra.mxu0 %v7835_v51  ;;  %4840 = vmatpush.bf16.msra.mxu3 %v7435_v1  ;;  %v9247_v51 = vld [vmem:[#allocation8 + $0x5ec] sm:$0xf0]  ;;  %v7771_v1 = vor.u32 %v9155_v45, %v7770_v43  ;;  %v8235_v37 = vor.u32 %v9271_v28, %v8234_v46  ;;  %v8042_v7 = vld [vmem:[#allocation8 + $0x520] sm:$0xf]  ;;  %v9085_v46 = vld [vmem:[#allocation8 + $0xe4] sm:$0xf] }
 0x215   :  { %4853 = vmatpush.bf16.msra.mxu1 %v7563_v2  ;;  %v3017_v47 = vpop.f32.mrf.mxu2  ;;  %v8011_v2 = vor.u32 %v9215_v8, %v8010_v56  ;;  %v8139_v5 = vor.u32 %v9247_v51, %v8138_v50  ;;  %v9235_v34 = vld [vmem:[#allocation8 + $0x58c] sm:$0xf0]  ;;  %v3028_v56 = vpop.f32.mrf.mxu3  ;;  %v8219_v8 = vor.u32 %v9267_v38, %v8218_v58  ;;  %v7930_v51 = vld [vmem:[#allocation8 + $0x440] sm:$0xf]  ;;  %v7500_v28 = vld [vmem:[#allocation8 + $0xf0] sm:$0xf0] }
 0x216   :  { %4866 = vmatpush.bf16.msra.mxu2 %v7691_v3  ;;  %v8266_v3 = vld [vmem:[#allocation8 + $0x6e0] sm:$0xf]  ;;  %v8091_v39 = vor.u32 %v9235_v34, %v8090_v33  ;;  %v9231_v45 = vld [vmem:[#allocation8 + $0x56c] sm:$0xf0]  ;;  %v7503_v58 = vor.u32 %v9085_v46, %v7500_v28  ;;  %v9149_v38 = vld [vmem:[#allocation8 + $0x2e4] sm:$0xf] }
 0x217   :  { %v8267_v49 = vor.u32 %v9279_v60, %v8266_v3  ;;  %v9195_v53 = vld [vmem:[#allocation8 + $0x44c] sm:$0xf0]  ;;  %v8026_v25 = vld [vmem:[#allocation8 + $0x500] sm:$0xf] }
 0x218   :  { %4879 = vmatpush.bf16.msra.mxu0 %v7819_v42  ;;  %4841 = vmatpush.bf16.msra.mxu3 %v7419_v20  ;;  %v7994_v42 = vld [vmem:[#allocation8 + $0x4c0] sm:$0xf]  ;;  %v9227_v63 = vld [vmem:[#allocation8 + $0x54c] sm:$0xf0]  ;;  %v7931_v3 = vor.u32 %v9195_v53, %v7930_v51  ;;  %v9145_v51 = vld [vmem:[#allocation8 + $0x2c4] sm:$0xf] }
 0x219   :  { %4854 = vmatpush.bf16.msra.mxu1 %v7547_v22  ;;  %v7995_v14 = vor.u32 %v9211_v6, %v7994_v42  ;;  %v7978_v20 = vld [vmem:[#allocation8 + $0x4a0] sm:$0xf]  ;;  %v9207_v22 = vld [vmem:[#allocation8 + $0x4ac] sm:$0xf0]  ;;  %v3043_v6 = vpop.f32.mrf.mxu1  ;;  %v7740_v53 = vld [vmem:[#allocation8 + $0x2d0] sm:$0xf0] }
 0x21a   :  { %4867 = vmatpush.bf16.msra.mxu2 %v7675_v21  ;;  %v9836_v21 = vld [vmem:[#allocation7] sm:$0xff]  ;;  %v7979_v27 = vor.u32 %v9207_v22, %v7978_v20  ;;  %v9259_v60 = vld [vmem:[#allocation8 + $0x64c] sm:$0xf0]  ;;  %v8170_v20 = vld [vmem:[#allocation8 + $0x620] sm:$0xf] }
 0x21b   :  { %v563_v23 = vperm.slane %v9836_v21, 5  ;;  %v9191_v42 = vld [vmem:[#allocation8 + $0x42c] sm:$0xf0]  ;;  %v8154_v34 = vld [vmem:[#allocation8 + $0x600] sm:$0xf] }
 0x21c   :  { %4880 = vmatpush.bf16.msra.mxu0 %v7803_v26  ;;  %4842 = vmatpush.bf16.msra.mxu3 %v7403_v35  ;;  %v8251_v26 = vor.u32 %v9275_v32, %v8250_v16  ;;  %v3054_v35 = vpop.f32.mrf.mxu0  ;;  %v9187_v24 = vld [vmem:[#allocation8 + $0x40c] sm:$0xf0]  ;;  %v7724_v6 = vld [vmem:[#allocation8 + $0x2b0] sm:$0xf0] }
 0x21d   :  { %4855 = vmatpush.bf16.msra.mxu1 %v7531_v57  ;;  %v3003_v10 = vadd.f32 %v9809_v44, %v563_v23  ;;  %v2964_v57 = vadd.f32 %v9811_v61, %v9799_v29  ;;  %v8074_v44 = vld [vmem:[#allocation8 + $0x560] sm:$0xf]  ;;  %v3067_v0 = vpop.f32.mrf.mxu2 }
 0x21e   :  { %4868 = vmatpush.bf16.msra.mxu2 %v7659_v15  ;;  %v7963_v15 = vor.u32 %v9203_v30, %v7962_v52  ;;  %v8202_v61 = vld [vmem:[#allocation8 + $0x660] sm:$0xf]  ;;  %v8075_v50 = vor.u32 %v9231_v45, %v8074_v44  ;;  %v9117_v52 = vld [vmem:[#allocation8 + $0x1e4] sm:$0xf]  ;;  %v7628_v30 = vld [vmem:[#allocation8 + $0x1f0] sm:$0xf0] }
 0x21f   :  { %v3016_v43 = vadd.f32 %v9815_v17, %v3003_v10  ;;  %v2977_v47 = vadd.f32 %v9807_v41, %v2964_v57  ;;  %v8186_v41 = vld [vmem:[#allocation8 + $0x640] sm:$0xf]  ;;  %v9113_v44 = vld [vmem:[#allocation8 + $0x1c4] sm:$0xf]  ;;  %v7612_v45 = vld [vmem:[#allocation8 + $0x1d0] sm:$0xf0] }
 0x220   :  { %4881 = vmatpush.bf16.msra.mxu0 %v7787_v40  ;;  %4843 = vmatpush.bf16.msra.mxu3 %v7387_v48  ;;  %v7946_v40 = vld [vmem:[#allocation8 + $0x460] sm:$0xf]  ;;  %v9263_v48 = vld [vmem:[#allocation8 + $0x66c] sm:$0xf0]  ;;  %v8187_v16 = vor.u32 %v9259_v60, %v8186_v41  ;;  %v7743_v41 = vor.u32 %v9145_v51, %v7740_v53  ;;  %v7676_v51 = vld [vmem:[#allocation8 + $0x250] sm:$0xf0] }
 0x221   :  { %4856 = vmatpush.bf16.msra.mxu1 %v7515_v55  ;;  %v7947_v29 = vor.u32 %v9199_v31, %v7946_v40  ;;  %v3029_v55 = vadd.f32 %v3028_v56, %v3016_v43  ;;  %v7898_v23 = vld [vmem:[#allocation8 + $0x400] sm:$0xf]  ;;  %v9081_v31 = vld [vmem:[#allocation8 + $0xc4] sm:$0xf] }
 0x222   :  { %4869 = vmatpush.bf16.msra.mxu2 %v7643_v59  ;;  %v8058_v59 = vld [vmem:[#allocation8 + $0x540] sm:$0xf]  ;;  %v7899_v33 = vor.u32 %v9187_v24, %v7898_v23  ;;  %v9303_v24 = vld [vmem:[#allocation8 + $0x7ac] sm:$0xf0] }
 0x223   :  { %4844 = vmatmul.bf16.vlgmr.msra.gmra.mxu3 %v9825_v11  ;;  %v8059_v4 = vor.u32 %v9227_v63, %v8058_v59  ;;  %v3042_v54 = vadd.f32 %v3041_v36, %v3029_v55  ;;  %v7484_v36 = vld [vmem:[#allocation8 + $0xd0] sm:$0xf0]  ;;  %v7615_v63 = vor.u32 %v9113_v44, %v7612_v45  ;;  %v8378_v60 = vld [vmem:[#allocation8 + $0x7c0] sm:$0xf]  ;;  %v9097_v44 = vld [vmem:[#allocation8 + $0x144] sm:$0xf] }
 0x224   :  { %4882 = vmatpush.bf16.msra.mxu0 %v7771_v1  ;;  %4888 = vmatpush.bf16.msrb.mxu3 %v8011_v2  ;;  %v3056_v17 = vpop.f32.mrf.mxu0  ;;  %v8203_v1 = vor.u32 %v9263_v48, %v8202_v61  ;;  %v2990_v2 = vadd.f32 %v9801_v18, %v2977_v47  ;;  %v9255_v18 = vld [vmem:[#allocation8 + $0x62c] sm:$0xf0]  ;;  %v7548_v45 = vld [vmem:[#allocation8 + $0x150] sm:$0xf0] }
 0x225   :  { %4901 = vmatpush.bf16.msrb.mxu1 %v8139_v5  ;;  %4870 = vmatmul.bf16.vlgmr.msra.gmra.mxu2 %v9829_v9  ;;  %v7914_v5 = vld [vmem:[#allocation8 + $0x420] sm:$0xf]  ;;  %v8171_v10 = vor.u32 %v9255_v18, %v8170_v20  ;;  %v9311_v61 = vld [vmem:[#allocation8 + $0x7ec] sm:$0xf0]  ;;  %v7468_v17 = vld [vmem:[#allocation8 + $0xb0] sm:$0xf0] }
 0x226   :  { %4857 = vmatmul.bf16.vlgmr.msra.gmra.mxu1 %v9827_v12  ;;  %4914 = vmatpush.bf16.msrb.mxu2 %v8267_v49  ;;  %v9223_v49 = vld [vmem:[#allocation8 + $0x52c] sm:$0xf0]  ;;  %v3270_v32 = vmul.f32 0.2, %v2990_v2  ;;  %v9105_v20 = vld [vmem:[#allocation8 + $0x184] sm:$0xf] }
 0x227   :  { %4883 = vmatmul.bf16.vlgmr.msra.gmra.mxu0 %v9831_v13  ;;  %v8043_v22 = vor.u32 %v9223_v49, %v8042_v7  ;;  %v7580_v18 = vld [vmem:[#allocation8 + $0x190] sm:$0xf0] }
 0x228   :  { %4889 = vmatpush.bf16.msrb.mxu3 %v7995_v14  ;;  %v3030_v14 = vpop.f32.mrf.mxu3  ;;  %v3278_v57 = vmax.f32 %v2990_v2, %v3270_v32  ;;  %v7596_v2 = vld [vmem:[#allocation8 + $0x1b0] sm:$0xf0]  ;;  %v7583_v28 = vor.u32 %v9105_v20, %v7580_v18  ;;  %v9245_v18 = vld [vmem:[#allocation8 + $0x5e4] sm:$0xf] }
 0x229   :  { %4902 = vmatpush.bf16.msrb.mxu1 %v8123_v19  ;;  %v7915_v19 = vor.u32 %v9191_v42, %v7914_v5  ;;  %v9141_v42 = vld [vmem:[#allocation8 + $0x2a4] sm:$0xf]  ;;  %v8012_v20 = vld [vmem:[#allocation8 + $0x4f0] sm:$0xf0] }
 0x22a   :  { %4915 = vmatpush.bf16.msrb.mxu2 %v8251_v26  ;;  %v3055_v26 = vadd.f32 %v3054_v35, %v3042_v54  ;;  %v7631_v35 = vor.u32 %v9117_v52, %v7628_v30  ;;  %v9846_v48 = vpack.c.bf16 %v3278_v57, %v3278_v57  ;;  %v9073_v14 = vld [vmem:[#allocation8 + $0x84] sm:$0xf]  ;;  %v7727_v23 = vor.u32 %v9141_v42, %v7724_v6  ;;  %v7436_v30 = vld [vmem:[#allocation8 + $0x70] sm:$0xf0]  ;;  %v9299_v57 = vld [vmem:[#allocation8 + $0x78c] sm:$0xf0] }
 0x22b   :  { %v9069_v52 = vld [vmem:[#allocation8 + $0x64] sm:$0xf]  ;;  %v7660_v42 = vld [vmem:[#allocation8 + $0x230] sm:$0xf0] }
 0x22c   :  { %4890 = vmatpush.bf16.msrb.mxu3 %v7979_v27  ;;  %v9219_v27 = vld [vmem:[#allocation8 + $0x50c] sm:$0xf0]  ;;  %v3068_v40 = vadd.f32 %v3067_v0, %v3055_v26  ;;  %v9077_v0 = vld [vmem:[#allocation8 + $0xa4] sm:$0xf] }
 0x22d   :  { %4903 = vmatpush.bf16.msrb.mxu1 %v8107_v62  ;;  %v3069_v62 = vpop.f32.mrf.mxu2  ;;  %v7471_v5 = vor.u32 %v9077_v0, %v7468_v17  ;;  %v9137_v26 = vld [vmem:[#allocation8 + $0x284] sm:$0xf] }
 0x22e   :  { %4916 = vmatpush.bf16.msrb.mxu2 %v8235_v37  ;;  %v9251_v37 = vld [vmem:[#allocation8 + $0x60c] sm:$0xf0]  ;;  %v9093_v17 = vld [vmem:[#allocation8 + $0x124] sm:$0xf] }
 0x22f   :  { %v8155_v56 = vor.u32 %v9251_v37, %v8154_v34  ;;  %v9854_v62 = vpop.f32.mrf.mxu1  ;;  %v8346_v34 = vld [vmem:[#allocation8 + $0x780] sm:$0xf] }
 0x230   :  { %4891 = vmatpush.bf16.msrb.mxu3 %v7963_v15  ;;  %v8027_v15 = vor.u32 %v9219_v27, %v8026_v25  ;;  %v3080_v43 = vpop.f32.mrf.mxu3  ;;  %v7708_v27 = vld [vmem:[#allocation8 + $0x290] sm:$0xf0] }
 0x231   :  { %4904 = vmatpush.bf16.msrb.mxu1 %v8091_v39  ;;  %v7756_v39 = vld [vmem:[#allocation8 + $0x2f0] sm:$0xf0]  ;;  %v7711_v37 = vor.u32 %v9137_v26, %v7708_v27  ;;  %v8298_v27 = vld [vmem:[#allocation8 + $0x720] sm:$0xf] }
 0x232   :  { %4917 = vmatpush.bf16.msrb.mxu2 %v8219_v8  ;;  %v3081_v8 = vadd.f32 %v3080_v43, %v3068_v40  ;;  %v7759_v47 = vor.u32 %v9149_v38, %v7756_v39  ;;  %v7692_v38 = vld [vmem:[#allocation8 + $0x270] sm:$0xf0]  ;;  %v8347_v39 = vor.u32 %v9299_v57, %v8346_v34 }
 0x234   :  { %4892 = vmatpush.bf16.msrb.mxu3 %v7947_v29  ;;  %v8394_v29 = vld [vmem:[#allocation8 + $0x7e0] sm:$0xf]  ;;  %v3271_v59 = vmul.f32 0.2, %v3081_v8 }
 0x235   :  { %4905 = vmatpush.bf16.msrb.mxu1 %v8075_v50  ;;  %v7487_v50 = vor.u32 %v9081_v31, %v7484_v36  ;;  %v8395_v55 = vor.u32 %v9311_v61, %v8394_v29  ;;  %v7420_v31 = vld [vmem:[#allocation8 + $0x50] sm:$0xf0]  ;;  %v9295_v29 = vld [vmem:[#allocation8 + $0x76c] sm:$0xf0] }
 0x236   :  { %4918 = vmatpush.bf16.msrb.mxu2 %v8203_v1  ;;  %v9109_v1 = vld [vmem:[#allocation8 + $0x1a4] sm:$0xf] }
 0x237   :  { %4927 = vmatpush.bf16.msrb.mxu0 %v8395_v55  ;;  %v7599_v49 = vor.u32 %v9109_v1, %v7596_v2  ;;  %v7551_v55 = vor.u32 %v9097_v44, %v7548_v45  ;;  %v3095_v0 = vpop.f32.mrf.mxu1  ;;  %v7532_v1 = vld [vmem:[#allocation8 + $0x130] sm:$0xf0]  ;;  %v9181_v44 = vld [vmem:[#allocation8 + $0x3e4] sm:$0xf] }
 0x238   :  { %4893 = vmatpush.bf16.msrb.mxu3 %v7931_v3  ;;  %v3279_v3 = vmax.f32 %v3081_v8, %v3271_v59  ;;  %v3082_v32 = vpop.f32.mrf.mxu3  ;;  %v9061_v59 = vld [vmem:[#allocation8 + $0x24] sm:$0xf]  ;;  %v7884_v45 = vld [vmem:[#allocation8 + $0x3f0] sm:$0xf0] }
 0x239   :  { %4906 = vmatpush.bf16.msrb.mxu1 %v8059_v4  ;;  %v9307_v4 = vld [vmem:[#allocation8 + $0x7cc] sm:$0xf0]  ;;  %v9213_v32 = vld [vmem:[#allocation8 + $0x4e4] sm:$0xf]  ;;  %v7868_v0 = vld [vmem:[#allocation8 + $0x3d0] sm:$0xf0] }
 0x23a   :  { %4919 = vmatpush.bf16.msrb.mxu2 %v8187_v16  ;;  %v8379_v54 = vor.u32 %v9307_v4, %v8378_v60  ;;  %v9849_v7 = vpack.c.bf16 %v3279_v3, %v3279_v3  ;;  %v7452_v16 = vld [vmem:[#allocation8 + $0x90] sm:$0xf0]  ;;  %v8314_v3 = vld [vmem:[#allocation8 + $0x740] sm:$0xf]  ;;  %v9057_v4 = vld [vmem:[#allocation8 + $0x4] sm:$0xf] }
 0x23b   :  { %v7455_v25 = vor.u32 %v9073_v14, %v7452_v16  ;;  %v9089_v14 = vld [vmem:[#allocation8 + $0x104] sm:$0xf]  ;;  %v7516_v16 = vld [vmem:[#allocation8 + $0x110] sm:$0xf0] }
 0x23c   :  { %4894 = vmatpush.bf16.msrb.mxu3 %v7915_v19  ;;  %v9851_v19 = vpop.f32.mrf.mxu0  ;;  %4928 = vmatpush.bf16.msrb.mxu0 %v8379_v54  ;;  %v7535_v54 = vor.u32 %v9093_v17, %v7532_v1  ;;  %v7519_v34 = vor.u32 %v9089_v14, %v7516_v16  ;;  %v9197_v16 = vld [vmem:[#allocation8 + $0x464] sm:$0xf] }
 0x23d   :  { %4907 = vmatpush.bf16.msrb.mxu1 %v8043_v22  ;;  %v8362_v22 = vld [vmem:[#allocation8 + $0x7a0] sm:$0xf] }
 0x23e   :  { %4920 = vmatpush.bf16.msrb.mxu2 %v8171_v10  ;;  %v8363_v46 = vor.u32 %v9303_v24, %v8362_v22  ;;  %v9101_v10 = vld [vmem:[#allocation8 + $0x164] sm:$0xf]  ;;  %v8140_v24 = vld [vmem:[#allocation8 + $0x5f0] sm:$0xf0] }
 0x23f   :  { %v8143_v57 = vor.u32 %v9245_v18, %v8140_v24  ;;  %v8076_v18 = vld [vmem:[#allocation8 + $0x570] sm:$0xf0]  ;;  %v9169_v24 = vld [vmem:[#allocation8 + $0x384] sm:$0xf] }
 0x240   :  { %4895 = vmatpush.bf16.msrb.mxu3 %v7899_v33  ;;  %v7564_v33 = vld [vmem:[#allocation8 + $0x170] sm:$0xf0]  ;;  %4929 = vmatpush.bf16.msrb.mxu0 %v8363_v46  ;;  %v9856_v36 = vpop.f32.mrf.mxu3  ;;  %v9287_v46 = vld [vmem:[#allocation8 + $0x72c] sm:$0xf0] }
 0x241   :  { %4908 = vmatpush.bf16.msrb.mxu1 %v8027_v15  ;;  %v7439_v15 = vor.u32 %v9069_v52, %v7436_v30  ;;  %v7567_v40 = vor.u32 %v9101_v10, %v7564_v33  ;;  %v9121_v52 = vld [vmem:[#allocation8 + $0x204] sm:$0xf]  ;;  %v7644_v30 = vld [vmem:[#allocation8 + $0x210] sm:$0xf0]  ;;  %v8299_v10 = vor.u32 %v9287_v46, %v8298_v27  ;;  %v564_v33 = vperm.slane %v9836_v21, 6 }
 0x242   :  { %4921 = vmatpush.bf16.msrb.mxu2 %v8155_v56  ;;  %v9858_v56 = vpop.f32.mrf.mxu2 }
 0x243   :  { %4896 = vmatmul.bf16.vlgmr.msrb.gmra.mxu3 %v9846_v48 }
 0x244   :  { %4940 = vmatpush.bf16.msra.mxu3 %v7503_v58  ;;  %4909 = vmatmul.bf16.vlgmr.msrb.gmra.mxu1 %v9849_v7  ;;  %v9133_v58 = vld [vmem:[#allocation8 + $0x264] sm:$0xf]  ;;  %v3121_v43 = vpop.f32.mrf.mxu0 }
 0x245   :  { %4953 = vmatpush.bf16.msra.mxu1 %v7631_v35  ;;  %v9065_v35 = vld [vmem:[#allocation8 + $0x44] sm:$0xf]  ;;  %v7695_v8 = vor.u32 %v9133_v58, %v7692_v38  ;;  %4930 = vmatpush.bf16.msrb.mxu0 %v8347_v39  ;;  %v7996_v58 = vld [vmem:[#allocation8 + $0x4d0] sm:$0xf0] }
 0x246   :  { %4966 = vmatpush.bf16.msra.mxu2 %v7759_v47  ;;  %v8330_v47 = vld [vmem:[#allocation8 + $0x760] sm:$0xf]  ;;  %v7423_v61 = vor.u32 %v9065_v35, %v7420_v31  ;;  %v9241_v38 = vld [vmem:[#allocation8 + $0x5c4] sm:$0xf]  ;;  %v8124_v39 = vld [vmem:[#allocation8 + $0x5d0] sm:$0xf0] }
 0x247   :  { %v8331_v53 = vor.u32 %v9295_v29, %v8330_v47  ;;  %v8282_v35 = vld [vmem:[#allocation8 + $0x700] sm:$0xf]  ;;  %v9283_v31 = vld [vmem:[#allocation8 + $0x70c] sm:$0xf0]  ;;  %v7887_v29 = vor.u32 %v9181_v44, %v7884_v45  ;;  %v9221_v44 = vld [vmem:[#allocation8 + $0x524] sm:$0xf] }
 0x248   :  { %4941 = vmatpush.bf16.msra.mxu3 %v7487_v50  ;;  %v9129_v50 = vld [vmem:[#allocation8 + $0x244] sm:$0xf]  ;;  %v3108_v22 = vpop.f32.mrf.mxu3  ;;  %v8283_v43 = vor.u32 %v9283_v31, %v8282_v35  ;;  %v7916_v31 = vld [vmem:[#allocation8 + $0x430] sm:$0xf0] }
 0x249   :  { %4954 = vmatpush.bf16.msra.mxu1 %v7615_v63  ;;  %v7404_v63 = vld [vmem:[#allocation8 + $0x30] sm:$0xf0]  ;;  %v7679_v2 = vor.u32 %v9129_v50, %v7676_v51  ;;  %4931 = vmatpush.bf16.msrb.mxu0 %v8331_v53  ;;  %v9205_v50 = vld [vmem:[#allocation8 + $0x4a4] sm:$0xf] }
 0x24a   :  { %4967 = vmatpush.bf16.msra.mxu2 %v7743_v41  ;;  %v9291_v41 = vld [vmem:[#allocation8 + $0x74c] sm:$0xf0]  ;;  %v7407_v60 = vor.u32 %v9061_v59, %v7404_v63  ;;  %v7980_v51 = vld [vmem:[#allocation8 + $0x4b0] sm:$0xf0]  ;;  %v9177_v63 = vld [vmem:[#allocation8 + $0x3c4] sm:$0xf] }
 0x24b   :  { %v8315_v6 = vor.u32 %v9291_v41, %v8314_v3  ;;  %v8108_v59 = vld [vmem:[#allocation8 + $0x5b0] sm:$0xf0]  ;;  %v7983_v17 = vor.u32 %v9205_v50, %v7980_v51  ;;  %v7871_v1 = vor.u32 %v9177_v63, %v7868_v0  ;;  %v9201_v3 = vld [vmem:[#allocation8 + $0x484] sm:$0xf] }
 0x24c   :  { %4942 = vmatpush.bf16.msra.mxu3 %v7471_v5  ;;  %v9125_v5 = vld [vmem:[#allocation8 + $0x224] sm:$0xf]  ;;  %v7964_v41 = vld [vmem:[#allocation8 + $0x490] sm:$0xf0] }
 0x24d   :  { %4955 = vmatpush.bf16.msra.mxu1 %v7599_v49  ;;  %v7388_v49 = vld [vmem:[#allocation8 + $0x10] sm:$0xf0]  ;;  %v7663_v26 = vor.u32 %v9125_v5, %v7660_v42  ;;  %4932 = vmatpush.bf16.msrb.mxu0 %v8315_v6  ;;  %v9173_v42 = vld [vmem:[#allocation8 + $0x3a4] sm:$0xf] }
 0x24e   :  { %4968 = vmatpush.bf16.msra.mxu2 %v7727_v23  ;;  %v9860_v23 = vpop.f32.mrf.mxu0  ;;  %v8092_v5 = vld [vmem:[#allocation8 + $0x590] sm:$0xf0]  ;;  %v9189_v35 = vld [vmem:[#allocation8 + $0x424] sm:$0xf] }
 0x24f   :  { %v7852_v6 = vld [vmem:[#allocation8 + $0x3b0] sm:$0xf0]  ;;  %v7919_v51 = vor.u32 %v9189_v35, %v7916_v31 }
 0x250   :  { %4943 = vmatpush.bf16.msra.mxu3 %v7455_v25  ;;  %v3134_v25 = vpop.f32.mrf.mxu2  ;;  %v7855_v14 = vor.u32 %v9173_v42, %v7852_v6  ;;  %v8044_v45 = vld [vmem:[#allocation8 + $0x530] sm:$0xf0] }
 0x251   :  { %4956 = vmatpush.bf16.msra.mxu1 %v7583_v28  ;;  %v7391_v28 = vor.u32 %v9057_v4, %v7388_v49  ;;  %4933 = vmatpush.bf16.msrb.mxu0 %v8299_v10  ;;  %v9233_v4 = vld [vmem:[#allocation8 + $0x584] sm:$0xf]  ;;  %v7967_v49 = vor.u32 %v9201_v3, %v7964_v41  ;;  %v7836_v25 = vld [vmem:[#allocation8 + $0x390] sm:$0xf0]  ;;  %v8047_v63 = vor.u32 %v9221_v44, %v8044_v45  ;;  %v7634_v3 = vld [vmem:[#allocation8 + $0x1e8] sm:$0xf] }
 0x252   :  { %4969 = vmatpush.bf16.msra.mxu2 %v7711_v37  ;;  %v8015_v37 = vor.u32 %v9213_v32, %v8012_v20  ;;  %v7948_v32 = vld [vmem:[#allocation8 + $0x470] sm:$0xf0]  ;;  %v9229_v20 = vld [vmem:[#allocation8 + $0x564] sm:$0xf]  ;;  %v7458_v44 = vld [vmem:[#allocation8 + $0x88] sm:$0xf] }
 0x253   :  { %v7951_v27 = vor.u32 %v9197_v16, %v7948_v32  ;;  %v8079_v46 = vor.u32 %v9229_v20, %v8076_v18  ;;  %v9225_v10 = vld [vmem:[#allocation8 + $0x544] sm:$0xf]  ;;  %v7900_v0 = vld [vmem:[#allocation8 + $0x410] sm:$0xf0]  ;;  %v9076_v45 = vld [vmem:[#allocation8 + $0x94] sm:$0xf0] }
 0x254   :  { %4944 = vmatpush.bf16.msra.mxu3 %v7439_v15  ;;  %v9209_v15 = vld [vmem:[#allocation8 + $0x4c4] sm:$0xf]  ;;  %v7788_v42 = vld [vmem:[#allocation8 + $0x330] sm:$0xf0] }
 0x255   :  { %4957 = vmatpush.bf16.msra.mxu1 %v7567_v40  ;;  %v7647_v40 = vor.u32 %v9121_v52, %v7644_v30  ;;  %v7999_v47 = vor.u32 %v9209_v15, %v7996_v58  ;;  %4934 = vmatpush.bf16.msrb.mxu0 %v8283_v43  ;;  %v7932_v52 = vld [vmem:[#allocation8 + $0x450] sm:$0xf0] }
 0x256   :  { %4970 = vmatpush.bf16.msra.mxu2 %v7695_v8  ;;  %v3094_v8 = vadd.f32 %v9854_v62, %v564_v33  ;;  %v3173_v53 = vpop.f32.mrf.mxu0  ;;  %v8060_v33 = vld [vmem:[#allocation8 + $0x550] sm:$0xf0] }
 0x257   :  { %v7820_v15 = vld [vmem:[#allocation8 + $0x370] sm:$0xf0]  ;;  %v9277_v53 = vld [vmem:[#allocation8 + $0x6e4] sm:$0xf] }
 0x258   :  { %4945 = vmatpush.bf16.msra.mxu3 %v7423_v61  ;;  %v8127_v61 = vor.u32 %v9241_v38, %v8124_v39  ;;  %v3107_v62 = vadd.f32 %v9856_v36, %v3094_v8  ;;  %v8095_v36 = vor.u32 %v9233_v4, %v8092_v5  ;;  %v9157_v5 = vld [vmem:[#allocation8 + $0x324] sm:$0xf]  ;;  %v8220_v35 = vld [vmem:[#allocation8 + $0x690] sm:$0xf0] }
 0x259   :  { %4958 = vmatpush.bf16.msra.mxu1 %v7551_v55  ;;  %v9237_v55 = vld [vmem:[#allocation8 + $0x5a4] sm:$0xf]  ;;  %4979 = vmatpush.bf16.msra.mxu0 %v7887_v29  ;;  %v7791_v16 = vor.u32 %v9157_v5, %v7788_v42  ;;  %v7554_v42 = vld [vmem:[#allocation8 + $0x148] sm:$0xf] }
 0x25a   :  { %4971 = vmatpush.bf16.msra.mxu2 %v7679_v2  ;;  %v8111_v2 = vor.u32 %v9237_v55, %v8108_v59  ;;  %v9161_v29 = vld [vmem:[#allocation8 + $0x344] sm:$0xf]  ;;  %v8268_v55 = vld [vmem:[#allocation8 + $0x6f0] sm:$0xf0] }
 0x25b   :  { %v8271_v41 = vor.u32 %v9277_v53, %v8268_v55  ;;  %v7459_v53 = vor.u32 %v9076_v45, %v7458_v44 }
 0x25c   :  { %4946 = vmatpush.bf16.msra.mxu3 %v7407_v60  ;;  %v3145_v60 = vpop.f32.mrf.mxu1  ;;  %v9871_v39 = vpop.f32.mrf.mxu2 }
 0x25d   :  { %4959 = vmatpush.bf16.msra.mxu1 %v7535_v54  ;;  %v3120_v54 = vadd.f32 %v9851_v19, %v3107_v62  ;;  %4980 = vmatpush.bf16.msra.mxu0 %v7871_v1  ;;  %v7839_v19 = vor.u32 %v9169_v24, %v7836_v25  ;;  %v9217_v62 = vld [vmem:[#allocation8 + $0x504] sm:$0xf]  ;;  %v7490_v24 = vld [vmem:[#allocation8 + $0xc8] sm:$0xf]  ;;  %v9084_v25 = vld [vmem:[#allocation8 + $0xd4] sm:$0xf0] }
 0x25e   :  { %4972 = vmatpush.bf16.msra.mxu2 %v7663_v26  ;;  %v9868_v22 = vpop.f32.mrf.mxu0 }
 0x25f   :  { %v3133_v26 = vadd.f32 %v9858_v56, %v3120_v54 }
 0x260   :  { %4947 = vmatpush.bf16.msra.mxu3 %v7391_v28  ;;  %v9193_v28 = vld [vmem:[#allocation8 + $0x444] sm:$0xf] }
 0x261   :  { %4960 = vmatpush.bf16.msra.mxu1 %v7519_v34  ;;  %4981 = vmatpush.bf16.msra.mxu0 %v7855_v14  ;;  %v3146_v30 = vadd.f32 %v3145_v60, %v3133_v26  ;;  %v7935_v38 = vor.u32 %v9193_v28, %v7932_v52  ;;  %v9120_v60 = vld [vmem:[#allocation8 + $0x1f4] sm:$0xf0]  ;;  %v8252_v14 = vld [vmem:[#allocation8 + $0x6d0] sm:$0xf0]  ;;  %v7618_v26 = vld [vmem:[#allocation8 + $0x1c8] sm:$0xf] }
 0x262   :  { %4973 = vmatpush.bf16.msra.mxu2 %v7647_v40  ;;  %v8063_v40 = vor.u32 %v9225_v10, %v8060_v33  ;;  %v7635_v18 = vor.u32 %v9120_v60, %v7634_v3  ;;  %v7772_v28 = vld [vmem:[#allocation8 + $0x310] sm:$0xf0]  ;;  %v9269_v52 = vld [vmem:[#allocation8 + $0x6a4] sm:$0xf]  ;;  %v7491_v33 = vor.u32 %v9084_v25, %v7490_v24  ;;  %v7426_v60 = vld [vmem:[#allocation8 + $0x48] sm:$0xf] }
 0x263   :  { %4948 = vmatmul.bf16.vlgmr.msra.gmra.mxu3 %v9825_v11  ;;  %v8188_v3 = vld [vmem:[#allocation8 + $0x650] sm:$0xf0]  ;;  %v7410_v25 = vld [vmem:[#allocation8 + $0x28] sm:$0xf] }
 0x264   :  { %4992 = vmatpush.bf16.msrb.mxu3 %v8015_v37  ;;  %4961 = vmatmul.bf16.vlgmr.msra.gmra.mxu1 %v9827_v12  ;;  %v3147_v34 = vpop.f32.mrf.mxu1  ;;  %v3158_v37 = vpop.f32.mrf.mxu3 }
 0x265   :  { %5005 = vmatpush.bf16.msrb.mxu1 %v8143_v57  ;;  %v9165_v57 = vld [vmem:[#allocation8 + $0x364] sm:$0xf]  ;;  %v3159_v58 = vadd.f32 %v3158_v37, %v3146_v30  ;;  %4982 = vmatpush.bf16.msra.mxu0 %v7839_v19  ;;  %v9116_v19 = vld [vmem:[#allocation8 + $0x1d4] sm:$0xf0]  ;;  %v8236_v30 = vld [vmem:[#allocation8 + $0x6b0] sm:$0xf0] }
 0x266   :  { %v7823_v56 = vor.u32 %v9165_v57, %v7820_v15  ;;  %v3199_v8 = vpop.f32.mrf.mxu0  ;;  %v7619_v34 = vor.u32 %v9116_v19, %v7618_v26  ;;  %v7474_v37 = vld [vmem:[#allocation8 + $0xa8] sm:$0xf]  ;;  %v9080_v57 = vld [vmem:[#allocation8 + $0xb4] sm:$0xf0]  ;;  %v8239_v15 = vor.u32 %v9269_v52, %v8236_v30  ;;  %v9249_v30 = vld [vmem:[#allocation8 + $0x604] sm:$0xf] }
 0x267   :  { %v3172_v43 = vadd.f32 %v9860_v23, %v3159_v58  ;;  %v7506_v23 = vld [vmem:[#allocation8 + $0xe8] sm:$0xf]  ;;  %v7475_v31 = vor.u32 %v9080_v57, %v7474_v37  ;;  %v9064_v26 = vld [vmem:[#allocation8 + $0x34] sm:$0xf0] }
 0x268   :  { %4993 = vmatpush.bf16.msrb.mxu3 %v7999_v47  ;;  %v9185_v47 = vld [vmem:[#allocation8 + $0x404] sm:$0xf]  ;;  %v7602_v58 = vld [vmem:[#allocation8 + $0x1a8] sm:$0xf]  ;;  %v9152_v37 = vld [vmem:[#allocation8 + $0x2f4] sm:$0xf0] }
 0x269   :  { %5006 = vmatpush.bf16.msrb.mxu1 %v8127_v61  ;;  %v7804_v61 = vld [vmem:[#allocation8 + $0x350] sm:$0xf0]  ;;  %v3272_v50 = vmul.f32 0.2, %v3172_v43  ;;  %4983 = vmatpush.bf16.msra.mxu0 %v7823_v56  ;;  %v7903_v54 = vor.u32 %v9185_v47, %v7900_v0  ;;  %v565_v56 = vperm.slane %v9836_v21, 7 }
 0x26a   :  { %v7807_v59 = vor.u32 %v9161_v29, %v7804_v61  ;;  %v7586_v47 = vld [vmem:[#allocation8 + $0x188] sm:$0xf]  ;;  %v9108_v29 = vld [vmem:[#allocation8 + $0x194] sm:$0xf0]  ;;  %v8204_v21 = vld [vmem:[#allocation8 + $0x670] sm:$0xf0] }
 0x26b   :  { %v3280_v1 = vmax.f32 %v3172_v43, %v3272_v50  ;;  %v3185_v61 = vadd.f32 %v9871_v39, %v565_v56  ;;  %v7587_v55 = vor.u32 %v9108_v29, %v7586_v47  ;;  %v7538_v19 = vld [vmem:[#allocation8 + $0x128] sm:$0xf]  ;;  %v9248_v47 = vld [vmem:[#allocation8 + $0x5f4] sm:$0xf0] }
 0x26c   :  { %4994 = vmatpush.bf16.msrb.mxu3 %v7983_v17  ;;  %v8028_v17 = vld [vmem:[#allocation8 + $0x510] sm:$0xf0]  ;;  %v3160_v4 = vpop.f32.mrf.mxu3  ;;  %v7522_v56 = vld [vmem:[#allocation8 + $0x108] sm:$0xf] }
 0x26d   :  { %5007 = vmatpush.bf16.msrb.mxu1 %v8111_v2  ;;  %v9088_v2 = vld [vmem:[#allocation8 + $0xf4] sm:$0xf0]  ;;  %v9874_v6 = vpack.c.bf16 %v3280_v1, %v3280_v1  ;;  %4984 = vmatpush.bf16.msra.mxu0 %v7807_v59  ;;  %v8031_v32 = vor.u32 %v9217_v62, %v8028_v17  ;;  %v7442_v59 = vld [vmem:[#allocation8 + $0x68] sm:$0xf]  ;;  %v3198_v1 = vadd.f32 %v9868_v22, %v3185_v61 }
 0x26e   :  { %v7507_v20 = vor.u32 %v9088_v2, %v7506_v23  ;;  %v7570_v62 = vld [vmem:[#allocation8 + $0x168] sm:$0xf]  ;;  %v9104_v17 = vld [vmem:[#allocation8 + $0x174] sm:$0xf0]  ;;  %v9257_v2 = vld [vmem:[#allocation8 + $0x644] sm:$0xf] }
 0x26f   :  { %4922 = vmatmul.bf16.vlgmr.msrb.gmra.mxu2 %v9874_v6  ;;  %v9068_v4 = vld [vmem:[#allocation8 + $0x54] sm:$0xf0]  ;;  %v8191_v5 = vor.u32 %v9257_v2, %v8188_v3  ;;  %v8130_v3 = vld [vmem:[#allocation8 + $0x5c8] sm:$0xf] }
 0x270   :  { %4995 = vmatpush.bf16.msrb.mxu3 %v7967_v49  ;;  %v9273_v49 = vld [vmem:[#allocation8 + $0x6c4] sm:$0xf]  ;;  %5018 = vmatpush.bf16.msrb.mxu2 %v8271_v41  ;;  %v7571_v41 = vor.u32 %v9104_v17, %v7570_v62 }
 0x271   :  { %5008 = vmatpush.bf16.msrb.mxu1 %v8095_v36  ;;  %v3186_v36 = vpop.f32.mrf.mxu2  ;;  %4985 = vmatpush.bf16.msra.mxu0 %v7791_v16  ;;  %v8172_v16 = vld [vmem:[#allocation8 + $0x630] sm:$0xf0] }
 0x272   :  { %v9253_v36 = vld [vmem:[#allocation8 + $0x624] sm:$0xf] }
 0x274   :  { %4996 = vmatpush.bf16.msrb.mxu3 %v7951_v27  ;;  %v8255_v27 = vor.u32 %v9273_v49, %v8252_v14 }
 0x275   :  { %5009 = vmatpush.bf16.msrb.mxu1 %v8079_v46  ;;  %v9153_v46 = vld [vmem:[#allocation8 + $0x304] sm:$0xf] }
 0x276   :  { %v7775_v10 = vor.u32 %v9153_v46, %v7772_v28  ;;  %5019 = vmatpush.bf16.msrb.mxu2 %v8255_v27  ;;  %v8175_v27 = vor.u32 %v9253_v36, %v8172_v16  ;;  %v9096_v46 = vld [vmem:[#allocation8 + $0x134] sm:$0xf0]  ;;  %v8380_v36 = vld [vmem:[#allocation8 + $0x7d0] sm:$0xf0]  ;;  %v7986_v16 = vld [vmem:[#allocation8 + $0x4a8] sm:$0xf] }
 0x278   :  { %4997 = vmatpush.bf16.msrb.mxu3 %v7935_v38  ;;  %v9112_v38 = vld [vmem:[#allocation8 + $0x1b4] sm:$0xf0]  ;;  %4986 = vmatpush.bf16.msra.mxu0 %v7775_v10  ;;  %v8156_v10 = vld [vmem:[#allocation8 + $0x610] sm:$0xf0] }
 0x279   :  { %5010 = vmatpush.bf16.msrb.mxu1 %v8063_v40  ;;  %v9265_v40 = vld [vmem:[#allocation8 + $0x684] sm:$0xf]  ;;  %v7603_v43 = vor.u32 %v9112_v38, %v7602_v58  ;;  %v7394_v58 = vld [vmem:[#allocation8 + $0x8] sm:$0xf]  ;;  %v9060_v38 = vld [vmem:[#allocation8 + $0x14] sm:$0xf0] }
 0x27a   :  { %5020 = vmatpush.bf16.msrb.mxu2 %v8239_v15  ;;  %v8223_v8 = vor.u32 %v9265_v40, %v8220_v35  ;;  %v7539_v15 = vor.u32 %v9096_v46, %v7538_v19  ;;  %v8159_v40 = vor.u32 %v9249_v30, %v8156_v10  ;;  %v9092_v35 = vld [vmem:[#allocation8 + $0x114] sm:$0xf0]  ;;  %v9301_v46 = vld [vmem:[#allocation8 + $0x7a4] sm:$0xf]  ;;  %v7970_v30 = vld [vmem:[#allocation8 + $0x488] sm:$0xf] }
 0x27b   :  { %v9204_v10 = vld [vmem:[#allocation8 + $0x494] sm:$0xf0] }
 0x27c   :  { %4998 = vmatpush.bf16.msrb.mxu3 %v7919_v51  ;;  %v3210_v50 = vpop.f32.mrf.mxu1  ;;  %v9261_v51 = vld [vmem:[#allocation8 + $0x664] sm:$0xf] }
 0x27d   :  { %5011 = vmatpush.bf16.msrb.mxu1 %v8047_v63  ;;  %v9072_v63 = vld [vmem:[#allocation8 + $0x74] sm:$0xf0]  ;;  %v8207_v0 = vor.u32 %v9261_v51, %v8204_v21  ;;  %v3211_v49 = vadd.f32 %v3210_v50, %v3198_v1  ;;  %v7395_v50 = vor.u32 %v9060_v38, %v7394_v58  ;;  %v7746_v51 = vld [vmem:[#allocation8 + $0x2c8] sm:$0xf]  ;;  %v7971_v38 = vor.u32 %v9204_v10, %v7970_v30  ;;  %v8300_v30 = vld [vmem:[#allocation8 + $0x730] sm:$0xf0] }
 0x27e   :  { %5021 = vmatpush.bf16.msrb.mxu2 %v8223_v8  ;;  %v7443_v39 = vor.u32 %v9072_v63, %v7442_v59  ;;  %v8146_v8 = vld [vmem:[#allocation8 + $0x5e8] sm:$0xf]  ;;  %v9148_v21 = vld [vmem:[#allocation8 + $0x2d4] sm:$0xf0]  ;;  %v9309_v63 = vld [vmem:[#allocation8 + $0x7e4] sm:$0xf] }
 0x27f   :  { %4974 = vmatmul.bf16.vlgmr.msra.gmra.mxu2 %v9829_v9  ;;  %v8147_v17 = vor.u32 %v9248_v47, %v8146_v8  ;;  %v8002_v1 = vld [vmem:[#allocation8 + $0x4c8] sm:$0xf]  ;;  %v7747_v2 = vor.u32 %v9148_v21, %v7746_v51  ;;  %v9232_v47 = vld [vmem:[#allocation8 + $0x574] sm:$0xf0] }
 0x280   :  { %4999 = vmatpush.bf16.msrb.mxu3 %v7903_v54  ;;  %v9100_v54 = vld [vmem:[#allocation8 + $0x154] sm:$0xf0]  ;;  %v8082_v8 = vld [vmem:[#allocation8 + $0x568] sm:$0xf] }
 0x281   :  { %5012 = vmatpush.bf16.msrb.mxu1 %v8031_v32  ;;  %v7427_v32 = vor.u32 %v9068_v4, %v7426_v60  ;;  %v7555_v24 = vor.u32 %v9100_v54, %v7554_v42  ;;  %v7730_v60 = vld [vmem:[#allocation8 + $0x2a8] sm:$0xf]  ;;  %v9144_v4 = vld [vmem:[#allocation8 + $0x2b4] sm:$0xf0]  ;;  %v9305_v54 = vld [vmem:[#allocation8 + $0x7c4] sm:$0xf] }
 0x282   :  { %5022 = vmatpush.bf16.msrb.mxu2 %v8207_v0  ;;  %v8396_v0 = vld [vmem:[#allocation8 + $0x7f0] sm:$0xf0]  ;;  %v8274_v10 = vld [vmem:[#allocation8 + $0x6e8] sm:$0xf] }
 0x283   :  { %5000 = vmatmul.bf16.vlgmr.msrb.gmra.mxu3 %v9846_v48 }
 0x284   :  { %5044 = vmatpush.bf16.msra.mxu3 %v7507_v20  ;;  %5013 = vmatmul.bf16.vlgmr.msrb.gmra.mxu1 %v9849_v7  ;;  %v3249_v23 = vpop.f32.mrf.mxu0  ;;  %v3212_v14 = vpop.f32.mrf.mxu1 }
 0x285   :  { %5057 = vmatpush.bf16.msra.mxu1 %v7635_v18 }
 0x286   :  { %v3223_v22 = vpop.f32.mrf.mxu3  ;;  %5023 = vmatpush.bf16.msrb.mxu2 %v8191_v5  ;;  %v8399_v5 = vor.u32 %v9309_v63, %v8396_v0  ;;  %v8083_v63 = vor.u32 %v9232_v47, %v8082_v8  ;;  %v8332_v0 = vld [vmem:[#allocation8 + $0x770] sm:$0xf0] }
 0x287   :  { %v3224_v20 = vadd.f32 %v3223_v22, %v3211_v49  ;;  %v9208_v22 = vld [vmem:[#allocation8 + $0x4b4] sm:$0xf0] }
 0x288   :  { %5045 = vmatpush.bf16.msra.mxu3 %v7491_v33  ;;  %v3236_v18 = vpop.f32.mrf.mxu2  ;;  %v7411_v33 = vor.u32 %v9064_v26, %v7410_v25  ;;  %v7714_v25 = vld [vmem:[#allocation8 + $0x288] sm:$0xf]  ;;  %v9140_v26 = vld [vmem:[#allocation8 + $0x294] sm:$0xf0]  ;;  %v7987_v19 = vor.u32 %v9208_v22, %v7986_v16 }
 0x289   :  { %5058 = vmatpush.bf16.msra.mxu1 %v7619_v34  ;;  %v3237_v28 = vadd.f32 %v3236_v18, %v3224_v20  ;;  %v7762_v34 = vld [vmem:[#allocation8 + $0x2e8] sm:$0xf]  ;;  %v7731_v20 = vor.u32 %v9144_v4, %v7730_v60  ;;  %v9192_v22 = vld [vmem:[#allocation8 + $0x434] sm:$0xf0] }
 0x28a   :  { %5024 = vmatpush.bf16.msrb.mxu2 %v8175_v27  ;;  %v7763_v45 = vor.u32 %v9152_v37, %v7762_v34  ;;  %v8114_v18 = vld [vmem:[#allocation8 + $0x5a8] sm:$0xf]  ;;  %v8383_v27 = vor.u32 %v9305_v54, %v8380_v36  ;;  %v9236_v37 = vld [vmem:[#allocation8 + $0x594] sm:$0xf0]  ;;  %v8316_v36 = vld [vmem:[#allocation8 + $0x750] sm:$0xf0] }
 0x28b   :  { %v3250_v57 = vadd.f32 %v3249_v23, %v3237_v28  ;;  %v9212_v23 = vld [vmem:[#allocation8 + $0x4d4] sm:$0xf0]  ;;  %v8098_v34 = vld [vmem:[#allocation8 + $0x588] sm:$0xf] }
 0x28c   :  { %5046 = vmatpush.bf16.msra.mxu3 %v7475_v31  ;;  %v3251_v52 = vpop.f32.mrf.mxu0  ;;  %v8018_v31 = vld [vmem:[#allocation8 + $0x4e8] sm:$0xf]  ;;  %v3262_v44 = vpop.f32.mrf.mxu1  ;;  %v8003_v42 = vor.u32 %v9212_v23, %v8002_v1 }
 0x28d   :  { %5059 = vmatpush.bf16.msra.mxu1 %v7603_v43  ;;  %v9216_v43 = vld [vmem:[#allocation8 + $0x4f4] sm:$0xf0]  ;;  %v3263_v29 = vadd.f32 %v3262_v44, %v3250_v57  ;;  %v8364_v52 = vld [vmem:[#allocation8 + $0x7b0] sm:$0xf0]  ;;  %v7698_v57 = vld [vmem:[#allocation8 + $0x268] sm:$0xf] }
 0x28e   :  { %v3225_v61 = vpop.f32.mrf.mxu3  ;;  %v8019_v59 = vor.u32 %v9216_v43, %v8018_v31  ;;  %5025 = vmatpush.bf16.msrb.mxu2 %v8159_v40  ;;  %v8367_v58 = vor.u32 %v9301_v46, %v8364_v52  ;;  %v8348_v40 = vld [vmem:[#allocation8 + $0x790] sm:$0xf0]  ;;  %v7954_v31 = vld [vmem:[#allocation8 + $0x468] sm:$0xf]  ;;  %v9200_v43 = vld [vmem:[#allocation8 + $0x474] sm:$0xf0] }
 0x28f   :  { %v3273_v62 = vmul.f32 0.2, %v3263_v29  ;;  %v9889_v44 = vld [vmem:[#allocation10] sm:$0xf]  ;;  %v7682_v61 = vld [vmem:[#allocation8 + $0x248] sm:$0xf] }
 0x290   :  { %5047 = vmatpush.bf16.msra.mxu3 %v7459_v53  ;;  %v3238_v53 = vpop.f32.mrf.mxu2  ;;  %v8066_v23 = vld [vmem:[#allocation8 + $0x548] sm:$0xf] }
 0x291   :  { %5060 = vmatpush.bf16.msra.mxu1 %v7587_v55  ;;  %v7523_v55 = vor.u32 %v9092_v35, %v7522_v56  ;;  %5026 = vmatmul.bf16.vlgmr.msrb.gmra.mxu2 %v9874_v6  ;;  %v9297_v56 = vld [vmem:[#allocation8 + $0x784] sm:$0xf]  ;;  %v8099_v35 = vor.u32 %v9236_v37, %v8098_v34  ;;  %v7955_v53 = vor.u32 %v9200_v43, %v7954_v31  ;;  %v7922_v16 = vld [vmem:[#allocation8 + $0x428] sm:$0xf]  ;;  %v9118_v43 = vld [vmem:[#allocation8 + $0x1ec] sm:$0xf] }
 0x292   :  { %5070 = vmatpush.bf16.msra.mxu2 %v7763_v45  ;;  %v8351_v21 = vor.u32 %v9297_v56, %v8348_v40  ;;  %v7923_v52 = vor.u32 %v9192_v22, %v7922_v16  ;;  %v9220_v56 = vld [vmem:[#allocation8 + $0x514] sm:$0xf0]  ;;  %v9086_v40 = vld [vmem:[#allocation8 + $0xec] sm:$0xf]  ;;  %v7476_v22 = vld [vmem:[#allocation8 + $0xb8] sm:$0xf0] }
 0x293   :  { %v9078_v16 = vld [vmem:[#allocation8 + $0xac] sm:$0xf] }
 0x294   :  { %5048 = vmatpush.bf16.msra.mxu3 %v7443_v39  ;;  %v9244_v39 = vld [vmem:[#allocation8 + $0x5d4] sm:$0xf0] }
 0x295   :  { %5061 = vmatpush.bf16.msra.mxu1 %v7571_v41  ;;  %v3281_v41 = vmax.f32 %v3263_v29, %v3273_v62  ;;  %v8131_v14 = vor.u32 %v9244_v39, %v8130_v3  ;;  %v7938_v62 = vld [vmem:[#allocation8 + $0x448] sm:$0xf]  ;;  %v9128_v39 = vld [vmem:[#allocation8 + $0x234] sm:$0xf0] }
 0x296   :  { %5071 = vmatpush.bf16.msra.mxu2 %v7747_v2  ;;  %v9228_v2 = vld [vmem:[#allocation8 + $0x554] sm:$0xf0]  ;;  %v7666_v3 = vld [vmem:[#allocation8 + $0x228] sm:$0xf] }
 0x297   :  { %v9883_v49 = vpack.c.bf16 %v3281_v41, %v3281_v41 }
 0x298   :  { %5049 = vmatpush.bf16.msra.mxu3 %v7427_v32  ;;  %v3264_v32 = vpop.f32.mrf.mxu1 }
 0x299   :  { %5062 = vmatpush.bf16.msra.mxu1 %v7555_v24  ;;  %v9240_v24 = vld [vmem:[#allocation8 + $0x5b4] sm:$0xf0]  ;;  %4935 = vmatmul.bf16.vlgmr.msrb.gmra.mxu0 %v9883_v49  ;;  %v7667_v32 = vor.u32 %v9128_v39, %v7666_v3  ;;  %v9114_v3 = vld [vmem:[#allocation8 + $0x1cc] sm:$0xf]  ;;  %v7620_v39 = vld [vmem:[#allocation8 + $0x1d8] sm:$0xf0] }
 0x29a   :  { %5031 = vmatpush.bf16.msrb.mxu0 %v8399_v5  ;;  %v8115_v28 = vor.u32 %v9240_v24, %v8114_v18  ;;  %5072 = vmatpush.bf16.msra.mxu2 %v7731_v20  ;;  %v9289_v5 = vld [vmem:[#allocation8 + $0x744] sm:$0xf]  ;;  %v8050_v20 = vld [vmem:[#allocation8 + $0x528] sm:$0xf]  ;;  %v9224_v18 = vld [vmem:[#allocation8 + $0x534] sm:$0xf0] }
 0x29b   :  { %v8051_v37 = vor.u32 %v9224_v18, %v8050_v20  ;;  %v9110_v20 = vld [vmem:[#allocation8 + $0x1ac] sm:$0xf]  ;;  %v7604_v18 = vld [vmem:[#allocation8 + $0x1b8] sm:$0xf0] }
 0x29c   :  { %5050 = vmatpush.bf16.msra.mxu3 %v7411_v33  ;;  %v7715_v33 = vor.u32 %v9140_v26, %v7714_v25  ;;  %v7650_v26 = vld [vmem:[#allocation8 + $0x208] sm:$0xf] }
 0x29d   :  { %5063 = vmatpush.bf16.msra.mxu1 %v7539_v15  ;;  %v9136_v15 = vld [vmem:[#allocation8 + $0x274] sm:$0xf0] }
 0x29e   :  { %5032 = vmatpush.bf16.msrb.mxu0 %v8383_v27  ;;  %5073 = vmatpush.bf16.msra.mxu2 %v7715_v33  ;;  %v7699_v45 = vor.u32 %v9136_v15, %v7698_v57  ;;  %v9124_v27 = vld [vmem:[#allocation8 + $0x214] sm:$0xf0]  ;;  %v7906_v57 = vld [vmem:[#allocation8 + $0x408] sm:$0xf] }
 0x29f   :  { %v9280_v33 = vld [vmem:[#allocation8 + $0x6f4] sm:$0xf0] }
 0x2a0   :  { %5051 = vmatpush.bf16.msra.mxu3 %v7395_v50  ;;  %v9132_v50 = vld [vmem:[#allocation8 + $0x254] sm:$0xf0]  ;;  %v8275_v31 = vor.u32 %v9280_v33, %v8274_v10  ;;  %v9106_v33 = vld [vmem:[#allocation8 + $0x18c] sm:$0xf] }
 0x2a1   :  { %5064 = vmatpush.bf16.msra.mxu1 %v7523_v55  ;;  %v3548_v55 = vperm.slane %v9889_v44, 0  ;;  %v7683_v1 = vor.u32 %v9132_v50, %v7682_v61  ;;  %v9188_v15 = vld [vmem:[#allocation8 + $0x414] sm:$0xf0]  ;;  %v8258_v50 = vld [vmem:[#allocation8 + $0x6c8] sm:$0xf] }
 0x2a2   :  { %5033 = vmatpush.bf16.msrb.mxu0 %v8367_v58  ;;  %5074 = vmatpush.bf16.msra.mxu2 %v7699_v45  ;;  %v8034_v58 = vld [vmem:[#allocation8 + $0x508] sm:$0xf]  ;;  %v7636_v45 = vld [vmem:[#allocation8 + $0x1f8] sm:$0xf0]  ;;  %v7907_v61 = vor.u32 %v9188_v15, %v7906_v57  ;;  %v9264_v57 = vld [vmem:[#allocation8 + $0x674] sm:$0xf0] }
 0x2a3   :  { %5052 = vmatmul.bf16.vlgmr.msra.gmra.mxu3 %v9825_v11  ;;  %v4858_v29 = vpop.f32.mrf.mxu1 }
 0x2a4   :  { %5096 = vmatpush.bf16.msrb.mxu3 %v8019_v59  ;;  %5065 = vmatmul.bf16.vlgmr.msra.gmra.mxu1 %v9827_v12  ;;  %v9891_v51 = vpop.f32.mrf.mxu0  ;;  %v9293_v59 = vld [vmem:[#allocation8 + $0x764] sm:$0xf] }
 0x2a5   :  { %5109 = vmatpush.bf16.msrb.mxu1 %v8147_v17  ;;  %v9196_v17 = vld [vmem:[#allocation8 + $0x454] sm:$0xf0]  ;;  %v8335_v60 = vor.u32 %v9293_v59, %v8332_v0  ;;  %v8284_v0 = vld [vmem:[#allocation8 + $0x710] sm:$0xf0] }
 0x2a6   :  { %5034 = vmatpush.bf16.msrb.mxu0 %v8351_v21  ;;  %v4845_v41 = vpop.f32.mrf.mxu3  ;;  %v7939_v4 = vor.u32 %v9196_v17, %v7938_v62  ;;  %5075 = vmatpush.bf16.msra.mxu2 %v7683_v1  ;;  %v9276_v21 = vld [vmem:[#allocation8 + $0x6d4] sm:$0xf0]  ;;  %v7890_v62 = vld [vmem:[#allocation8 + $0x3e8] sm:$0xf]  ;;  %v7639_v17 = vor.u32 %v9118_v43, %v7636_v45  ;;  %v9102_v45 = vld [vmem:[#allocation8 + $0x16c] sm:$0xf] }
 0x2a7   :  { %v9184_v1 = vld [vmem:[#allocation8 + $0x3f4] sm:$0xf0] }
 0x2a8   :  { %5097 = vmatpush.bf16.msrb.mxu3 %v8003_v42  ;;  %v4846_v42 = vadd.f32 %v4845_v41, %v3548_v55  ;;  %v4871_v54 = vpop.f32.mrf.mxu2  ;;  %v8035_v55 = vor.u32 %v9220_v56, %v8034_v58 }
 0x2a9   :  { %5110 = vmatpush.bf16.msrb.mxu1 %v8131_v14  ;;  %v8067_v14 = vor.u32 %v9228_v2, %v8066_v23  ;;  %4987 = vmatmul.bf16.vlgmr.msra.gmra.mxu0 %v9831_v13  ;;  %v9082_v23 = vld [vmem:[#allocation8 + $0xcc] sm:$0xf]  ;;  %v8259_v2 = vor.u32 %v9276_v21, %v8258_v50 }
 0x2aa   :  { %v4859_v24 = vadd.f32 %v4858_v29, %v4846_v42  ;;  %5035 = vmatpush.bf16.msrb.mxu0 %v8335_v60  ;;  %5076 = vmatpush.bf16.msra.mxu2 %v7667_v32  ;;  %v8242_v60 = vld [vmem:[#allocation8 + $0x6a8] sm:$0xf] }
 0x2ab   :  { %v4860_v25 = vpop.f32.mrf.mxu1 }
 0x2ac   :  { %5098 = vmatpush.bf16.msrb.mxu3 %v7987_v19  ;;  %v9285_v19 = vld [vmem:[#allocation8 + $0x724] sm:$0xf]  ;;  %v4886_v46 = vpop.f32.mrf.mxu0  ;;  %v4872_v34 = vadd.f32 %v4871_v54, %v4859_v24  ;;  %v7874_v54 = vld [vmem:[#allocation8 + $0x3c8] sm:$0xf]  ;;  %v9268_v25 = vld [vmem:[#allocation8 + $0x694] sm:$0xf0] }
 0x2ad   :  { %5111 = vmatpush.bf16.msrb.mxu1 %v8115_v28  ;;  %v8319_v28 = vor.u32 %v9289_v5, %v8316_v36  ;;  %v8303_v29 = vor.u32 %v9285_v19, %v8300_v30  ;;  %v7891_v5 = vor.u32 %v9184_v1, %v7890_v62  ;;  %v9180_v36 = vld [vmem:[#allocation8 + $0x3d4] sm:$0xf0]  ;;  %v8226_v24 = vld [vmem:[#allocation8 + $0x688] sm:$0xf]  ;;  %v7607_v46 = vor.u32 %v9110_v20, %v7604_v18  ;;  %v7460_v30 = vld [vmem:[#allocation8 + $0x98] sm:$0xf0] }
 0x2ae   :  { %v9896_v8 = vadd.f32 %v9891_v51, %v4872_v34  ;;  %v4847_v47 = vpop.f32.mrf.mxu3  ;;  %v7492_v51 = vld [vmem:[#allocation8 + $0xd8] sm:$0xf0]  ;;  %v7858_v19 = vld [vmem:[#allocation8 + $0x3a8] sm:$0xf]  ;;  %v8227_v10 = vor.u32 %v9268_v25, %v8226_v24  ;;  %v9252_v20 = vld [vmem:[#allocation8 + $0x614] sm:$0xf0] }
 0x2af   :  { %5036 = vmatpush.bf16.msrb.mxu0 %v8319_v28  ;;  %v7495_v42 = vor.u32 %v9082_v23, %v7492_v51  ;;  %v9176_v28 = vld [vmem:[#allocation8 + $0x3b4] sm:$0xf0]  ;;  %v7588_v34 = vld [vmem:[#allocation8 + $0x198] sm:$0xf0]  ;;  %v8178_v23 = vld [vmem:[#allocation8 + $0x628] sm:$0xf] }
 0x2b0   :  { %5099 = vmatpush.bf16.msrb.mxu3 %v7971_v38  ;;  %v7651_v38 = vor.u32 %v9124_v27, %v7650_v26  ;;  %v7875_v26 = vor.u32 %v9180_v36, %v7874_v54  ;;  %v7479_v27 = vor.u32 %v9078_v16, %v7476_v22  ;;  %v7859_v15 = vor.u32 %v9176_v28, %v7858_v19  ;;  %v7572_v47 = vld [vmem:[#allocation8 + $0x178] sm:$0xf0]  ;;  %v9256_v51 = vld [vmem:[#allocation8 + $0x634] sm:$0xf0]  ;;  %v9094_v16 = vld [vmem:[#allocation8 + $0x12c] sm:$0xf] }
 0x2b1   :  { %5112 = vmatpush.bf16.msrb.mxu1 %v8099_v35  ;;  %v7508_v35 = vld [vmem:[#allocation8 + $0xf8] sm:$0xf0]  ;;  %v7591_v56 = vor.u32 %v9106_v33, %v7588_v34  ;;  %v8179_v36 = vor.u32 %v9256_v51, %v8178_v23  ;;  %v7794_v18 = vld [vmem:[#allocation8 + $0x328] sm:$0xf]  ;;  %v9150_v19 = vld [vmem:[#allocation8 + $0x2ec] sm:$0xf] }
 0x2b2   :  { %v7511_v59 = vor.u32 %v9086_v40, %v7508_v35  ;;  %5077 = vmatpush.bf16.msra.mxu2 %v7651_v38  ;;  %v7842_v38 = vld [vmem:[#allocation8 + $0x388] sm:$0xf]  ;;  %v9172_v40 = vld [vmem:[#allocation8 + $0x394] sm:$0xf0]  ;;  %v9070_v35 = vld [vmem:[#allocation8 + $0x6c] sm:$0xf] }
 0x2b3   :  { %5037 = vmatpush.bf16.msrb.mxu0 %v8303_v29  ;;  %v8194_v29 = vld [vmem:[#allocation8 + $0x648] sm:$0xf]  ;;  %v7843_v50 = vor.u32 %v9172_v40, %v7842_v38  ;;  %v7556_v1 = vld [vmem:[#allocation8 + $0x158] sm:$0xf0]  ;;  %v9214_v34 = vld [vmem:[#allocation8 + $0x4ec] sm:$0xf] }
 0x2b4   :  { %5100 = vmatpush.bf16.msrb.mxu3 %v7955_v53  ;;  %v4873_v53 = vpop.f32.mrf.mxu2  ;;  %v7412_v54 = vld [vmem:[#allocation8 + $0x38] sm:$0xf0] }
 0x2b5   :  { %5113 = vmatpush.bf16.msrb.mxu1 %v8083_v63  ;;  %v9281_v63 = vld [vmem:[#allocation8 + $0x704] sm:$0xf]  ;;  %5078 = vmatmul.bf16.vlgmr.msra.gmra.mxu2 %v9829_v9  ;;  %v7826_v53 = vld [vmem:[#allocation8 + $0x368] sm:$0xf]  ;;  %v7540_v22 = vld [vmem:[#allocation8 + $0x138] sm:$0xf0] }
 0x2b6   :  { %5122 = vmatpush.bf16.msrb.mxu2 %v8275_v31  ;;  %v8287_v41 = vor.u32 %v9281_v63, %v8284_v0  ;;  %v7444_v31 = vld [vmem:[#allocation8 + $0x78] sm:$0xf0]  ;;  %v9066_v63 = vld [vmem:[#allocation8 + $0x4c] sm:$0xf]  ;;  %v7543_v28 = vor.u32 %v9094_v16, %v7540_v22 }
 0x2b7   :  { %v7447_v21 = vor.u32 %v9070_v35, %v7444_v31  ;;  %v7428_v0 = vld [vmem:[#allocation8 + $0x58] sm:$0xf0]  ;;  %v9146_v35 = vld [vmem:[#allocation8 + $0x2cc] sm:$0xf] }
 0x2b8   :  { %5101 = vmatpush.bf16.msrb.mxu3 %v7939_v4  ;;  %v9272_v4 = vld [vmem:[#allocation8 + $0x6b4] sm:$0xf0]  ;;  %5038 = vmatpush.bf16.msrb.mxu0 %v8287_v41  ;;  %v7810_v41 = vld [vmem:[#allocation8 + $0x348] sm:$0xf]  ;;  %v7524_v33 = vld [vmem:[#allocation8 + $0x118] sm:$0xf0] }
 0x2b9   :  { %5114 = vmatpush.bf16.msrb.mxu1 %v8067_v14  ;;  %v7623_v14 = vor.u32 %v9114_v3, %v7620_v39  ;;  %v8243_v32 = vor.u32 %v9272_v4, %v8242_v60  ;;  %v7431_v39 = vor.u32 %v9066_v63, %v7428_v0  ;;  %v7748_v31 = vld [vmem:[#allocation8 + $0x2d8] sm:$0xf0]  ;;  %v9242_v0 = vld [vmem:[#allocation8 + $0x5cc] sm:$0xf] }
 0x2ba   :  { %5123 = vmatpush.bf16.msrb.mxu2 %v8259_v2  ;;  %v7751_v63 = vor.u32 %v9146_v35, %v7748_v31  ;;  %v7732_v23 = vld [vmem:[#allocation8 + $0x2b8] sm:$0xf0]  ;;  %v8338_v31 = vld [vmem:[#allocation8 + $0x768] sm:$0xf] }
 0x2bb   :  { %5039 = vmatmul.bf16.vlgmr.msrb.gmra.mxu0 %v9883_v49 }
 0x2bc   :  { %5102 = vmatpush.bf16.msrb.mxu3 %v7923_v52  ;;  %5083 = vmatpush.bf16.msra.mxu0 %v7891_v5  ;;  %v9074_v52 = vld [vmem:[#allocation8 + $0x8c] sm:$0xf]  ;;  %v9164_v5 = vld [vmem:[#allocation8 + $0x354] sm:$0xf0] }
 0x2bd   :  { %5115 = vmatpush.bf16.msrb.mxu1 %v8051_v37  ;;  %v8210_v37 = vld [vmem:[#allocation8 + $0x668] sm:$0xf]  ;;  %v7463_v58 = vor.u32 %v9074_v52, %v7460_v30  ;;  %v7811_v25 = vor.u32 %v9164_v5, %v7810_v41  ;;  %v9058_v52 = vld [vmem:[#allocation8 + $0xc] sm:$0xf]  ;;  %v9308_v41 = vld [vmem:[#allocation8 + $0x7d4] sm:$0xf0] }
 0x2be   :  { %5124 = vmatpush.bf16.msrb.mxu2 %v8243_v32  ;;  %v8211_v43 = vor.u32 %v9264_v57, %v8210_v37  ;;  %v8162_v32 = vld [vmem:[#allocation8 + $0x608] sm:$0xf]  ;;  %v9090_v30 = vld [vmem:[#allocation8 + $0x10c] sm:$0xf]  ;;  %v8020_v37 = vld [vmem:[#allocation8 + $0x4f8] sm:$0xf0] }
 0x2c0   :  { %5103 = vmatpush.bf16.msrb.mxu3 %v7907_v61  ;;  %5084 = vmatpush.bf16.msra.mxu0 %v7875_v26  ;;  %v9260_v61 = vld [vmem:[#allocation8 + $0x654] sm:$0xf0] }
 0x2c1   :  { %5116 = vmatpush.bf16.msrb.mxu1 %v8035_v55  ;;  %v7575_v55 = vor.u32 %v9102_v45, %v7572_v47  ;;  %v8195_v62 = vor.u32 %v9260_v61, %v8194_v29  ;;  %v4910_v2 = vpop.f32.mrf.mxu1  ;;  %v7527_v45 = vor.u32 %v9090_v30, %v7524_v33  ;;  %v8023_v47 = vor.u32 %v9214_v34, %v8020_v37  ;;  %v7778_v29 = vld [vmem:[#allocation8 + $0x308] sm:$0xf]  ;;  %v9156_v61 = vld [vmem:[#allocation8 + $0x314] sm:$0xf0]  ;;  %v9198_v33 = vld [vmem:[#allocation8 + $0x46c] sm:$0xf] }
 0x2c2   :  { %5125 = vmatpush.bf16.msrb.mxu2 %v8227_v10  ;;  %v8163_v10 = vor.u32 %v9252_v20, %v8162_v32  ;;  %v8370_v32 = vld [vmem:[#allocation8 + $0x7a8] sm:$0xf]  ;;  %v7956_v34 = vld [vmem:[#allocation8 + $0x478] sm:$0xf0] }
 0x2c3   :  { %5104 = vmatmul.bf16.vlgmr.msrb.gmra.mxu3 %v9846_v48  ;;  %v7959_v35 = vor.u32 %v9198_v33, %v7956_v34  ;;  %v8290_v34 = vld [vmem:[#allocation8 + $0x708] sm:$0xf] }
 0x2c4   :  { %5148 = vmatpush.bf16.msra.mxu3 %v7511_v59  ;;  %5117 = vmatmul.bf16.vlgmr.msrb.gmra.mxu1 %v9849_v7  ;;  %v9168_v59 = vld [vmem:[#allocation8 + $0x374] sm:$0xf0] }
 0x2c5   :  { %5161 = vmatpush.bf16.msra.mxu1 %v7639_v17  ;;  %5085 = vmatpush.bf16.msra.mxu0 %v7859_v15  ;;  %v9098_v17 = vld [vmem:[#allocation8 + $0x14c] sm:$0xf]  ;;  %v7827_v3 = vor.u32 %v9168_v59, %v7826_v53  ;;  %v9312_v53 = vld [vmem:[#allocation8 + $0x7f4] sm:$0xf0]  ;;  %v8004_v59 = vld [vmem:[#allocation8 + $0x4d8] sm:$0xf0] }
 0x2c6   :  { %5126 = vmatpush.bf16.msrb.mxu2 %v8211_v43  ;;  %v4897_v60 = vpop.f32.mrf.mxu3  ;;  %v7559_v4 = vor.u32 %v9098_v17, %v7556_v1  ;;  %v9246_v15 = vld [vmem:[#allocation8 + $0x5ec] sm:$0xf]  ;;  %v7779_v17 = vor.u32 %v9156_v61, %v7778_v29  ;;  %v7940_v29 = vld [vmem:[#allocation8 + $0x458] sm:$0xf0]  ;;  %v3549_v61 = vperm.slane %v9889_v44, 1 }
 0x2c7   :  { %v9142_v1 = vld [vmem:[#allocation8 + $0x2ac] sm:$0xf] }
 0x2c8   :  { %5149 = vmatpush.bf16.msra.mxu3 %v7495_v42  ;;  %v9062_v42 = vld [vmem:[#allocation8 + $0x2c] sm:$0xf]  ;;  %v7735_v5 = vor.u32 %v9142_v1, %v7732_v23  ;;  %v9292_v23 = vld [vmem:[#allocation8 + $0x754] sm:$0xf0] }
 0x2c9   :  { %5162 = vmatpush.bf16.msra.mxu1 %v7623_v14  ;;  %5086 = vmatpush.bf16.msra.mxu0 %v7843_v50  ;;  %v4898_v14 = vadd.f32 %v4897_v60, %v9896_v8  ;;  %v7415_v26 = vor.u32 %v9062_v42, %v7412_v54  ;;  %v7396_v8 = vld [vmem:[#allocation8 + $0x18] sm:$0xf0]  ;;  %v4912_v38 = vpop.f32.mrf.mxu1  ;;  %v8402_v50 = vld [vmem:[#allocation8 + $0x7e8] sm:$0xf]  ;;  %v9206_v60 = vld [vmem:[#allocation8 + $0x4ac] sm:$0xf] }
 0x2ca   :  { %5127 = vmatpush.bf16.msrb.mxu2 %v8195_v62  ;;  %v7399_v40 = vor.u32 %v9058_v52, %v7396_v8  ;;  %v8132_v62 = vld [vmem:[#allocation8 + $0x5d8] sm:$0xf0]  ;;  %v8403_v51 = vor.u32 %v9312_v53, %v8402_v50  ;;  %v9238_v42 = vld [vmem:[#allocation8 + $0x5ac] sm:$0xf]  ;;  %v8354_v8 = vld [vmem:[#allocation8 + $0x788] sm:$0xf] }
 0x2cb   :  { %v9903_v24 = vadd.f32 %v4910_v2, %v4898_v14  ;;  %v8116_v54 = vld [vmem:[#allocation8 + $0x5b8] sm:$0xf0]  ;;  %v9138_v14 = vld [vmem:[#allocation8 + $0x28c] sm:$0xf] }
 0x2cc   :  { %5150 = vmatpush.bf16.msra.mxu3 %v7479_v27  ;;  %v9160_v27 = vld [vmem:[#allocation8 + $0x334] sm:$0xf0]  ;;  %v8119_v20 = vor.u32 %v9238_v42, %v8116_v54  ;;  %v7684_v38 = vld [vmem:[#allocation8 + $0x258] sm:$0xf0]  ;;  %v9222_v44 = vld [vmem:[#allocation8 + $0x52c] sm:$0xf] }
 0x2cd   :  { %5163 = vmatpush.bf16.msra.mxu1 %v7607_v46  ;;  %5087 = vmatpush.bf16.msra.mxu0 %v7827_v3  ;;  %v7764_v46 = vld [vmem:[#allocation8 + $0x2f8] sm:$0xf0]  ;;  %v8386_v3 = vld [vmem:[#allocation8 + $0x7c8] sm:$0xf] }
 0x2ce   :  { %5128 = vmatpush.bf16.msrb.mxu2 %v8179_v36  ;;  %v7767_v57 = vor.u32 %v9150_v19, %v7764_v46  ;;  %v4899_v43 = vpop.f32.mrf.mxu3  ;;  %v7716_v36 = vld [vmem:[#allocation8 + $0x298] sm:$0xf0]  ;;  %v8387_v16 = vor.u32 %v9308_v41, %v8386_v3 }
 0x2cf   :  { %v8100_v19 = vld [vmem:[#allocation8 + $0x598] sm:$0xf0] }
 0x2d0   :  { %5151 = vmatpush.bf16.msra.mxu3 %v7463_v58  ;;  %v8148_v58 = vld [vmem:[#allocation8 + $0x5f8] sm:$0xf0] }
 0x2d1   :  { %5164 = vmatpush.bf16.msra.mxu1 %v7591_v56  ;;  %5088 = vmatpush.bf16.msra.mxu0 %v7811_v25  ;;  %v7795_v56 = vor.u32 %v9160_v27, %v7794_v18  ;;  %v9304_v18 = vld [vmem:[#allocation8 + $0x7b4] sm:$0xf0]  ;;  %v9202_v25 = vld [vmem:[#allocation8 + $0x48c] sm:$0xf]  ;;  %v7700_v46 = vld [vmem:[#allocation8 + $0x278] sm:$0xf0] }
 0x2d2   :  { %5129 = vmatpush.bf16.msrb.mxu2 %v8163_v10  ;;  %v9234_v27 = vld [vmem:[#allocation8 + $0x58c] sm:$0xf]  ;;  %v9300_v10 = vld [vmem:[#allocation8 + $0x794] sm:$0xf0]  ;;  %v8068_v53 = vld [vmem:[#allocation8 + $0x558] sm:$0xf0] }
 0x2d3   :  { %v8103_v30 = vor.u32 %v9234_v27, %v8100_v19  ;;  %v8052_v41 = vld [vmem:[#allocation8 + $0x538] sm:$0xf0] }
 0x2d4   :  { %5152 = vmatpush.bf16.msra.mxu3 %v7447_v21  ;;  %v8151_v21 = vor.u32 %v9246_v15, %v8148_v58  ;;  %v8084_v15 = vld [vmem:[#allocation8 + $0x578] sm:$0xf0]  ;;  %v9130_v58 = vld [vmem:[#allocation8 + $0x24c] sm:$0xf] }
 0x2d5   :  { %5165 = vmatpush.bf16.msra.mxu1 %v7575_v55  ;;  %v9210_v55 = vld [vmem:[#allocation8 + $0x4cc] sm:$0xf]  ;;  %5089 = vmatpush.bf16.msra.mxu0 %v7795_v56  ;;  %v7687_v50 = vor.u32 %v9130_v58, %v7684_v38  ;;  %v8036_v27 = vld [vmem:[#allocation8 + $0x518] sm:$0xf0] }
 0x2d6   :  { %5174 = vmatpush.bf16.msra.mxu2 %v7767_v57  ;;  %v8007_v2 = vor.u32 %v9210_v55, %v8004_v59  ;;  %v9230_v57 = vld [vmem:[#allocation8 + $0x56c] sm:$0xf]  ;;  %v7668_v59 = vld [vmem:[#allocation8 + $0x238] sm:$0xf0] }
 0x2d7   :  { %5130 = vmatmul.bf16.vlgmr.msrb.gmra.mxu2 %v9874_v6  ;;  %v8087_v43 = vor.u32 %v9230_v57, %v8084_v15  ;;  %v9126_v55 = vld [vmem:[#allocation8 + $0x22c] sm:$0xf]  ;;  %v7892_v15 = vld [vmem:[#allocation8 + $0x3f8] sm:$0xf0] }
 0x2d8   :  { %5153 = vmatpush.bf16.msra.mxu3 %v7431_v39  ;;  %v8135_v39 = vor.u32 %v9242_v0, %v8132_v62  ;;  %v8322_v62 = vld [vmem:[#allocation8 + $0x748] sm:$0xf]  ;;  %v9182_v57 = vld [vmem:[#allocation8 + $0x3ec] sm:$0xf] }
 0x2d9   :  { %5166 = vmatpush.bf16.msra.mxu1 %v7559_v4  ;;  %v7988_v4 = vld [vmem:[#allocation8 + $0x4b8] sm:$0xf0]  ;;  %5090 = vmatpush.bf16.msra.mxu0 %v7779_v17  ;;  %v8323_v42 = vor.u32 %v9292_v23, %v8322_v62  ;;  %v8442_v23 = vld [vmem:[#allocation11 + $0x40] sm:$0xf] }
 0x2da   :  { %5175 = vmatpush.bf16.msra.mxu2 %v7751_v63  ;;  %v7991_v22 = vor.u32 %v9206_v60, %v7988_v4  ;;  %v9122_v60 = vld [vmem:[#allocation8 + $0x20c] sm:$0xf]  ;;  %v7652_v4 = vld [vmem:[#allocation8 + $0x218] sm:$0xf0] }
 0x2dc   :  { %5154 = vmatpush.bf16.msra.mxu3 %v7415_v26  ;;  %v7972_v26 = vld [vmem:[#allocation8 + $0x498] sm:$0xf0]  ;;  %5091 = vmatmul.bf16.vlgmr.msra.gmra.mxu0 %v9831_v13 }
 0x2dd   :  { %5167 = vmatpush.bf16.msra.mxu1 %v7543_v28  ;;  %5135 = vmatpush.bf16.msrb.mxu0 %v8403_v51  ;;  %v8371_v28 = vor.u32 %v9304_v18, %v8370_v32  ;;  %v7975_v52 = vor.u32 %v9202_v25, %v7972_v26  ;;  %v9190_v51 = vld [vmem:[#allocation8 + $0x42c] sm:$0xf]  ;;  %v8055_v32 = vor.u32 %v9222_v44, %v8052_v41  ;;  %v7908_v25 = vld [vmem:[#allocation8 + $0x418] sm:$0xf0] }
 0x2de   :  { %5176 = vmatpush.bf16.msra.mxu2 %v7735_v5  ;;  %v9186_v18 = vld [vmem:[#allocation8 + $0x40c] sm:$0xf]  ;;  %v7655_v26 = vor.u32 %v9122_v60, %v7652_v4  ;;  %v7844_v41 = vld [vmem:[#allocation8 + $0x398] sm:$0xf0]  ;;  %v8522_v4 = vld [vmem:[#allocation11 + $0xe0] sm:$0xf] }
 0x2df   :  { %v9170_v44 = vld [vmem:[#allocation8 + $0x38c] sm:$0xf] }
 0x2e0   :  { %5155 = vmatpush.bf16.msra.mxu3 %v7399_v40  ;;  %v8355_v40 = vor.u32 %v9300_v10, %v8354_v8  ;;  %v9274_v8 = vld [vmem:[#allocation8 + $0x6cc] sm:$0xf] }
 0x2e1   :  { %5168 = vmatpush.bf16.msra.mxu1 %v7527_v45  ;;  %5136 = vmatpush.bf16.msrb.mxu0 %v8387_v16  ;;  %v4962_v56 = vpop.f32.mrf.mxu1  ;;  %v9296_v45 = vld [vmem:[#allocation8 + $0x774] sm:$0xf0]  ;;  %v8276_v16 = vld [vmem:[#allocation8 + $0x6f8] sm:$0xf0] }
 0x2e2   :  { %v8339_v63 = vor.u32 %v9296_v45, %v8338_v31  ;;  %v9270_v31 = vld [vmem:[#allocation8 + $0x6ac] sm:$0xf]  ;;  %v7895_v45 = vor.u32 %v9182_v57, %v7892_v15  ;;  %v7812_v57 = vld [vmem:[#allocation8 + $0x358] sm:$0xf0] }
 0x2e3   :  { %5156 = vmatmul.bf16.vlgmr.msra.gmra.mxu3 %v9825_v11  ;;  %v7719_v11 = vor.u32 %v9138_v14, %v7716_v36  ;;  %v8306_v14 = vld [vmem:[#allocation8 + $0x728] sm:$0xf]  ;;  %v9278_v36 = vld [vmem:[#allocation8 + $0x6ec] sm:$0xf] }
 0x2e4   :  { %5200 = vmatpush.bf16.msrb.mxu3 %v8023_v47  ;;  %5169 = vmatmul.bf16.vlgmr.msra.gmra.mxu1 %v9827_v12  ;;  %v9134_v12 = vld [vmem:[#allocation8 + $0x26c] sm:$0xf]  ;;  %v8279_v19 = vor.u32 %v9278_v36, %v8276_v16 }
 0x2e5   :  { %5213 = vmatpush.bf16.msrb.mxu1 %v8151_v21  ;;  %5177 = vmatpush.bf16.msra.mxu2 %v7719_v11  ;;  %v7703_v37 = vor.u32 %v9134_v12, %v7700_v46  ;;  %v9194_v47 = vld [vmem:[#allocation8 + $0x44c] sm:$0xf]  ;;  %v8466_v12 = vld [vmem:[#allocation11 + $0x70] sm:$0xf]  ;;  %v9328_v46 = vld [vmem:[#allocation11 + $0x74] sm:$0xf0] }
 0x2e6   :  { %5137 = vmatpush.bf16.msrb.mxu0 %v8371_v28  ;;  %v9226_v21 = vld [vmem:[#allocation8 + $0x54c] sm:$0xf]  ;;  %v7943_v0 = vor.u32 %v9194_v47, %v7940_v29  ;;  %v4949_v17 = vpop.f32.mrf.mxu3  ;;  %v8467_v58 = vor.u32 %v9328_v46, %v8466_v12  ;;  %v7876_v29 = vld [vmem:[#allocation8 + $0x3d8] sm:$0xf0] }
 0x2e7   :  { %v8071_v1 = vor.u32 %v9226_v21, %v8068_v53  ;;  %v4950_v3 = vadd.f32 %v4949_v17, %v3549_v61  ;;  %v9218_v11 = vld [vmem:[#allocation8 + $0x50c] sm:$0xf]  ;;  %v8450_v21 = vld [vmem:[#allocation11 + $0x50] sm:$0xf]  ;;  %v9324_v53 = vld [vmem:[#allocation11 + $0x54] sm:$0xf0] }
 0x2e8   :  { %5201 = vmatpush.bf16.msrb.mxu3 %v8007_v2  ;;  %v7924_v2 = vld [vmem:[#allocation8 + $0x438] sm:$0xf0]  ;;  %v8039_v33 = vor.u32 %v9218_v11, %v8036_v27  ;;  %v9178_v47 = vld [vmem:[#allocation8 + $0x3cc] sm:$0xf]  ;;  %v8451_v62 = vor.u32 %v9324_v53, %v8450_v21  ;;  %v8530_v17 = vld [vmem:[#allocation11 + $0xf0] sm:$0xf] }
 0x2e9   :  { %5214 = vmatpush.bf16.msrb.mxu1 %v8135_v39  ;;  %5178 = vmatpush.bf16.msra.mxu2 %v7703_v37  ;;  %v7671_v39 = vor.u32 %v9126_v55, %v7668_v59  ;;  %v4964_v5 = vpop.f32.mrf.mxu1  ;;  %v7927_v54 = vor.u32 %v9190_v51, %v7924_v2  ;;  %v9284_v37 = vld [vmem:[#allocation8 + $0x714] sm:$0xf0]  ;;  %v9266_v55 = vld [vmem:[#allocation8 + $0x68c] sm:$0xf]  ;;  %v8228_v59 = vld [vmem:[#allocation8 + $0x698] sm:$0xf0] }
 0x2ea   :  { %5138 = vmatpush.bf16.msrb.mxu0 %v8355_v40  ;;  %v9326_v40 = vld [vmem:[#allocation11 + $0x64] sm:$0xf0]  ;;  %v7828_v11 = vld [vmem:[#allocation8 + $0x378] sm:$0xf0] }
 0x2eb   :  { %v9322_v51 = vld [vmem:[#allocation11 + $0x44] sm:$0xf0]  ;;  %v9340_v12 = vld [vmem:[#allocation11 + $0xd4] sm:$0xf0] }
 0x2ec   :  { %5202 = vmatpush.bf16.msrb.mxu3 %v7991_v22  ;;  %v9910_v22 = vadd.f32 %v4962_v56, %v4950_v3  ;;  %v8458_v56 = vld [vmem:[#allocation11 + $0x60] sm:$0xf]  ;;  %v9262_v3 = vld [vmem:[#allocation8 + $0x66c] sm:$0xf]  ;;  %v8443_v60 = vor.u32 %v9322_v51, %v8442_v23  ;;  %v7796_v21 = vld [vmem:[#allocation8 + $0x338] sm:$0xf0] }
 0x2ed   :  { %5215 = vmatpush.bf16.msrb.mxu1 %v8119_v20  ;;  %5179 = vmatpush.bf16.msra.mxu2 %v7687_v50  ;;  %v9288_v20 = vld [vmem:[#allocation8 + $0x734] sm:$0xf0]  ;;  %v8459_v61 = vor.u32 %v9326_v40, %v8458_v56  ;;  %v9342_v5 = vld [vmem:[#allocation11 + $0xe4] sm:$0xf0]  ;;  %v8418_v40 = vld [vmem:[#allocation11 + $0x10] sm:$0xf] }
 0x2ee   :  { %5139 = vmatpush.bf16.msrb.mxu0 %v8339_v63  ;;  %v8307_v28 = vor.u32 %v9288_v20, %v8306_v14  ;;  %v4951_v10 = vpop.f32.mrf.mxu3  ;;  %v7879_v63 = vor.u32 %v9178_v47, %v7876_v29  ;;  %v9320_v14 = vld [vmem:[#allocation11 + $0x34] sm:$0xf0]  ;;  %v8523_v36 = vor.u32 %v9342_v5, %v8522_v4  ;;  %v9258_v16 = vld [vmem:[#allocation8 + $0x64c] sm:$0xf]  ;;  %v9325_v5 = vld [vmem:[#allocation11 + $0x64] sm:$0xf] }
 0x2ef   :  { %v8180_v10 = vld [vmem:[#allocation8 + $0x638] sm:$0xf0]  ;;  %v9154_v23 = vld [vmem:[#allocation8 + $0x30c] sm:$0xf] }
 0x2f0   :  { %5203 = vmatpush.bf16.msrb.mxu3 %v7975_v52  ;;  %v7911_v52 = vor.u32 %v9186_v18, %v7908_v25  ;;  %v7847_v25 = vor.u32 %v9170_v44, %v7844_v41  ;;  %v9310_v44 = vld [vmem:[#allocation8 + $0x7ec] sm:$0xf]  ;;  %v8404_v41 = vld [vmem:[#allocation8 + $0x7f8] sm:$0xf0] }
 0x2f1   :  { %5216 = vmatpush.bf16.msrb.mxu1 %v8103_v30  ;;  %5180 = vmatpush.bf16.msra.mxu2 %v7671_v39  ;;  %v8260_v30 = vld [vmem:[#allocation8 + $0x6d8] sm:$0xf0] }
 0x2f2   :  { %5140 = vmatpush.bf16.msrb.mxu0 %v8323_v42  ;;  %v8263_v38 = vor.u32 %v9274_v8, %v8260_v30  ;;  %v9918_v18 = vpop.f32.mrf.mxu2  ;;  %v9254_v30 = vld [vmem:[#allocation8 + $0x62c] sm:$0xf] }
 0x2f3   :  { %v8183_v56 = vor.u32 %v9254_v30, %v8180_v10 }
 0x2f4   :  { %5204 = vmatpush.bf16.msrb.mxu3 %v7959_v35  ;;  %v8291_v35 = vor.u32 %v9284_v37, %v8290_v34  ;;  %v9162_v34 = vld [vmem:[#allocation8 + $0x34c] sm:$0xf] }
 0x2f5   :  { %5217 = vmatpush.bf16.msrb.mxu1 %v8087_v43  ;;  %5181 = vmatpush.bf16.msra.mxu2 %v7655_v26  ;;  %v8244_v43 = vld [vmem:[#allocation8 + $0x6b8] sm:$0xf0]  ;;  %v9166_v26 = vld [vmem:[#allocation8 + $0x36c] sm:$0xf] }
 0x2f6   :  { %5141 = vmatpush.bf16.msrb.mxu0 %v8307_v28  ;;  %v8247_v50 = vor.u32 %v9270_v31, %v8244_v43  ;;  %v8426_v28 = vld [vmem:[#allocation11 + $0x20] sm:$0xf]  ;;  %v9250_v43 = vld [vmem:[#allocation8 + $0x60c] sm:$0xf] }
 0x2f8   :  { %5205 = vmatpush.bf16.msrb.mxu3 %v7943_v0  ;;  %5182 = vmatmul.bf16.vlgmr.msra.gmra.mxu2 %v9829_v9  ;;  %v9174_v0 = vld [vmem:[#allocation8 + $0x3ac] sm:$0xf]  ;;  %v7860_v9 = vld [vmem:[#allocation8 + $0x3b8] sm:$0xf0] }
 0x2f9   :  { %5218 = vmatpush.bf16.msrb.mxu1 %v8071_v1  ;;  %5226 = vmatpush.bf16.msrb.mxu2 %v8279_v19  ;;  %v9344_v1 = vld [vmem:[#allocation11 + $0xf4] sm:$0xf0]  ;;  %v7863_v39 = vor.u32 %v9174_v0, %v7860_v9  ;;  %v8514_v19 = vld [vmem:[#allocation11 + $0xd0] sm:$0xf]  ;;  %v8410_v0 = vld [vmem:[#allocation11] sm:$0xf] }
 0x2fa   :  { %5142 = vmatpush.bf16.msrb.mxu0 %v8291_v35  ;;  %v8531_v2 = vor.u32 %v9344_v1, %v8530_v17  ;;  %v8515_v8 = vor.u32 %v9340_v12, %v8514_v19  ;;  %v9316_v35 = vld [vmem:[#allocation11 + $0x14] sm:$0xf0]  ;;  %v4925_v29 = vpop.f32.mrf.mxu2  ;;  %v9314_v9 = vld [vmem:[#allocation11 + $0x4] sm:$0xf0]  ;;  %v9327_v17 = vld [vmem:[#allocation11 + $0x74] sm:$0xf] }
 0x2fb   :  { %v8419_v53 = vor.u32 %v9316_v35, %v8418_v40  ;;  %v8468_v1 = vld [vmem:[#allocation11 + $0x78] sm:$0xf0]  ;;  %v9323_v19 = vld [vmem:[#allocation11 + $0x54] sm:$0xf]  ;;  %v9298_v40 = vld [vmem:[#allocation8 + $0x78c] sm:$0xf] }
 0x2fc   :  { %5206 = vmatpush.bf16.msrb.mxu3 %v7927_v54  ;;  %v8434_v54 = vld [vmem:[#allocation11 + $0x30] sm:$0xf]  ;;  %v8452_v12 = vld [vmem:[#allocation11 + $0x58] sm:$0xf0]  ;;  %v8356_v35 = vld [vmem:[#allocation8 + $0x798] sm:$0xf0] }
 0x2fd   :  { %5219 = vmatpush.bf16.msrb.mxu1 %v8055_v32  ;;  %5227 = vmatpush.bf16.msrb.mxu2 %v8263_v38  ;;  %v8196_v32 = vld [vmem:[#allocation8 + $0x658] sm:$0xf0]  ;;  %v8435_v27 = vor.u32 %v9320_v14, %v8434_v54  ;;  %v9338_v38 = vld [vmem:[#allocation11 + $0xc4] sm:$0xf0]  ;;  %v8455_v30 = vor.u32 %v9323_v19, %v8452_v12  ;;  %v8436_v29 = vld [vmem:[#allocation11 + $0x38] sm:$0xf0] }
 0x2fe   :  { %5187 = vmatpush.bf16.msra.mxu0 %v7895_v45  ;;  %v8199_v46 = vor.u32 %v9258_v16, %v8196_v32  ;;  %v8164_v45 = vld [vmem:[#allocation8 + $0x618] sm:$0xf0]  ;;  %v8482_v16 = vld [vmem:[#allocation11 + $0x90] sm:$0xf]  ;;  %v9335_v12 = vld [vmem:[#allocation11 + $0xb4] sm:$0xf] }
 0x2ff   :  { %5143 = vmatmul.bf16.vlgmr.msrb.gmra.mxu0 %v9883_v49  ;;  %v9332_v32 = vld [vmem:[#allocation11 + $0x94] sm:$0xf0] }
 0x300   :  { %5207 = vmatpush.bf16.msrb.mxu3 %v7911_v52  ;;  %v9318_v52 = vld [vmem:[#allocation11 + $0x24] sm:$0xf0]  ;;  %v8308_v19 = vld [vmem:[#allocation8 + $0x738] sm:$0xf0] }
 0x301   :  { %5220 = vmatpush.bf16.msrb.mxu1 %v8039_v33  ;;  %5228 = vmatpush.bf16.msrb.mxu2 %v8247_v50  ;;  %v9916_v20 = vpop.f32.mrf.mxu1  ;;  %v7831_v33 = vor.u32 %v9166_v26, %v7828_v11  ;;  %v8427_v15 = vor.u32 %v9318_v52, %v8426_v28  ;;  %v9158_v50 = vld [vmem:[#allocation8 + $0x32c] sm:$0xf]  ;;  %v8388_v26 = vld [vmem:[#allocation8 + $0x7d8] sm:$0xf0]  ;;  %v8474_v52 = vld [vmem:[#allocation11 + $0x80] sm:$0xf] }
 0x302   :  { %5188 = vmatpush.bf16.msra.mxu0 %v7879_v63  ;;  %v8167_v63 = vor.u32 %v9250_v43, %v8164_v45  ;;  %v9922_v54 = vpop.f32.mrf.mxu2  ;;  %v9302_v28 = vld [vmem:[#allocation8 + $0x7ac] sm:$0xf]  ;;  %v9341_v43 = vld [vmem:[#allocation11 + $0xe4] sm:$0xf]  ;;  %v8524_v45 = vld [vmem:[#allocation11 + $0xe8] sm:$0xf0] }
 0x303   :  { %5208 = vmatmul.bf16.vlgmr.msrb.gmra.mxu3 %v9846_v48  ;;  %v8231_v48 = vor.u32 %v9266_v55, %v8228_v59  ;;  %v8498_v55 = vld [vmem:[#allocation11 + $0xb0] sm:$0xf]  ;;  %v9336_v59 = vld [vmem:[#allocation11 + $0xb4] sm:$0xf0] }
 0x304   :  { %5654 = vmatpush.bf16.msra.mxu3 %v8467_v58  ;;  %5221 = vmatmul.bf16.vlgmr.msrb.gmra.mxu1 %v9849_v7  ;;  %v8212_v7 = vld [vmem:[#allocation8 + $0x678] sm:$0xf0]  ;;  %v8506_v58 = vld [vmem:[#allocation11 + $0xc0] sm:$0xf] }
 0x305   :  { %5667 = vmatpush.bf16.msra.mxu1 %v8531_v2  ;;  %5229 = vmatpush.bf16.msrb.mxu2 %v8231_v48  ;;  %v8215_v42 = vor.u32 %v9262_v3, %v8212_v7  ;;  %v8507_v31 = vor.u32 %v9338_v38, %v8506_v58  ;;  %v7799_v48 = vor.u32 %v9158_v50, %v7796_v21  ;;  %v7780_v2 = vld [vmem:[#allocation8 + $0x318] sm:$0xf0]  ;;  %v8490_v7 = vld [vmem:[#allocation11 + $0xa0] sm:$0xf] }
 0x306   :  { %5189 = vmatpush.bf16.msra.mxu0 %v7863_v39  ;;  %v9920_v37 = vpop.f32.mrf.mxu3  ;;  %v8411_v3 = vor.u32 %v9314_v9, %v8410_v0  ;;  %v9334_v39 = vld [vmem:[#allocation11 + $0xa4] sm:$0xf0]  ;;  %v7783_v14 = vor.u32 %v9154_v23, %v7780_v2  ;;  %v9339_v9 = vld [vmem:[#allocation11 + $0xd4] sm:$0xf] }
 0x307   :  { %v8491_v4 = vor.u32 %v9334_v39, %v8490_v7 }
 0x308   :  { %5655 = vmatpush.bf16.msra.mxu3 %v8459_v61  ;;  %v7815_v61 = vor.u32 %v9162_v34, %v7812_v57  ;;  %v8532_v34 = vld [vmem:[#allocation11 + $0xf8] sm:$0xf0]  ;;  %v9321_v57 = vld [vmem:[#allocation11 + $0x44] sm:$0xf] }
 0x309   :  { %5668 = vmatpush.bf16.msra.mxu1 %v8523_v36  ;;  %5230 = vmatpush.bf16.msrb.mxu2 %v8215_v42  ;;  %v5016_v47 = vpop.f32.mrf.mxu1  ;;  %v8460_v42 = vld [vmem:[#allocation11 + $0x68] sm:$0xf0]  ;;  %v8407_v36 = vor.u32 %v9310_v44, %v8404_v41  ;;  %v8324_v44 = vld [vmem:[#allocation8 + $0x758] sm:$0xf0]  ;;  %v9337_v41 = vld [vmem:[#allocation11 + $0xc4] sm:$0xf] }
 0x30a   :  { %5190 = vmatpush.bf16.msra.mxu0 %v7847_v25  ;;  %v9306_v25 = vld [vmem:[#allocation8 + $0x7cc] sm:$0xf]  ;;  %v8463_v11 = vor.u32 %v9325_v5, %v8460_v42  ;;  %v4977_v38 = vpop.f32.mrf.mxu2  ;;  %v9319_v47 = vld [vmem:[#allocation11 + $0x34] sm:$0xf] }
 0x30b   :  { %v8439_v0 = vor.u32 %v9319_v47, %v8436_v29 }
 0x30c   :  { %5656 = vmatpush.bf16.msra.mxu3 %v8451_v62  ;;  %v8499_v62 = vor.u32 %v9336_v59, %v8498_v55  ;;  %v9294_v55 = vld [vmem:[#allocation8 + $0x76c] sm:$0xf] }
 0x30d   :  { %5669 = vmatpush.bf16.msra.mxu1 %v8515_v8  ;;  %5231 = vmatpush.bf16.msrb.mxu2 %v8199_v46  ;;  %v8391_v46 = vor.u32 %v9306_v25, %v8388_v26  ;;  %v9330_v8 = vld [vmem:[#allocation11 + $0x84] sm:$0xf0] }
 0x30e   :  { %5191 = vmatpush.bf16.msra.mxu0 %v7831_v33  ;;  %v5003_v51 = vpop.f32.mrf.mxu3  ;;  %v8475_v10 = vor.u32 %v9330_v8, %v8474_v52  ;;  %v9343_v33 = vld [vmem:[#allocation11 + $0xf4] sm:$0xf]  ;;  %v9313_v52 = vld [vmem:[#allocation11 + $0x4] sm:$0xf] }
 0x30f   :  { %v8535_v58 = vor.u32 %v9343_v33, %v8532_v34  ;;  %v9317_v51 = vld [vmem:[#allocation11 + $0x24] sm:$0xf]  ;;  %v8594_v33 = vld [vmem:[#allocation11 + $0x170] sm:$0xf]  ;;  %v9360_v34 = vld [vmem:[#allocation11 + $0x174] sm:$0xf0] }
 0x310   :  { %5657 = vmatpush.bf16.msra.mxu3 %v8443_v60  ;;  %v8471_v60 = vor.u32 %v9327_v17, %v8468_v1  ;;  %v9928_v17 = vld [vmem:[#allocation10] sm:$0xf] }
 0x311   :  { %5670 = vmatpush.bf16.msra.mxu1 %v8507_v31  ;;  %5232 = vmatpush.bf16.msrb.mxu2 %v8183_v56  ;;  %v3550_v1 = vperm.slane %v9928_v17, 2 }
 0x312   :  { %5192 = vmatpush.bf16.msra.mxu0 %v7815_v61  ;;  %v8527_v61 = vor.u32 %v9341_v43, %v8524_v45  ;;  %v8484_v43 = vld [vmem:[#allocation11 + $0x98] sm:$0xf0] }
 0x314   :  { %5658 = vmatpush.bf16.msra.mxu3 %v8435_v27  ;;  %v8483_v27 = vor.u32 %v9332_v32, %v8482_v16  ;;  %v8420_v16 = vld [vmem:[#allocation11 + $0x18] sm:$0xf0] }
 0x315   :  { %5671 = vmatpush.bf16.msra.mxu1 %v8499_v62  ;;  %5233 = vmatpush.bf16.msrb.mxu2 %v8167_v63  ;;  %v8340_v63 = vld [vmem:[#allocation8 + $0x778] sm:$0xf0]  ;;  %v8516_v62 = vld [vmem:[#allocation11 + $0xd8] sm:$0xf0] }
 0x316   :  { %5193 = vmatpush.bf16.msra.mxu0 %v7799_v48  ;;  %v4936_v21 = vpop.f32.mrf.mxu0  ;;  %v8519_v48 = vor.u32 %v9339_v9, %v8516_v62  ;;  %v8343_v2 = vor.u32 %v9294_v55, %v8340_v63  ;;  %v9358_v9 = vld [vmem:[#allocation11 + $0x164] sm:$0xf0] }
 0x318   :  { %5659 = vmatpush.bf16.msra.mxu3 %v8427_v15  ;;  %5234 = vmatmul.bf16.vlgmr.msrb.gmra.mxu2 %v9874_v6  ;;  %v8372_v6 = vld [vmem:[#allocation8 + $0x7b8] sm:$0xf0]  ;;  %v8444_v15 = vld [vmem:[#allocation11 + $0x48] sm:$0xf0] }
 0x319   :  { %5672 = vmatpush.bf16.msra.mxu1 %v8491_v4  ;;  %v8375_v56 = vor.u32 %v9302_v28, %v8372_v6  ;;  %v8447_v31 = vor.u32 %v9321_v57, %v8444_v15  ;;  %v9333_v6 = vld [vmem:[#allocation11 + $0xa4] sm:$0xf] }
 0x31a   :  { %5194 = vmatpush.bf16.msra.mxu0 %v7783_v14 }
 0x31c   :  { %5660 = vmatpush.bf16.msra.mxu3 %v8419_v53  ;;  %v8359_v53 = vor.u32 %v9298_v40, %v8356_v35  ;;  %v8292_v35 = vld [vmem:[#allocation8 + $0x718] sm:$0xf0] }
 0x31d   :  { %5673 = vmatpush.bf16.msra.mxu1 %v8483_v27  ;;  %5195 = vmatmul.bf16.vlgmr.msra.gmra.mxu0 %v9831_v13  ;;  %v4924_v13 = vadd.f32 %v9918_v18, %v9903_v24  ;;  %v8428_v24 = vld [vmem:[#allocation11 + $0x28] sm:$0xf0]  ;;  %v9931_v18 = vpop.f32.mrf.mxu2 }
 0x31e   :  { %5239 = vmatpush.bf16.msrb.mxu0 %v8407_v36  ;;  %v8431_v5 = vor.u32 %v9317_v51, %v8428_v24  ;;  %v9315_v36 = vld [vmem:[#allocation11 + $0x14] sm:$0xf]  ;;  %v4938_v25 = vpop.f32.mrf.mxu0 }
 0x31f   :  { %v4937_v59 = vadd.f32 %v4936_v21, %v4924_v13  ;;  %v8423_v28 = vor.u32 %v9315_v36, %v8420_v16  ;;  %v4976_v13 = vadd.f32 %v9922_v54, %v9910_v22  ;;  %v8476_v21 = vld [vmem:[#allocation11 + $0x88] sm:$0xf0]  ;;  %v8578_v54 = vld [vmem:[#allocation11 + $0x150] sm:$0xf] }
 0x320   :  { %5661 = vmatpush.bf16.msra.mxu3 %v8411_v3  ;;  %v9290_v3 = vld [vmem:[#allocation8 + $0x74c] sm:$0xf]  ;;  %v8546_v25 = vld [vmem:[#allocation11 + $0x110] sm:$0xf] }
 0x321   :  { %5674 = vmatpush.bf16.msra.mxu1 %v8475_v10  ;;  %v5066_v50 = vpop.f32.mrf.mxu1  ;;  %v5252_v23 = vmul.f32 0.2, %v4937_v59  ;;  %v8327_v26 = vor.u32 %v9290_v3, %v8324_v44  ;;  %v8412_v10 = vld [vmem:[#allocation11 + $0x8] sm:$0xf0]  ;;  %v9354_v3 = vld [vmem:[#allocation11 + $0x144] sm:$0xf0] }
 0x322   :  { %5240 = vmatpush.bf16.msrb.mxu0 %v8391_v46  ;;  %v8500_v46 = vld [vmem:[#allocation11 + $0xb8] sm:$0xf0]  ;;  %v8415_v45 = vor.u32 %v9313_v52, %v8412_v10  ;;  %v8588_v10 = vld [vmem:[#allocation11 + $0x168] sm:$0xf0] }
 0x323   :  { %v5256_v7 = vmax.f32 %v4937_v59, %v5252_v23  ;;  %v8503_v8 = vor.u32 %v9335_v12, %v8500_v46  ;;  %v8538_v12 = vld [vmem:[#allocation11 + $0x100] sm:$0xf]  ;;  %v9346_v46 = vld [vmem:[#allocation11 + $0x104] sm:$0xf0]  ;;  %v8596_v52 = vld [vmem:[#allocation11 + $0x178] sm:$0xf0] }
 0x324   :  { %5706 = vmatpush.bf16.msrb.mxu3 %v8471_v60  ;;  %v8508_v60 = vld [vmem:[#allocation11 + $0xc8] sm:$0xf0] }
 0x325   :  { %5719 = vmatpush.bf16.msrb.mxu1 %v8535_v58  ;;  %v8511_v42 = vor.u32 %v9337_v41, %v8508_v60  ;;  %v5260_v14 = vpack.c.bf16 %v5256_v7, %v5256_v7  ;;  %v5029_v57 = vpop.f32.mrf.mxu2  ;;  %v9282_v58 = vld [vmem:[#allocation8 + $0x70c] sm:$0xf]  ;;  %v8562_v60 = vld [vmem:[#allocation11 + $0x130] sm:$0xf] }
 0x326   :  { %5241 = vmatpush.bf16.msrb.mxu0 %v8375_v56  ;;  %v5053_v39 = vpop.f32.mrf.mxu3  ;;  %v8595_v56 = vor.u32 %v9360_v34, %v8594_v33  ;;  %v4988_v47 = vpop.f32.mrf.mxu0  ;;  %v8295_v29 = vor.u32 %v9282_v58, %v8292_v35  ;;  %v9355_v57 = vld [vmem:[#allocation11 + $0x154] sm:$0xf]  ;;  %v9353_v35 = vld [vmem:[#allocation11 + $0x144] sm:$0xf] }
 0x327   :  { %v5054_v4 = vadd.f32 %v5053_v39, %v3550_v1  ;;  %5662 = vmatmul.bf16.vlgmr.msra.gmra.mxu3 %v5260_v14 }
 0x328   :  { %5707 = vmatpush.bf16.msrb.mxu3 %v8463_v11  ;;  %v9286_v11 = vld [vmem:[#allocation8 + $0x72c] sm:$0xf]  ;;  %5680 = vmatpush.bf16.msra.mxu2 %v8595_v56 }
 0x329   :  { %5720 = vmatpush.bf16.msrb.mxu1 %v8527_v61  ;;  %v5068_v32 = vpop.f32.mrf.mxu1  ;;  %v9933_v27 = vadd.f32 %v5066_v50, %v5054_v4  ;;  %v8311_v15 = vor.u32 %v9286_v11, %v8308_v19  ;;  %v9329_v50 = vld [vmem:[#allocation11 + $0x84] sm:$0xf]  ;;  %v9352_v4 = vld [vmem:[#allocation11 + $0x134] sm:$0xf0] }
 0x32a   :  { %5242 = vmatpush.bf16.msrb.mxu0 %v8359_v53  ;;  %v4989_v53 = vadd.f32 %v4988_v47, %v4976_v13  ;;  %v8479_v55 = vor.u32 %v9329_v50, %v8476_v21  ;;  %v9351_v13 = vld [vmem:[#allocation11 + $0x134] sm:$0xf]  ;;  %v8564_v50 = vld [vmem:[#allocation11 + $0x138] sm:$0xf0] }
 0x32b   :  { %v8567_v21 = vor.u32 %v9351_v13, %v8564_v50  ;;  %v8644_v13 = vld [vmem:[#allocation11 + $0x1d8] sm:$0xf0] }
 0x32c   :  { %5708 = vmatpush.bf16.msrb.mxu3 %v8455_v30  ;;  %v8492_v30 = vld [vmem:[#allocation11 + $0xa8] sm:$0xf0]  ;;  %v5002_v59 = vadd.f32 %v9920_v37, %v4989_v53  ;;  %v9349_v53 = vld [vmem:[#allocation11 + $0x124] sm:$0xf] }
 0x32d   :  { %5721 = vmatpush.bf16.msrb.mxu1 %v8519_v48  ;;  %v8495_v38 = vor.u32 %v9333_v6, %v8492_v30  ;;  %v9356_v48 = vld [vmem:[#allocation11 + $0x154] sm:$0xf0]  ;;  %v9357_v30 = vld [vmem:[#allocation11 + $0x164] sm:$0xf] }
 0x32e   :  { %5243 = vmatpush.bf16.msrb.mxu0 %v8343_v2  ;;  %v5055_v40 = vpop.f32.mrf.mxu3  ;;  %v4990_v63 = vpop.f32.mrf.mxu0  ;;  %v5015_v1 = vadd.f32 %v9916_v20, %v5002_v59  ;;  %v8579_v23 = vor.u32 %v9356_v48, %v8578_v54  ;;  %v8570_v2 = vld [vmem:[#allocation11 + $0x140] sm:$0xf]  ;;  %v8591_v33 = vor.u32 %v9357_v30, %v8588_v10 }
 0x32f   :  { %v8571_v39 = vor.u32 %v9354_v3, %v8570_v2  ;;  %v9347_v63 = vld [vmem:[#allocation11 + $0x114] sm:$0xf] }
 0x330   :  { %5709 = vmatpush.bf16.msrb.mxu3 %v8447_v31  ;;  %v9331_v31 = vld [vmem:[#allocation11 + $0x94] sm:$0xf]  ;;  %v5028_v51 = vadd.f32 %v9931_v18, %v5015_v1  ;;  %v9350_v18 = vld [vmem:[#allocation11 + $0x124] sm:$0xf0]  ;;  %v9376_v1 = vld [vmem:[#allocation11 + $0x1f4] sm:$0xf0] }
 0x331   :  { %5722 = vmatpush.bf16.msrb.mxu1 %v8511_v42  ;;  %v8487_v61 = vor.u32 %v9331_v31, %v8484_v43  ;;  %v8572_v31 = vld [vmem:[#allocation11 + $0x148] sm:$0xf0] }
 0x332   :  { %5244 = vmatpush.bf16.msrb.mxu0 %v8327_v26  ;;  %v9348_v26 = vld [vmem:[#allocation11 + $0x114] sm:$0xf0] }
 0x333   :  { %v8547_v19 = vor.u32 %v9348_v26, %v8546_v25 }
 0x334   :  { %5710 = vmatpush.bf16.msrb.mxu3 %v8439_v0  ;;  %v8586_v0 = vld [vmem:[#allocation11 + $0x160] sm:$0xf] }
 0x335   :  { %5723 = vmatpush.bf16.msrb.mxu1 %v8503_v8  ;;  %v8587_v62 = vor.u32 %v9358_v9, %v8586_v0  ;;  %v8539_v8 = vor.u32 %v9346_v46, %v8538_v12  ;;  %v8548_v9 = vld [vmem:[#allocation11 + $0x118] sm:$0xf0]  ;;  %v9368_v12 = vld [vmem:[#allocation11 + $0x1b4] sm:$0xf0]  ;;  %v8618_v46 = vld [vmem:[#allocation11 + $0x1a0] sm:$0xf] }
 0x336   :  { %5245 = vmatpush.bf16.msrb.mxu0 %v8311_v15  ;;  %v8580_v15 = vld [vmem:[#allocation11 + $0x158] sm:$0xf0] }
 0x337   :  { %5681 = vmatpush.bf16.msra.mxu2 %v8587_v62  ;;  %v8583_v58 = vor.u32 %v9355_v57, %v8580_v15  ;;  %v8658_v62 = vld [vmem:[#allocation11 + $0x1f0] sm:$0xf] }
 0x338   :  { %5711 = vmatpush.bf16.msrb.mxu3 %v8431_v5  ;;  %v5040_v24 = vpop.f32.mrf.mxu0  ;;  %v8563_v5 = vor.u32 %v9352_v4, %v8562_v60  ;;  %v8659_v48 = vor.u32 %v9376_v1, %v8658_v62  ;;  %v9365_v62 = vld [vmem:[#allocation11 + $0x1a4] sm:$0xf]  ;;  %v8620_v1 = vld [vmem:[#allocation11 + $0x1a8] sm:$0xf0] }
 0x339   :  { %5724 = vmatpush.bf16.msrb.mxu1 %v8495_v38  ;;  %v5041_v37 = vadd.f32 %v5040_v24, %v5028_v51  ;;  %v3551_v38 = vperm.slane %v9928_v17, 3  ;;  %v9345_v51 = vld [vmem:[#allocation11 + $0x104] sm:$0xf]  ;;  %v8540_v24 = vld [vmem:[#allocation11 + $0x108] sm:$0xf0] }
 0x33a   :  { %5246 = vmatpush.bf16.msrb.mxu0 %v8295_v29  ;;  %v8543_v3 = vor.u32 %v9345_v51, %v8540_v24  ;;  %v9363_v51 = vld [vmem:[#allocation11 + $0x194] sm:$0xf]  ;;  %v8612_v24 = vld [vmem:[#allocation11 + $0x198] sm:$0xf0] }
 0x33b   :  { %5682 = vmatpush.bf16.msra.mxu2 %v8579_v23  ;;  %v5253_v44 = vmul.f32 0.2, %v5041_v37  ;;  %v8551_v23 = vor.u32 %v9347_v63, %v8548_v9  ;;  %v9367_v63 = vld [vmem:[#allocation11 + $0x1b4] sm:$0xf] }
 0x33c   :  { %5712 = vmatpush.bf16.msrb.mxu3 %v8423_v28  ;;  %v9359_v28 = vld [vmem:[#allocation11 + $0x174] sm:$0xf] }
 0x33d   :  { %5725 = vmatpush.bf16.msrb.mxu1 %v8487_v61  ;;  %5247 = vmatmul.bf16.vlgmr.msrb.gmra.mxu0 %v9883_v49  ;;  %v9943_v49 = vpop.f32.mrf.mxu2  ;;  %v5257_v20 = vmax.f32 %v5041_v37, %v5253_v44  ;;  %v8599_v6 = vor.u32 %v9359_v28, %v8596_v52  ;;  %v8650_v44 = vld [vmem:[#allocation11 + $0x1e0] sm:$0xf]  ;;  %v9366_v52 = vld [vmem:[#allocation11 + $0x1a4] sm:$0xf0] }
 0x33e   :  { %5693 = vmatpush.bf16.msra.mxu0 %v8659_v48  ;;  %v5080_v37 = vadd.f32 %v9943_v49, %v9933_v27  ;;  %v8619_v10 = vor.u32 %v9366_v52, %v8618_v46 }
 0x33f   :  { %5683 = vmatpush.bf16.msra.mxu2 %v8571_v39  ;;  %v5261_v42 = vpack.c.bf16 %v5257_v20, %v5257_v20  ;;  %v9374_v20 = vld [vmem:[#allocation11 + $0x1e4] sm:$0xf0] }
 0x340   :  { %5713 = vmatpush.bf16.msrb.mxu3 %v8415_v45  ;;  %v5042_v36 = vpop.f32.mrf.mxu0  ;;  %v8575_v45 = vor.u32 %v9353_v35, %v8572_v31  ;;  %v8660_v35 = vld [vmem:[#allocation11 + $0x1f8] sm:$0xf0] }
 0x341   :  { %5726 = vmatpush.bf16.msrb.mxu1 %v8479_v55  ;;  %v9940_v22 = vpop.f32.mrf.mxu1  ;;  %v8556_v55 = vld [vmem:[#allocation11 + $0x128] sm:$0xf0] }
 0x342   :  { %5675 = vmatmul.bf16.vlgmr.msra.gmra.mxu1 %v5261_v42  ;;  %v8559_v17 = vor.u32 %v9349_v53, %v8556_v55  ;;  %v9369_v55 = vld [vmem:[#allocation11 + $0x1c4] sm:$0xf] }
 0x343   :  { %5714 = vmatmul.bf16.vlgmr.msrb.gmra.mxu3 %v5260_v14  ;;  %v8554_v14 = vld [vmem:[#allocation11 + $0x120] sm:$0xf]  ;;  %5684 = vmatpush.bf16.msra.mxu2 %v8563_v5  ;;  %v8642_v5 = vld [vmem:[#allocation11 + $0x1d0] sm:$0xf] }
 0x344   :  { %v8555_v16 = vor.u32 %v9350_v18, %v8554_v14 }
 0x345   :  { %v5081_v32 = vpop.f32.mrf.mxu2 }
 0x346   :  { %v9945_v7 = vpop.f32.mrf.mxu3 }
 0x347   :  { %5685 = vmatpush.bf16.msra.mxu2 %v8555_v16  ;;  %v8634_v16 = vld [vmem:[#allocation11 + $0x1c0] sm:$0xf] }
 0x349   :  { %v5120_v41 = vpop.f32.mrf.mxu1 }
 0x34a   :  { %v8651_v41 = vor.u32 %v9374_v20, %v8650_v44  ;;  %v8604_v44 = vld [vmem:[#allocation11 + $0x188] sm:$0xf0] }
 0x34b   :  { %5686 = vmatpush.bf16.msra.mxu2 %v8547_v19  ;;  %v8626_v19 = vld [vmem:[#allocation11 + $0x1b0] sm:$0xf] }
 0x34c   :  { %5694 = vmatpush.bf16.msra.mxu0 %v8651_v41  ;;  %v8627_v28 = vor.u32 %v9368_v12, %v8626_v19 }
 0x34e   :  { %v5107_v11 = vpop.f32.mrf.mxu3 }
 0x34f   :  { %5687 = vmatpush.bf16.msra.mxu2 %v8539_v8 }
 0x352   :  { %5727 = vmatmul.bf16.vlgmr.msrb.gmra.mxu1 %v5261_v42  ;;  %v9372_v42 = vld [vmem:[#allocation11 + $0x1d4] sm:$0xf0] }
 0x353   :  { %5732 = vmatpush.bf16.msrb.mxu2 %v8599_v6  ;;  %v8643_v14 = vor.u32 %v9372_v42, %v8642_v5 }
 0x355   :  { %5695 = vmatpush.bf16.msra.mxu0 %v8643_v14 }
 0x357   :  { %5733 = vmatpush.bf16.msrb.mxu2 %v8591_v33  ;;  %v8610_v33 = vld [vmem:[#allocation11 + $0x190] sm:$0xf] }
 0x359   :  { %v5092_v56 = vpop.f32.mrf.mxu0 }
 0x35a   :  { %v5131_v40 = vpop.f32.mrf.mxu2  ;;  %v5093_v2 = vadd.f32 %v5092_v56, %v5080_v37 }
 0x35b   :  { %5734 = vmatpush.bf16.msrb.mxu2 %v8583_v58  ;;  %v8602_v58 = vld [vmem:[#allocation11 + $0x180] sm:$0xf] }
 0x35c   :  { %v5106_v39 = vadd.f32 %v9945_v7, %v5093_v2  ;;  %v9370_v7 = vld [vmem:[#allocation11 + $0x1c4] sm:$0xf0]  ;;  %v8615_v2 = vor.u32 %v9363_v51, %v8612_v24 }
 0x35d   :  { %v8635_v25 = vor.u32 %v9370_v7, %v8634_v16 }
 0x35e   :  { %v5119_v60 = vadd.f32 %v9940_v22, %v5106_v39  ;;  %v9361_v39 = vld [vmem:[#allocation11 + $0x184] sm:$0xf] }
 0x35f   :  { %5735 = vmatpush.bf16.msrb.mxu2 %v8575_v45  ;;  %5696 = vmatpush.bf16.msra.mxu0 %v8635_v25  ;;  %v8652_v45 = vld [vmem:[#allocation11 + $0x1e8] sm:$0xf0]  ;;  %v8607_v20 = vor.u32 %v9361_v39, %v8604_v44  ;;  %v5328_v25 = vld [vmem:[#allocation13] sm:$0x3] }
 0x360   :  { %v5132_v18 = vadd.f32 %v5131_v40, %v5119_v60  ;;  %v9375_v40 = vld [vmem:[#allocation11 + $0x1f4] sm:$0xf]  ;;  %v5331_v46 = vperm.slane %v5328_v25, 1 }
 0x361   :  { %v5170_v34 = vpop.f32.mrf.mxu1  ;;  %v5094_v59 = vpop.f32.mrf.mxu0  ;;  %v8663_v31 = vor.u32 %v9375_v40, %v8660_v35  ;;  %v5762_v35 = vld [vmem:[#allocation14] sm:$0x3] }
 0x362   :  { %v5133_v0 = vpop.f32.mrf.mxu2  ;;  %v8636_v59 = vld [vmem:[#allocation11 + $0x1c8] sm:$0xf0] }
 0x363   :  { %5736 = vmatpush.bf16.msrb.mxu2 %v8567_v21  ;;  %5697 = vmatpush.bf16.msra.mxu0 %v8627_v28  ;;  %v8628_v0 = vld [vmem:[#allocation11 + $0x1b8] sm:$0xf0] }
 0x364   :  { %v8631_v9 = vor.u32 %v9367_v63, %v8628_v0 }
 0x366   :  { %v5157_v43 = vpop.f32.mrf.mxu3 }
 0x367   :  { %v5158_v47 = vadd.f32 %v5157_v43, %v3551_v38  ;;  %5737 = vmatpush.bf16.msrb.mxu2 %v8559_v17  ;;  %5698 = vmatpush.bf16.msra.mxu0 %v8619_v10  ;;  %v9362_v38 = vld [vmem:[#allocation11 + $0x184] sm:$0xf0]  ;;  %v9373_v43 = vld [vmem:[#allocation11 + $0x1e4] sm:$0xf]  ;;  %v8639_v17 = vor.u32 %v9369_v55, %v8636_v59  ;;  %v9391_v59 = vld [vmem:[#allocation2] ss:$0 sm:$0xff] }
 0x368   :  { %v8603_v56 = vor.u32 %v9362_v38, %v8602_v58 }
 0x369   :  { %v5172_v29 = vpop.f32.mrf.mxu1  ;;  %v9948_v61 = vadd.f32 %v5170_v34, %v5158_v47  ;;  %v9364_v34 = vld [vmem:[#allocation11 + $0x194] sm:$0xf0]  ;;  %v8655_v47 = vor.u32 %v9373_v43, %v8652_v45 }
 0x36a   :  { %v8611_v15 = vor.u32 %v9364_v34, %v8610_v33  ;;  %v9371_v29 = vld [vmem:[#allocation11 + $0x1d4] sm:$0xf] }
 0x36b   :  { %5738 = vmatpush.bf16.msrb.mxu2 %v8551_v23  ;;  %v8647_v50 = vor.u32 %v9371_v29, %v8644_v13  ;;  %v8623_v23 = vor.u32 %v9365_v62, %v8620_v1  ;;  %v5765_v29 = vperm.slane %v5762_v35, 1 }
 0x36c   :  { %5699 = vmatpush.bf16.msra.mxu0 %v8611_v15 }
 0x36e   :  { %v5159_v54 = vpop.f32.mrf.mxu3 }
 0x36f   :  { %5739 = vmatpush.bf16.msrb.mxu2 %v8543_v3 }
 0x370   :  { %5700 = vmatpush.bf16.msra.mxu0 %v8603_v56 }
 0x374   :  { %5745 = vmatpush.bf16.msrb.mxu0 %v8663_v31 }
 0x378   :  { %5746 = vmatpush.bf16.msrb.mxu0 %v8655_v47  ;;  %v5764_v47 = vperm.slane %v5762_v35, 0 }
 0x37b   :  { %v9956_v27 = vpop.f32.mrf.mxu2 }
 0x37c   :  { %v5144_v36 = vpop.f32.mrf.mxu0  ;;  %5747 = vmatpush.bf16.msrb.mxu0 %v8647_v50  ;;  %v5184_v37 = vadd.f32 %v9956_v27, %v9948_v61 }
 0x37d   :  { %v5145_v49 = vadd.f32 %v5144_v36, %v5132_v18 }
 0x37f   :  { %v5254_v26 = vmul.f32 0.2, %v5145_v49 }
 0x380   :  { %5748 = vmatpush.bf16.msrb.mxu0 %v8639_v17 }
 0x381   :  { %v9954_v4 = vpop.f32.mrf.mxu1  ;;  %v5258_v22 = vmax.f32 %v5145_v49, %v5254_v26  ;;  %v5330_v26 = vperm.slane %v5328_v25, 0 }
 0x383   :  { %v5262_v8 = vpack.c.bf16 %v5258_v22, %v5258_v22  ;;  %v5185_v30 = vpop.f32.mrf.mxu2 }
 0x384   :  { %v5146_v6 = vpop.f32.mrf.mxu0  ;;  %5749 = vmatpush.bf16.msrb.mxu0 %v8631_v9 }
 0x385   :  { %5688 = vmatmul.bf16.vlgmr.msra.gmra.mxu2 %v5262_v8 }
 0x386   :  { %v9958_v32 = vpop.f32.mrf.mxu3 }
 0x388   :  { %5750 = vmatpush.bf16.msrb.mxu0 %v8623_v23 }
 0x389   :  { %v5224_v11 = vpop.f32.mrf.mxu1 }
 0x38c   :  { %5751 = vmatpush.bf16.msrb.mxu0 %v8615_v2 }
 0x38e   :  { %v5211_v57 = vpop.f32.mrf.mxu3 }
 0x390   :  { %5752 = vmatpush.bf16.msrb.mxu0 %v8607_v20 }
 0x395   :  { %5740 = vmatmul.bf16.vlgmr.msrb.gmra.mxu2 %v5262_v8 }
 0x39a   :  { %v5196_v21 = vpop.f32.mrf.mxu0 }
 0x39b   :  { %v5235_v53 = vpop.f32.mrf.mxu2  ;;  %v5197_v3 = vadd.f32 %v5196_v21, %v5184_v37 }
 0x39d   :  { %v5210_v41 = vadd.f32 %v9958_v32, %v5197_v3 }
 0x39f   :  { %v5223_v5 = vadd.f32 %v9954_v4, %v5210_v41 }
 0x3a1   :  { %v5236_v42 = vadd.f32 %v5235_v53, %v5223_v5 }
 0x3a2   :  { %v5198_v54 = vpop.f32.mrf.mxu0 }
 0x3a3   :  { %v5237_v48 = vpop.f32.mrf.mxu2 }
 0x3aa   :  { %v5663_v60 = vpop.f32.mrf.mxu3 }
 0x3ab   :  { %v5664_v11 = vadd.f32 %v5663_v60, %v5330_v26 }
 0x3b2   :  { %v5665_v18 = vpop.f32.mrf.mxu3 }
 0x3ba   :  { %v5248_v14 = vpop.f32.mrf.mxu0 }
 0x3bb   :  { %v5249_v36 = vadd.f32 %v5248_v14, %v5236_v42 }
 0x3bd   :  { %v5255_v49 = vmul.f32 0.2, %v5249_v36 }
 0x3bf   :  { %v5259_v16 = vmax.f32 %v5249_v36, %v5255_v49  ;;  %v5676_v19 = vpop.f32.mrf.mxu1 }
 0x3c0   :  { %v5677_v32 = vadd.f32 %v5676_v19, %v5664_v11 }
 0x3c1   :  { %v5263_v7 = vpack.c.bf16 %v5259_v16, %v5259_v16 }
 0x3c2   :  { %v5250_v61 = vpop.f32.mrf.mxu0 }
 0x3c3   :  { %5701 = vmatmul.bf16.vlgmr.msra.gmra.mxu0 %v5263_v7 }
 0x3c6   :  { %v5715_v27 = vpop.f32.mrf.mxu3 }
 0x3c7   :  { %v5678_v12 = vpop.f32.mrf.mxu1  ;;  %v5716_v4 = vadd.f32 %v5715_v27, %v5331_v46 }
 0x3ce   :  { %v5717_v22 = vpop.f32.mrf.mxu3 }
 0x3cf   :  { %v5728_v28 = vpop.f32.mrf.mxu1 }
 0x3d0   :  { %v5729_v52 = vadd.f32 %v5728_v28, %v5716_v4 }
 0x3d3   :  { %5753 = vmatmul.bf16.vlgmr.msrb.gmra.mxu0 %v5263_v7 }
 0x3d7   :  { %v5730_v8 = vpop.f32.mrf.mxu1 }
 0x408   :  { %v5689_v6 = vpop.f32.mrf.mxu2 }
 0x409   :  { %v5690_v30 = vadd.f32 %v5689_v6, %v5677_v32 }
 0x410   :  { %v5691_v10 = vpop.f32.mrf.mxu2 }
 0x418   :  { %v5741_v33 = vpop.f32.mrf.mxu2 }
 0x419   :  { %v5742_v38 = vadd.f32 %v5741_v33, %v5729_v52 }
 0x420   :  { %v5743_v34 = vpop.f32.mrf.mxu2 }
 0x440   :  { %v5702_v57 = vpop.f32.mrf.mxu0 }
 0x441   :  { %v5703_v58 = vadd.f32 %v5702_v57, %v5690_v30 }
 0x443   :  { %v5758_v56 = vmul.f32 0.2, %v5703_v58 }
 0x445   :  { %v5760_v43 = vmax.f32 %v5703_v58, %v5758_v56 }
 0x447   :  { %v5768_v50 = vmul.f32 %v5764_v47, %v5760_v43 }
 0x448   :  { %v5704_v15 = vpop.f32.mrf.mxu0 }
 0x450   :  { %v5754_v40 = vpop.f32.mrf.mxu0 }
 0x451   :  { %v5755_v31 = vadd.f32 %v5754_v40, %v5742_v38 }
 0x453   :  { %v5759_v45 = vmul.f32 0.2, %v5755_v31 }
 0x455   :  { %v5761_v13 = vmax.f32 %v5755_v31, %v5759_v45 }
 0x457   :  { %v5769_v21 = vmul.f32 %v5765_v29, %v5761_v13 }
 0x458   :  { %v5756_v53 = vpop.f32.mrf.mxu0 }
 0x459   :  { %v5770_v55 = vadd.f32 %v5769_v21, %v5768_v50 }
 0x45b   :  { %5771 = vadd.xlane.f32.xlu0 %v5770_v55 }
 0x4ce   :  { %v5772_v17 = vpop.xlane.xlu0 %5771 }
 0x4cf   :  { %v5777_v63 = vadd.f32 %v9391_v59, %v5772_v17 }
 0x4d1   :  { %v8664_v0 = vmul.f32 -1.442695, %v5777_v63 }
 0x4d3   :  { %9392 = vpow2.f32 %v8664_v0 }
 0x4d9   :  { %v9393_v9 = vpop.eup %9392 }
 0x4da   :  { %v5781_v62 = vadd.f32 1.0, %v9393_v9 }
 0x4dc   :  { %9394 = vrcp.f32 %v5781_v62  ;;  %v5793_v23 = vand.u32 2147483648, %v5781_v62  ;;  %v5791_v24 = vand.u32 2147483647, %v5781_v62  ;;  %vm5787_vm2 = vweird.f32 %v5781_v62 }
 0x4de   :  { %v5794_v2 = vor.u32 1.1754944e-38, %v5793_v23  ;;  %vm5792_vm5 = vcmp.eq.f32.partialorder %v5791_v24, 8.507059e+37 }
 0x4e2   :  { %v9395_v1 = vpop.eup %9394 }
 0x4e3   :  { %v5783_v54 = vmul.f32 %v9395_v1, %v5781_v62  ;;  %vm5788_vm1 = vweird.f32 %v9395_v1 }
 0x4e4   :  { %vm5789_vm3 = vmor %vm5787_vm2, %vm5788_vm1 }
 0x4e5   :  { %v5784_v48 = vsub.f32 1.0, %v5783_v54 }
 0x4e7   :  { %v5785_v51 = vmul.f32 %v9395_v1, %v5784_v48 }
 0x4e9   :  { %v5786_v37 = vadd.f32 %v9395_v1, %v5785_v51 }
 0x4eb   :  { %v5790_v3 = vsel %vm5789_vm3, %v9395_v1, %v5786_v37 }
 0x4ec   :  { %v5795_v39 = vsel %vm5792_vm5, %v5794_v2, %v5790_v3 }
 0x4ed   :  { %5798 = vst.msk [vmem:[%s9976_s9] sm:$0xff] %vm5797_vm4, %v5795_v39 }
 0x4ee   :  { %5803 = vsyncpa [#allocation4], 1 }
 0x4ef   :  { %5804 = vsyncpa [#allocation6], 1 }
 0x4f0   :  { %5805 = vsyncpa [#allocation9], 1 }
 0x4f1   :  { %5806 = vsyncpa [#allocation12], 1 }
 0x4f2   :  { %5807 = vsyncpa [#allocation15], 1 }

</bundles_post_ra>
